<compile_context>
chip_gen: v5e
topology: v5e:2x2
jax: 0.10.0
libtpu: 0.0.40
codegen_flags: <defaults>
</compile_context>

<pallas_src>
from functools import partial

import jax
import jax.numpy as jnp
from jax.experimental import pallas as pl
from jax.experimental.pallas import tpu as pltpu

EPS = 1e-5  # nn.BatchNorm2d default eps


def conv_block_kernel(x_ref, cmask_ref, spool_ref,
                      w1_ref, s1_ref, b1_ref,
                      w2_ref, s2_ref, b2_ref,
                      w3_ref, s3_ref, b3_ref,
                      o_ref,
                      h_ref, cols1_ref, cols2_ref,
                      *, H, W):
    Wp = W + 2                      # padded row width (1-pixel halo each side)
    Lcore = (H - 1) * Wp + W        # contiguous flat range covering all outputs
    halo = Wp + 1                   # offset of core (padded pixel (1,1))

    def build_im2col(cols_ref, read_tap, C):
        # 9 taps = static-offset slices of the halo-padded flat buffer, packed
        # lane-adjacent into one (Lcore, 9*C) MXU operand (single big-K matmul).
        k = 0
        for ky in range(3):
            for kx in range(3):
                cols_ref[:, pl.ds(k * C, C)] = read_tap(ky * Wp + kx)
                k += 1
        return cols_ref[...].astype(jnp.bfloat16)

    cin = x_ref.shape[-1]

    # ---- conv1 3x3(pad=1) + folded BN + ReLU : one K=9*Cin matmul ----
    cols1 = build_im2col(cols1_ref, lambda off: x_ref[pl.ds(off, Lcore), :], cin)
    z1 = jnp.dot(cols1, w1_ref[...], preferred_element_type=jnp.float32)
    h1 = jnp.maximum(z1 * s1_ref[...] + b1_ref[...], 0.0)

    # Re-zero the wrap-around (halo-column) rows inside the core once, zero the
    # outer halo rows, and park h1 in the padded scratch so conv2's taps see
    # proper zero padding.  (Replaces the old 9 per-tap masks.)
    h1 = h1 * cmask_ref[...]
    zrow = jnp.zeros((halo, h_ref.shape[1]), h_ref.dtype)
    h_ref[pl.ds(0, halo), :] = zrow
    h_ref[pl.ds(halo + Lcore, halo), :] = zrow
    h_ref[pl.ds(halo, Lcore), :] = h1

    # ---- conv2 3x3(pad=1) + folded BN + ReLU : one K=9*Cout matmul ----
    cols2 = build_im2col(cols2_ref, lambda off: h_ref[pl.ds(off, Lcore), :],
                         h_ref.shape[1])
    z2 = jnp.dot(cols2, w2_ref[...], preferred_element_type=jnp.float32)
    h2 = jnp.maximum(z2 * s2_ref[...] + b2_ref[...], 0.0)

    # ---- conv3 1x1 + folded BN + ReLU ----
    z3 = jnp.dot(h2.astype(jnp.bfloat16), w3_ref[...],
                 preferred_element_type=jnp.float32)
    h3 = jnp.maximum(z3 * s3_ref[...] + b3_ref[...], 0.0)

    # Dropout2d(p=0.3) is identity in inference mode.
    # TODO(synk): training-mode channel dropout (pltpu.prng_*) not implemented.

    # ---- MaxPool2d(2), fully in-kernel ----
    # 2x2 window max via two shifted pairwise maxima (still padded-flat layout),
    # then stride-2 anchor selection as an exact 0/1 matmul -> pooled tile only.
    hx = jnp.maximum(h3[:-1, :], h3[1:, :])        # + neighbor in x
    hy = jnp.maximum(hx[:-Wp, :], hx[Wp:, :])      # + neighbor in y
    pooled = jnp.dot(spool_ref[...], hy, preferred_element_type=jnp.float32)
    o_ref[...] = pooled.astype(o_ref.dtype)


def conv_block_forward(x_nchw, params):
    B, Cin, H, W = x_nchw.shape
    Cout = params["w1"].shape[0]
    # MaxPool2d(2) on odd H/W would silently drop the last row/col; this kernel
    # assumes (and the original module effectively requires) even spatial dims.
    assert H % 2 == 0 and W % 2 == 0, "even H, W required"

    Hp, Wp = H + 2, W + 2
    HpWp = Hp * Wp
    Lcore = (H - 1) * Wp + W
    Lhy = Lcore - 1 - Wp
    Hh, Wh = H // 2, W // 2

    # NCHW -> NHWC, zero-pad 1-pixel halo, flatten rows (halo cols kept in-row).
    x = jnp.transpose(x_nchw, (0, 2, 3, 1))
    x = jnp.pad(x, ((0, 0), (1, 1), (1, 1), (0, 0)))
    x = x.reshape(B, HpWp, Cin).astype(jnp.float32)

    # Fold conv bias + inference BatchNorm into per-channel scale / bias (f32).
    def fold(bconv, bn):
        gamma, beta, mean, var = bn
        scale = gamma / jnp.sqrt(var + EPS)
        bias = (bconv - mean) * scale + beta
        return (scale.reshape(1, Cout).astype(jnp.float32),
                bias.reshape(1, Cout).astype(jnp.float32))

    s1, b1 = fold(params["b1"], params["bn1"])
    s2, b2 = fold(params["b2"], params["bn2"])
    s3, b3 = fold(params["b3"], params["bn3"])

    # Conv weights: (O,I,kh,kw) -> im2col layout (kh*kw*I, O), bf16 MXU operands.
    w1 = jnp.transpose(params["w1"], (2, 3, 1, 0)).reshape(9 * Cin, Cout)
    w2 = jnp.transpose(params["w2"], (2, 3, 1, 0)).reshape(9 * Cout, Cout)
    w3 = jnp.transpose(params["w3"][:, :, 0, 0], (1, 0))
    w1, w2, w3 = (w.astype(jnp.bfloat16) for w in (w1, w2, w3))

    # Validity mask over the core flat range: zero for the wrap-around halo
    # columns (x_pad in {0, Wp-1}) so the parked h1 has exact zero padding.
    xcol = (jnp.arange(Lcore) + 1) % Wp
    cmask = ((xcol >= 1) & (xcol <= W)).astype(jnp.float32)[:, None]

    # Stride-2 pool-anchor selection matrix (exact 0/1 gather-as-matmul).
    idx = jnp.arange(Hh * Wh)
    anchors = 2 * (idx // Wh) * Wp + 2 * (idx % Wh)
    spool = (jnp.arange(Lhy)[None, :] == anchors[:, None]).astype(jnp.float32)

    const2d = lambda b: (0, 0)
    vec_spec = pl.BlockSpec((1, Cout), const2d)

    out = pl.pallas_call(
        partial(conv_block_kernel, H=H, W=W),
        out_shape=jax.ShapeDtypeStruct((B, Hh * Wh, Cout), jnp.float32),
        grid=(B,),
        in_specs=[
            pl.BlockSpec((None, HpWp, Cin), lambda b: (b, 0, 0)),   # x (padded)
            pl.BlockSpec((Lcore, 1), const2d),                      # cmask
            pl.BlockSpec((Hh * Wh, Lhy), const2d),                  # spool
            pl.BlockSpec((9 * Cin, Cout), const2d),                 # w1
            vec_spec, vec_spec,                                     # s1, b1
            pl.BlockSpec((9 * Cout, Cout), const2d),                # w2
            vec_spec, vec_spec,                                     # s2, b2
            pl.BlockSpec((Cout, Cout), const2d),                    # w3
            vec_spec, vec_spec,                                     # s3, b3
        ],
        out_specs=pl.BlockSpec((None, Hh * Wh, Cout), lambda b: (b, 0, 0)),
        scratch_shapes=[
            pltpu.VMEM((HpWp, Cout), jnp.float32),        # halo-padded h1
            pltpu.VMEM((Lcore, 9 * Cin), jnp.float32),    # im2col operand conv1
            pltpu.VMEM((Lcore, 9 * Cout), jnp.float32),   # im2col operand conv2
        ],
        compiler_params=pltpu.CompilerParams(
            dimension_semantics=("parallel",)),
    )(x, cmask, spool, w1, s1, b1, w2, s2, b2, w3, s3, b3)

    # Pure layout glue back to NCHW (output already pooled inside the kernel).
    out = out.reshape(B, Hh, Wh, Cout)
    return jnp.transpose(out, (0, 3, 1, 2))


def reference_forward(x_nchw, params):
    """Pure-JAX (f32) reference mirroring the PyTorch module in eval mode."""
    x = jnp.transpose(x_nchw, (0, 2, 3, 1))

    def conv_bn_relu(h, w, bconv, bn, pad):
        wh = jnp.transpose(w, (2, 3, 1, 0))  # HWIO
        y = jax.lax.conv_general_dilated(
            h, wh, window_strides=(1, 1), padding=[(pad, pad), (pad, pad)],
            dimension_numbers=("NHWC", "HWIO", "NHWC"))
        y = y + bconv
        gamma, beta, mean, var = bn
        y = gamma * (y - mean) / jnp.sqrt(var + EPS) + beta
        return jnp.maximum(y, 0.0)

    h = conv_bn_relu(x, params["w1"], params["b1"], params["bn1"], 1)
    h = conv_bn_relu(h, params["w2"], params["b2"], params["bn2"], 1)
    h = conv_bn_relu(h, params["w3"], params["b3"], params["bn3"], 0)
    B, H, W, C = h.shape
    h = h.reshape(B, H // 2, 2, W // 2, 2, C).max(axis=(2, 4))
    return jnp.transpose(h, (0, 3, 1, 2))


if __name__ == "__main__":
    B, Cin, Cout, H, W = 2, 4, 16, 16, 16
    key = jax.random.PRNGKey(0)
    ks = jax.random.split(key, 10)

    x = jax.random.normal(ks[0], (B, Cin, H, W), jnp.float32)

    def bn_init(k):
        k1, k2, k3, k4 = jax.random.split(k, 4)
        gamma = jax.random.uniform(k1, (Cout,), jnp.float32, 0.5, 1.5)
        beta = 0.1 * jax.random.normal(k2, (Cout,), jnp.float32)
        mean = 0.1 * jax.random.normal(k3, (Cout,), jnp.float32)
        var = jax.random.uniform(k4, (Cout,), jnp.float32, 0.5, 1.5)
        return (gamma, beta, mean, var)

    params = {
        "w1": 0.1 * jax.random.normal(ks[1], (Cout, Cin, 3, 3), jnp.float32),
        "b1": 0.1 * jax.random.normal(ks[2], (Cout,), jnp.float32),
        "bn1": bn_init(ks[3]),
        "w2": 0.1 * jax.random.normal(ks[4], (Cout, Cout, 3, 3), jnp.float32),
        "b2": 0.1 * jax.random.normal(ks[5], (Cout,), jnp.float32),
        "bn2": bn_init(ks[6]),
        "w3": 0.1 * jax.random.normal(ks[7], (Cout, Cout, 1, 1), jnp.float32),
        "b3": 0.1 * jax.random.normal(ks[8], (Cout,), jnp.float32),
        "bn3": bn_init(ks[9]),
    }

    out = jax.block_until_ready(conv_block_forward(x, params))
    assert out.shape == (B, Cout, H // 2, W // 2), out.shape

    ref = reference_forward(x, params)
    err = float(jnp.max(jnp.abs(out - ref)))
    # Tolerance sized for bf16 matmul operands (f32 accumulation) vs f32 ref.
    assert err < 3e-2, f"max abs err {err}"

    print("KERNEL_OK")
</pallas_src>

<mosaic_0001>
module attributes {stable_mosaic.version = 11 : i64} {
  func.func @conv_block_kernel(%arg0: i32, %arg1: memref<1x324x4xf32, #tpu.memory_space<vmem>>, %arg2: memref<286x1xf32, #tpu.memory_space<vmem>>, %arg3: memref<64x267xf32, #tpu.memory_space<vmem>>, %arg4: memref<36x16xbf16, #tpu.memory_space<vmem>>, %arg5: memref<1x16xf32, #tpu.memory_space<vmem>>, %arg6: memref<1x16xf32, #tpu.memory_space<vmem>>, %arg7: memref<144x16xbf16, #tpu.memory_space<vmem>>, %arg8: memref<1x16xf32, #tpu.memory_space<vmem>>, %arg9: memref<1x16xf32, #tpu.memory_space<vmem>>, %arg10: memref<16x16xbf16, #tpu.memory_space<vmem>>, %arg11: memref<1x16xf32, #tpu.memory_space<vmem>>, %arg12: memref<1x16xf32, #tpu.memory_space<vmem>>, %arg13: memref<1x64x16xf32, #tpu.memory_space<vmem>>, %arg14: memref<324x16xf32, #tpu.memory_space<vmem>>, %arg15: memref<286x36xf32, #tpu.memory_space<vmem>>, %arg16: memref<286x144xf32, #tpu.memory_space<vmem>>) attributes {dimension_semantics = [#tpu.dimension_semantics<parallel>], iteration_bounds = array<i64: 2>, scalar_prefetch = 0 : i64, scratch_operands = 3 : i64, tpu.core_type = #tpu.core_type<tc>, window_params = [{transform_indices = @transform_0, window_bounds = array<i64: 1, 324, 4>}, {pipeline_mode = #tpu.pipeline_mode<synchronous>, transform_indices = @transform_1, window_bounds = array<i64: 286, 1>}, {pipeline_mode = #tpu.pipeline_mode<synchronous>, transform_indices = @transform_2, window_bounds = array<i64: 64, 267>}, {pipeline_mode = #tpu.pipeline_mode<synchronous>, transform_indices = @transform_3, window_bounds = array<i64: 36, 16>}, {pipeline_mode = #tpu.pipeline_mode<synchronous>, transform_indices = @transform_4, window_bounds = array<i64: 1, 16>}, {pipeline_mode = #tpu.pipeline_mode<synchronous>, transform_indices = @transform_5, window_bounds = array<i64: 1, 16>}, {pipeline_mode = #tpu.pipeline_mode<synchronous>, transform_indices = @transform_6, window_bounds = array<i64: 144, 16>}, {pipeline_mode = #tpu.pipeline_mode<synchronous>, transform_indices = @transform_7, window_bounds = array<i64: 1, 16>}, {pipeline_mode = #tpu.pipeline_mode<synchronous>, transform_indices = @transform_8, window_bounds = array<i64: 1, 16>}, {pipeline_mode = #tpu.pipeline_mode<synchronous>, transform_indices = @transform_9, window_bounds = array<i64: 16, 16>}, {pipeline_mode = #tpu.pipeline_mode<synchronous>, transform_indices = @transform_10, window_bounds = array<i64: 1, 16>}, {pipeline_mode = #tpu.pipeline_mode<synchronous>, transform_indices = @transform_11, window_bounds = array<i64: 1, 16>}, {transform_indices = @transform_12, window_bounds = array<i64: 1, 64, 16>}]} {
    %c0 = arith.constant 0 : index
    %c0_0 = arith.constant 0 : index
    %c0_1 = arith.constant 0 : index
    %0 = vector.load %arg1[%c0, %c0_0, %c0_1] : memref<1x324x4xf32, #tpu.memory_space<vmem>>, vector<1x286x4xf32>
    %1 = vector.shape_cast %0 : vector<1x286x4xf32> to vector<286x4xf32>
    %c0_2 = arith.constant 0 : index
    %c0_3 = arith.constant 0 : index
    %2 = vector.load %arg15[%c0_2, %c0_3] : memref<286x36xf32, #tpu.memory_space<vmem>>, vector<286x4xf32>
    tpu.vector_store %arg15[%c0_2, %c0_3], %1 {strides = array<i32>} : memref<286x36xf32, #tpu.memory_space<vmem>>, vector<286x4xf32>,
    %c0_4 = arith.constant 0 : index
    %c1 = arith.constant 1 : index
    %c0_5 = arith.constant 0 : index
    %3 = vector.load %arg1[%c0_4, %c1, %c0_5] : memref<1x324x4xf32, #tpu.memory_space<vmem>>, vector<1x286x4xf32>
    %4 = vector.shape_cast %3 : vector<1x286x4xf32> to vector<286x4xf32>
    %c0_6 = arith.constant 0 : index
    %c4 = arith.constant 4 : index
    %5 = vector.load %arg15[%c0_6, %c4] : memref<286x36xf32, #tpu.memory_space<vmem>>, vector<286x4xf32>
    tpu.vector_store %arg15[%c0_6, %c4], %4 {strides = array<i32>} : memref<286x36xf32, #tpu.memory_space<vmem>>, vector<286x4xf32>,
    %c0_7 = arith.constant 0 : index
    %c2 = arith.constant 2 : index
    %c0_8 = arith.constant 0 : index
    %6 = vector.load %arg1[%c0_7, %c2, %c0_8] : memref<1x324x4xf32, #tpu.memory_space<vmem>>, vector<1x286x4xf32>
    %7 = vector.shape_cast %6 : vector<1x286x4xf32> to vector<286x4xf32>
    %c0_9 = arith.constant 0 : index
    %c8 = arith.constant 8 : index
    %8 = vector.load %arg15[%c0_9, %c8] : memref<286x36xf32, #tpu.memory_space<vmem>>, vector<286x4xf32>
    tpu.vector_store %arg15[%c0_9, %c8], %7 {strides = array<i32>} : memref<286x36xf32, #tpu.memory_space<vmem>>, vector<286x4xf32>,
    %c0_10 = arith.constant 0 : index
    %c18 = arith.constant 18 : index
    %c0_11 = arith.constant 0 : index
    %9 = vector.load %arg1[%c0_10, %c18, %c0_11] : memref<1x324x4xf32, #tpu.memory_space<vmem>>, vector<1x286x4xf32>
    %10 = vector.shape_cast %9 : vector<1x286x4xf32> to vector<286x4xf32>
    %c0_12 = arith.constant 0 : index
    %c12 = arith.constant 12 : index
    %11 = vector.load %arg15[%c0_12, %c12] : memref<286x36xf32, #tpu.memory_space<vmem>>, vector<286x4xf32>
    tpu.vector_store %arg15[%c0_12, %c12], %10 {strides = array<i32>} : memref<286x36xf32, #tpu.memory_space<vmem>>, vector<286x4xf32>,
    %c0_13 = arith.constant 0 : index
    %c19 = arith.constant 19 : index
    %c0_14 = arith.constant 0 : index
    %12 = vector.load %arg1[%c0_13, %c19, %c0_14] : memref<1x324x4xf32, #tpu.memory_space<vmem>>, vector<1x286x4xf32>
    %13 = vector.shape_cast %12 : vector<1x286x4xf32> to vector<286x4xf32>
    %c0_15 = arith.constant 0 : index
    %c16 = arith.constant 16 : index
    %14 = vector.load %arg15[%c0_15, %c16] : memref<286x36xf32, #tpu.memory_space<vmem>>, vector<286x4xf32>
    tpu.vector_store %arg15[%c0_15, %c16], %13 {strides = array<i32>} : memref<286x36xf32, #tpu.memory_space<vmem>>, vector<286x4xf32>,
    %c0_16 = arith.constant 0 : index
    %c20 = arith.constant 20 : index
    %c0_17 = arith.constant 0 : index
    %15 = vector.load %arg1[%c0_16, %c20, %c0_17] : memref<1x324x4xf32, #tpu.memory_space<vmem>>, vector<1x286x4xf32>
    %16 = vector.shape_cast %15 : vector<1x286x4xf32> to vector<286x4xf32>
    %c0_18 = arith.constant 0 : index
    %c20_19 = arith.constant 20 : index
    %17 = vector.load %arg15[%c0_18, %c20_19] : memref<286x36xf32, #tpu.memory_space<vmem>>, vector<286x4xf32>
    tpu.vector_store %arg15[%c0_18, %c20_19], %16 {strides = array<i32>} : memref<286x36xf32, #tpu.memory_space<vmem>>, vector<286x4xf32>,
    %c0_20 = arith.constant 0 : index
    %c36 = arith.constant 36 : index
    %c0_21 = arith.constant 0 : index
    %18 = vector.load %arg1[%c0_20, %c36, %c0_21] : memref<1x324x4xf32, #tpu.memory_space<vmem>>, vector<1x286x4xf32>
    %19 = vector.shape_cast %18 : vector<1x286x4xf32> to vector<286x4xf32>
    %c0_22 = arith.constant 0 : index
    %c24 = arith.constant 24 : index
    %20 = vector.load %arg15[%c0_22, %c24] : memref<286x36xf32, #tpu.memory_space<vmem>>, vector<286x4xf32>
    tpu.vector_store %arg15[%c0_22, %c24], %19 {strides = array<i32>} : memref<286x36xf32, #tpu.memory_space<vmem>>, vector<286x4xf32>,
    %c0_23 = arith.constant 0 : index
    %c37 = arith.constant 37 : index
    %c0_24 = arith.constant 0 : index
    %21 = vector.load %arg1[%c0_23, %c37, %c0_24] : memref<1x324x4xf32, #tpu.memory_space<vmem>>, vector<1x286x4xf32>
    %22 = vector.shape_cast %21 : vector<1x286x4xf32> to vector<286x4xf32>
    %c0_25 = arith.constant 0 : index
    %c28 = arith.constant 28 : index
    %23 = vector.load %arg15[%c0_25, %c28] : memref<286x36xf32, #tpu.memory_space<vmem>>, vector<286x4xf32>
    tpu.vector_store %arg15[%c0_25, %c28], %22 {strides = array<i32>} : memref<286x36xf32, #tpu.memory_space<vmem>>, vector<286x4xf32>,
    %c0_26 = arith.constant 0 : index
    %c38 = arith.constant 38 : index
    %c0_27 = arith.constant 0 : index
    %24 = vector.load %arg1[%c0_26, %c38, %c0_27] : memref<1x324x4xf32, #tpu.memory_space<vmem>>, vector<1x286x4xf32>
    %25 = vector.shape_cast %24 : vector<1x286x4xf32> to vector<286x4xf32>
    %c0_28 = arith.constant 0 : index
    %c32 = arith.constant 32 : index
    %26 = vector.load %arg15[%c0_28, %c32] : memref<286x36xf32, #tpu.memory_space<vmem>>, vector<286x4xf32>
    tpu.vector_store %arg15[%c0_28, %c32], %25 {strides = array<i32>} : memref<286x36xf32, #tpu.memory_space<vmem>>, vector<286x4xf32>,
    %c0_29 = arith.constant 0 : index
    %c0_30 = arith.constant 0 : index
    %27 = vector.load %arg15[%c0_29, %c0_30] : memref<286x36xf32, #tpu.memory_space<vmem>>, vector<286x36xf32>
    %28 = arith.truncf %27 : vector<286x36xf32> to vector<286x36xbf16>
    %c0_31 = arith.constant 0 : index
    %c0_32 = arith.constant 0 : index
    %29 = vector.load %arg4[%c0_31, %c0_32] : memref<36x16xbf16, #tpu.memory_space<vmem>>, vector<36x16xbf16>
    %cst = arith.constant dense<0.000000e+00> : vector<286x16xf32>
    %30 = tpu.matmul %28, %29, %cst {dimension_numbers = #tpu.dot_dimension_numbers<[1], [0], [0], [1], [0, 0, 1, 1], [], []>} : vector<286x36xbf16>, vector<36x16xbf16>, vector<286x16xf32> -> vector<286x16xf32>
    %c0_33 = arith.constant 0 : index
    %c0_34 = arith.constant 0 : index
    %31 = vector.load %arg5[%c0_33, %c0_34] : memref<1x16xf32, #tpu.memory_space<vmem>>, vector<1x16xf32>
    %32 = vector.broadcast %31 : vector<1x16xf32> to vector<286x16xf32>
    %33 = arith.mulf %30, %32 : vector<286x16xf32>
    %c0_35 = arith.constant 0 : index
    %c0_36 = arith.constant 0 : index
    %34 = vector.load %arg6[%c0_35, %c0_36] : memref<1x16xf32, #tpu.memory_space<vmem>>, vector<1x16xf32>
    %35 = vector.broadcast %34 : vector<1x16xf32> to vector<286x16xf32>
    %36 = arith.addf %33, %35 : vector<286x16xf32>
    %cst_37 = arith.constant 0.000000e+00 : f32
    %37 = vector.broadcast %cst_37 : f32 to vector<286x16xf32>
    %38 = arith.maximumf %36, %37 : vector<286x16xf32>
    %c0_38 = arith.constant 0 : index
    %c0_39 = arith.constant 0 : index
    %39 = vector.load %arg2[%c0_38, %c0_39] : memref<286x1xf32, #tpu.memory_space<vmem>>, vector<286x1xf32>
    %40 = vector.broadcast %39 : vector<286x1xf32> to vector<286x16xf32>
    %41 = arith.mulf %38, %40 : vector<286x16xf32>
    %cst_40 = arith.constant 0.000000e+00 : f32
    %42 = vector.broadcast %cst_40 : f32 to vector<19x16xf32>
    %c0_41 = arith.constant 0 : index
    %c0_42 = arith.constant 0 : index
    %43 = vector.load %arg14[%c0_41, %c0_42] : memref<324x16xf32, #tpu.memory_space<vmem>>, vector<19x16xf32>
    tpu.vector_store %arg14[%c0_41, %c0_42], %42 {strides = array<i32>} : memref<324x16xf32, #tpu.memory_space<vmem>>, vector<19x16xf32>,
    %c305 = arith.constant 305 : index
    %c0_43 = arith.constant 0 : index
    %44 = vector.load %arg14[%c305, %c0_43] : memref<324x16xf32, #tpu.memory_space<vmem>>, vector<19x16xf32>
    tpu.vector_store %arg14[%c305, %c0_43], %42 {strides = array<i32>} : memref<324x16xf32, #tpu.memory_space<vmem>>, vector<19x16xf32>,
    %c19_44 = arith.constant 19 : index
    %c0_45 = arith.constant 0 : index
    %45 = vector.load %arg14[%c19_44, %c0_45] : memref<324x16xf32, #tpu.memory_space<vmem>>, vector<286x16xf32>
    tpu.vector_store %arg14[%c19_44, %c0_45], %41 {strides = array<i32>} : memref<324x16xf32, #tpu.memory_space<vmem>>, vector<286x16xf32>,
    %c0_46 = arith.constant 0 : index
    %c0_47 = arith.constant 0 : index
    %46 = vector.load %arg14[%c0_46, %c0_47] : memref<324x16xf32, #tpu.memory_space<vmem>>, vector<286x16xf32>
    %c0_48 = arith.constant 0 : index
    %c0_49 = arith.constant 0 : index
    %47 = vector.load %arg16[%c0_48, %c0_49] : memref<286x144xf32, #tpu.memory_space<vmem>>, vector<286x16xf32>
    tpu.vector_store %arg16[%c0_48, %c0_49], %46 {strides = array<i32>} : memref<286x144xf32, #tpu.memory_space<vmem>>, vector<286x16xf32>,
    %c1_50 = arith.constant 1 : index
    %c0_51 = arith.constant 0 : index
    %48 = vector.load %arg14[%c1_50, %c0_51] : memref<324x16xf32, #tpu.memory_space<vmem>>, vector<286x16xf32>
    %c0_52 = arith.constant 0 : index
    %c16_53 = arith.constant 16 : index
    %49 = vector.load %arg16[%c0_52, %c16_53] : memref<286x144xf32, #tpu.memory_space<vmem>>, vector<286x16xf32>
    tpu.vector_store %arg16[%c0_52, %c16_53], %48 {strides = array<i32>} : memref<286x144xf32, #tpu.memory_space<vmem>>, vector<286x16xf32>,
    %c2_54 = arith.constant 2 : index
    %c0_55 = arith.constant 0 : index
    %50 = vector.load %arg14[%c2_54, %c0_55] : memref<324x16xf32, #tpu.memory_space<vmem>>, vector<286x16xf32>
    %c0_56 = arith.constant 0 : index
    %c32_57 = arith.constant 32 : index
    %51 = vector.load %arg16[%c0_56, %c32_57] : memref<286x144xf32, #tpu.memory_space<vmem>>, vector<286x16xf32>
    tpu.vector_store %arg16[%c0_56, %c32_57], %50 {strides = array<i32>} : memref<286x144xf32, #tpu.memory_space<vmem>>, vector<286x16xf32>,
    %c18_58 = arith.constant 18 : index
    %c0_59 = arith.constant 0 : index
    %52 = vector.load %arg14[%c18_58, %c0_59] : memref<324x16xf32, #tpu.memory_space<vmem>>, vector<286x16xf32>
    %c0_60 = arith.constant 0 : index
    %c48 = arith.constant 48 : index
    %53 = vector.load %arg16[%c0_60, %c48] : memref<286x144xf32, #tpu.memory_space<vmem>>, vector<286x16xf32>
    tpu.vector_store %arg16[%c0_60, %c48], %52 {strides = array<i32>} : memref<286x144xf32, #tpu.memory_space<vmem>>, vector<286x16xf32>,
    %c19_61 = arith.constant 19 : index
    %c0_62 = arith.constant 0 : index
    %54 = vector.load %arg14[%c19_61, %c0_62] : memref<324x16xf32, #tpu.memory_space<vmem>>, vector<286x16xf32>
    %c0_63 = arith.constant 0 : index
    %c64 = arith.constant 64 : index
    %55 = vector.load %arg16[%c0_63, %c64] : memref<286x144xf32, #tpu.memory_space<vmem>>, vector<286x16xf32>
    tpu.vector_store %arg16[%c0_63, %c64], %54 {strides = array<i32>} : memref<286x144xf32, #tpu.memory_space<vmem>>, vector<286x16xf32>,
    %c20_64 = arith.constant 20 : index
    %c0_65 = arith.constant 0 : index
    %56 = vector.load %arg14[%c20_64, %c0_65] : memref<324x16xf32, #tpu.memory_space<vmem>>, vector<286x16xf32>
    %c0_66 = arith.constant 0 : index
    %c80 = arith.constant 80 : index
    %57 = vector.load %arg16[%c0_66, %c80] : memref<286x144xf32, #tpu.memory_space<vmem>>, vector<286x16xf32>
    tpu.vector_store %arg16[%c0_66, %c80], %56 {strides = array<i32>} : memref<286x144xf32, #tpu.memory_space<vmem>>, vector<286x16xf32>,
    %c36_67 = arith.constant 36 : index
    %c0_68 = arith.constant 0 : index
    %58 = vector.load %arg14[%c36_67, %c0_68] : memref<324x16xf32, #tpu.memory_space<vmem>>, vector<286x16xf32>
    %c0_69 = arith.constant 0 : index
    %c96 = arith.constant 96 : index
    %59 = vector.load %arg16[%c0_69, %c96] : memref<286x144xf32, #tpu.memory_space<vmem>>, vector<286x16xf32>
    tpu.vector_store %arg16[%c0_69, %c96], %58 {strides = array<i32>} : memref<286x144xf32, #tpu.memory_space<vmem>>, vector<286x16xf32>,
    %c37_70 = arith.constant 37 : index
    %c0_71 = arith.constant 0 : index
    %60 = vector.load %arg14[%c37_70, %c0_71] : memref<324x16xf32, #tpu.memory_space<vmem>>, vector<286x16xf32>
    %c0_72 = arith.constant 0 : index
    %c112 = arith.constant 112 : index
    %61 = vector.load %arg16[%c0_72, %c112] : memref<286x144xf32, #tpu.memory_space<vmem>>, vector<286x16xf32>
    tpu.vector_store %arg16[%c0_72, %c112], %60 {strides = array<i32>} : memref<286x144xf32, #tpu.memory_space<vmem>>, vector<286x16xf32>,
    %c38_73 = arith.constant 38 : index
    %c0_74 = arith.constant 0 : index
    %62 = vector.load %arg14[%c38_73, %c0_74] : memref<324x16xf32, #tpu.memory_space<vmem>>, vector<286x16xf32>
    %c0_75 = arith.constant 0 : index
    %c128 = arith.constant 128 : index
    %63 = vector.load %arg16[%c0_75, %c128] : memref<286x144xf32, #tpu.memory_space<vmem>>, vector<286x16xf32>
    tpu.vector_store %arg16[%c0_75, %c128], %62 {strides = array<i32>} : memref<286x144xf32, #tpu.memory_space<vmem>>, vector<286x16xf32>,
    %c0_76 = arith.constant 0 : index
    %c0_77 = arith.constant 0 : index
    %64 = vector.load %arg16[%c0_76, %c0_77] : memref<286x144xf32, #tpu.memory_space<vmem>>, vector<286x144xf32>
    %65 = arith.truncf %64 : vector<286x144xf32> to vector<286x144xbf16>
    %c0_78 = arith.constant 0 : index
    %c0_79 = arith.constant 0 : index
    %66 = vector.load %arg7[%c0_78, %c0_79] : memref<144x16xbf16, #tpu.memory_space<vmem>>, vector<144x16xbf16>
    %cst_80 = arith.constant dense<0.000000e+00> : vector<286x16xf32>
    %67 = tpu.matmul %65, %66, %cst_80 {dimension_numbers = #tpu.dot_dimension_numbers<[1], [0], [0], [1], [0, 0, 1, 1], [], []>} : vector<286x144xbf16>, vector<144x16xbf16>, vector<286x16xf32> -> vector<286x16xf32>
    %c0_81 = arith.constant 0 : index
    %c0_82 = arith.constant 0 : index
    %68 = vector.load %arg8[%c0_81, %c0_82] : memref<1x16xf32, #tpu.memory_space<vmem>>, vector<1x16xf32>
    %69 = vector.broadcast %68 : vector<1x16xf32> to vector<286x16xf32>
    %70 = arith.mulf %67, %69 : vector<286x16xf32>
    %c0_83 = arith.constant 0 : index
    %c0_84 = arith.constant 0 : index
    %71 = vector.load %arg9[%c0_83, %c0_84] : memref<1x16xf32, #tpu.memory_space<vmem>>, vector<1x16xf32>
    %72 = vector.broadcast %71 : vector<1x16xf32> to vector<286x16xf32>
    %73 = arith.addf %70, %72 : vector<286x16xf32>
    %cst_85 = arith.constant 0.000000e+00 : f32
    %74 = vector.broadcast %cst_85 : f32 to vector<286x16xf32>
    %75 = arith.maximumf %73, %74 : vector<286x16xf32>
    %76 = arith.truncf %75 : vector<286x16xf32> to vector<286x16xbf16>
    %c0_86 = arith.constant 0 : index
    %c0_87 = arith.constant 0 : index
    %77 = vector.load %arg10[%c0_86, %c0_87] : memref<16x16xbf16, #tpu.memory_space<vmem>>, vector<16x16xbf16>
    %cst_88 = arith.constant dense<0.000000e+00> : vector<286x16xf32>
    %78 = tpu.matmul %76, %77, %cst_88 {dimension_numbers = #tpu.dot_dimension_numbers<[1], [0], [0], [1], [0, 0, 1, 1], [], []>} : vector<286x16xbf16>, vector<16x16xbf16>, vector<286x16xf32> -> vector<286x16xf32>
    %c0_89 = arith.constant 0 : index
    %c0_90 = arith.constant 0 : index
    %79 = vector.load %arg11[%c0_89, %c0_90] : memref<1x16xf32, #tpu.memory_space<vmem>>, vector<1x16xf32>
    %80 = vector.broadcast %79 : vector<1x16xf32> to vector<286x16xf32>
    %81 = arith.mulf %78, %80 : vector<286x16xf32>
    %c0_91 = arith.constant 0 : index
    %c0_92 = arith.constant 0 : index
    %82 = vector.load %arg12[%c0_91, %c0_92] : memref<1x16xf32, #tpu.memory_space<vmem>>, vector<1x16xf32>
    %83 = vector.broadcast %82 : vector<1x16xf32> to vector<286x16xf32>
    %84 = arith.addf %81, %83 : vector<286x16xf32>
    %cst_93 = arith.constant 0.000000e+00 : f32
    %85 = vector.broadcast %cst_93 : f32 to vector<286x16xf32>
    %86 = arith.maximumf %84, %85 : vector<286x16xf32>
    %87 = vector.extract_strided_slice %86 {offsets = [0, 0], sizes = [285, 16], strides = [1, 1]} : vector<286x16xf32> to vector<285x16xf32>
    %88 = vector.extract_strided_slice %86 {offsets = [1, 0], sizes = [285, 16], strides = [1, 1]} : vector<286x16xf32> to vector<285x16xf32>
    %89 = arith.maximumf %87, %88 : vector<285x16xf32>
    %90 = vector.extract_strided_slice %89 {offsets = [0, 0], sizes = [267, 16], strides = [1, 1]} : vector<285x16xf32> to vector<267x16xf32>
    %91 = vector.extract_strided_slice %89 {offsets = [18, 0], sizes = [267, 16], strides = [1, 1]} : vector<285x16xf32> to vector<267x16xf32>
    %92 = arith.maximumf %90, %91 : vector<267x16xf32>
    %c0_94 = arith.constant 0 : index
    %c0_95 = arith.constant 0 : index
    %93 = vector.load %arg3[%c0_94, %c0_95] : memref<64x267xf32, #tpu.memory_space<vmem>>, vector<64x267xf32>
    %cst_96 = arith.constant dense<0.000000e+00> : vector<64x16xf32>
    %94 = tpu.matmul %93, %92, %cst_96 {dimension_numbers = #tpu.dot_dimension_numbers<[1], [0], [0], [1], [0, 0, 1, 1], [], []>} : vector<64x267xf32>, vector<267x16xf32>, vector<64x16xf32> -> vector<64x16xf32>
    %c0_97 = arith.constant 0 : index
    %c0_98 = arith.constant 0 : index
    %c0_99 = arith.constant 0 : index
    %95 = vector.load %arg13[%c0_97, %c0_98, %c0_99] : memref<1x64x16xf32, #tpu.memory_space<vmem>>, vector<1x64x16xf32>
    %96 = vector.shape_cast %95 : vector<1x64x16xf32> to vector<64x16xf32>
    %97 = vector.shape_cast %94 : vector<64x16xf32> to vector<1x64x16xf32>
    tpu.vector_store %arg13[%c0_97, %c0_98, %c0_99], %97 {strides = array<i32>} : memref<1x64x16xf32, #tpu.memory_space<vmem>>, vector<1x64x16xf32>,
    return
  }
  func.func @transform_0(%arg0: i32) -> (i32, i32, i32) {
    %c0_i32 = arith.constant 0 : i32
    %c0_i32_0 = arith.constant 0 : i32
    %c0_i32_1 = arith.constant 0 : i32
    return %arg0, %c0_i32, %c0_i32_0 : i32, i32, i32
  }
  func.func @transform_1(%arg0: i32) -> (i32, i32) {
    %c0_i32 = arith.constant 0 : i32
    %c0_i32_0 = arith.constant 0 : i32
    %c0_i32_1 = arith.constant 0 : i32
    return %c0_i32, %c0_i32_0 : i32, i32
  }
  func.func @transform_2(%arg0: i32) -> (i32, i32) {
    %c0_i32 = arith.constant 0 : i32
    %c0_i32_0 = arith.constant 0 : i32
    %c0_i32_1 = arith.constant 0 : i32
    return %c0_i32, %c0_i32_0 : i32, i32
  }
  func.func @transform_3(%arg0: i32) -> (i32, i32) {
    %c0_i32 = arith.constant 0 : i32
    %c0_i32_0 = arith.constant 0 : i32
    %c0_i32_1 = arith.constant 0 : i32
    return %c0_i32, %c0_i32_0 : i32, i32
  }
  func.func @transform_4(%arg0: i32) -> (i32, i32) {
    %c0_i32 = arith.constant 0 : i32
    %c0_i32_0 = arith.constant 0 : i32
    %c0_i32_1 = arith.constant 0 : i32
    return %c0_i32, %c0_i32_0 : i32, i32
  }
  func.func @transform_5(%arg0: i32) -> (i32, i32) {
    %c0_i32 = arith.constant 0 : i32
    %c0_i32_0 = arith.constant 0 : i32
    %c0_i32_1 = arith.constant 0 : i32
    return %c0_i32, %c0_i32_0 : i32, i32
  }
  func.func @transform_6(%arg0: i32) -> (i32, i32) {
    %c0_i32 = arith.constant 0 : i32
    %c0_i32_0 = arith.constant 0 : i32
    %c0_i32_1 = arith.constant 0 : i32
    return %c0_i32, %c0_i32_0 : i32, i32
  }
  func.func @transform_7(%arg0: i32) -> (i32, i32) {
    %c0_i32 = arith.constant 0 : i32
    %c0_i32_0 = arith.constant 0 : i32
    %c0_i32_1 = arith.constant 0 : i32
    return %c0_i32, %c0_i32_0 : i32, i32
  }
  func.func @transform_8(%arg0: i32) -> (i32, i32) {
    %c0_i32 = arith.constant 0 : i32
    %c0_i32_0 = arith.constant 0 : i32
    %c0_i32_1 = arith.constant 0 : i32
    return %c0_i32, %c0_i32_0 : i32, i32
  }
  func.func @transform_9(%arg0: i32) -> (i32, i32) {
    %c0_i32 = arith.constant 0 : i32
    %c0_i32_0 = arith.constant 0 : i32
    %c0_i32_1 = arith.constant 0 : i32
    return %c0_i32, %c0_i32_0 : i32, i32
  }
  func.func @transform_10(%arg0: i32) -> (i32, i32) {
    %c0_i32 = arith.constant 0 : i32
    %c0_i32_0 = arith.constant 0 : i32
    %c0_i32_1 = arith.constant 0 : i32
    return %c0_i32, %c0_i32_0 : i32, i32
  }
  func.func @transform_11(%arg0: i32) -> (i32, i32) {
    %c0_i32 = arith.constant 0 : i32
    %c0_i32_0 = arith.constant 0 : i32
    %c0_i32_1 = arith.constant 0 : i32
    return %c0_i32, %c0_i32_0 : i32, i32
  }
  func.func @transform_12(%arg0: i32) -> (i32, i32, i32) {
    %c0_i32 = arith.constant 0 : i32
    %c0_i32_0 = arith.constant 0 : i32
    %c0_i32_1 = arith.constant 0 : i32
    return %arg0, %c0_i32, %c0_i32_0 : i32, i32, i32
  }
}

</mosaic_0001>

<bundles_post_ra>
// kernel: tpu_custom_call.1
= control target key start
LH: loop header
LB: loop body
LE: loop exit
PB: predicated region body
PF: predicated region fallthrough
CT: control target
= control target key end

     0   :  { %s6247_s21 = smov 0   ;;  %s9338_s0 = inlined_call_operand.vmem [shape: f32[2,324,4], index: 0, kind: input, shape index: {}]   ;;  %s9339_s1 = inlined_call_operand.vmem [shape: f32[286,1], index: 1, kind: input, shape index: {}]   ;;  %s9340_s2 = inlined_call_operand.vmem [shape: f32[64,267], index: 2, kind: input, shape index: {}]   ;;  %s9341_s3 = inlined_call_operand.vmem [shape: bf16[36,16], index: 3, kind: input, shape index: {}]   ;;  %s9342_s4 = inlined_call_operand.vmem [shape: f32[1,16], index: 4, kind: input, shape index: {}]   ;;  %s9343_s5 = inlined_call_operand.vmem [shape: f32[1,16], index: 5, kind: input, shape index: {}]   ;;  %s9344_s6 = inlined_call_operand.vmem [shape: bf16[144,16], index: 6, kind: input, shape index: {}]   ;;  %s9345_s7 = inlined_call_operand.vmem [shape: f32[1,16], index: 7, kind: input, shape index: {}]   ;;  %s9346_s8 = inlined_call_operand.vmem [shape: f32[1,16], index: 8, kind: input, shape index: {}]   ;;  %s9347_s9 = inlined_call_operand.vmem [shape: bf16[16,16], index: 9, kind: input, shape index: {}]   ;;  %s9348_s10 = inlined_call_operand.vmem [shape: f32[1,16], index: 10, kind: input, shape index: {}]   ;;  %s9349_s11 = inlined_call_operand.vmem [shape: f32[1,16], index: 11, kind: input, shape index: {}]   ;;  %s9350_s12 = inlined_call_operand.vmem [shape: f32[2,64,16], index: 12, kind: output, shape index: {}]  }
   0x1 LB: > { %s5980_s22 = sadd.s32 4294967295, %s6165_s21   ;;  %p5984_p0 = scmp.ge.s32.totalorder %s6165_s21, 1  ;;  %s6165_s21 = sphi %s6247_s21, %s22_s21  }
   0x2   : > { %p362_p1 = scmp.lt.s32.totalorder %s6165_s21, 3 }
   0x4   : > { %p363_p2 = pnand %p5984_p0, %p362_p1 }
   0x5   : > { %p404_p3 = scmp.lt.s32.totalorder (!%p363_p2), %s5980_s22, 1  ;;  %s6167_s27 = smov (!%p363_p2), 4  }
   0x6   : > { %366 = sbr.rel (%p363_p2) target bundleno = 2319 (0x90f), region = 68  ;;  %s6168_s28 = smov (!%p363_p2), 8  }
   0x7   : > { %s6169_s29 = smov (!%p363_p2), 12   ;;  %s6170_s30 = smov (!%p363_p2), 16  }
   0x8   : > { %s6171_s13 = smov (!%p363_p2), 20   ;;  %s6172_s14 = smov (!%p363_p2), 24  }
   0x9   : > { %s6173_s15 = smov (!%p363_p2), 28   ;;  %s6174_s16 = smov (!%p363_p2), 32  }
   0xa   : > { %s6179_s18 = smov (!%p363_p2), 80   ;;  %s6181_s19 = smov (!%p363_p2), 96  }
   0xb   : > { %s9355_s22 = smov (!%p404_p3, %s5980_s22), 1  ;;  %vm451_vm0 = vcmask 31744   ;;  %vm669_vm1 = vcmask 64544   ;;  %vm487_vm2 = vcmask 29696   ;;  %vm705_vm3 = vcmask 62496  }
   0xc   : > { %s6116_s23 = smul.u32 328, %s9355_s22  ;;  %vm887_vm4 = vcmask 97344   ;;  %vm923_vm5 = vcmask 95296   ;;  %vm1105_vm6 = vcmask 130144   ;;  %vm1141_vm7 = vcmask 128096  }
   0xd   : > { %vm1323_vm8 = vcmask 162944   ;;  %vm1359_vm9 = vcmask 160896   ;;  %vm1541_vm10 = vcmask 195744   ;;  %vm1577_vm11 = vcmask 193696  }
   0xe   : > { %s6261_s26 = scalar_lea.vmem %s9338_s0, %s6116_s23  ;;  %vm1759_vm12 = vcmask 228544   ;;  %vm1795_vm13 = vcmask 226496   ;;  %vm1977_vm14 = vcmask 261344   ;;  %vm2362_vm15 = vcmask 1041408  }
   0xf   : > { %v491_v0 = vld [vmem:[%s6261_s26 + $0x11] sm:$0xff]  ;;  %v489_v1 = vld [vmem:[%s6261_s26 + $0x1] sm:$0xff]  ;;  %v492_v3 = vld [vmem:[%s6261_s26 + $0x19] sm:$0xff] }
  0x10   : > { %565 = vrot.lane.b32.xlu1 %v491_v0, %s6167_s27  ;;  %561 = vrot.lane.b32.xlu0 %v489_v1, %s6167_s27  ;;  %v493_v2 = vld [vmem:[%s6261_s26 + $0x21] sm:$0xff]  ;;  %v490_v4 = vld [vmem:[%s6261_s26 + $0x9] sm:$0xff] }
  0x11   : > { %569 = vrot.lane.b32.xlu2 %v493_v2, %s6167_s27  ;;  %v494_v5 = vld [vmem:[%s6261_s26 + $0x29] sm:$0xff]  ;;  %v496_v6 = vld [vmem:[%s6261_s26 + $0x39] sm:$0xff]  ;;  %v495_v7 = vld [vmem:[%s6261_s26 + $0x31] sm:$0xff] }
  0x12   : > { %v497_v8 = vld [vmem:[%s6261_s26 + $0x41] sm:$0xff]  ;;  %v499_v9 = vld [vmem:[%s6261_s26 + $0x51] sm:$0xff]  ;;  %v498_v10 = vld [vmem:[%s6261_s26 + $0x49] sm:$0xff] }
  0x13   : > { %v500_v11 = vld [vmem:[%s6261_s26 + $0x59] sm:$0xff]  ;;  %v502_v12 = vld [vmem:[%s6261_s26 + $0x69] sm:$0xff]  ;;  %v501_v13 = vld [vmem:[%s6261_s26 + $0x61] sm:$0xff] }
  0x14   : > { %v503_v14 = vld [vmem:[%s6261_s26 + $0x71] sm:$0xff]  ;;  %v505_v15 = vld [vmem:[%s6261_s26 + $0x81] sm:$0xff]  ;;  %v504_v16 = vld [vmem:[%s6261_s26 + $0x79] sm:$0xff] }
  0x15   : > { %v506_v17 = vld [vmem:[%s6261_s26 + $0x89] sm:$0xff]  ;;  %v508_v18 = vld [vmem:[%s6261_s26 + $0x99] sm:$0xff]  ;;  %v507_v19 = vld [vmem:[%s6261_s26 + $0x91] sm:$0xff] }
  0x16   : > { %v509_v20 = vld [vmem:[%s6261_s26 + $0xa1] sm:$0xff]  ;;  %v511_v21 = vld [vmem:[%s6261_s26 + $0xb1] sm:$0xff]  ;;  %v510_v22 = vld [vmem:[%s6261_s26 + $0xa9] sm:$0xff] }
  0x17   : > { %v512_v23 = vld [vmem:[%s6261_s26 + $0xb9] sm:$0xff]  ;;  %v514_v24 = vld [vmem:[%s6261_s26 + $0xc9] sm:$0xff]  ;;  %v513_v25 = vld [vmem:[%s6261_s26 + $0xc1] sm:$0xff] }
  0x18   : > { %567 = vrot.lane.b32.xlu1 %v492_v3, %s6167_s27  ;;  %563 = vrot.lane.b32.xlu0 %v490_v4, %s6167_s27  ;;  %v515_v26 = vld [vmem:[%s6261_s26 + $0xd1] sm:$0xff]  ;;  %v517_v27 = vld [vmem:[%s6261_s26 + $0xe1] sm:$0xff] }
  0x19   : > { %571 = vrot.lane.b32.xlu2 %v494_v5, %s6167_s27  ;;  %v516_v28 = vld [vmem:[%s6261_s26 + $0xd9] sm:$0xff]  ;;  %v518_v29 = vld [vmem:[%s6261_s26 + $0xe9] sm:$0xff]  ;;  %v519_v31 = vld [vmem:[%s6261_s26 + $0xf1] sm:$0xff] }
  0x1a   : > { %v520_v30 = vld [vmem:[%s6261_s26 + $0xf9] sm:$0xff]  ;;  %v417_v32 = vld [vmem:[%s6261_s26 + $0x10] sm:$0xff]  ;;  %v521_v34 = vld [vmem:[%s6261_s26 + $0x101] sm:$0xff] }
  0x1b   : > { %v415_v33 = vld [vmem:[%s6261_s26] sm:$0xff]  ;;  %454 = vst.msk [vmem:[#allocation3 + $0x10] sm:$0xff] %vm451_vm0, %v417_v32  ;;  %v523_v35 = vld [vmem:[%s6261_s26 + $0x111] sm:$0xff]  ;;  %v522_v36 = vld [vmem:[%s6261_s26 + $0x109] sm:$0xff] }
  0x1c   : > { %452 = vst.msk [vmem:[#allocation3] sm:$0xff] %vm451_vm0, %v415_v33  ;;  %v418_v37 = vld [vmem:[%s6261_s26 + $0x18] sm:$0xff]  ;;  %v416_v38 = vld [vmem:[%s6261_s26 + $0x8] sm:$0xff]  ;;  %v419_v43 = vld [vmem:[%s6261_s26 + $0x20] sm:$0xff] }
  0x1d   : > { %455 = vst.msk [vmem:[#allocation3 + $0x18] sm:$0xff] %vm451_vm0, %v418_v37  ;;  %v524_v39 = vld [vmem:[%s6261_s26 + $0x119] sm:$0x3f]  ;;  %v708_v40 = vld [vmem:[%s6261_s26 + $0xa] sm:$0xff]  ;;  %v707_v41 = vld [vmem:[%s6261_s26 + $0x2] sm:$0xff] }
  0x1e   : > { %453 = vst.msk [vmem:[#allocation3 + $0x8] sm:$0xff] %vm451_vm0, %v416_v38  ;;  %v422_v44 = vld [vmem:[%s6261_s26 + $0x38] sm:$0xff]  ;;  %v421_v45 = vld [vmem:[%s6261_s26 + $0x30] sm:$0xff]  ;;  %v6358_v47 = vld [vmem:[%s6261_s26 + $0x22] sm:$0xff] }
  0x1f   : > { %456 = vst.msk [vmem:[#allocation3 + $0x20] sm:$0xff] %vm451_vm0, %v419_v43  ;;  %v6355_v46 = vld [vmem:[%s6261_s26 + $0x12] sm:$0xff]  ;;  %v6361_v48 = vld [vmem:[%s6261_s26 + $0x1a] sm:$0xff]  ;;  %v420_v50 = vld [vmem:[%s6261_s26 + $0x28] sm:$0xff] }
  0x20   : > { %575 = vrot.lane.b32.xlu1 %v496_v6, %s6167_s27  ;;  %573 = vrot.lane.b32.xlu0 %v495_v7, %s6167_s27  ;;  %459 = vst.msk [vmem:[#allocation3 + $0x38] sm:$0xff] %vm451_vm0, %v422_v44  ;;  %v425_v51 = vld [vmem:[%s6261_s26 + $0x50] sm:$0xff]  ;;  %v424_v52 = vld [vmem:[%s6261_s26 + $0x48] sm:$0xff] }
  0x21   : > { %577 = vrot.lane.b32.xlu2 %v497_v8, %s6167_s27  ;;  %458 = vst.msk [vmem:[#allocation3 + $0x30] sm:$0xff] %vm451_vm0, %v421_v45  ;;  %v6377_v53 = vld [vmem:[%s6261_s26 + $0x2a] sm:$0xff]  ;;  %v6380_v54 = vld [vmem:[%s6261_s26 + $0x3a] sm:$0xff]  ;;  %v6383_v55 = vld [vmem:[%s6261_s26 + $0x32] sm:$0xff] }
  0x22   : > { %457 = vst.msk [vmem:[#allocation3 + $0x28] sm:$0xff] %vm451_vm0, %v420_v50  ;;  %v423_v57 = vld [vmem:[%s6261_s26 + $0x40] sm:$0xff]  ;;  %v428_v60 = vld [vmem:[%s6261_s26 + $0x68] sm:$0xff]  ;;  %v6402_v63 = vld [vmem:[%s6261_s26 + $0x52] sm:$0xff] }
  0x23   : > { %462 = vst.msk [vmem:[#allocation3 + $0x50] sm:$0xff] %vm451_vm0, %v425_v51  ;;  %v427_v61 = vld [vmem:[%s6261_s26 + $0x60] sm:$0xff]  ;;  %v6405_v0 = vld [vmem:[%s6261_s26 + $0x4a] sm:$0xff]  ;;  %v426_v2 = vld [vmem:[%s6261_s26 + $0x58] sm:$0xff] }
  0x24   : > { %461 = vst.msk [vmem:[#allocation3 + $0x48] sm:$0xff] %vm451_vm0, %v424_v52  ;;  %v6399_v62 = vld [vmem:[%s6261_s26 + $0x42] sm:$0xff]  ;;  %v430_v6 = vld [vmem:[%s6261_s26 + $0x78] sm:$0xff]  ;;  %v6426_v8 = vld [vmem:[%s6261_s26 + $0x6a] sm:$0xff] }
  0x25   : > { %460 = vst.msk [vmem:[#allocation3 + $0x40] sm:$0xff] %vm451_vm0, %v423_v57  ;;  %v431_v5 = vld [vmem:[%s6261_s26 + $0x80] sm:$0xff]  ;;  %v440_v32 = vld [vmem:[%s6261_s26 + $0xc8] sm:$0xff]  ;;  %v438_v38 = vld [vmem:[%s6261_s26 + $0xb8] sm:$0xff] }
  0x26   : > { %465 = vst.msk [vmem:[#allocation3 + $0x68] sm:$0xff] %vm451_vm0, %v428_v60  ;;  %v6423_v7 = vld [vmem:[%s6261_s26 + $0x5a] sm:$0xff]  ;;  %v6522_v44 = vld [vmem:[%s6261_s26 + $0xca] sm:$0xff]  ;;  %v6525_v45 = vld [vmem:[%s6261_s26 + $0xc2] sm:$0xff] }
  0x27   : > { %464 = vst.msk [vmem:[#allocation3 + $0x60] sm:$0xff] %vm451_vm0, %v427_v61  ;;  %v439_v33 = vld [vmem:[%s6261_s26 + $0xc0] sm:$0xff]  ;;  %v441_v50 = vld [vmem:[%s6261_s26 + $0xd0] sm:$0xff] }
  0x28   : > { %581 = vrot.lane.b32.xlu1 %v499_v9, %s6167_s27  ;;  %579 = vrot.lane.b32.xlu0 %v498_v10, %s6167_s27  ;;  %463 = vst.msk [vmem:[#allocation3 + $0x58] sm:$0xff] %vm451_vm0, %v426_v2  ;;  %v6429_v9 = vld [vmem:[%s6261_s26 + $0x62] sm:$0xff]  ;;  %v6519_v43 = vld [vmem:[%s6261_s26 + $0xba] sm:$0xff] }
  0x29   : > { %583 = vrot.lane.b32.xlu2 %v500_v11, %s6167_s27  ;;  %468 = vst.msk [vmem:[#allocation3 + $0x80] sm:$0xff] %vm451_vm0, %v431_v5  ;;  %v429_v11 = vld [vmem:[%s6261_s26 + $0x70] sm:$0xff]  ;;  %v6549_v60 = vld [vmem:[%s6261_s26 + $0xda] sm:$0xff]  ;;  %v448_v5 = vld [vmem:[%s6261_s26 + $0x108] sm:$0xff] }
  0x2a   : > { %467 = vst.msk [vmem:[#allocation3 + $0x78] sm:$0xff] %vm451_vm0, %v430_v6  ;;  %v445_v57 = vld [vmem:[%s6261_s26 + $0xf0] sm:$0xff] }
  0x2b   : > { %466 = vst.msk [vmem:[#allocation3 + $0x70] sm:$0xff] %vm451_vm0, %v429_v11  ;;  %v6567_v6 = vld [vmem:[%s6261_s26 + $0xea] sm:$0xff]  ;;  %v6573_v11 = vld [vmem:[%s6261_s26 + $0xf2] sm:$0xff] }
  0x2c   : > { %477 = vst.msk [vmem:[#allocation3 + $0xc8] sm:$0xff] %vm451_vm0, %v440_v32 }
  0x2d   : > { %476 = vst.msk [vmem:[#allocation3 + $0xc0] sm:$0xff] %vm451_vm0, %v439_v33 }
  0x2e   : > { %475 = vst.msk [vmem:[#allocation3 + $0xb8] sm:$0xff] %vm451_vm0, %v438_v38 }
  0x2f   : > { %478 = vst.msk [vmem:[#allocation3 + $0xd0] sm:$0xff] %vm451_vm0, %v441_v50 }
  0x30   : > { %587 = vrot.lane.b32.xlu1 %v502_v12, %s6167_s27  ;;  %585 = vrot.lane.b32.xlu0 %v501_v13, %s6167_s27  ;;  %482 = vst.msk [vmem:[#allocation3 + $0xf0] sm:$0xff] %vm451_vm0, %v445_v57  ;;  %v1144_v57 = vld [vmem:[%s6261_s26 + $0x1b] sm:$0xff] }
  0x31   : > { %589 = vrot.lane.b32.xlu2 %v503_v14, %s6167_s27  ;;  %v434_v14 = vld [vmem:[%s6261_s26 + $0x98] sm:$0xff]  ;;  %485 = vst.msk [vmem:[#allocation3 + $0x108] sm:$0xff] %vm451_vm0, %v448_v5 }
  0x32   : > { %471 = vst.msk [vmem:[#allocation3 + $0x98] sm:$0xff] %vm451_vm0, %v434_v14 }
  0x38   : > { %593 = vrot.lane.b32.xlu1 %v505_v15, %s6167_s27  ;;  %591 = vrot.lane.b32.xlu0 %v504_v16, %s6167_s27  ;;  %v433_v15 = vld [vmem:[%s6261_s26 + $0x90] sm:$0xff] }
  0x39   : > { %595 = vrot.lane.b32.xlu2 %v506_v17, %s6167_s27  ;;  %v6447_v16 = vld [vmem:[%s6261_s26 + $0x72] sm:$0xff]  ;;  %v6450_v17 = vld [vmem:[%s6261_s26 + $0x82] sm:$0xff]  ;;  %470 = vst.msk [vmem:[#allocation3 + $0x90] sm:$0xff] %vm451_vm0, %v433_v15 }
  0x40   : > { %599 = vrot.lane.b32.xlu1 %v508_v18, %s6167_s27  ;;  %597 = vrot.lane.b32.xlu0 %v507_v19, %s6167_s27  ;;  %v6453_v18 = vld [vmem:[%s6261_s26 + $0x7a] sm:$0xff] }
  0x41   : > { %601 = vrot.lane.b32.xlu2 %v509_v20, %s6167_s27  ;;  %v432_v20 = vld [vmem:[%s6261_s26 + $0x88] sm:$0xff] }
  0x42   : > { %469 = vst.msk [vmem:[#allocation3 + $0x88] sm:$0xff] %vm451_vm0, %v432_v20  ;;  %v6592_v20 = vld [vmem:[%s6261_s26 + $0x112] sm:$0xff] }
  0x48   : > { %605 = vrot.lane.b32.xlu1 %v511_v21, %s6167_s27  ;;  %603 = vrot.lane.b32.xlu0 %v510_v22, %s6167_s27 }
  0x49   : > { %607 = vrot.lane.b32.xlu2 %v512_v23, %s6167_s27  ;;  %v437_v23 = vld [vmem:[%s6261_s26 + $0xb0] sm:$0xff] }
  0x4a   : > { %474 = vst.msk [vmem:[#allocation3 + $0xb0] sm:$0xff] %vm451_vm0, %v437_v23  ;;  %v450_v23 = vld [vmem:[%s6261_s26 + $0x118] sm:$0x3f] }
  0x4b   : > { %488 = vst.msk [vmem:[#allocation3 + $0x118] sm:$0x3f] %vm487_vm2, %v450_v23  ;;  %vm2307_vm2 = vcmask 293888  }
  0x50   : > { %611 = vrot.lane.b32.xlu1 %v514_v24, %s6167_s27  ;;  %609 = vrot.lane.b32.xlu0 %v513_v25, %s6167_s27  ;;  %v436_v24 = vld [vmem:[%s6261_s26 + $0xa8] sm:$0xff] }
  0x51   : > { %613 = vrot.lane.b32.xlu2 %v515_v26, %s6167_s27  ;;  %v6471_v25 = vld [vmem:[%s6261_s26 + $0x8a] sm:$0xff]  ;;  %v6474_v26 = vld [vmem:[%s6261_s26 + $0x9a] sm:$0xff]  ;;  %473 = vst.msk [vmem:[#allocation3 + $0xa8] sm:$0xff] %vm451_vm0, %v436_v24 }
  0x58   : > { %617 = vrot.lane.b32.xlu1 %v517_v27, %s6167_s27  ;;  %615 = vrot.lane.b32.xlu0 %v516_v28, %s6167_s27  ;;  %v6477_v27 = vld [vmem:[%s6261_s26 + $0x92] sm:$0xff] }
  0x59   : > { %619 = vrot.lane.b32.xlu2 %v518_v29, %s6167_s27  ;;  %v435_v29 = vld [vmem:[%s6261_s26 + $0xa0] sm:$0xff] }
  0x5a   : > { %472 = vst.msk [vmem:[#allocation3 + $0xa0] sm:$0xff] %vm451_vm0, %v435_v29  ;;  %v742_v29 = vld [vmem:[%s6261_s26 + $0x11a] sm:$0x3f] }
  0x60   : > { %623 = vrot.lane.b32.xlu1 %v520_v30, %s6167_s27  ;;  %621 = vrot.lane.b32.xlu0 %v519_v31, %s6167_s27 }
  0x61   : > { %625 = vrot.lane.b32.xlu2 %v521_v34, %s6167_s27  ;;  %v6495_v34 = vld [vmem:[%s6261_s26 + $0xa2] sm:$0xff] }
  0x68   : > { %629 = vrot.lane.b32.xlu1 %v523_v35, %s6167_s27  ;;  %627 = vrot.lane.b32.xlu0 %v522_v36, %s6167_s27  ;;  %v6498_v35 = vld [vmem:[%s6261_s26 + $0xb2] sm:$0xff]  ;;  %v6501_v36 = vld [vmem:[%s6261_s26 + $0xaa] sm:$0xff] }
  0x69   : > { %631 = vrot.lane.b32.xlu2 %v524_v39, %s6167_s27 }
  0x6b   : > { %v570_v42 = vpop.permute.xlu2 %569 }
  0x6c   : > { %674 = vst.msk [vmem:[#allocation3 + $0x20] sm:$0xff] %vm669_vm1, %v570_v42  ;;  %v442_v42 = vld [vmem:[%s6261_s26 + $0xd8] sm:$0xff] }
  0x6d   : > { %479 = vst.msk [vmem:[#allocation3 + $0xd8] sm:$0xff] %vm451_vm0, %v442_v42 }
  0x70   : > { %781 = vrot.lane.b32.xlu1 %v708_v40, %s6168_s28  ;;  %779 = vrot.lane.b32.xlu0 %v707_v41, %s6168_s28  ;;  %v443_v41 = vld [vmem:[%s6261_s26 + $0xe0] sm:$0xff] }
  0x71   : > { %783 = vrot.lane.b32.xlu2 %v6355_v46, %s6168_s28  ;;  %480 = vst.msk [vmem:[#allocation3 + $0xe0] sm:$0xff] %vm451_vm0, %v443_v41 }
  0x73   : > { %v572_v49 = vpop.permute.xlu2 %571 }
  0x74   : > { %675 = vst.msk [vmem:[#allocation3 + $0x28] sm:$0xff] %vm669_vm1, %v572_v49 }
  0x78   : > { %787 = vrot.lane.b32.xlu1 %v6358_v47, %s6168_s28  ;;  %785 = vrot.lane.b32.xlu0 %v6361_v48, %s6168_s28 }
  0x79   : > { %789 = vrot.lane.b32.xlu2 %v6377_v53, %s6168_s28 }
  0x7b   : > { %v578_v56 = vpop.permute.xlu2 %577 }
  0x7c   : > { %678 = vst.msk [vmem:[#allocation3 + $0x40] sm:$0xff] %vm669_vm1, %v578_v56  ;;  %v446_v56 = vld [vmem:[%s6261_s26 + $0xf8] sm:$0xff] }
  0x7d   : > { %483 = vst.msk [vmem:[#allocation3 + $0xf8] sm:$0xff] %vm451_vm0, %v446_v56  ;;  %v960_v56 = vld [vmem:[%s6261_s26 + $0x12a] sm:$0x3f] }
  0x80   : > { %793 = vrot.lane.b32.xlu1 %v6380_v54, %s6168_s28  ;;  %791 = vrot.lane.b32.xlu0 %v6383_v55, %s6168_s28 }
  0x81   : > { %795 = vrot.lane.b32.xlu2 %v6399_v62, %s6168_s28 }
  0x82   : > { %v566_v58 = vpop.permute.xlu1 %565  ;;  %v562_v59 = vpop.permute.xlu0 %561 }
  0x83   : > { %672 = vst.msk [vmem:[#allocation3 + $0x10] sm:$0xff] %vm669_vm1, %v566_v58  ;;  %v584_v1 = vpop.permute.xlu2 %583  ;;  %v6543_v58 = vld [vmem:[%s6261_s26 + $0xd2] sm:$0xff] }
  0x84   : > { %670 = vst.msk [vmem:[#allocation3] sm:$0xff] %vm669_vm1, %v562_v59  ;;  %v6546_v59 = vld [vmem:[%s6261_s26 + $0xe2] sm:$0xff] }
  0x85   : > { %681 = vst.msk [vmem:[#allocation3 + $0x58] sm:$0xff] %vm669_vm1, %v584_v1  ;;  %v444_v1 = vld [vmem:[%s6261_s26 + $0xe8] sm:$0xff] }
  0x86   : > { %481 = vst.msk [vmem:[#allocation3 + $0xe8] sm:$0xff] %vm451_vm0, %v444_v1  ;;  %v1145_v1 = vld [vmem:[%s6261_s26 + $0x23] sm:$0xff] }
  0x88   : > { %799 = vrot.lane.b32.xlu1 %v6402_v63, %s6168_s28  ;;  %797 = vrot.lane.b32.xlu0 %v6405_v0, %s6168_s28 }
  0x89   : > { %801 = vrot.lane.b32.xlu2 %v6423_v7, %s6168_s28 }
  0x8a   : > { %v568_v3 = vpop.permute.xlu1 %567  ;;  %v564_v4 = vpop.permute.xlu0 %563 }
  0x8b   : > { %673 = vst.msk [vmem:[#allocation3 + $0x18] sm:$0xff] %vm669_vm1, %v568_v3  ;;  %v590_v10 = vpop.permute.xlu2 %589 }
  0x8c   : > { %671 = vst.msk [vmem:[#allocation3 + $0x8] sm:$0xff] %vm669_vm1, %v564_v4  ;;  %v449_v4 = vld [vmem:[%s6261_s26 + $0x110] sm:$0xff] }
  0x8d   : > { %684 = vst.msk [vmem:[#allocation3 + $0x70] sm:$0xff] %vm669_vm1, %v590_v10  ;;  %v6570_v10 = vld [vmem:[%s6261_s26 + $0xfa] sm:$0xff] }
  0x8e   : > { %486 = vst.msk [vmem:[#allocation3 + $0x110] sm:$0xff] %vm451_vm0, %v449_v4 }
  0x90   : > { %805 = vrot.lane.b32.xlu1 %v6426_v8, %s6168_s28  ;;  %803 = vrot.lane.b32.xlu0 %v6429_v9, %s6168_s28 }
  0x91   : > { %807 = vrot.lane.b32.xlu2 %v6447_v16, %s6168_s28 }
  0x92   : > { %v576_v12 = vpop.permute.xlu1 %575  ;;  %v574_v13 = vpop.permute.xlu0 %573 }
  0x93   : > { %677 = vst.msk [vmem:[#allocation3 + $0x38] sm:$0xff] %vm669_vm1, %v576_v12  ;;  %v596_v19 = vpop.permute.xlu2 %595 }
  0x94   : > { %676 = vst.msk [vmem:[#allocation3 + $0x30] sm:$0xff] %vm669_vm1, %v574_v13  ;;  %v447_v13 = vld [vmem:[%s6261_s26 + $0x100] sm:$0xff] }
  0x95   : > { %687 = vst.msk [vmem:[#allocation3 + $0x88] sm:$0xff] %vm669_vm1, %v596_v19  ;;  %v6589_v19 = vld [vmem:[%s6261_s26 + $0x102] sm:$0xff] }
  0x96   : > { %484 = vst.msk [vmem:[#allocation3 + $0x100] sm:$0xff] %vm451_vm0, %v447_v13  ;;  %vm2013_vm0 = vcmask 259296  }
  0x98   : > { %811 = vrot.lane.b32.xlu1 %v6450_v17, %s6168_s28  ;;  %809 = vrot.lane.b32.xlu0 %v6453_v18, %s6168_s28 }
  0x99   : > { %813 = vrot.lane.b32.xlu2 %v6471_v25, %s6168_s28 }
  0x9a   : > { %v582_v21 = vpop.permute.xlu1 %581  ;;  %v580_v22 = vpop.permute.xlu0 %579 }
  0x9b   : > { %680 = vst.msk [vmem:[#allocation3 + $0x50] sm:$0xff] %vm669_vm1, %v582_v21  ;;  %v602_v28 = vpop.permute.xlu2 %601  ;;  %v6595_v21 = vld [vmem:[%s6261_s26 + $0x10a] sm:$0xff] }
  0x9c   : > { %679 = vst.msk [vmem:[#allocation3 + $0x48] sm:$0xff] %vm669_vm1, %v580_v22 }
  0x9d   : > { %690 = vst.msk [vmem:[#allocation3 + $0xa0] sm:$0xff] %vm669_vm1, %v602_v28 }
  0xa0   : > { %817 = vrot.lane.b32.xlu1 %v6474_v26, %s6168_s28  ;;  %815 = vrot.lane.b32.xlu0 %v6477_v27, %s6168_s28 }
  0xa1   : > { %819 = vrot.lane.b32.xlu2 %v6495_v34, %s6168_s28 }
  0xa2   : > { %v588_v30 = vpop.permute.xlu1 %587  ;;  %v586_v31 = vpop.permute.xlu0 %585 }
  0xa3   : > { %683 = vst.msk [vmem:[#allocation3 + $0x68] sm:$0xff] %vm669_vm1, %v588_v30  ;;  %v608_v37 = vpop.permute.xlu2 %607 }
  0xa4   : > { %682 = vst.msk [vmem:[#allocation3 + $0x60] sm:$0xff] %vm669_vm1, %v586_v31 }
  0xa5   : > { %693 = vst.msk [vmem:[#allocation3 + $0xb8] sm:$0xff] %vm669_vm1, %v608_v37 }
  0xa8   : > { %823 = vrot.lane.b32.xlu1 %v6498_v35, %s6168_s28  ;;  %821 = vrot.lane.b32.xlu0 %v6501_v36, %s6168_s28 }
  0xa9   : > { %825 = vrot.lane.b32.xlu2 %v6519_v43, %s6168_s28 }
  0xaa   : > { %v594_v39 = vpop.permute.xlu1 %593  ;;  %v592_v40 = vpop.permute.xlu0 %591 }
  0xab   : > { %686 = vst.msk [vmem:[#allocation3 + $0x80] sm:$0xff] %vm669_vm1, %v594_v39  ;;  %v614_v49 = vpop.permute.xlu2 %613 }
  0xac   : > { %685 = vst.msk [vmem:[#allocation3 + $0x78] sm:$0xff] %vm669_vm1, %v592_v40 }
  0xad   : > { %696 = vst.msk [vmem:[#allocation3 + $0xd0] sm:$0xff] %vm669_vm1, %v614_v49  ;;  %v958_v49 = vld [vmem:[%s6261_s26 + $0x11a] sm:$0xff] }
  0xb0   : > { %829 = vrot.lane.b32.xlu1 %v6522_v44, %s6168_s28  ;;  %827 = vrot.lane.b32.xlu0 %v6525_v45, %s6168_s28 }
  0xb1   : > { %831 = vrot.lane.b32.xlu2 %v6543_v58, %s6168_s28 }
  0xb2   : > { %v600_v51 = vpop.permute.xlu1 %599  ;;  %v598_v52 = vpop.permute.xlu0 %597 }
  0xb3   : > { %689 = vst.msk [vmem:[#allocation3 + $0x98] sm:$0xff] %vm669_vm1, %v600_v51  ;;  %v620_v61 = vpop.permute.xlu2 %619 }
  0xb4   : > { %688 = vst.msk [vmem:[#allocation3 + $0x90] sm:$0xff] %vm669_vm1, %v598_v52 }
  0xb5   : > { %699 = vst.msk [vmem:[#allocation3 + $0xe8] sm:$0xff] %vm669_vm1, %v620_v61 }
  0xb8   : > { %835 = vrot.lane.b32.xlu1 %v6546_v59, %s6168_s28  ;;  %833 = vrot.lane.b32.xlu0 %v6549_v60, %s6168_s28 }
  0xb9   : > { %837 = vrot.lane.b32.xlu2 %v6567_v6, %s6168_s28 }
  0xba   : > { %v606_v2 = vpop.permute.xlu1 %605  ;;  %v604_v3 = vpop.permute.xlu0 %603 }
  0xbb   : > { %692 = vst.msk [vmem:[#allocation3 + $0xb0] sm:$0xff] %vm669_vm1, %v606_v2  ;;  %v626_v12 = vpop.permute.xlu2 %625  ;;  %v1147_v2 = vld [vmem:[%s6261_s26 + $0x33] sm:$0xff] }
  0xbc   : > { %691 = vst.msk [vmem:[#allocation3 + $0xa8] sm:$0xff] %vm669_vm1, %v604_v3  ;;  %v1146_v3 = vld [vmem:[%s6261_s26 + $0x2b] sm:$0xff] }
  0xbd   : > { %702 = vst.msk [vmem:[#allocation3 + $0x100] sm:$0xff] %vm669_vm1, %v626_v12  ;;  %v1149_v12 = vld [vmem:[%s6261_s26 + $0x43] sm:$0xff] }
  0xc0   : > { %841 = vrot.lane.b32.xlu1 %v6570_v10, %s6168_s28  ;;  %839 = vrot.lane.b32.xlu0 %v6573_v11, %s6168_s28 }
  0xc1   : > { %843 = vrot.lane.b32.xlu2 %v6589_v19, %s6168_s28 }
  0xc2   : > { %v612_v14 = vpop.permute.xlu1 %611  ;;  %v610_v15 = vpop.permute.xlu0 %609 }
  0xc3   : > { %695 = vst.msk [vmem:[#allocation3 + $0xc8] sm:$0xff] %vm669_vm1, %v612_v14  ;;  %v632_v22 = vpop.permute.xlu2 %631 }
  0xc4   : > { %694 = vst.msk [vmem:[#allocation3 + $0xc0] sm:$0xff] %vm669_vm1, %v610_v15 }
  0xc5   : > { %706 = vst.msk [vmem:[#allocation3 + $0x118] sm:$0x3f] %vm705_vm3, %v632_v22  ;;  %vm2231_vm3 = vcmask 292096  }
  0xc8   : > { %847 = vrot.lane.b32.xlu1 %v6592_v20, %s6168_s28  ;;  %845 = vrot.lane.b32.xlu0 %v6595_v21, %s6168_s28 }
  0xc9   : > { %849 = vrot.lane.b32.xlu2 %v742_v29, %s6168_s28  ;;  %v1156_v29 = vld [vmem:[%s6261_s26 + $0x7b] sm:$0xff] }
  0xca   : > { %v618_v24 = vpop.permute.xlu1 %617  ;;  %v616_v28 = vpop.permute.xlu0 %615 }
  0xcb   : > { %698 = vst.msk [vmem:[#allocation3 + $0xe0] sm:$0xff] %vm669_vm1, %v618_v24  ;;  %v784_v30 = vpop.permute.xlu2 %783 }
  0xcc   : > { %697 = vst.msk [vmem:[#allocation3 + $0xd8] sm:$0xff] %vm669_vm1, %v616_v28  ;;  %v1154_v28 = vld [vmem:[%s6261_s26 + $0x6b] sm:$0xff] }
  0xcd   : > { %890 = vst.msk [vmem:[#allocation3 + $0x10] sm:$0xff] %vm887_vm4, %v784_v30  ;;  %v1155_v30 = vld [vmem:[%s6261_s26 + $0x73] sm:$0xff] }
  0xd0   : > { %999 = vrot.lane.b32.xlu1 %v6361_v48, %s6169_s29  ;;  %997 = vrot.lane.b32.xlu0 %v6355_v46, %s6169_s29 }
  0xd1   : > { %1001 = vrot.lane.b32.xlu2 %v6358_v47, %s6169_s29 }
  0xd2   : > { %v624_v31 = vpop.permute.xlu1 %623  ;;  %v622_v32 = vpop.permute.xlu0 %621 }
  0xd3   : > { %701 = vst.msk [vmem:[#allocation3 + $0xf8] sm:$0xff] %vm669_vm1, %v624_v31  ;;  %v790_v46 = vpop.permute.xlu2 %789 }
  0xd4   : > { %700 = vst.msk [vmem:[#allocation3 + $0xf0] sm:$0xff] %vm669_vm1, %v622_v32 }
  0xd5   : > { %893 = vst.msk [vmem:[#allocation3 + $0x28] sm:$0xff] %vm887_vm4, %v790_v46 }
  0xd8   : > { %1005 = vrot.lane.b32.xlu1 %v6383_v55, %s6169_s29  ;;  %1003 = vrot.lane.b32.xlu0 %v6377_v53, %s6169_s29 }
  0xd9   : > { %1007 = vrot.lane.b32.xlu2 %v6380_v54, %s6169_s29 }
  0xda   : > { %v630_v48 = vpop.permute.xlu1 %629  ;;  %v628_v33 = vpop.permute.xlu0 %627 }
  0xdb   : > { %704 = vst.msk [vmem:[#allocation3 + $0x110] sm:$0xff] %vm669_vm1, %v630_v48  ;;  %v796_v47 = vpop.permute.xlu2 %795  ;;  %v1157_v48 = vld [vmem:[%s6261_s26 + $0x83] sm:$0xff] }
  0xdc   : > { %703 = vst.msk [vmem:[#allocation3 + $0x108] sm:$0xff] %vm669_vm1, %v628_v33  ;;  %v1159_v33 = vld [vmem:[%s6261_s26 + $0x93] sm:$0xff]  ;;  %vm2195_vm1 = vcmask 294144  }
  0xdd   : > { %896 = vst.msk [vmem:[#allocation3 + $0x40] sm:$0xff] %vm887_vm4, %v796_v47  ;;  %v1158_v47 = vld [vmem:[%s6261_s26 + $0x8b] sm:$0xff] }
  0xe0   : > { %1011 = vrot.lane.b32.xlu1 %v6405_v0, %s6169_s29  ;;  %1009 = vrot.lane.b32.xlu0 %v6399_v62, %s6169_s29 }
  0xe1   : > { %1013 = vrot.lane.b32.xlu2 %v6402_v63, %s6169_s29 }
  0xe2   : > { %v782_v53 = vpop.permute.xlu1 %781  ;;  %v780_v55 = vpop.permute.xlu0 %779 }
  0xe3   : > { %889 = vst.msk [vmem:[#allocation3 + $0x8] sm:$0xff] %vm887_vm4, %v782_v53  ;;  %v802_v54 = vpop.permute.xlu2 %801 }
  0xe4   : > { %888 = vst.msk [vmem:[#allocation3] sm:$0xff] %vm887_vm4, %v780_v55 }
  0xe5   : > { %899 = vst.msk [vmem:[#allocation3 + $0x58] sm:$0xff] %vm887_vm4, %v802_v54 }
  0xe8   : > { %1017 = vrot.lane.b32.xlu1 %v6429_v9, %s6169_s29  ;;  %1015 = vrot.lane.b32.xlu0 %v6423_v7, %s6169_s29 }
  0xe9   : > { %1019 = vrot.lane.b32.xlu2 %v6426_v8, %s6169_s29 }
  0xea   : > { %v788_v62 = vpop.permute.xlu1 %787  ;;  %v786_v0 = vpop.permute.xlu0 %785 }
  0xeb   : > { %892 = vst.msk [vmem:[#allocation3 + $0x20] sm:$0xff] %vm887_vm4, %v788_v62  ;;  %v808_v63 = vpop.permute.xlu2 %807  ;;  %v1160_v62 = vld [vmem:[%s6261_s26 + $0x9b] sm:$0xff] }
  0xec   : > { %891 = vst.msk [vmem:[#allocation3 + $0x18] sm:$0xff] %vm887_vm4, %v786_v0  ;;  %v1162_v0 = vld [vmem:[%s6261_s26 + $0xab] sm:$0xff] }
  0xed   : > { %902 = vst.msk [vmem:[#allocation3 + $0x70] sm:$0xff] %vm887_vm4, %v808_v63  ;;  %v1161_v63 = vld [vmem:[%s6261_s26 + $0xa3] sm:$0xff] }
  0xf0   : > { %1023 = vrot.lane.b32.xlu1 %v6453_v18, %s6169_s29  ;;  %1021 = vrot.lane.b32.xlu0 %v6447_v16, %s6169_s29 }
  0xf1   : > { %1025 = vrot.lane.b32.xlu2 %v6450_v17, %s6169_s29 }
  0xf2   : > { %v794_v7 = vpop.permute.xlu1 %793  ;;  %v792_v9 = vpop.permute.xlu0 %791 }
  0xf3   : > { %895 = vst.msk [vmem:[#allocation3 + $0x38] sm:$0xff] %vm887_vm4, %v794_v7  ;;  %v814_v8 = vpop.permute.xlu2 %813 }
  0xf4   : > { %894 = vst.msk [vmem:[#allocation3 + $0x30] sm:$0xff] %vm887_vm4, %v792_v9 }
  0xf5   : > { %905 = vst.msk [vmem:[#allocation3 + $0x88] sm:$0xff] %vm887_vm4, %v814_v8 }
  0xf8   : > { %1029 = vrot.lane.b32.xlu1 %v6477_v27, %s6169_s29  ;;  %1027 = vrot.lane.b32.xlu0 %v6471_v25, %s6169_s29 }
  0xf9   : > { %1031 = vrot.lane.b32.xlu2 %v6474_v26, %s6169_s29 }
  0xfa   : > { %v800_v16 = vpop.permute.xlu1 %799  ;;  %v798_v18 = vpop.permute.xlu0 %797 }
  0xfb   : > { %898 = vst.msk [vmem:[#allocation3 + $0x50] sm:$0xff] %vm887_vm4, %v800_v16  ;;  %v820_v17 = vpop.permute.xlu2 %819  ;;  %v1163_v16 = vld [vmem:[%s6261_s26 + $0xb3] sm:$0xff] }
  0xfc   : > { %897 = vst.msk [vmem:[#allocation3 + $0x48] sm:$0xff] %vm887_vm4, %v798_v18  ;;  %v1165_v18 = vld [vmem:[%s6261_s26 + $0xc3] sm:$0xff] }
  0xfd   : > { %908 = vst.msk [vmem:[#allocation3 + $0xa0] sm:$0xff] %vm887_vm4, %v820_v17  ;;  %v1164_v17 = vld [vmem:[%s6261_s26 + $0xbb] sm:$0xff] }
 0x100   : > { %1035 = vrot.lane.b32.xlu1 %v6501_v36, %s6169_s29  ;;  %1033 = vrot.lane.b32.xlu0 %v6495_v34, %s6169_s29 }
 0x101   : > { %1037 = vrot.lane.b32.xlu2 %v6498_v35, %s6169_s29 }
 0x102   : > { %v806_v25 = vpop.permute.xlu1 %805  ;;  %v804_v27 = vpop.permute.xlu0 %803 }
 0x103   : > { %901 = vst.msk [vmem:[#allocation3 + $0x68] sm:$0xff] %vm887_vm4, %v806_v25  ;;  %v826_v26 = vpop.permute.xlu2 %825 }
 0x104   : > { %900 = vst.msk [vmem:[#allocation3 + $0x60] sm:$0xff] %vm887_vm4, %v804_v27 }
 0x105   : > { %911 = vst.msk [vmem:[#allocation3 + $0xb8] sm:$0xff] %vm887_vm4, %v826_v26 }
 0x108   : > { %1041 = vrot.lane.b32.xlu1 %v6525_v45, %s6169_s29  ;;  %1039 = vrot.lane.b32.xlu0 %v6519_v43, %s6169_s29  ;;  %v959_v45 = vld [vmem:[%s6261_s26 + $0x122] sm:$0xff] }
 0x109   : > { %1043 = vrot.lane.b32.xlu2 %v6522_v44, %s6169_s29 }
 0x10a   : > { %v812_v34 = vpop.permute.xlu1 %811  ;;  %v810_v36 = vpop.permute.xlu0 %809 }
 0x10b   : > { %904 = vst.msk [vmem:[#allocation3 + $0x80] sm:$0xff] %vm887_vm4, %v812_v34  ;;  %v832_v35 = vpop.permute.xlu2 %831  ;;  %v1166_v34 = vld [vmem:[%s6261_s26 + $0xcb] sm:$0xff] }
 0x10c   : > { %903 = vst.msk [vmem:[#allocation3 + $0x78] sm:$0xff] %vm887_vm4, %v810_v36  ;;  %v1168_v36 = vld [vmem:[%s6261_s26 + $0xdb] sm:$0xff] }
 0x10d   : > { %914 = vst.msk [vmem:[#allocation3 + $0xd0] sm:$0xff] %vm887_vm4, %v832_v35  ;;  %v1167_v35 = vld [vmem:[%s6261_s26 + $0xd3] sm:$0xff] }
 0x110   : > { %1047 = vrot.lane.b32.xlu1 %v6549_v60, %s6169_s29  ;;  %1045 = vrot.lane.b32.xlu0 %v6543_v58, %s6169_s29  ;;  %v1143_v58 = vld [vmem:[%s6261_s26 + $0x13] sm:$0xff] }
 0x111   : > { %1049 = vrot.lane.b32.xlu2 %v6546_v59, %s6169_s29 }
 0x112   : > { %v818_v37 = vpop.permute.xlu1 %817  ;;  %v816_v38 = vpop.permute.xlu0 %815 }
 0x113   : > { %907 = vst.msk [vmem:[#allocation3 + $0x98] sm:$0xff] %vm887_vm4, %v818_v37  ;;  %v838_v39 = vpop.permute.xlu2 %837 }
 0x114   : > { %906 = vst.msk [vmem:[#allocation3 + $0x90] sm:$0xff] %vm887_vm4, %v816_v38 }
 0x115   : > { %917 = vst.msk [vmem:[#allocation3 + $0xe8] sm:$0xff] %vm887_vm4, %v838_v39 }
 0x118   : > { %1053 = vrot.lane.b32.xlu1 %v6573_v11, %s6169_s29  ;;  %1051 = vrot.lane.b32.xlu0 %v6567_v6, %s6169_s29  ;;  %v1150_v11 = vld [vmem:[%s6261_s26 + $0x4b] sm:$0xff] }
 0x119   : > { %1055 = vrot.lane.b32.xlu2 %v6570_v10, %s6169_s29  ;;  %v1148_v10 = vld [vmem:[%s6261_s26 + $0x3b] sm:$0xff] }
 0x11a   : > { %v824_v40 = vpop.permute.xlu1 %823  ;;  %v822_v41 = vpop.permute.xlu0 %821 }
 0x11b   : > { %910 = vst.msk [vmem:[#allocation3 + $0xb0] sm:$0xff] %vm887_vm4, %v824_v40  ;;  %v844_v42 = vpop.permute.xlu2 %843  ;;  %v1169_v40 = vld [vmem:[%s6261_s26 + $0xe3] sm:$0xff] }
 0x11c   : > { %909 = vst.msk [vmem:[#allocation3 + $0xa8] sm:$0xff] %vm887_vm4, %v822_v41  ;;  %v1171_v41 = vld [vmem:[%s6261_s26 + $0xf3] sm:$0xff] }
 0x11d   : > { %920 = vst.msk [vmem:[#allocation3 + $0x100] sm:$0xff] %vm887_vm4, %v844_v42  ;;  %v1170_v42 = vld [vmem:[%s6261_s26 + $0xeb] sm:$0xff] }
 0x120   : > { %1059 = vrot.lane.b32.xlu1 %v6595_v21, %s6169_s29  ;;  %1057 = vrot.lane.b32.xlu0 %v6589_v19, %s6169_s29  ;;  %v1151_v19 = vld [vmem:[%s6261_s26 + $0x53] sm:$0xff]  ;;  %v1152_v21 = vld [vmem:[%s6261_s26 + $0x5b] sm:$0xff] }
 0x121   : > { %1061 = vrot.lane.b32.xlu2 %v6592_v20, %s6169_s29  ;;  %v1153_v20 = vld [vmem:[%s6261_s26 + $0x63] sm:$0xff] }
 0x122   : > { %v830_v43 = vpop.permute.xlu1 %829  ;;  %v828_v44 = vpop.permute.xlu0 %827 }
 0x123   : > { %913 = vst.msk [vmem:[#allocation3 + $0xc8] sm:$0xff] %vm887_vm4, %v830_v43  ;;  %v850_v50 = vpop.permute.xlu2 %849 }
 0x124   : > { %912 = vst.msk [vmem:[#allocation3 + $0xc0] sm:$0xff] %vm887_vm4, %v828_v44 }
 0x125   : > { %924 = vst.msk [vmem:[#allocation3 + $0x118] sm:$0x3f] %vm923_vm5, %v850_v50  ;;  %v1174_v50 = vld [vmem:[%s6261_s26 + $0x10b] sm:$0xff]  ;;  %vm2836_vm5 = vcmask 124928  }
 0x128   : > { %1065 = vrot.lane.b32.xlu1 %v959_v45, %s6169_s29  ;;  %1063 = vrot.lane.b32.xlu0 %v958_v49, %s6169_s29  ;;  %v1172_v49 = vld [vmem:[%s6261_s26 + $0xfb] sm:$0xff] }
 0x129   : > { %1067 = vrot.lane.b32.xlu2 %v960_v56, %s6169_s29  ;;  %s6101_s29 = sshll.u32 %s9355_s22, 6 }
 0x12a   : > { %v836_v51 = vpop.permute.xlu1 %835  ;;  %v834_v52 = vpop.permute.xlu0 %833  ;;  %s9317_s20 = scalar_lea.vmem %s9350_s12, %s6101_s29 }
 0x12b   : > { %916 = vst.msk [vmem:[#allocation3 + $0xe0] sm:$0xff] %vm887_vm4, %v836_v51  ;;  %v1002_v59 = vpop.permute.xlu2 %1001  ;;  %v1173_v51 = vld [vmem:[%s6261_s26 + $0x103] sm:$0xff] }
 0x12c   : > { %915 = vst.msk [vmem:[#allocation3 + $0xd8] sm:$0xff] %vm887_vm4, %v834_v52 }
 0x12d   : > { %1108 = vst.msk [vmem:[#allocation3 + $0x10] sm:$0xff] %vm1105_vm6, %v1002_v59  ;;  %v1177_v59 = vld [vmem:[%s6261_s26 + $0x123] sm:$0xff] }
 0x130   : > { %1217 = vrot.lane.b32.xlu1 %v1144_v57, %s6170_s30  ;;  %1215 = vrot.lane.b32.xlu0 %v1143_v58, %s6170_s30  ;;  %v1175_v58 = vld [vmem:[%s6261_s26 + $0x113] sm:$0xff] }
 0x131   : > { %1219 = vrot.lane.b32.xlu2 %v1145_v1, %s6170_s30 }
 0x132   : > { %v842_v60 = vpop.permute.xlu1 %841  ;;  %v840_v61 = vpop.permute.xlu0 %839 }
 0x133   : > { %919 = vst.msk [vmem:[#allocation3 + $0xf8] sm:$0xff] %vm887_vm4, %v842_v60  ;;  %v1008_v4 = vpop.permute.xlu2 %1007  ;;  %v1176_v60 = vld [vmem:[%s6261_s26 + $0x11b] sm:$0xff] }
 0x134   : > { %918 = vst.msk [vmem:[#allocation3 + $0xf0] sm:$0xff] %vm887_vm4, %v840_v61 }
 0x135   : > { %1111 = vst.msk [vmem:[#allocation3 + $0x28] sm:$0xff] %vm1105_vm6, %v1008_v4  ;;  %v1362_v4 = vld [vmem:[%s6261_s26 + $0x1c] sm:$0xff] }
 0x138   : > { %1223 = vrot.lane.b32.xlu1 %v1147_v2, %s6170_s30  ;;  %1221 = vrot.lane.b32.xlu0 %v1146_v3, %s6170_s30  ;;  %v1178_v3 = vld [vmem:[%s6261_s26 + $0x12b] sm:$0x3f] }
 0x139   : > { %1225 = vrot.lane.b32.xlu2 %v1148_v10, %s6170_s30 }
 0x13a   : > { %v848_v5 = vpop.permute.xlu1 %847  ;;  %v846_v6 = vpop.permute.xlu0 %845 }
 0x13b   : > { %922 = vst.msk [vmem:[#allocation3 + $0x110] sm:$0xff] %vm887_vm4, %v848_v5  ;;  %v1014_v13 = vpop.permute.xlu2 %1013  ;;  %v1361_v5 = vld [vmem:[%s6261_s26 + $0x14] sm:$0xff] }
 0x13c   : > { %921 = vst.msk [vmem:[#allocation3 + $0x108] sm:$0xff] %vm887_vm4, %v846_v6  ;;  %vm2833_vm4 = vcmask 130048  }
 0x13d   : > { %1114 = vst.msk [vmem:[#allocation3 + $0x40] sm:$0xff] %vm1105_vm6, %v1014_v13  ;;  %v6833_v13 = vld [vmem:[%s6261_s26 + $0x34] sm:$0xff] }
 0x140   : > { %1229 = vrot.lane.b32.xlu1 %v1150_v11, %s6170_s30  ;;  %1227 = vrot.lane.b32.xlu0 %v1149_v12, %s6170_s30  ;;  %v6830_v12 = vld [vmem:[%s6261_s26 + $0x24] sm:$0xff] }
 0x141   : > { %1231 = vrot.lane.b32.xlu2 %v1151_v19, %s6170_s30 }
 0x142   : > { %v1000_v14 = vpop.permute.xlu1 %999  ;;  %v998_v15 = vpop.permute.xlu0 %997 }
 0x143   : > { %1107 = vst.msk [vmem:[#allocation3 + $0x8] sm:$0xff] %vm1105_vm6, %v1000_v14  ;;  %v1020_v22 = vpop.permute.xlu2 %1019  ;;  %v6836_v14 = vld [vmem:[%s6261_s26 + $0x2c] sm:$0xff] }
 0x144   : > { %1106 = vst.msk [vmem:[#allocation3] sm:$0xff] %vm1105_vm6, %v998_v15 }
 0x145   : > { %1117 = vst.msk [vmem:[#allocation3 + $0x58] sm:$0xff] %vm1105_vm6, %v1020_v22  ;;  %v6851_v22 = vld [vmem:[%s6261_s26 + $0x4c] sm:$0xff] }
 0x148   : > { %1235 = vrot.lane.b32.xlu1 %v1153_v20, %s6170_s30  ;;  %1233 = vrot.lane.b32.xlu0 %v1152_v21, %s6170_s30  ;;  %v6848_v21 = vld [vmem:[%s6261_s26 + $0x3c] sm:$0xff] }
 0x149   : > { %1237 = vrot.lane.b32.xlu2 %v1154_v28, %s6170_s30 }
 0x14a   : > { %v1006_v23 = vpop.permute.xlu1 %1005  ;;  %v1004_v24 = vpop.permute.xlu0 %1003 }
 0x14b   : > { %1110 = vst.msk [vmem:[#allocation3 + $0x20] sm:$0xff] %vm1105_vm6, %v1006_v23  ;;  %v1026_v31 = vpop.permute.xlu2 %1025  ;;  %v6854_v23 = vld [vmem:[%s6261_s26 + $0x44] sm:$0xff] }
 0x14c   : > { %1109 = vst.msk [vmem:[#allocation3 + $0x18] sm:$0xff] %vm1105_vm6, %v1004_v24 }
 0x14d   : > { %1120 = vst.msk [vmem:[#allocation3 + $0x70] sm:$0xff] %vm1105_vm6, %v1026_v31  ;;  %v6869_v31 = vld [vmem:[%s6261_s26 + $0x64] sm:$0xff] }
 0x150   : > { %1241 = vrot.lane.b32.xlu1 %v1156_v29, %s6170_s30  ;;  %1239 = vrot.lane.b32.xlu0 %v1155_v30, %s6170_s30  ;;  %v6866_v30 = vld [vmem:[%s6261_s26 + $0x54] sm:$0xff] }
 0x151   : > { %1243 = vrot.lane.b32.xlu2 %v1157_v48, %s6170_s30 }
 0x152   : > { %v1012_v32 = vpop.permute.xlu1 %1011  ;;  %v1010_v46 = vpop.permute.xlu0 %1009 }
 0x153   : > { %1113 = vst.msk [vmem:[#allocation3 + $0x38] sm:$0xff] %vm1105_vm6, %v1012_v32  ;;  %v1032_v53 = vpop.permute.xlu2 %1031  ;;  %v6872_v32 = vld [vmem:[%s6261_s26 + $0x5c] sm:$0xff] }
 0x154   : > { %1112 = vst.msk [vmem:[#allocation3 + $0x30] sm:$0xff] %vm1105_vm6, %v1010_v46 }
 0x155   : > { %1123 = vst.msk [vmem:[#allocation3 + $0x88] sm:$0xff] %vm1105_vm6, %v1032_v53  ;;  %v6887_v53 = vld [vmem:[%s6261_s26 + $0x7c] sm:$0xff] }
 0x158   : > { %1247 = vrot.lane.b32.xlu1 %v1159_v33, %s6170_s30  ;;  %1245 = vrot.lane.b32.xlu0 %v1158_v47, %s6170_s30  ;;  %v6884_v47 = vld [vmem:[%s6261_s26 + $0x6c] sm:$0xff] }
 0x159   : > { %1249 = vrot.lane.b32.xlu2 %v1160_v62, %s6170_s30 }
 0x15a   : > { %v1018_v55 = vpop.permute.xlu1 %1017  ;;  %v1016_v54 = vpop.permute.xlu0 %1015 }
 0x15b   : > { %1116 = vst.msk [vmem:[#allocation3 + $0x50] sm:$0xff] %vm1105_vm6, %v1018_v55  ;;  %v1038_v7 = vpop.permute.xlu2 %1037  ;;  %v6890_v55 = vld [vmem:[%s6261_s26 + $0x74] sm:$0xff] }
 0x15c   : > { %1115 = vst.msk [vmem:[#allocation3 + $0x48] sm:$0xff] %vm1105_vm6, %v1016_v54 }
 0x15d   : > { %1126 = vst.msk [vmem:[#allocation3 + $0xa0] sm:$0xff] %vm1105_vm6, %v1038_v7  ;;  %v6905_v7 = vld [vmem:[%s6261_s26 + $0x94] sm:$0xff] }
 0x160   : > { %1253 = vrot.lane.b32.xlu1 %v1162_v0, %s6170_s30  ;;  %1251 = vrot.lane.b32.xlu0 %v1161_v63, %s6170_s30  ;;  %v6902_v63 = vld [vmem:[%s6261_s26 + $0x84] sm:$0xff] }
 0x161   : > { %1255 = vrot.lane.b32.xlu2 %v1163_v16, %s6170_s30 }
 0x162   : > { %v1024_v9 = vpop.permute.xlu1 %1023  ;;  %v1022_v8 = vpop.permute.xlu0 %1021 }
 0x163   : > { %1119 = vst.msk [vmem:[#allocation3 + $0x68] sm:$0xff] %vm1105_vm6, %v1024_v9  ;;  %v1044_v25 = vpop.permute.xlu2 %1043  ;;  %v6908_v9 = vld [vmem:[%s6261_s26 + $0x8c] sm:$0xff] }
 0x164   : > { %1118 = vst.msk [vmem:[#allocation3 + $0x60] sm:$0xff] %vm1105_vm6, %v1022_v8 }
 0x165   : > { %1129 = vst.msk [vmem:[#allocation3 + $0xb8] sm:$0xff] %vm1105_vm6, %v1044_v25  ;;  %v6923_v25 = vld [vmem:[%s6261_s26 + $0xac] sm:$0xff] }
 0x168   : > { %1259 = vrot.lane.b32.xlu1 %v1165_v18, %s6170_s30  ;;  %1257 = vrot.lane.b32.xlu0 %v1164_v17, %s6170_s30  ;;  %v6920_v17 = vld [vmem:[%s6261_s26 + $0x9c] sm:$0xff] }
 0x169   : > { %1261 = vrot.lane.b32.xlu2 %v1166_v34, %s6170_s30 }
 0x16a   : > { %v1030_v27 = vpop.permute.xlu1 %1029  ;;  %v1028_v26 = vpop.permute.xlu0 %1027 }
 0x16b   : > { %1122 = vst.msk [vmem:[#allocation3 + $0x80] sm:$0xff] %vm1105_vm6, %v1030_v27  ;;  %v1050_v37 = vpop.permute.xlu2 %1049  ;;  %v6926_v27 = vld [vmem:[%s6261_s26 + $0xa4] sm:$0xff] }
 0x16c   : > { %1121 = vst.msk [vmem:[#allocation3 + $0x78] sm:$0xff] %vm1105_vm6, %v1028_v26 }
 0x16d   : > { %1132 = vst.msk [vmem:[#allocation3 + $0xd0] sm:$0xff] %vm1105_vm6, %v1050_v37  ;;  %v6941_v37 = vld [vmem:[%s6261_s26 + $0xc4] sm:$0xff] }
 0x170   : > { %1265 = vrot.lane.b32.xlu1 %v1168_v36, %s6170_s30  ;;  %1263 = vrot.lane.b32.xlu0 %v1167_v35, %s6170_s30  ;;  %v6938_v35 = vld [vmem:[%s6261_s26 + $0xb4] sm:$0xff] }
 0x171   : > { %1267 = vrot.lane.b32.xlu2 %v1169_v40, %s6170_s30 }
 0x172   : > { %v1036_v38 = vpop.permute.xlu1 %1035  ;;  %v1034_v39 = vpop.permute.xlu0 %1033 }
 0x173   : > { %1125 = vst.msk [vmem:[#allocation3 + $0x98] sm:$0xff] %vm1105_vm6, %v1036_v38  ;;  %v1056_v43 = vpop.permute.xlu2 %1055  ;;  %v6944_v38 = vld [vmem:[%s6261_s26 + $0xbc] sm:$0xff] }
 0x174   : > { %1124 = vst.msk [vmem:[#allocation3 + $0x90] sm:$0xff] %vm1105_vm6, %v1034_v39 }
 0x175   : > { %1135 = vst.msk [vmem:[#allocation3 + $0xe8] sm:$0xff] %vm1105_vm6, %v1056_v43  ;;  %v6959_v43 = vld [vmem:[%s6261_s26 + $0xdc] sm:$0xff] }
 0x178   : > { %1271 = vrot.lane.b32.xlu1 %v1171_v41, %s6170_s30  ;;  %1269 = vrot.lane.b32.xlu0 %v1170_v42, %s6170_s30  ;;  %v6956_v42 = vld [vmem:[%s6261_s26 + $0xcc] sm:$0xff] }
 0x179   : > { %1273 = vrot.lane.b32.xlu2 %v1172_v49, %s6170_s30 }
 0x17a   : > { %v1042_v44 = vpop.permute.xlu1 %1041  ;;  %v1040_v45 = vpop.permute.xlu0 %1039 }
 0x17b   : > { %1128 = vst.msk [vmem:[#allocation3 + $0xb0] sm:$0xff] %vm1105_vm6, %v1042_v44  ;;  %v1062_v52 = vpop.permute.xlu2 %1061  ;;  %v6962_v44 = vld [vmem:[%s6261_s26 + $0xd4] sm:$0xff] }
 0x17c   : > { %1127 = vst.msk [vmem:[#allocation3 + $0xa8] sm:$0xff] %vm1105_vm6, %v1040_v45 }
 0x17d   : > { %1138 = vst.msk [vmem:[#allocation3 + $0x100] sm:$0xff] %vm1105_vm6, %v1062_v52  ;;  %v6977_v52 = vld [vmem:[%s6261_s26 + $0xf4] sm:$0xff] }
 0x180   : > { %1277 = vrot.lane.b32.xlu1 %v1174_v50, %s6170_s30  ;;  %1275 = vrot.lane.b32.xlu0 %v1173_v51, %s6170_s30  ;;  %v6974_v51 = vld [vmem:[%s6261_s26 + $0xe4] sm:$0xff] }
 0x181   : > { %1279 = vrot.lane.b32.xlu2 %v1175_v58, %s6170_s30 }
 0x182   : > { %v1048_v56 = vpop.permute.xlu1 %1047  ;;  %v1046_v57 = vpop.permute.xlu0 %1045 }
 0x183   : > { %1131 = vst.msk [vmem:[#allocation3 + $0xc8] sm:$0xff] %vm1105_vm6, %v1048_v56  ;;  %v1068_v61 = vpop.permute.xlu2 %1067  ;;  %v6980_v56 = vld [vmem:[%s6261_s26 + $0xec] sm:$0xff] }
 0x184   : > { %1130 = vst.msk [vmem:[#allocation3 + $0xc0] sm:$0xff] %vm1105_vm6, %v1046_v57 }
 0x185   : > { %1142 = vst.msk [vmem:[#allocation3 + $0x118] sm:$0x3f] %vm1141_vm7, %v1068_v61  ;;  %v6995_v61 = vld [vmem:[%s6261_s26 + $0x10c] sm:$0xff]  ;;  %vm3348_vm7 = vcmask 392448  }
 0x188   : > { %1283 = vrot.lane.b32.xlu1 %v1177_v59, %s6170_s30  ;;  %1281 = vrot.lane.b32.xlu0 %v1176_v60, %s6170_s30  ;;  %v6992_v60 = vld [vmem:[%s6261_s26 + $0xfc] sm:$0xff] }
 0x189   : > { %1285 = vrot.lane.b32.xlu2 %v1178_v3, %s6170_s30 }
 0x18a   : > { %v1054_v1 = vpop.permute.xlu1 %1053  ;;  %v1052_v2 = vpop.permute.xlu0 %1051 }
 0x18b   : > { %1134 = vst.msk [vmem:[#allocation3 + $0xe0] sm:$0xff] %vm1105_vm6, %v1054_v1  ;;  %v1220_v6 = vpop.permute.xlu2 %1219  ;;  %v6998_v1 = vld [vmem:[%s6261_s26 + $0x104] sm:$0xff] }
 0x18c   : > { %1133 = vst.msk [vmem:[#allocation3 + $0xd8] sm:$0xff] %vm1105_vm6, %v1052_v2 }
 0x18d   : > { %1326 = vst.msk [vmem:[#allocation3 + $0x10] sm:$0xff] %vm1323_vm8, %v1220_v6  ;;  %v7013_v6 = vld [vmem:[%s6261_s26 + $0x124] sm:$0xff] }
 0x190   : > { %1435 = vrot.lane.b32.xlu1 %v1362_v4, %s6171_s13  ;;  %1433 = vrot.lane.b32.xlu0 %v1361_v5, %s6171_s13  ;;  %v7010_v5 = vld [vmem:[%s6261_s26 + $0x114] sm:$0xff] }
 0x191   : > { %1437 = vrot.lane.b32.xlu2 %v6830_v12, %s6171_s13 }
 0x192   : > { %v1060_v10 = vpop.permute.xlu1 %1059  ;;  %v1058_v11 = vpop.permute.xlu0 %1057 }
 0x193   : > { %1137 = vst.msk [vmem:[#allocation3 + $0xf8] sm:$0xff] %vm1105_vm6, %v1060_v10  ;;  %v1226_v15 = vpop.permute.xlu2 %1225  ;;  %v7016_v10 = vld [vmem:[%s6261_s26 + $0x11c] sm:$0xff] }
 0x194   : > { %1136 = vst.msk [vmem:[#allocation3 + $0xf0] sm:$0xff] %vm1105_vm6, %v1058_v11 }
 0x195   : > { %1329 = vst.msk [vmem:[#allocation3 + $0x28] sm:$0xff] %vm1323_vm8, %v1226_v15 }
 0x198   : > { %1441 = vrot.lane.b32.xlu1 %v6833_v13, %s6171_s13  ;;  %1439 = vrot.lane.b32.xlu0 %v6836_v14, %s6171_s13 }
 0x199   : > { %1443 = vrot.lane.b32.xlu2 %v6848_v21, %s6171_s13 }
 0x19a   : > { %v1066_v19 = vpop.permute.xlu1 %1065  ;;  %v1064_v20 = vpop.permute.xlu0 %1063 }
 0x19b   : > { %1140 = vst.msk [vmem:[#allocation3 + $0x110] sm:$0xff] %vm1105_vm6, %v1066_v19  ;;  %v1232_v24 = vpop.permute.xlu2 %1231 }
 0x19c   : > { %1139 = vst.msk [vmem:[#allocation3 + $0x108] sm:$0xff] %vm1105_vm6, %v1064_v20  ;;  %v1396_v20 = vld [vmem:[%s6261_s26 + $0x12c] sm:$0x3f]  ;;  %vm3130_vm6 = vcmask 261248  }
 0x19d   : > { %1332 = vst.msk [vmem:[#allocation3 + $0x40] sm:$0xff] %vm1323_vm8, %v1232_v24 }
 0x1a0   : > { %1447 = vrot.lane.b32.xlu1 %v6851_v22, %s6171_s13  ;;  %1445 = vrot.lane.b32.xlu0 %v6854_v23, %s6171_s13 }
 0x1a1   : > { %1449 = vrot.lane.b32.xlu2 %v6866_v30, %s6171_s13 }
 0x1a2   : > { %v1218_v28 = vpop.permute.xlu1 %1217  ;;  %v1216_v29 = vpop.permute.xlu0 %1215 }
 0x1a3   : > { %1325 = vst.msk [vmem:[#allocation3 + $0x8] sm:$0xff] %vm1323_vm8, %v1218_v28  ;;  %v1238_v46 = vpop.permute.xlu2 %1237 }
 0x1a4   : > { %1324 = vst.msk [vmem:[#allocation3] sm:$0xff] %vm1323_vm8, %v1216_v29 }
 0x1a5   : > { %1335 = vst.msk [vmem:[#allocation3 + $0x58] sm:$0xff] %vm1323_vm8, %v1238_v46 }
 0x1a8   : > { %1453 = vrot.lane.b32.xlu1 %v6869_v31, %s6171_s13  ;;  %1451 = vrot.lane.b32.xlu0 %v6872_v32, %s6171_s13 }
 0x1a9   : > { %1455 = vrot.lane.b32.xlu2 %v6884_v47, %s6171_s13 }
 0x1aa   : > { %v1224_v48 = vpop.permute.xlu1 %1223  ;;  %v1222_v33 = vpop.permute.xlu0 %1221 }
 0x1ab   : > { %1328 = vst.msk [vmem:[#allocation3 + $0x20] sm:$0xff] %vm1323_vm8, %v1224_v48  ;;  %v1244_v54 = vpop.permute.xlu2 %1243 }
 0x1ac   : > { %1327 = vst.msk [vmem:[#allocation3 + $0x18] sm:$0xff] %vm1323_vm8, %v1222_v33 }
 0x1ad   : > { %1338 = vst.msk [vmem:[#allocation3 + $0x70] sm:$0xff] %vm1323_vm8, %v1244_v54 }
 0x1b0   : > { %1459 = vrot.lane.b32.xlu1 %v6887_v53, %s6171_s13  ;;  %1457 = vrot.lane.b32.xlu0 %v6890_v55, %s6171_s13 }
 0x1b1   : > { %1461 = vrot.lane.b32.xlu2 %v6902_v63, %s6171_s13 }
 0x1b2   : > { %v1230_v62 = vpop.permute.xlu1 %1229  ;;  %v1228_v0 = vpop.permute.xlu0 %1227 }
 0x1b3   : > { %1331 = vst.msk [vmem:[#allocation3 + $0x38] sm:$0xff] %vm1323_vm8, %v1230_v62  ;;  %v1250_v8 = vpop.permute.xlu2 %1249 }
 0x1b4   : > { %1330 = vst.msk [vmem:[#allocation3 + $0x30] sm:$0xff] %vm1323_vm8, %v1228_v0 }
 0x1b5   : > { %1341 = vst.msk [vmem:[#allocation3 + $0x88] sm:$0xff] %vm1323_vm8, %v1250_v8 }
 0x1b8   : > { %1465 = vrot.lane.b32.xlu1 %v6905_v7, %s6171_s13  ;;  %1463 = vrot.lane.b32.xlu0 %v6908_v9, %s6171_s13 }
 0x1b9   : > { %1467 = vrot.lane.b32.xlu2 %v6920_v17, %s6171_s13 }
 0x1ba   : > { %v1236_v16 = vpop.permute.xlu1 %1235  ;;  %v1234_v18 = vpop.permute.xlu0 %1233 }
 0x1bb   : > { %1334 = vst.msk [vmem:[#allocation3 + $0x50] sm:$0xff] %vm1323_vm8, %v1236_v16  ;;  %v1256_v26 = vpop.permute.xlu2 %1255 }
 0x1bc   : > { %1333 = vst.msk [vmem:[#allocation3 + $0x48] sm:$0xff] %vm1323_vm8, %v1234_v18 }
 0x1bd   : > { %1344 = vst.msk [vmem:[#allocation3 + $0xa0] sm:$0xff] %vm1323_vm8, %v1256_v26 }
 0x1c0   : > { %1471 = vrot.lane.b32.xlu1 %v6923_v25, %s6171_s13  ;;  %1469 = vrot.lane.b32.xlu0 %v6926_v27, %s6171_s13 }
 0x1c1   : > { %1473 = vrot.lane.b32.xlu2 %v6938_v35, %s6171_s13 }
 0x1c2   : > { %v1242_v34 = vpop.permute.xlu1 %1241  ;;  %v1240_v36 = vpop.permute.xlu0 %1239 }
 0x1c3   : > { %1337 = vst.msk [vmem:[#allocation3 + $0x68] sm:$0xff] %vm1323_vm8, %v1242_v34  ;;  %v1262_v39 = vpop.permute.xlu2 %1261 }
 0x1c4   : > { %1336 = vst.msk [vmem:[#allocation3 + $0x60] sm:$0xff] %vm1323_vm8, %v1240_v36 }
 0x1c5   : > { %1347 = vst.msk [vmem:[#allocation3 + $0xb8] sm:$0xff] %vm1323_vm8, %v1262_v39 }
 0x1c8   : > { %1477 = vrot.lane.b32.xlu1 %v6941_v37, %s6171_s13  ;;  %1475 = vrot.lane.b32.xlu0 %v6944_v38, %s6171_s13 }
 0x1c9   : > { %1479 = vrot.lane.b32.xlu2 %v6956_v42, %s6171_s13 }
 0x1ca   : > { %v1248_v40 = vpop.permute.xlu1 %1247  ;;  %v1246_v41 = vpop.permute.xlu0 %1245 }
 0x1cb   : > { %1340 = vst.msk [vmem:[#allocation3 + $0x80] sm:$0xff] %vm1323_vm8, %v1248_v40  ;;  %v1268_v45 = vpop.permute.xlu2 %1267 }
 0x1cc   : > { %1339 = vst.msk [vmem:[#allocation3 + $0x78] sm:$0xff] %vm1323_vm8, %v1246_v41  ;;  %v1614_v41 = vld [vmem:[%s6261_s26 + $0x13c] sm:$0x3f] }
 0x1cd   : > { %1350 = vst.msk [vmem:[#allocation3 + $0xd0] sm:$0xff] %vm1323_vm8, %v1268_v45 }
 0x1d0   : > { %1483 = vrot.lane.b32.xlu1 %v6959_v43, %s6171_s13  ;;  %1481 = vrot.lane.b32.xlu0 %v6962_v44, %s6171_s13 }
 0x1d1   : > { %1485 = vrot.lane.b32.xlu2 %v6974_v51, %s6171_s13 }
 0x1d2   : > { %v1254_v49 = vpop.permute.xlu1 %1253  ;;  %v1252_v50 = vpop.permute.xlu0 %1251 }
 0x1d3   : > { %1343 = vst.msk [vmem:[#allocation3 + $0x98] sm:$0xff] %vm1323_vm8, %v1254_v49  ;;  %v1274_v57 = vpop.permute.xlu2 %1273 }
 0x1d4   : > { %1342 = vst.msk [vmem:[#allocation3 + $0x90] sm:$0xff] %vm1323_vm8, %v1252_v50  ;;  %v1799_v50 = vld [vmem:[%s6261_s26 + $0x35] sm:$0xff] }
 0x1d5   : > { %1353 = vst.msk [vmem:[#allocation3 + $0xe8] sm:$0xff] %vm1323_vm8, %v1274_v57 }
 0x1d8   : > { %1489 = vrot.lane.b32.xlu1 %v6977_v52, %s6171_s13  ;;  %1487 = vrot.lane.b32.xlu0 %v6980_v56, %s6171_s13 }
 0x1d9   : > { %1491 = vrot.lane.b32.xlu2 %v6992_v60, %s6171_s13 }
 0x1da   : > { %v1260_v58 = vpop.permute.xlu1 %1259  ;;  %v1258_v59 = vpop.permute.xlu0 %1257 }
 0x1db   : > { %1346 = vst.msk [vmem:[#allocation3 + $0xb0] sm:$0xff] %vm1323_vm8, %v1260_v58  ;;  %v1280_v2 = vpop.permute.xlu2 %1279 }
 0x1dc   : > { %1345 = vst.msk [vmem:[#allocation3 + $0xa8] sm:$0xff] %vm1323_vm8, %v1258_v59  ;;  %v1802_v59 = vld [vmem:[%s6261_s26 + $0x4d] sm:$0xff] }
 0x1dd   : > { %1356 = vst.msk [vmem:[#allocation3 + $0x100] sm:$0xff] %vm1323_vm8, %v1280_v2 }
 0x1e0   : > { %1495 = vrot.lane.b32.xlu1 %v6995_v61, %s6171_s13  ;;  %1493 = vrot.lane.b32.xlu0 %v6998_v1, %s6171_s13 }
 0x1e1   : > { %1497 = vrot.lane.b32.xlu2 %v7010_v5, %s6171_s13 }
 0x1e2   : > { %v1266_v3 = vpop.permute.xlu1 %1265  ;;  %v1264_v4 = vpop.permute.xlu0 %1263 }
 0x1e3   : > { %1349 = vst.msk [vmem:[#allocation3 + $0xc8] sm:$0xff] %vm1323_vm8, %v1266_v3  ;;  %v1286_v11 = vpop.permute.xlu2 %1285 }
 0x1e4   : > { %1348 = vst.msk [vmem:[#allocation3 + $0xc0] sm:$0xff] %vm1323_vm8, %v1264_v4  ;;  %v1805_v4 = vld [vmem:[%s6261_s26 + $0x65] sm:$0xff] }
 0x1e5   : > { %1360 = vst.msk [vmem:[#allocation3 + $0x118] sm:$0x3f] %vm1359_vm9, %v1286_v11  ;;  %vm3784_vm9 = vcmask 654848  }
 0x1e8   : > { %1501 = vrot.lane.b32.xlu1 %v7013_v6, %s6171_s13  ;;  %1499 = vrot.lane.b32.xlu0 %v7016_v10, %s6171_s13 }
 0x1e9   : > { %1503 = vrot.lane.b32.xlu2 %v1396_v20, %s6171_s13  ;;  %v1810_v20 = vld [vmem:[%s6261_s26 + $0x8d] sm:$0xff]  ;;  %s6177_s13 = smov 64  }
 0x1ea   : > { %v1272_v15 = vpop.permute.xlu1 %1271  ;;  %v1270_v19 = vpop.permute.xlu0 %1269 }
 0x1eb   : > { %1352 = vst.msk [vmem:[#allocation3 + $0xe0] sm:$0xff] %vm1323_vm8, %v1272_v15  ;;  %v1438_v24 = vpop.permute.xlu2 %1437 }
 0x1ec   : > { %1351 = vst.msk [vmem:[#allocation3 + $0xd8] sm:$0xff] %vm1323_vm8, %v1270_v19  ;;  %v1808_v19 = vld [vmem:[%s6261_s26 + $0x7d] sm:$0xff] }
 0x1ed   : > { %1544 = vst.msk [vmem:[#allocation3 + $0x10] sm:$0xff] %vm1541_vm10, %v1438_v24  ;;  %v1809_v24 = vld [vmem:[%s6261_s26 + $0x85] sm:$0xff] }
 0x1f0   : > { %1653 = vrot.lane.b32.xlu1 %v6836_v14, %s6172_s14  ;;  %1651 = vrot.lane.b32.xlu0 %v6830_v12, %s6172_s14 }
 0x1f1   : > { %1655 = vrot.lane.b32.xlu2 %v6833_v13, %s6172_s14 }
 0x1f2   : > { %v1278_v28 = vpop.permute.xlu1 %1277  ;;  %v1276_v29 = vpop.permute.xlu0 %1275 }
 0x1f3   : > { %1355 = vst.msk [vmem:[#allocation3 + $0xf8] sm:$0xff] %vm1323_vm8, %v1278_v28  ;;  %v1444_v12 = vpop.permute.xlu2 %1443 }
 0x1f4   : > { %1354 = vst.msk [vmem:[#allocation3 + $0xf0] sm:$0xff] %vm1323_vm8, %v1276_v29 }
 0x1f5   : > { %1547 = vst.msk [vmem:[#allocation3 + $0x28] sm:$0xff] %vm1541_vm10, %v1444_v12 }
 0x1f8   : > { %1659 = vrot.lane.b32.xlu1 %v6854_v23, %s6172_s14  ;;  %1657 = vrot.lane.b32.xlu0 %v6848_v21, %s6172_s14 }
 0x1f9   : > { %1661 = vrot.lane.b32.xlu2 %v6851_v22, %s6172_s14 }
 0x1fa   : > { %v1284_v14 = vpop.permute.xlu1 %1283  ;;  %v1282_v46 = vpop.permute.xlu0 %1281 }
 0x1fb   : > { %1358 = vst.msk [vmem:[#allocation3 + $0x110] sm:$0xff] %vm1323_vm8, %v1284_v14  ;;  %v1450_v13 = vpop.permute.xlu2 %1449  ;;  %v1811_v14 = vld [vmem:[%s6261_s26 + $0x95] sm:$0xff] }
 0x1fc   : > { %1357 = vst.msk [vmem:[#allocation3 + $0x108] sm:$0xff] %vm1323_vm8, %v1282_v46  ;;  %v1813_v46 = vld [vmem:[%s6261_s26 + $0xa5] sm:$0xff]  ;;  %vm3566_vm8 = vcmask 523648  }
 0x1fd   : > { %1550 = vst.msk [vmem:[#allocation3 + $0x40] sm:$0xff] %vm1541_vm10, %v1450_v13  ;;  %v1812_v13 = vld [vmem:[%s6261_s26 + $0x9d] sm:$0xff] }
 0x200   : > { %1665 = vrot.lane.b32.xlu1 %v6872_v32, %s6172_s14  ;;  %1663 = vrot.lane.b32.xlu0 %v6866_v30, %s6172_s14 }
 0x201   : > { %1667 = vrot.lane.b32.xlu2 %v6869_v31, %s6172_s14 }
 0x202   : > { %v1436_v21 = vpop.permute.xlu1 %1435  ;;  %v1434_v23 = vpop.permute.xlu0 %1433 }
 0x203   : > { %1543 = vst.msk [vmem:[#allocation3 + $0x8] sm:$0xff] %vm1541_vm10, %v1436_v21  ;;  %v1456_v22 = vpop.permute.xlu2 %1455 }
 0x204   : > { %1542 = vst.msk [vmem:[#allocation3] sm:$0xff] %vm1541_vm10, %v1434_v23 }
 0x205   : > { %1553 = vst.msk [vmem:[#allocation3 + $0x58] sm:$0xff] %vm1541_vm10, %v1456_v22 }
 0x208   : > { %1671 = vrot.lane.b32.xlu1 %v6890_v55, %s6172_s14  ;;  %1669 = vrot.lane.b32.xlu0 %v6884_v47, %s6172_s14 }
 0x209   : > { %1673 = vrot.lane.b32.xlu2 %v6887_v53, %s6172_s14 }
 0x20a   : > { %v1442_v30 = vpop.permute.xlu1 %1441  ;;  %v1440_v32 = vpop.permute.xlu0 %1439 }
 0x20b   : > { %1546 = vst.msk [vmem:[#allocation3 + $0x20] sm:$0xff] %vm1541_vm10, %v1442_v30  ;;  %v1462_v31 = vpop.permute.xlu2 %1461  ;;  %v1814_v30 = vld [vmem:[%s6261_s26 + $0xad] sm:$0xff] }
 0x20c   : > { %1545 = vst.msk [vmem:[#allocation3 + $0x18] sm:$0xff] %vm1541_vm10, %v1440_v32  ;;  %v1816_v32 = vld [vmem:[%s6261_s26 + $0xbd] sm:$0xff] }
 0x20d   : > { %1556 = vst.msk [vmem:[#allocation3 + $0x70] sm:$0xff] %vm1541_vm10, %v1462_v31  ;;  %v1815_v31 = vld [vmem:[%s6261_s26 + $0xb5] sm:$0xff] }
 0x210   : > { %1677 = vrot.lane.b32.xlu1 %v6908_v9, %s6172_s14  ;;  %1675 = vrot.lane.b32.xlu0 %v6902_v63, %s6172_s14 }
 0x211   : > { %1679 = vrot.lane.b32.xlu2 %v6905_v7, %s6172_s14 }
 0x212   : > { %v1448_v48 = vpop.permute.xlu1 %1447  ;;  %v1446_v33 = vpop.permute.xlu0 %1445 }
 0x213   : > { %1549 = vst.msk [vmem:[#allocation3 + $0x38] sm:$0xff] %vm1541_vm10, %v1448_v48  ;;  %v1468_v47 = vpop.permute.xlu2 %1467 }
 0x214   : > { %1548 = vst.msk [vmem:[#allocation3 + $0x30] sm:$0xff] %vm1541_vm10, %v1446_v33 }
 0x215   : > { %1559 = vst.msk [vmem:[#allocation3 + $0x88] sm:$0xff] %vm1541_vm10, %v1468_v47 }
 0x218   : > { %1683 = vrot.lane.b32.xlu1 %v6926_v27, %s6172_s14  ;;  %1681 = vrot.lane.b32.xlu0 %v6920_v17, %s6172_s14 }
 0x219   : > { %1685 = vrot.lane.b32.xlu2 %v6923_v25, %s6172_s14 }
 0x21a   : > { %v1454_v53 = vpop.permute.xlu1 %1453  ;;  %v1452_v55 = vpop.permute.xlu0 %1451 }
 0x21b   : > { %1552 = vst.msk [vmem:[#allocation3 + $0x50] sm:$0xff] %vm1541_vm10, %v1454_v53  ;;  %v1474_v54 = vpop.permute.xlu2 %1473  ;;  %v1817_v53 = vld [vmem:[%s6261_s26 + $0xc5] sm:$0xff] }
 0x21c   : > { %1551 = vst.msk [vmem:[#allocation3 + $0x48] sm:$0xff] %vm1541_vm10, %v1452_v55  ;;  %v1819_v55 = vld [vmem:[%s6261_s26 + $0xd5] sm:$0xff] }
 0x21d   : > { %1562 = vst.msk [vmem:[#allocation3 + $0xa0] sm:$0xff] %vm1541_vm10, %v1474_v54  ;;  %v1818_v54 = vld [vmem:[%s6261_s26 + $0xcd] sm:$0xff] }
 0x220   : > { %1689 = vrot.lane.b32.xlu1 %v6944_v38, %s6172_s14  ;;  %1687 = vrot.lane.b32.xlu0 %v6938_v35, %s6172_s14  ;;  %v1613_v35 = vld [vmem:[%s6261_s26 + $0x134] sm:$0xff] }
 0x221   : > { %1691 = vrot.lane.b32.xlu2 %v6941_v37, %s6172_s14  ;;  %v1612_v37 = vld [vmem:[%s6261_s26 + $0x12c] sm:$0xff] }
 0x222   : > { %v1460_v62 = vpop.permute.xlu1 %1459  ;;  %v1458_v0 = vpop.permute.xlu0 %1457 }
 0x223   : > { %1555 = vst.msk [vmem:[#allocation3 + $0x68] sm:$0xff] %vm1541_vm10, %v1460_v62  ;;  %v1480_v63 = vpop.permute.xlu2 %1479 }
 0x224   : > { %1554 = vst.msk [vmem:[#allocation3 + $0x60] sm:$0xff] %vm1541_vm10, %v1458_v0 }
 0x225   : > { %1565 = vst.msk [vmem:[#allocation3 + $0xb8] sm:$0xff] %vm1541_vm10, %v1480_v63 }
 0x228   : > { %1695 = vrot.lane.b32.xlu1 %v6962_v44, %s6172_s14  ;;  %1693 = vrot.lane.b32.xlu0 %v6956_v42, %s6172_s14  ;;  %v1798_v42 = vld [vmem:[%s6261_s26 + $0x2d] sm:$0xff] }
 0x229   : > { %1697 = vrot.lane.b32.xlu2 %v6959_v43, %s6172_s14  ;;  %v1797_v43 = vld [vmem:[%s6261_s26 + $0x25] sm:$0xff] }
 0x22a   : > { %v1466_v7 = vpop.permute.xlu1 %1465  ;;  %v1464_v9 = vpop.permute.xlu0 %1463 }
 0x22b   : > { %1558 = vst.msk [vmem:[#allocation3 + $0x80] sm:$0xff] %vm1541_vm10, %v1466_v7  ;;  %v1486_v8 = vpop.permute.xlu2 %1485  ;;  %v1820_v7 = vld [vmem:[%s6261_s26 + $0xdd] sm:$0xff] }
 0x22c   : > { %1557 = vst.msk [vmem:[#allocation3 + $0x78] sm:$0xff] %vm1541_vm10, %v1464_v9  ;;  %v1822_v9 = vld [vmem:[%s6261_s26 + $0xed] sm:$0xff] }
 0x22d   : > { %1568 = vst.msk [vmem:[#allocation3 + $0xd0] sm:$0xff] %vm1541_vm10, %v1486_v8  ;;  %v1821_v8 = vld [vmem:[%s6261_s26 + $0xe5] sm:$0xff] }
 0x230   : > { %1701 = vrot.lane.b32.xlu1 %v6980_v56, %s6172_s14  ;;  %1699 = vrot.lane.b32.xlu0 %v6974_v51, %s6172_s14  ;;  %v1801_v51 = vld [vmem:[%s6261_s26 + $0x45] sm:$0xff] }
 0x231   : > { %1703 = vrot.lane.b32.xlu2 %v6977_v52, %s6172_s14  ;;  %v1800_v52 = vld [vmem:[%s6261_s26 + $0x3d] sm:$0xff] }
 0x232   : > { %v1472_v16 = vpop.permute.xlu1 %1471  ;;  %v1470_v18 = vpop.permute.xlu0 %1469 }
 0x233   : > { %1561 = vst.msk [vmem:[#allocation3 + $0x98] sm:$0xff] %vm1541_vm10, %v1472_v16  ;;  %v1492_v17 = vpop.permute.xlu2 %1491 }
 0x234   : > { %1560 = vst.msk [vmem:[#allocation3 + $0x90] sm:$0xff] %vm1541_vm10, %v1470_v18 }
 0x235   : > { %1571 = vst.msk [vmem:[#allocation3 + $0xe8] sm:$0xff] %vm1541_vm10, %v1492_v17 }
 0x238   : > { %1707 = vrot.lane.b32.xlu1 %v6998_v1, %s6172_s14  ;;  %1705 = vrot.lane.b32.xlu0 %v6992_v60, %s6172_s14  ;;  %v1804_v60 = vld [vmem:[%s6261_s26 + $0x5d] sm:$0xff] }
 0x239   : > { %1709 = vrot.lane.b32.xlu2 %v6995_v61, %s6172_s14  ;;  %v1803_v61 = vld [vmem:[%s6261_s26 + $0x55] sm:$0xff] }
 0x23a   : > { %v1478_v25 = vpop.permute.xlu1 %1477  ;;  %v1476_v27 = vpop.permute.xlu0 %1475 }
 0x23b   : > { %1564 = vst.msk [vmem:[#allocation3 + $0xb0] sm:$0xff] %vm1541_vm10, %v1478_v25  ;;  %v1498_v26 = vpop.permute.xlu2 %1497  ;;  %v1823_v25 = vld [vmem:[%s6261_s26 + $0xf5] sm:$0xff] }
 0x23c   : > { %1563 = vst.msk [vmem:[#allocation3 + $0xa8] sm:$0xff] %vm1541_vm10, %v1476_v27  ;;  %v1825_v27 = vld [vmem:[%s6261_s26 + $0x105] sm:$0xff] }
 0x23d   : > { %1574 = vst.msk [vmem:[#allocation3 + $0x100] sm:$0xff] %vm1541_vm10, %v1498_v26  ;;  %v1824_v26 = vld [vmem:[%s6261_s26 + $0xfd] sm:$0xff] }
 0x240   : > { %1713 = vrot.lane.b32.xlu1 %v7016_v10, %s6172_s14  ;;  %1711 = vrot.lane.b32.xlu0 %v7010_v5, %s6172_s14  ;;  %v1807_v5 = vld [vmem:[%s6261_s26 + $0x75] sm:$0xff] }
 0x241   : > { %1715 = vrot.lane.b32.xlu2 %v7013_v6, %s6172_s14  ;;  %v1806_v6 = vld [vmem:[%s6261_s26 + $0x6d] sm:$0xff] }
 0x242   : > { %v1484_v34 = vpop.permute.xlu1 %1483  ;;  %v1482_v36 = vpop.permute.xlu0 %1481 }
 0x243   : > { %1567 = vst.msk [vmem:[#allocation3 + $0xc8] sm:$0xff] %vm1541_vm10, %v1484_v34  ;;  %v1504_v38 = vpop.permute.xlu2 %1503 }
 0x244   : > { %1566 = vst.msk [vmem:[#allocation3 + $0xc0] sm:$0xff] %vm1541_vm10, %v1482_v36 }
 0x245   : > { %1578 = vst.msk [vmem:[#allocation3 + $0x118] sm:$0x3f] %vm1577_vm11, %v1504_v38  ;;  %v1828_v38 = vld [vmem:[%s6261_s26 + $0x11d] sm:$0xff]  ;;  %vm4220_vm11 = vcmask 917248  }
 0x248   : > { %1719 = vrot.lane.b32.xlu1 %v1613_v35, %s6172_s14  ;;  %1717 = vrot.lane.b32.xlu0 %v1612_v37, %s6172_s14  ;;  %v1826_v37 = vld [vmem:[%s6261_s26 + $0x10d] sm:$0xff] }
 0x249   : > { %1721 = vrot.lane.b32.xlu2 %v1614_v41, %s6172_s14  ;;  %s6178_s14 = smov 48  }
 0x24a   : > { %v1490_v39 = vpop.permute.xlu1 %1489  ;;  %v1488_v40 = vpop.permute.xlu0 %1487 }
 0x24b   : > { %1570 = vst.msk [vmem:[#allocation3 + $0xe0] sm:$0xff] %vm1541_vm10, %v1490_v39  ;;  %v1656_v44 = vpop.permute.xlu2 %1655  ;;  %v1827_v39 = vld [vmem:[%s6261_s26 + $0x115] sm:$0xff] }
 0x24c   : > { %1569 = vst.msk [vmem:[#allocation3 + $0xd8] sm:$0xff] %vm1541_vm10, %v1488_v40 }
 0x24d   : > { %1762 = vst.msk [vmem:[#allocation3 + $0x10] sm:$0xff] %vm1759_vm12, %v1656_v44  ;;  %v1831_v44 = vld [vmem:[%s6261_s26 + $0x135] sm:$0xff] }
 0x250   : > { %1871 = vrot.lane.b32.xlu1 %v1798_v42, %s6173_s15  ;;  %1869 = vrot.lane.b32.xlu0 %v1797_v43, %s6173_s15  ;;  %v1829_v43 = vld [vmem:[%s6261_s26 + $0x125] sm:$0xff] }
 0x251   : > { %1873 = vrot.lane.b32.xlu2 %v1799_v50, %s6173_s15 }
 0x252   : > { %v1496_v45 = vpop.permute.xlu1 %1495  ;;  %v1494_v49 = vpop.permute.xlu0 %1493 }
 0x253   : > { %1573 = vst.msk [vmem:[#allocation3 + $0xf8] sm:$0xff] %vm1541_vm10, %v1496_v45  ;;  %v1662_v56 = vpop.permute.xlu2 %1661  ;;  %v1830_v45 = vld [vmem:[%s6261_s26 + $0x12d] sm:$0xff] }
 0x254   : > { %1572 = vst.msk [vmem:[#allocation3 + $0xf0] sm:$0xff] %vm1541_vm10, %v1494_v49 }
 0x255   : > { %1765 = vst.msk [vmem:[#allocation3 + $0x28] sm:$0xff] %vm1759_vm12, %v1662_v56  ;;  %v2016_v56 = vld [vmem:[%s6261_s26 + $0x2e] sm:$0xff] }
 0x258   : > { %1877 = vrot.lane.b32.xlu1 %v1801_v51, %s6173_s15  ;;  %1875 = vrot.lane.b32.xlu0 %v1800_v52, %s6173_s15  ;;  %v1832_v52 = vld [vmem:[%s6261_s26 + $0x13d] sm:$0x3f] }
 0x259   : > { %1879 = vrot.lane.b32.xlu2 %v1802_v59, %s6173_s15 }
 0x25a   : > { %v1502_v57 = vpop.permute.xlu1 %1501  ;;  %v1500_v58 = vpop.permute.xlu0 %1499 }
 0x25b   : > { %1576 = vst.msk [vmem:[#allocation3 + $0x110] sm:$0xff] %vm1541_vm10, %v1502_v57  ;;  %v1668_v1 = vpop.permute.xlu2 %1667  ;;  %v2015_v57 = vld [vmem:[%s6261_s26 + $0x26] sm:$0xff] }
 0x25c   : > { %1575 = vst.msk [vmem:[#allocation3 + $0x108] sm:$0xff] %vm1541_vm10, %v1500_v58  ;;  %vm4002_vm10 = vcmask 786048  }
 0x25d   : > { %1768 = vst.msk [vmem:[#allocation3 + $0x40] sm:$0xff] %vm1759_vm12, %v1668_v1  ;;  %v2018_v1 = vld [vmem:[%s6261_s26 + $0x3e] sm:$0xff] }
 0x260   : > { %1883 = vrot.lane.b32.xlu1 %v1804_v60, %s6173_s15  ;;  %1881 = vrot.lane.b32.xlu0 %v1803_v61, %s6173_s15  ;;  %v2017_v61 = vld [vmem:[%s6261_s26 + $0x36] sm:$0xff] }
 0x261   : > { %1885 = vrot.lane.b32.xlu2 %v1805_v4, %s6173_s15 }
 0x262   : > { %v1654_v2 = vpop.permute.xlu1 %1653  ;;  %v1652_v3 = vpop.permute.xlu0 %1651 }
 0x263   : > { %1761 = vst.msk [vmem:[#allocation3 + $0x8] sm:$0xff] %vm1759_vm12, %v1654_v2  ;;  %v1674_v10 = vpop.permute.xlu2 %1673  ;;  %v2019_v2 = vld [vmem:[%s6261_s26 + $0x46] sm:$0xff] }
 0x264   : > { %1760 = vst.msk [vmem:[#allocation3] sm:$0xff] %vm1759_vm12, %v1652_v3 }
 0x265   : > { %1771 = vst.msk [vmem:[#allocation3 + $0x58] sm:$0xff] %vm1759_vm12, %v1674_v10  ;;  %v2021_v10 = vld [vmem:[%s6261_s26 + $0x56] sm:$0xff] }
 0x268   : > { %1889 = vrot.lane.b32.xlu1 %v1807_v5, %s6173_s15  ;;  %1887 = vrot.lane.b32.xlu0 %v1806_v6, %s6173_s15  ;;  %v2022_v6 = vld [vmem:[%s6261_s26 + $0x5e] sm:$0xff] }
 0x269   : > { %1891 = vrot.lane.b32.xlu2 %v1808_v19, %s6173_s15 }
 0x26a   : > { %v1660_v11 = vpop.permute.xlu1 %1659  ;;  %v1658_v15 = vpop.permute.xlu0 %1657 }
 0x26b   : > { %1764 = vst.msk [vmem:[#allocation3 + $0x20] sm:$0xff] %vm1759_vm12, %v1660_v11  ;;  %v1680_v28 = vpop.permute.xlu2 %1679 }
 0x26c   : > { %1763 = vst.msk [vmem:[#allocation3 + $0x18] sm:$0xff] %vm1759_vm12, %v1658_v15 }
 0x26d   : > { %1774 = vst.msk [vmem:[#allocation3 + $0x70] sm:$0xff] %vm1759_vm12, %v1680_v28  ;;  %v2024_v28 = vld [vmem:[%s6261_s26 + $0x6e] sm:$0xff] }
 0x270   : > { %1895 = vrot.lane.b32.xlu1 %v1810_v20, %s6173_s15  ;;  %1893 = vrot.lane.b32.xlu0 %v1809_v24, %s6173_s15  ;;  %v2020_v20 = vld [vmem:[%s6261_s26 + $0x4e] sm:$0xff]  ;;  %v2025_v24 = vld [vmem:[%s6261_s26 + $0x76] sm:$0xff] }
 0x271   : > { %1897 = vrot.lane.b32.xlu2 %v1811_v14, %s6173_s15 }
 0x272   : > { %v1666_v29 = vpop.permute.xlu1 %1665  ;;  %v1664_v12 = vpop.permute.xlu0 %1663 }
 0x273   : > { %1767 = vst.msk [vmem:[#allocation3 + $0x38] sm:$0xff] %vm1759_vm12, %v1666_v29  ;;  %v1686_v21 = vpop.permute.xlu2 %1685 }
 0x274   : > { %1766 = vst.msk [vmem:[#allocation3 + $0x30] sm:$0xff] %vm1759_vm12, %v1664_v12 }
 0x275   : > { %1777 = vst.msk [vmem:[#allocation3 + $0x88] sm:$0xff] %vm1759_vm12, %v1686_v21  ;;  %v2027_v21 = vld [vmem:[%s6261_s26 + $0x86] sm:$0xff] }
 0x278   : > { %1901 = vrot.lane.b32.xlu1 %v1813_v46, %s6173_s15  ;;  %1899 = vrot.lane.b32.xlu0 %v1812_v13, %s6173_s15  ;;  %v2023_v46 = vld [vmem:[%s6261_s26 + $0x66] sm:$0xff]  ;;  %v2028_v13 = vld [vmem:[%s6261_s26 + $0x8e] sm:$0xff] }
 0x279   : > { %1903 = vrot.lane.b32.xlu2 %v1814_v30, %s6173_s15 }
 0x27a   : > { %v1672_v23 = vpop.permute.xlu1 %1671  ;;  %v1670_v22 = vpop.permute.xlu0 %1669 }
 0x27b   : > { %1770 = vst.msk [vmem:[#allocation3 + $0x50] sm:$0xff] %vm1759_vm12, %v1672_v23  ;;  %v1692_v48 = vpop.permute.xlu2 %1691 }
 0x27c   : > { %1769 = vst.msk [vmem:[#allocation3 + $0x48] sm:$0xff] %vm1759_vm12, %v1670_v22 }
 0x27d   : > { %1780 = vst.msk [vmem:[#allocation3 + $0xa0] sm:$0xff] %vm1759_vm12, %v1692_v48  ;;  %v2030_v48 = vld [vmem:[%s6261_s26 + $0x9e] sm:$0xff] }
 0x280   : > { %1907 = vrot.lane.b32.xlu1 %v1816_v32, %s6173_s15  ;;  %1905 = vrot.lane.b32.xlu0 %v1815_v31, %s6173_s15  ;;  %v2026_v32 = vld [vmem:[%s6261_s26 + $0x7e] sm:$0xff]  ;;  %v2031_v31 = vld [vmem:[%s6261_s26 + $0xa6] sm:$0xff] }
 0x281   : > { %1909 = vrot.lane.b32.xlu2 %v1817_v53, %s6173_s15 }
 0x282   : > { %v1678_v33 = vpop.permute.xlu1 %1677  ;;  %v1676_v47 = vpop.permute.xlu0 %1675 }
 0x283   : > { %1773 = vst.msk [vmem:[#allocation3 + $0x68] sm:$0xff] %vm1759_vm12, %v1678_v33  ;;  %v1698_v62 = vpop.permute.xlu2 %1697 }
 0x284   : > { %1772 = vst.msk [vmem:[#allocation3 + $0x60] sm:$0xff] %vm1759_vm12, %v1676_v47 }
 0x285   : > { %1783 = vst.msk [vmem:[#allocation3 + $0xb8] sm:$0xff] %vm1759_vm12, %v1698_v62  ;;  %v2033_v62 = vld [vmem:[%s6261_s26 + $0xb6] sm:$0xff] }
 0x288   : > { %1913 = vrot.lane.b32.xlu1 %v1819_v55, %s6173_s15  ;;  %1911 = vrot.lane.b32.xlu0 %v1818_v54, %s6173_s15  ;;  %v2029_v55 = vld [vmem:[%s6261_s26 + $0x96] sm:$0xff]  ;;  %v2034_v54 = vld [vmem:[%s6261_s26 + $0xbe] sm:$0xff] }
 0x289   : > { %1915 = vrot.lane.b32.xlu2 %v1820_v7, %s6173_s15 }
 0x28a   : > { %v1684_v0 = vpop.permute.xlu1 %1683  ;;  %v1682_v63 = vpop.permute.xlu0 %1681 }
 0x28b   : > { %1776 = vst.msk [vmem:[#allocation3 + $0x80] sm:$0xff] %vm1759_vm12, %v1684_v0  ;;  %v1704_v16 = vpop.permute.xlu2 %1703 }
 0x28c   : > { %1775 = vst.msk [vmem:[#allocation3 + $0x78] sm:$0xff] %vm1759_vm12, %v1682_v63 }
 0x28d   : > { %1786 = vst.msk [vmem:[#allocation3 + $0xd0] sm:$0xff] %vm1759_vm12, %v1704_v16  ;;  %v2036_v16 = vld [vmem:[%s6261_s26 + $0xce] sm:$0xff] }
 0x290   : > { %1919 = vrot.lane.b32.xlu1 %v1822_v9, %s6173_s15  ;;  %1917 = vrot.lane.b32.xlu0 %v1821_v8, %s6173_s15  ;;  %v2032_v9 = vld [vmem:[%s6261_s26 + $0xae] sm:$0xff]  ;;  %v2037_v8 = vld [vmem:[%s6261_s26 + $0xd6] sm:$0xff] }
 0x291   : > { %1921 = vrot.lane.b32.xlu2 %v1823_v25, %s6173_s15 }
 0x292   : > { %v1690_v18 = vpop.permute.xlu1 %1689  ;;  %v1688_v17 = vpop.permute.xlu0 %1687 }
 0x293   : > { %1779 = vst.msk [vmem:[#allocation3 + $0x98] sm:$0xff] %vm1759_vm12, %v1690_v18  ;;  %v1710_v34 = vpop.permute.xlu2 %1709 }
 0x294   : > { %1778 = vst.msk [vmem:[#allocation3 + $0x90] sm:$0xff] %vm1759_vm12, %v1688_v17 }
 0x295   : > { %1789 = vst.msk [vmem:[#allocation3 + $0xe8] sm:$0xff] %vm1759_vm12, %v1710_v34  ;;  %v2039_v34 = vld [vmem:[%s6261_s26 + $0xe6] sm:$0xff] }
 0x298   : > { %1925 = vrot.lane.b32.xlu1 %v1825_v27, %s6173_s15  ;;  %1923 = vrot.lane.b32.xlu0 %v1824_v26, %s6173_s15  ;;  %v2035_v27 = vld [vmem:[%s6261_s26 + $0xc6] sm:$0xff]  ;;  %v2040_v26 = vld [vmem:[%s6261_s26 + $0xee] sm:$0xff] }
 0x299   : > { %1927 = vrot.lane.b32.xlu2 %v1826_v37, %s6173_s15 }
 0x29a   : > { %v1696_v36 = vpop.permute.xlu1 %1695  ;;  %v1694_v35 = vpop.permute.xlu0 %1693 }
 0x29b   : > { %1782 = vst.msk [vmem:[#allocation3 + $0xb0] sm:$0xff] %vm1759_vm12, %v1696_v36  ;;  %v1716_v40 = vpop.permute.xlu2 %1715 }
 0x29c   : > { %1781 = vst.msk [vmem:[#allocation3 + $0xa8] sm:$0xff] %vm1759_vm12, %v1694_v35 }
 0x29d   : > { %1792 = vst.msk [vmem:[#allocation3 + $0x100] sm:$0xff] %vm1759_vm12, %v1716_v40  ;;  %v2042_v40 = vld [vmem:[%s6261_s26 + $0xfe] sm:$0xff] }
 0x2a0   : > { %1931 = vrot.lane.b32.xlu1 %v1828_v38, %s6173_s15  ;;  %1929 = vrot.lane.b32.xlu0 %v1827_v39, %s6173_s15  ;;  %v2038_v38 = vld [vmem:[%s6261_s26 + $0xde] sm:$0xff]  ;;  %v2043_v39 = vld [vmem:[%s6261_s26 + $0x106] sm:$0xff] }
 0x2a1   : > { %1933 = vrot.lane.b32.xlu2 %v1829_v43, %s6173_s15 }
 0x2a2   : > { %v1702_v41 = vpop.permute.xlu1 %1701  ;;  %v1700_v42 = vpop.permute.xlu0 %1699 }
 0x2a3   : > { %1785 = vst.msk [vmem:[#allocation3 + $0xc8] sm:$0xff] %vm1759_vm12, %v1702_v41  ;;  %v1722_v49 = vpop.permute.xlu2 %1721 }
 0x2a4   : > { %1784 = vst.msk [vmem:[#allocation3 + $0xc0] sm:$0xff] %vm1759_vm12, %v1700_v42 }
 0x2a5   : > { %1796 = vst.msk [vmem:[#allocation3 + $0x118] sm:$0x3f] %vm1795_vm13, %v1722_v49  ;;  %v2045_v49 = vld [vmem:[%s6261_s26 + $0x116] sm:$0xff]  ;;  %vm5427_vm13 = vcmask 1046528  }
 0x2a8   : > { %1937 = vrot.lane.b32.xlu1 %v1831_v44, %s6173_s15  ;;  %1935 = vrot.lane.b32.xlu0 %v1830_v45, %s6173_s15  ;;  %v2041_v44 = vld [vmem:[%s6261_s26 + $0xf6] sm:$0xff]  ;;  %v2046_v45 = vld [vmem:[%s6261_s26 + $0x11e] sm:$0xff] }
 0x2a9   : > { %1939 = vrot.lane.b32.xlu2 %v1832_v52, %s6173_s15 }
 0x2aa   : > { %v1708_v50 = vpop.permute.xlu1 %1707  ;;  %v1706_v51 = vpop.permute.xlu0 %1705 }
 0x2ab   : > { %1788 = vst.msk [vmem:[#allocation3 + $0xe0] sm:$0xff] %vm1759_vm12, %v1708_v50  ;;  %v1874_v58 = vpop.permute.xlu2 %1873  ;;  %v6175_v50 = vmov 0  }
 0x2ac   : > { %1787 = vst.msk [vmem:[#allocation3 + $0xd8] sm:$0xff] %vm1759_vm12, %v1706_v51  ;;  %6141 = vset.pattern.permute.xlu1 %v6175_v50  ;;  %6140 = vset.pattern.permute.xlu0 %v6175_v50  ;;  %v2291_v51 = vld [vmem:[%s9341_s3 + $0x10] sm:$0x3] }
 0x2ad   : > { %1980 = vst.msk [vmem:[#allocation3 + $0x10] sm:$0xff] %vm1977_vm14, %v1874_v58  ;;  %v2301_v52 = vunpack.c.l.b16 %v2291_v51  ;;  %6142 = vset.pattern.permute.xlu2 %v6175_v50 }
 0x2b0   : > { %2089 = vrot.lane.b32.xlu1 %v2016_v56, %s6174_s16  ;;  %2087 = vrot.lane.b32.xlu0 %v2015_v57, %s6174_s16  ;;  %v2304_v56 = vpack.c.b16 %v2301_v52, %v2301_v52 }
 0x2b1   : > { %2091 = vrot.lane.b32.xlu2 %v2017_v61, %s6174_s16  ;;  %v6103_v61 = vld [vmem:[%s9341_s3 + $0x8] sm:$0xff] }
 0x2b2   : > { %v1714_v59 = vpop.permute.xlu1 %1713  ;;  %v1712_v60 = vpop.permute.xlu0 %1711 }
 0x2b3   : > { %1791 = vst.msk [vmem:[#allocation3 + $0xf8] sm:$0xff] %vm1759_vm12, %v1714_v59  ;;  %v1880_v3 = vpop.permute.xlu2 %1879 }
 0x2b4   : > { %1790 = vst.msk [vmem:[#allocation3 + $0xf0] sm:$0xff] %vm1759_vm12, %v1712_v60  ;;  %v2364_v60 = vsel %vm2362_vm15, %v2304_v56, 0  ;;  %vm2876_vm15 = vcmask 128000  }
 0x2b5   : > { %1983 = vst.msk [vmem:[#allocation3 + $0x28] sm:$0xff] %vm1977_vm14, %v1880_v3  ;;  %2371 = vmatpush.bf16.msra.mxu0 %v2364_v60  ;;  %v2048_v3 = vld [vmem:[%s6261_s26 + $0x12e] sm:$0xff] }
 0x2b8   : > { %2093 = vrot.lane.b32.xlu0 %v2018_v1, %s6174_s16  ;;  %2095 = vrot.lane.b32.xlu1 %v2019_v2, %s6174_s16  ;;  %v2044_v1 = vld [vmem:[%s6261_s26 + $0x10e] sm:$0xff]  ;;  %v2049_v2 = vld [vmem:[%s6261_s26 + $0x136] sm:$0xff] }
 0x2b9   : > { %2097 = vrot.lane.b32.xlu2 %v2020_v20, %s6174_s16  ;;  %2372 = vmatpush.bf16.msra.mxu0 %v6103_v61 }
 0x2ba   : > { %v1720_v4 = vpop.permute.xlu1 %1719  ;;  %v1718_v5 = vpop.permute.xlu0 %1717 }
 0x2bb   : > { %1794 = vst.msk [vmem:[#allocation3 + $0x110] sm:$0xff] %vm1759_vm12, %v1720_v4  ;;  %v1886_v11 = vpop.permute.xlu2 %1885  ;;  %v6102_v4 = vld [vmem:[%s9341_s3] sm:$0xff] }
 0x2bc   : > { %1793 = vst.msk [vmem:[#allocation3 + $0x108] sm:$0xff] %vm1759_vm12, %v1718_v5  ;;  %vm4438_vm12 = vcmask 1048448  }
 0x2bd   : > { %1986 = vst.msk [vmem:[#allocation3 + $0x40] sm:$0xff] %vm1977_vm14, %v1886_v11  ;;  %2373 = vmatpush.bf16.msra.mxu0 %v6102_v4  ;;  %v2582_v11 = vld [vmem:[%s9339_s1 + $0x8] sm:$0xff] }
 0x2c0   : > { %2101 = vrot.lane.b32.xlu1 %v2022_v6, %s6174_s16  ;;  %2099 = vrot.lane.b32.xlu0 %v2021_v10, %s6174_s16 }
 0x2c1   : > { %2103 = vrot.lane.b32.xlu2 %v2023_v46, %s6174_s16 }
 0x2c2   : > { %v1872_v15 = vpop.permute.xlu1 %1871  ;;  %v1870_v19 = vpop.permute.xlu0 %1869 }
 0x2c3   : > { %1979 = vst.msk [vmem:[#allocation3 + $0x8] sm:$0xff] %vm1977_vm14, %v1872_v15  ;;  %v1892_v29 = vpop.permute.xlu2 %1891  ;;  %v2581_v15 = vld [vmem:[%s9339_s1] sm:$0xff] }
 0x2c4   : > { %1978 = vst.msk [vmem:[#allocation3] sm:$0xff] %vm1977_vm14, %v1870_v19  ;;  %v2047_v19 = vld [vmem:[%s6261_s26 + $0x126] sm:$0xff] }
 0x2c5   : > { %1989 = vst.msk [vmem:[#allocation3 + $0x58] sm:$0xff] %vm1977_vm14, %v1892_v29  ;;  %v2050_v29 = vld [vmem:[%s6261_s26 + $0x13e] sm:$0x3f]  ;;  %s6180_s26 = smov 112  }
 0x2c8   : > { %2107 = vrot.lane.b32.xlu1 %v2025_v24, %s6174_s16  ;;  %2105 = vrot.lane.b32.xlu0 %v2024_v28, %s6174_s16 }
 0x2c9   : > { %2109 = vrot.lane.b32.xlu2 %v2026_v32, %s6174_s16 }
 0x2ca   : > { %v1878_v12 = vpop.permute.xlu1 %1877  ;;  %v1876_v14 = vpop.permute.xlu0 %1875 }
 0x2cb   : > { %1982 = vst.msk [vmem:[#allocation3 + $0x20] sm:$0xff] %vm1977_vm14, %v1878_v12  ;;  %v1898_v23 = vpop.permute.xlu2 %1897  ;;  %v2584_v12 = vld [vmem:[%s9339_s1 + $0x18] sm:$0xff] }
 0x2cc   : > { %1981 = vst.msk [vmem:[#allocation3 + $0x18] sm:$0xff] %vm1977_vm14, %v1876_v14  ;;  %v2586_v14 = vld [vmem:[%s9339_s1 + $0x28] sm:$0xff] }
 0x2cd   : > { %1992 = vst.msk [vmem:[#allocation3 + $0x70] sm:$0xff] %vm1977_vm14, %v1898_v23  ;;  %v2589_v23 = vld [vmem:[%s9339_s1 + $0x40] sm:$0xff] }
 0x2d0   : > { %2113 = vrot.lane.b32.xlu1 %v2028_v13, %s6174_s16  ;;  %2111 = vrot.lane.b32.xlu0 %v2027_v21, %s6174_s16  ;;  %v2587_v21 = vld [vmem:[%s9339_s1 + $0x30] sm:$0xff] }
 0x2d1   : > { %2115 = vrot.lane.b32.xlu2 %v2029_v55, %s6174_s16 }
 0x2d2   : > { %v1884_v22 = vpop.permute.xlu1 %1883  ;;  %v1882_v30 = vpop.permute.xlu0 %1881 }
 0x2d3   : > { %1985 = vst.msk [vmem:[#allocation3 + $0x38] sm:$0xff] %vm1977_vm14, %v1884_v22  ;;  %v1904_v33 = vpop.permute.xlu2 %1903  ;;  %v2583_v22 = vld [vmem:[%s9339_s1 + $0x10] sm:$0xff] }
 0x2d4   : > { %1984 = vst.msk [vmem:[#allocation3 + $0x30] sm:$0xff] %vm1977_vm14, %v1882_v30 }
 0x2d5   : > { %1995 = vst.msk [vmem:[#allocation3 + $0x88] sm:$0xff] %vm1977_vm14, %v1904_v33  ;;  %v2590_v33 = vld [vmem:[%s9339_s1 + $0x48] sm:$0xff] }
 0x2d8   : > { %2119 = vrot.lane.b32.xlu1 %v2031_v31, %s6174_s16  ;;  %2117 = vrot.lane.b32.xlu0 %v2030_v48, %s6174_s16  ;;  %v2585_v48 = vld [vmem:[%s9339_s1 + $0x20] sm:$0xff] }
 0x2d9   : > { %2121 = vrot.lane.b32.xlu2 %v2032_v9, %s6174_s16  ;;  %v2595_v9 = vld [vmem:[%s9339_s1 + $0x70] sm:$0xff] }
 0x2da   : > { %v1890_v47 = vpop.permute.xlu1 %1889  ;;  %v1888_v53 = vpop.permute.xlu0 %1887 }
 0x2db   : > { %1988 = vst.msk [vmem:[#allocation3 + $0x50] sm:$0xff] %vm1977_vm14, %v1890_v47  ;;  %v1910_v0 = vpop.permute.xlu2 %1909  ;;  %v2592_v47 = vld [vmem:[%s9339_s1 + $0x58] sm:$0xff] }
 0x2dc   : > { %1987 = vst.msk [vmem:[#allocation3 + $0x48] sm:$0xff] %vm1977_vm14, %v1888_v53 }
 0x2dd   : > { %1998 = vst.msk [vmem:[#allocation3 + $0xa0] sm:$0xff] %vm1977_vm14, %v1910_v0 }
 0x2e0   : > { %2125 = vrot.lane.b32.xlu1 %v2034_v54, %s6174_s16  ;;  %2123 = vrot.lane.b32.xlu0 %v2033_v62, %s6174_s16 }
 0x2e1   : > { %2127 = vrot.lane.b32.xlu2 %v2035_v27, %s6174_s16  ;;  %v2596_v27 = vld [vmem:[%s9339_s1 + $0x78] sm:$0xff] }
 0x2e2   : > { %v1896_v63 = vpop.permute.xlu1 %1895  ;;  %v1894_v7 = vpop.permute.xlu0 %1893 }
 0x2e3   : > { %1991 = vst.msk [vmem:[#allocation3 + $0x68] sm:$0xff] %vm1977_vm14, %v1896_v63  ;;  %v1916_v18 = vpop.permute.xlu2 %1915 }
 0x2e4   : > { %1990 = vst.msk [vmem:[#allocation3 + $0x60] sm:$0xff] %vm1977_vm14, %v1894_v7  ;;  %v2593_v7 = vld [vmem:[%s9339_s1 + $0x60] sm:$0xff] }
 0x2e5   : > { %2001 = vst.msk [vmem:[#allocation3 + $0xb8] sm:$0xff] %vm1977_vm14, %v1916_v18 }
 0x2e8   : > { %2131 = vrot.lane.b32.xlu1 %v2037_v8, %s6174_s16  ;;  %2129 = vrot.lane.b32.xlu0 %v2036_v16, %s6174_s16  ;;  %v2588_v8 = vld [vmem:[%s9339_s1 + $0x38] sm:$0xff] }
 0x2e9   : > { %2133 = vrot.lane.b32.xlu2 %v2038_v38, %s6174_s16 }
 0x2ea   : > { %v1902_v17 = vpop.permute.xlu1 %1901  ;;  %v1900_v25 = vpop.permute.xlu0 %1899 }
 0x2eb   : > { %1994 = vst.msk [vmem:[#allocation3 + $0x80] sm:$0xff] %vm1977_vm14, %v1902_v17  ;;  %v1922_v36 = vpop.permute.xlu2 %1921 }
 0x2ec   : > { %1993 = vst.msk [vmem:[#allocation3 + $0x78] sm:$0xff] %vm1977_vm14, %v1900_v25  ;;  %v2591_v25 = vld [vmem:[%s9339_s1 + $0x50] sm:$0xff] }
 0x2ed   : > { %2004 = vst.msk [vmem:[#allocation3 + $0xd0] sm:$0xff] %vm1977_vm14, %v1922_v36 }
 0x2f0   : > { %2137 = vrot.lane.b32.xlu1 %v2040_v26, %s6174_s16  ;;  %2135 = vrot.lane.b32.xlu0 %v2039_v34, %s6174_s16  ;;  %v2598_v26 = vld [vmem:[%s9339_s1 + $0x88] sm:$0xff] }
 0x2f1   : > { %2139 = vrot.lane.b32.xlu2 %v2041_v44, %s6174_s16 }
 0x2f2   : > { %v1908_v35 = vpop.permute.xlu1 %1907  ;;  %v1906_v37 = vpop.permute.xlu0 %1905 }
 0x2f3   : > { %1997 = vst.msk [vmem:[#allocation3 + $0x98] sm:$0xff] %vm1977_vm14, %v1908_v35  ;;  %v1928_v41 = vpop.permute.xlu2 %1927 }
 0x2f4   : > { %1996 = vst.msk [vmem:[#allocation3 + $0x90] sm:$0xff] %vm1977_vm14, %v1906_v37 }
 0x2f5   : > { %2007 = vst.msk [vmem:[#allocation3 + $0xe8] sm:$0xff] %vm1977_vm14, %v1928_v41  ;;  %v2601_v41 = vld [vmem:[%s9339_s1 + $0xa0] sm:$0xff] }
 0x2f8   : > { %2143 = vrot.lane.b32.xlu1 %v2043_v39, %s6174_s16  ;;  %2141 = vrot.lane.b32.xlu0 %v2042_v40, %s6174_s16  ;;  %v2599_v40 = vld [vmem:[%s9339_s1 + $0x90] sm:$0xff] }
 0x2f9   : > { %2145 = vrot.lane.b32.xlu2 %v2044_v1, %s6174_s16 }
 0x2fa   : > { %v1914_v42 = vpop.permute.xlu1 %1913  ;;  %v1912_v43 = vpop.permute.xlu0 %1911 }
 0x2fb   : > { %2000 = vst.msk [vmem:[#allocation3 + $0xb0] sm:$0xff] %vm1977_vm14, %v1914_v42  ;;  %v1934_v57 = vpop.permute.xlu2 %1933  ;;  %v2594_v42 = vld [vmem:[%s9339_s1 + $0x68] sm:$0xff] }
 0x2fc   : > { %1999 = vst.msk [vmem:[#allocation3 + $0xa8] sm:$0xff] %vm1977_vm14, %v1912_v43 }
 0x2fd   : > { %2010 = vst.msk [vmem:[#allocation3 + $0x100] sm:$0xff] %vm1977_vm14, %v1934_v57 }
 0x300   : > { %2149 = vrot.lane.b32.xlu1 %v2046_v45, %s6174_s16  ;;  %2147 = vrot.lane.b32.xlu0 %v2045_v49, %s6174_s16  ;;  %v2597_v49 = vld [vmem:[%s9339_s1 + $0x80] sm:$0xff] }
 0x301   : > { %2151 = vrot.lane.b32.xlu2 %v2047_v19, %s6174_s16 }
 0x302   : > { %v1920_v58 = vpop.permute.xlu1 %1919  ;;  %v1918_v59 = vpop.permute.xlu0 %1917 }
 0x303   : > { %2003 = vst.msk [vmem:[#allocation3 + $0xc8] sm:$0xff] %vm1977_vm14, %v1920_v58  ;;  %v1940_v5 = vpop.permute.xlu2 %1939 }
 0x304   : > { %2002 = vst.msk [vmem:[#allocation3 + $0xc0] sm:$0xff] %vm1977_vm14, %v1918_v59  ;;  %v2600_v59 = vld [vmem:[%s9339_s1 + $0x98] sm:$0xff] }
 0x305   : > { %2014 = vst.msk [vmem:[#allocation3 + $0x118] sm:$0x3f] %vm2013_vm0, %v1940_v5  ;;  %vm3166_vm0 = vcmask 259200  }
 0x308   : > { %2155 = vrot.lane.b32.xlu1 %v2049_v2, %s6174_s16  ;;  %2153 = vrot.lane.b32.xlu0 %v2048_v3, %s6174_s16 }
 0x309   : > { %2157 = vrot.lane.b32.xlu2 %v2050_v29, %s6174_s16 }
 0x30a   : > { %v1926_v6 = vpop.permute.xlu1 %1925  ;;  %v1924_v10 = vpop.permute.xlu0 %1923 }
 0x30b   : > { %2006 = vst.msk [vmem:[#allocation3 + $0xe0] sm:$0xff] %vm1977_vm14, %v1926_v6  ;;  %v2092_v20 = vpop.permute.xlu2 %2091 }
 0x30c   : > { %2005 = vst.msk [vmem:[#allocation3 + $0xd8] sm:$0xff] %vm1977_vm14, %v1924_v10 }
 0x30d   : > { %2198 = vst.msk [vmem:[#allocation3 + $0x10] sm:$0xff] %vm2195_vm1, %v2092_v20 }
 0x310   : > { %2624 = vperm.xlu1 %6141, %v2582_v11   ;;  %2619 = vperm.xlu0 %6140, %v2581_v15  }
 0x311   : > { %2629 = vperm.xlu2 %6142, %v2583_v22  }
 0x312   : > { %v1932_v24 = vpop.permute.xlu1 %1931  ;;  %v1930_v28 = vpop.permute.xlu0 %1929 }
 0x313   : > { %2009 = vst.msk [vmem:[#allocation3 + $0xf8] sm:$0xff] %vm1977_vm14, %v1932_v24  ;;  %v2098_v30 = vpop.permute.xlu2 %2097 }
 0x314   : > { %2008 = vst.msk [vmem:[#allocation3 + $0xf0] sm:$0xff] %vm1977_vm14, %v1930_v28  ;;  %v2235_v34 = vld [vmem:[#allocation3 + $0x10] sm:$0xff] }
 0x315   : > { %2201 = vst.msk [vmem:[#allocation3 + $0x28] sm:$0xff] %vm2195_vm1, %v2098_v30 }
 0x318   : > { %2634 = vperm.xlu1 %6141, %v2584_v12   ;;  %2644 = vperm.xlu0 %6140, %v2586_v14  }
 0x319   : > { %2639 = vperm.xlu2 %6142, %v2585_v48  }
 0x31a   : > { %v1938_v46 = vpop.permute.xlu1 %1937  ;;  %v1936_v13 = vpop.permute.xlu0 %1935 }
 0x31b   : > { %2012 = vst.msk [vmem:[#allocation3 + $0x110] sm:$0xff] %vm1977_vm14, %v1938_v46  ;;  %v2104_v53 = vpop.permute.xlu2 %2103 }
 0x31c   : > { %2011 = vst.msk [vmem:[#allocation3 + $0x108] sm:$0xff] %vm1977_vm14, %v1936_v13  ;;  %v2238_v51 = vld [vmem:[#allocation3 + $0x28] sm:$0xff]  ;;  %vm5605_vm14 = vcmask 1045504  }
 0x31d   : > { %2204 = vst.msk [vmem:[#allocation3 + $0x40] sm:$0xff] %vm2195_vm1, %v2104_v53 }
 0x320   : > { %2649 = vperm.xlu1 %6141, %v2587_v21   ;;  %2659 = vperm.xlu0 %6140, %v2589_v23  }
 0x321   : > { %2654 = vperm.xlu2 %6142, %v2588_v8   ;;  %v7479_v8 = vld [vmem:[%s9342_s4] ss:$0 sm:$0xff] }
 0x322   : > { %v2090_v32 = vpop.permute.xlu1 %2089  ;;  %v2088_v31 = vpop.permute.xlu0 %2087 }
 0x323   : > { %2197 = vst.msk [vmem:[#allocation3 + $0x8] sm:$0xff] %vm2195_vm1, %v2090_v32  ;;  %v2110_v16 = vpop.permute.xlu2 %2109 }
 0x324   : > { %2196 = vst.msk [vmem:[#allocation3] sm:$0xff] %vm2195_vm1, %v2088_v31  ;;  %v2241_v20 = vld [vmem:[#allocation3 + $0x40] sm:$0xff]  ;;  %v6176_v31 = vmov 0.0  }
 0x325   : > { %2207 = vst.msk [vmem:[#allocation3 + $0x58] sm:$0xff] %vm2195_vm1, %v2110_v16 }
 0x326   : > { %2834 = vst.msk [vmem:[#allocation2] sm:$0xff] %vm2833_vm4, %v6176_v31 }
 0x327   : > { %2835 = vst.msk [vmem:[#allocation2 + $0x8] sm:$0xff] %vm2833_vm4, %v6176_v31 }
 0x328   : > { %2664 = vperm.xlu1 %6141, %v2590_v33   ;;  %2674 = vperm.xlu0 %6140, %v2592_v47   ;;  %2838 = vst.msk [vmem:[#allocation2 + $0x131] sm:$0xff] %vm2833_vm4, %v6176_v31 }
 0x329   : > { %2669 = vperm.xlu2 %6142, %v2591_v25   ;;  %2839 = vst.msk [vmem:[#allocation2 + $0x139] sm:$0xff] %vm2833_vm4, %v6176_v31 }
 0x32a   : > { %v2234_v55 = vld [vmem:[#allocation3 + $0x8] sm:$0xff]  ;;  %v2094_v54 = vpop.permute.xlu0 %2093  ;;  %v2096_v62 = vpop.permute.xlu1 %2095  ;;  %2837 = vst.msk [vmem:[#allocation2 + $0x10] sm:$0x7] %vm2836_vm5, %v6176_v31 }
 0x32b   : > { %v2233_v0 = vld [vmem:[#allocation3] sm:$0xff]  ;;  %2199 = vst.msk [vmem:[#allocation3 + $0x18] sm:$0xff] %vm2195_vm1, %v2094_v54  ;;  %v2116_v35 = vpop.permute.xlu2 %2115 }
 0x32c   : > { %v2269_v63 = vpack.c.bf16 %v2234_v55, %v2233_v0  ;;  %2200 = vst.msk [vmem:[#allocation3 + $0x20] sm:$0xff] %vm2195_vm1, %v2096_v62  ;;  %v2244_v22 = vld [vmem:[#allocation3 + $0x58] sm:$0xff] }
 0x32d   : > { %2210 = vst.msk [vmem:[#allocation3 + $0x70] sm:$0xff] %vm2195_vm1, %v2116_v35 }
 0x32e   : > { %5996 = vmatmul.msk.bf16.vlgmr.msra.gmra.mxu0 %vm2307_vm2, %v2269_v63  ;;  %v2950_v33 = vld [vmem:[#allocation2 + $0x1] sm:$0xff]  ;;  %2840 = vst.msk [vmem:[#allocation2 + $0x141] sm:$0x7] %vm2836_vm5, %v6176_v31  ;;  %vm4038_vm5 = vcmask 784000  }
 0x32f   : > { %v3168_v47 = vld [vmem:[#allocation2 + $0x2] sm:$0xff] }
 0x330   : > { %2679 = vperm.xlu1 %6141, %v2593_v7   ;;  %2689 = vperm.xlu0 %6140, %v2595_v9  }
 0x331   : > { %2684 = vperm.xlu2 %6142, %v2594_v42   ;;  %v2951_v62 = vld [vmem:[#allocation2 + $0x9] sm:$0xff] }
 0x332   : > { %v2102_v18 = vpop.permute.xlu1 %2101  ;;  %v2100_v17 = vpop.permute.xlu0 %2099  ;;  %v2236_v36 = vld [vmem:[#allocation3 + $0x18] sm:$0xff]  ;;  %v3169_v0 = vld [vmem:[#allocation2 + $0xa] sm:$0xff] }
 0x333   : > { %2203 = vst.msk [vmem:[#allocation3 + $0x38] sm:$0xff] %vm2195_vm1, %v2102_v18  ;;  %v2270_v37 = vpack.c.bf16 %v2236_v36, %v2235_v34  ;;  %v2122_v43 = vpop.permute.xlu2 %2121  ;;  %v2237_v50 = vld [vmem:[#allocation3 + $0x20] sm:$0xff] }
 0x334   : > { %2202 = vst.msk [vmem:[#allocation3 + $0x30] sm:$0xff] %vm2195_vm1, %v2100_v17  ;;  %v2271_v56 = vpack.c.bf16 %v2238_v51, %v2237_v50  ;;  %v2247_v63 = vld [vmem:[#allocation3 + $0x70] sm:$0xff]  ;;  %v7484_v17 = vld [vmem:[%s9343_s5] ss:$0 sm:$0xff] }
 0x335   : > { %2213 = vst.msk [vmem:[#allocation3 + $0x88] sm:$0xff] %vm2195_vm1, %v2122_v43 }
 0x338   : > { %2694 = vperm.xlu1 %6141, %v2596_v27   ;;  %2704 = vperm.xlu0 %6140, %v2598_v26  }
 0x339   : > { %2699 = vperm.xlu2 %6142, %v2597_v49  }
 0x33a   : > { %v2108_v38 = vpop.permute.xlu1 %2107  ;;  %v2106_v39 = vpop.permute.xlu0 %2105  ;;  %v2240_v3 = vld [vmem:[#allocation3 + $0x38] sm:$0xff] }
 0x33b   : > { %2206 = vst.msk [vmem:[#allocation3 + $0x50] sm:$0xff] %vm2195_vm1, %v2108_v38  ;;  %v2128_v52 = vpop.permute.xlu2 %2127  ;;  %v2239_v2 = vld [vmem:[#allocation3 + $0x30] sm:$0xff] }
 0x33c   : > { %2205 = vst.msk [vmem:[#allocation3 + $0x48] sm:$0xff] %vm2195_vm1, %v2106_v39  ;;  %v2272_v5 = vpack.c.bf16 %v2240_v3, %v2239_v2  ;;  %v2250_v18 = vld [vmem:[#allocation3 + $0x88] sm:$0xff] }
 0x33d   : > { %2216 = vst.msk [vmem:[#allocation3 + $0xa0] sm:$0xff] %vm2195_vm1, %v2128_v52 }
 0x33e   : > { %5997 = vmatmul.msk.bf16.gmra.mxu0 %vm2307_vm2, %v2270_v37 }
 0x340   : > { %2709 = vperm.xlu1 %6141, %v2599_v40   ;;  %2719 = vperm.xlu0 %6140, %v2601_v41  }
 0x341   : > { %2714 = vperm.xlu2 %6142, %v2600_v59  }
 0x342   : > { %v2114_v44 = vpop.permute.xlu1 %2113  ;;  %v2112_v45 = vpop.permute.xlu0 %2111  ;;  %v2243_v23 = vld [vmem:[#allocation3 + $0x50] sm:$0xff] }
 0x343   : > { %2209 = vst.msk [vmem:[#allocation3 + $0x68] sm:$0xff] %vm2195_vm1, %v2114_v44  ;;  %v2134_v60 = vpop.permute.xlu2 %2133  ;;  %v2242_v24 = vld [vmem:[#allocation3 + $0x48] sm:$0xff]  ;;  %v2274_v30 = vpack.c.bf16 %v2244_v22, %v2243_v23 }
 0x344   : > { %2208 = vst.msk [vmem:[#allocation3 + $0x60] sm:$0xff] %vm2195_vm1, %v2112_v45  ;;  %v2273_v29 = vpack.c.bf16 %v2242_v24, %v2241_v20 }
 0x345   : > { %2219 = vst.msk [vmem:[#allocation3 + $0xb8] sm:$0xff] %vm2195_vm1, %v2134_v60 }
 0x348   : > { %3022 = vrot.lane.b32.xlu1 %v2950_v33, %s6170_s30  ;;  %3240 = vrot.lane.b32.xlu0 %v3168_v47, %s6174_s16 }
 0x349   : > { %3024 = vrot.lane.b32.xlu2 %v2951_v62, %s6170_s30 }
 0x34a   : > { %v2120_v57 = vpop.permute.xlu1 %2119  ;;  %v2118_v58 = vpop.permute.xlu0 %2117  ;;  %v2246_v55 = vld [vmem:[#allocation3 + $0x68] sm:$0xff] }
 0x34b   : > { %2212 = vst.msk [vmem:[#allocation3 + $0x80] sm:$0xff] %vm2195_vm1, %v2120_v57  ;;  %v2140_v4 = vpop.permute.xlu2 %2139  ;;  %v2245_v53 = vld [vmem:[#allocation3 + $0x60] sm:$0xff] }
 0x34c   : > { %2211 = vst.msk [vmem:[#allocation3 + $0x78] sm:$0xff] %vm2195_vm1, %v2118_v58  ;;  %v2275_v54 = vpack.c.bf16 %v2246_v55, %v2245_v53 }
 0x34d   : > { %2222 = vst.msk [vmem:[#allocation3 + $0xd0] sm:$0xff] %vm2195_vm1, %v2140_v4  ;;  %v6112_v4 = vld [vmem:[%s9344_s6 + $0x40] sm:$0xff] }
 0x34e   : > { %5998 = vmatmul.msk.bf16.gmra.mxu0 %vm2307_vm2, %v2271_v56  ;;  %4888 = vmatpush.bf16.msra.mxu2 %v6112_v4 }
 0x350   : > { %3242 = vrot.lane.b32.xlu1 %v3169_v0, %s6174_s16 }
 0x352   : > { %v2126_v61 = vpop.permute.xlu1 %2125  ;;  %v2124_v1 = vpop.permute.xlu0 %2123  ;;  %v2249_v16 = vld [vmem:[#allocation3 + $0x80] sm:$0xff] }
 0x353   : > { %2215 = vst.msk [vmem:[#allocation3 + $0x98] sm:$0xff] %vm2195_vm1, %v2126_v61  ;;  %v2146_v11 = vpop.permute.xlu2 %2145  ;;  %v2248_v7 = vld [vmem:[#allocation3 + $0x78] sm:$0xff]  ;;  %v2277_v26 = vpack.c.bf16 %v2250_v18, %v2249_v16 }
 0x354   : > { %2214 = vst.msk [vmem:[#allocation3 + $0x90] sm:$0xff] %vm2195_vm1, %v2124_v1  ;;  %v2276_v9 = vpack.c.bf16 %v2248_v7, %v2247_v63 }
 0x355   : > { %2225 = vst.msk [vmem:[#allocation3 + $0xe8] sm:$0xff] %vm2195_vm1, %v2146_v11 }
 0x35a   : > { %v2132_v6 = vpop.permute.xlu1 %2131  ;;  %v2130_v10 = vpop.permute.xlu0 %2129  ;;  %v2252_v45 = vld [vmem:[#allocation3 + $0x98] sm:$0xff] }
 0x35b   : > { %2218 = vst.msk [vmem:[#allocation3 + $0xb0] sm:$0xff] %vm2195_vm1, %v2132_v6  ;;  %v2152_v28 = vpop.permute.xlu2 %2151  ;;  %v2251_v44 = vld [vmem:[#allocation3 + $0x90] sm:$0xff] }
 0x35c   : > { %2217 = vst.msk [vmem:[#allocation3 + $0xa8] sm:$0xff] %vm2195_vm1, %v2130_v10  ;;  %v2278_v59 = vpack.c.bf16 %v2252_v45, %v2251_v44 }
 0x35d   : > { %2228 = vst.msk [vmem:[#allocation3 + $0x100] sm:$0xff] %vm2195_vm1, %v2152_v28 }
 0x35e   : > { %5999 = vmatmul.msk.bf16.gmra.mxu0 %vm2307_vm2, %v2272_v5 }
 0x362   : > { %v2138_v15 = vpop.permute.xlu1 %2137  ;;  %v2136_v19 = vpop.permute.xlu0 %2135 }
 0x363   : > { %2221 = vst.msk [vmem:[#allocation3 + $0xc8] sm:$0xff] %vm2195_vm1, %v2138_v15  ;;  %v2158_v46 = vpop.permute.xlu2 %2157 }
 0x364   : > { %2220 = vst.msk [vmem:[#allocation3 + $0xc0] sm:$0xff] %vm2195_vm1, %v2136_v19 }
 0x365   : > { %2232 = vst.msk [vmem:[#allocation3 + $0x118] sm:$0x3f] %vm2231_vm3, %v2158_v46  ;;  %vm3820_vm3 = vcmask 652800  }
 0x36a   : > { %v2144_v12 = vpop.permute.xlu1 %2143  ;;  %v2142_v14 = vpop.permute.xlu0 %2141 }
 0x36b   : > { %2224 = vst.msk [vmem:[#allocation3 + $0xe0] sm:$0xff] %vm2195_vm1, %v2144_v12  ;;  %v2630_v38 = vpop.permute.xlu2 %2629  ;;  %v2253_v12 = vld [vmem:[#allocation3 + $0xa0] sm:$0xff] }
 0x36c   : > { %2223 = vst.msk [vmem:[#allocation3 + $0xd8] sm:$0xff] %vm2195_vm1, %v2142_v14  ;;  %v2254_v14 = vld [vmem:[#allocation3 + $0xa8] sm:$0xff] }
 0x36e   : > { %6000 = vmatmul.msk.bf16.gmra.mxu0 %vm2307_vm2, %v2273_v29 }
 0x372   : > { %v2150_v13 = vpop.permute.xlu1 %2149  ;;  %v2148_v21 = vpop.permute.xlu0 %2147 }
 0x373   : > { %2227 = vst.msk [vmem:[#allocation3 + $0xf8] sm:$0xff] %vm2195_vm1, %v2150_v13  ;;  %v2640_v57 = vpop.permute.xlu2 %2639 }
 0x374   : > { %2226 = vst.msk [vmem:[#allocation3 + $0xf0] sm:$0xff] %vm2195_vm1, %v2148_v21 }
 0x37a   : > { %v2156_v32 = vpop.permute.xlu1 %2155  ;;  %v2154_v48 = vpop.permute.xlu0 %2153 }
 0x37b   : > { %2230 = vst.msk [vmem:[#allocation3 + $0x110] sm:$0xff] %vm2195_vm1, %v2156_v32  ;;  %v7515_v20 = vpop.permute.xlu2 %2654 }
 0x37c   : > { %2229 = vst.msk [vmem:[#allocation3 + $0x108] sm:$0xff] %vm2195_vm1, %v2154_v48  ;;  %vm3384_vm1 = vcmask 390400  }
 0x37e   : > { %6001 = vmatmul.msk.bf16.gmra.mxu0 %vm2307_vm2, %v2274_v30  ;;  %v2279_v30 = vpack.c.bf16 %v2254_v14, %v2253_v12 }
 0x382   : > { %v2620_v35 = vpop.permute.xlu0 %2619  ;;  %v2625_v37 = vpop.permute.xlu1 %2624 }
 0x383   : > { %v7529_v33 = vpop.permute.xlu2 %2669 }
 0x38a   : > { %v2635_v56 = vpop.permute.xlu1 %2634  ;;  %v2645_v61 = vpop.permute.xlu0 %2644 }
 0x38e   : > { %6002 = vmatmul.msk.bf16.gmra.mxu0 %vm2307_vm2, %v2275_v54 }
 0x392   : > { %v7513_v19 = vpop.permute.xlu1 %2649  ;;  %v7518_v28 = vpop.permute.xlu0 %2659 }
 0x39a   : > { %v7527_v48 = vpop.permute.xlu1 %2664  ;;  %v7531_v53 = vpop.permute.xlu0 %2674 }
 0x39e   : > { %6003 = vmatmul.msk.bf16.gmra.mxu0 %vm2307_vm2, %v2276_v9 }
 0x3ab   : > { %v2375_v25 = vpop.f32.mrf.mxu0 }
 0x3ac   : > { %v2469_v27 = vmul.f32 %v7479_v8, %v2375_v25  ;;  %v2255_v25 = vld [vmem:[#allocation3 + $0xb0] sm:$0xff] }
 0x3ae   : > { %v2509_v34 = vadd.f32 %v7484_v17, %v2469_v27  ;;  %6004 = vmatmul.msk.bf16.gmra.mxu0 %vm2307_vm2, %v2277_v26  ;;  %v2256_v27 = vld [vmem:[#allocation3 + $0xb8] sm:$0xff]  ;;  %v7543_v26 = vpop.permute.xlu1 %2679 }
 0x3b0   : > { %v2545_v36 = vmax.f32 %v2509_v34, 0.0  ;;  %v7545_v34 = vpop.permute.xlu2 %2684 }
 0x3b2   : > { %v2797_v39 = vmul.f32 %v2620_v35, %v2545_v36 }
 0x3b3   : > { %v2377_v40 = vpop.f32.mrf.mxu0 }
 0x3b4   : > { %2841 = vst.msk [vmem:[#allocation2 + $0x13] sm:$0xff] %vm2833_vm4, %v2797_v39  ;;  %v2470_v41 = vmul.f32 %v7479_v8, %v2377_v40 }
 0x3b6   : > { %v2510_v42 = vadd.f32 %v7484_v17, %v2470_v41 }
 0x3b8   : > { %v2546_v43 = vmax.f32 %v2510_v42, 0.0 }
 0x3ba   : > { %v2798_v49 = vmul.f32 %v2625_v37, %v2546_v43  ;;  %v7547_v37 = vpop.permute.xlu0 %2689  ;;  %v2280_v43 = vpack.c.bf16 %v2256_v27, %v2255_v25 }
 0x3bb   : > { %v2380_v50 = vpop.f32.mrf.mxu0  ;;  %v3604_v51 = vld [vmem:[#allocation2 + $0x13] sm:$0xff] }
 0x3bc   : > { %v7492_v52 = vld [vmem:[#allocation2 + $0x12] sm:$0xff]  ;;  %2842 = vst.msk [vmem:[#allocation2 + $0x1b] sm:$0xff] %vm2833_vm4, %v2798_v49  ;;  %v2471_v58 = vmul.f32 %v7479_v8, %v2380_v50  ;;  %3676 = vrot.lane.b32.xlu1 %v3604_v51, %s6177_s13 }
 0x3bd   : > { %3458 = vrot.lane.b32.xlu2 %v7492_v52, %s6178_s14  ;;  %v2880_v60 = vld [vmem:[#allocation2 + $0x10] sm:$0xff] }
 0x3be   : > { %2916 = vst.msk [vmem:[#allocation4 + $0x20] sm:$0xff] %vm2833_vm4, %v2880_v60  ;;  %v2511_v1 = vadd.f32 %v7484_v17, %v2471_v58  ;;  %6005 = vmatmul.msk.bf16.gmra.mxu0 %vm2307_vm2, %v2278_v59  ;;  %v7564_v58 = vpop.permute.xlu2 %2699  ;;  %v2952_v60 = vld [vmem:[#allocation2 + $0x11] sm:$0xff] }
 0x3c0   : > { %v2547_v2 = vmax.f32 %v2511_v1, 0.0 }
 0x3c2   : > { %v2799_v3 = vmul.f32 %v2630_v38, %v2547_v2  ;;  %v7572_v2 = vpop.permute.xlu1 %2694 }
 0x3c3   : > { %v2382_v5 = vpop.f32.mrf.mxu0  ;;  %v3605_v6 = vld [vmem:[#allocation2 + $0x1b] sm:$0xff] }
 0x3c4   : > { %v7505_v10 = vld [vmem:[#allocation2 + $0x1a] sm:$0xff]  ;;  %2843 = vst.msk [vmem:[#allocation2 + $0x23] sm:$0xff] %vm2833_vm4, %v2799_v3  ;;  %v2472_v11 = vmul.f32 %v7479_v8, %v2382_v5  ;;  %v7574_v3 = vpop.permute.xlu0 %2704 }
 0x3c5   : > { %3678 = vrot.lane.b32.xlu2 %v3605_v6, %s6177_s13  ;;  %3460 = vrot.lane.b32.xlu0 %v7505_v10, %s6178_s14  ;;  %v2881_v15 = vld [vmem:[#allocation2 + $0x18] sm:$0xff] }
 0x3c6   : > { %2917 = vst.msk [vmem:[#allocation4 + $0x30] sm:$0xff] %vm2833_vm4, %v2881_v15  ;;  %v2512_v24 = vadd.f32 %v7484_v17, %v2472_v11  ;;  %v3822_v21 = vld [vmem:[#allocation2 + $0x14] sm:$0xff]  ;;  %v2257_v11 = vld [vmem:[#allocation3 + $0xc0] sm:$0xff] }
 0x3c7   : > { %v2953_v35 = vld [vmem:[#allocation2 + $0x19] sm:$0xff]  ;;  %v2258_v15 = vld [vmem:[#allocation3 + $0xc8] sm:$0xff] }
 0x3c8   : > { %v2548_v29 = vmax.f32 %v2512_v24, 0.0 }
 0x3ca   : > { %v2800_v46 = vmul.f32 %v2635_v56, %v2548_v29 }
 0x3cb   : > { %v2385_v13 = vpop.f32.mrf.mxu0  ;;  %v3823_v23 = vld [vmem:[#allocation2 + $0x1c] sm:$0xff] }
 0x3cc   : > { %2844 = vst.msk [vmem:[#allocation2 + $0x2b] sm:$0xff] %vm2833_vm4, %v2800_v46  ;;  %v2473_v22 = vmul.f32 %v7479_v8, %v2385_v13  ;;  %3896 = vrot.lane.b32.xlu1 %v3823_v23, %s6179_s18  ;;  %v2882_v32 = vld [vmem:[#allocation2 + $0x20] sm:$0xff]  ;;  %v2281_v13 = vpack.c.bf16 %v2258_v15, %v2257_v11 }
 0x3cd   : > { %3894 = vrot.lane.b32.xlu0 %v3822_v21, %s6179_s18  ;;  %2918 = vst.msk [vmem:[#allocation4 + $0x40] sm:$0xff] %vm2833_vm4, %v2882_v32  ;;  %v7562_v56 = vld [vmem:[#allocation2 + $0x22] sm:$0xff]  ;;  %v7592_v21 = vpop.permute.xlu2 %2714 }
 0x3ce   : > { %v2513_v31 = vadd.f32 %v7484_v17, %v2473_v22  ;;  %6006 = vmatmul.msk.bf16.gmra.mxu0 %vm2307_vm2, %v2279_v30  ;;  %v7597_v22 = vpop.permute.xlu1 %2709  ;;  %v7599_v30 = vpop.permute.xlu0 %2719 }
 0x3d0   : > { %v2549_v47 = vmax.f32 %v2513_v31, 0.0 }
 0x3d2   : > { %v2801_v55 = vmul.f32 %v2640_v57, %v2549_v47 }
 0x3d3   : > { %v2387_v54 = vpop.f32.mrf.mxu0  ;;  %v4258_v62 = vld [vmem:[#allocation2 + $0x25] sm:$0xff] }
 0x3d4   : > { %v7533_v0 = vld [vmem:[#allocation2 + $0x24] sm:$0xff]  ;;  %2845 = vst.msk [vmem:[#allocation2 + $0x33] sm:$0xff] %vm2833_vm4, %v2801_v55  ;;  %v2474_v7 = vmul.f32 %v7479_v8, %v2387_v54  ;;  %4330 = vrot.lane.b32.xlu1 %v4258_v62, %s6180_s26 }
 0x3d5   : > { %v4476_v63 = vld [vmem:[#allocation2 + $0x26] sm:$0xff]  ;;  %4112 = vrot.lane.b32.xlu2 %v7533_v0, %s6181_s19  ;;  %v3025_v25 = vpop.permute.xlu2 %3024 }
 0x3d6   : > { %4512 = vst.msk [vmem:[#allocation4 + $0x8] sm:$0xff] %vm2833_vm4, %v4476_v63  ;;  %v2883_v9 = vld [vmem:[#allocation2 + $0x28] sm:$0xff]  ;;  %v2514_v16 = vadd.f32 %v7484_v17, %v2474_v7  ;;  %v3241_v27 = vpop.permute.xlu0 %3240 }
 0x3d7   : > { %2919 = vst.msk [vmem:[#allocation4 + $0x50] sm:$0xff] %vm2833_vm4, %v2883_v9  ;;  %v3607_v29 = vld [vmem:[#allocation2 + $0x2b] sm:$0xff] }
 0x3d8   : > { %v2550_v18 = vmax.f32 %v2514_v16, 0.0  ;;  %v7582_v12 = vld [vmem:[#allocation2 + $0x2a] sm:$0xff]  ;;  %v2878_v16 = vld [vmem:[#allocation2] sm:$0xff] }
 0x3d9   : > { %v2879_v9 = vld [vmem:[#allocation2 + $0x8] sm:$0xff]  ;;  %2914 = vst.msk [vmem:[#allocation4] sm:$0xff] %vm2833_vm4, %v2878_v16 }
 0x3da   : > { %v2802_v36 = vmul.f32 %v2645_v61, %v2550_v18  ;;  %2915 = vst.msk [vmem:[#allocation4 + $0x10] sm:$0xff] %vm2833_vm4, %v2879_v9 }
 0x3db   : > { %v2390_v38 = vpop.f32.mrf.mxu0  ;;  %v4259_v39 = vld [vmem:[#allocation2 + $0x2d] sm:$0xff]  ;;  %3132 = vst.msk [vmem:[#allocation4 + $0x10] sm:$0xff] %vm3130_vm6, %v3025_v25 }
 0x3dc   : > { %v7549_v40 = vld [vmem:[#allocation2 + $0x2c] sm:$0xff]  ;;  %2846 = vst.msk [vmem:[#allocation2 + $0x3b] sm:$0xff] %vm2833_vm4, %v2802_v36  ;;  %v2475_v42 = vmul.f32 %v7479_v8, %v2390_v38  ;;  %3028 = vrot.lane.b32.xlu1 %v2953_v35, %s6170_s30  ;;  %v2259_v38 = vld [vmem:[#allocation3 + $0xd0] sm:$0xff] }
 0x3dd   : > { %v4477_v41 = vld [vmem:[#allocation2 + $0x2e] sm:$0xff]  ;;  %4332 = vrot.lane.b32.xlu2 %v4259_v39, %s6180_s26  ;;  %4114 = vrot.lane.b32.xlu0 %v7549_v40, %s6181_s19  ;;  %v2260_v39 = vld [vmem:[#allocation3 + $0xd8] sm:$0xff] }
 0x3de   : > { %4513 = vst.msk [vmem:[#allocation4 + $0x18] sm:$0xff] %vm2833_vm4, %v4477_v41  ;;  %v2884_v44 = vld [vmem:[#allocation2 + $0x30] sm:$0xff]  ;;  %v2515_v45 = vadd.f32 %v7484_v17, %v2475_v42  ;;  %6007 = vmatmul.msk.bf16.gmra.mxu0 %vm2307_vm2, %v2280_v43 }
 0x3df   : > { %2920 = vst.msk [vmem:[#allocation4 + $0x60] sm:$0xff] %vm2833_vm4, %v2884_v44  ;;  %v4549_v61 = vld [vmem:[#allocation4 + $0x8] sm:$0xff] }
 0x3e0   : > { %v2551_v49 = vmax.f32 %v2515_v45, 0.0 }
 0x3e2   : > { %v2803_v50 = vmul.f32 %v7513_v19, %v2551_v49 }
 0x3e3   : > { %v2392_v51 = vpop.f32.mrf.mxu0  ;;  %v4478_v57 = vld [vmem:[#allocation2 + $0x36] sm:$0xff] }
 0x3e4   : > { %2847 = vst.msk [vmem:[#allocation2 + $0x43] sm:$0xff] %vm2833_vm4, %v2803_v50  ;;  %v2476_v59 = vmul.f32 %v7479_v8, %v2392_v51  ;;  %3462 = vrot.lane.b32.xlu1 %v7562_v56, %s6178_s14  ;;  %v2885_v5 = vld [vmem:[#allocation2 + $0x38] sm:$0xff]  ;;  %v2282_v50 = vpack.c.bf16 %v2260_v39, %v2259_v38 }
 0x3e5   : > { %3244 = vrot.lane.b32.xlu2 %v7492_v52, %s6174_s16  ;;  %v4551_v1 = vld [vmem:[#allocation4 + $0x18] sm:$0xff]  ;;  %3026 = vrot.lane.b32.xlu0 %v2952_v60, %s6170_s30  ;;  %4514 = vst.msk [vmem:[#allocation4 + $0x28] sm:$0xff] %vm2833_vm4, %v4478_v57  ;;  %v7602_v55 = vld [vmem:[#allocation2 + $0x34] sm:$0xff] }
 0x3e6   : > { %v4621_v4 = vpack.c.bf16 %v4551_v1, %v4549_v61  ;;  %v2516_v6 = vadd.f32 %v7484_v17, %v2476_v59  ;;  %2921 = vst.msk [vmem:[#allocation4 + $0x70] sm:$0xff] %vm2833_vm4, %v2885_v5  ;;  %v2954_v61 = vld [vmem:[#allocation2 + $0x21] sm:$0xff] }
 0x3e8   : > { %6050 = vmatmul.msk.bf16.vlgmr.msra.gmra.mxu2 %vm2833_vm4, %v4621_v4  ;;  %v2552_v52 = vmax.f32 %v2516_v6, 0.0 }
 0x3ea   : > { %v2804_v19 = vmul.f32 %v7515_v20, %v2552_v52 }
 0x3eb   : > { %v2395_v24 = vpop.f32.mrf.mxu0  ;;  %v4479_v14 = vld [vmem:[#allocation2 + $0x3e] sm:$0xff] }
 0x3ec   : > { %2848 = vst.msk [vmem:[#allocation2 + $0x4b] sm:$0xff] %vm2833_vm4, %v2804_v19  ;;  %v2477_v46 = vmul.f32 %v7479_v8, %v2395_v24  ;;  %3682 = vrot.lane.b32.xlu1 %v3607_v29, %s6177_s13  ;;  %v2886_v20 = vld [vmem:[#allocation2 + $0x40] sm:$0xff]  ;;  %v4553_v63 = vld [vmem:[#allocation4 + $0x28] sm:$0xff]  ;;  %v2261_v24 = vld [vmem:[#allocation3 + $0xe0] sm:$0xff] }
 0x3ed   : > { %3464 = vrot.lane.b32.xlu2 %v7582_v12, %s6178_s14  ;;  %3246 = vrot.lane.b32.xlu0 %v7505_v10, %s6174_s16  ;;  %4515 = vst.msk [vmem:[#allocation4 + $0x38] sm:$0xff] %vm2833_vm4, %v4479_v14  ;;  %v3606_v10 = vld [vmem:[#allocation2 + $0x23] sm:$0xff] }
 0x3ee   : > { %v2517_v23 = vadd.f32 %v7484_v17, %v2477_v46  ;;  %6008 = vmatmul.msk.bf16.gmra.mxu0 %vm2307_vm2, %v2281_v13  ;;  %2922 = vst.msk [vmem:[#allocation4 + $0x80] sm:$0xff] %vm2833_vm4, %v2886_v20  ;;  %v4261_v43 = vld [vmem:[#allocation2 + $0x3d] sm:$0xff] }
 0x3ef   : > { %v7620_v44 = vld [vmem:[#allocation2 + $0x3c] sm:$0xff] }
 0x3f0   : > { %v2553_v32 = vmax.f32 %v2517_v23, 0.0  ;;  %v7647_v46 = vld [vmem:[#allocation2 + $0x3a] sm:$0xff]  ;;  %v2955_v23 = vld [vmem:[#allocation2 + $0x29] sm:$0xff] }
 0x3f2   : > { %v2805_v31 = vmul.f32 %v7518_v28, %v2553_v32 }
 0x3f3   : > { %v2397_v47 = vpop.f32.mrf.mxu0  ;;  %v4480_v54 = vld [vmem:[#allocation2 + $0x46] sm:$0xff] }
 0x3f4   : > { %2849 = vst.msk [vmem:[#allocation2 + $0x53] sm:$0xff] %vm2833_vm4, %v2805_v31  ;;  %v2478_v62 = vmul.f32 %v7479_v8, %v2397_v47  ;;  %4116 = vrot.lane.b32.xlu1 %v7602_v55, %s6181_s19  ;;  %v4555_v7 = vld [vmem:[#allocation4 + $0x38] sm:$0xff]  ;;  %v2887_v35 = vld [vmem:[#allocation2 + $0x48] sm:$0xff] }
 0x3f5   : > { %3898 = vrot.lane.b32.xlu2 %v7533_v0, %s6179_s18  ;;  %3680 = vrot.lane.b32.xlu0 %v3606_v10, %s6177_s13  ;;  %v4623_v28 = vpack.c.bf16 %v4555_v7, %v4553_v63  ;;  %4516 = vst.msk [vmem:[#allocation4 + $0x48] sm:$0xff] %vm2833_vm4, %v4480_v54  ;;  %v3023_v0 = vpop.permute.xlu1 %3022  ;;  %v7663_v7 = vld [vmem:[#allocation2 + $0x32] sm:$0xff] }
 0x3f6   : > { %v2518_v18 = vadd.f32 %v7484_v17, %v2478_v62  ;;  %3131 = vst.msk [vmem:[#allocation4] sm:$0xff] %vm3130_vm6, %v3023_v0  ;;  %v3608_v62 = vld [vmem:[#allocation2 + $0x33] sm:$0xff] }
 0x3f7   : > { %3349 = vst.msk [vmem:[#allocation4] sm:$0xff] %vm3348_vm7, %v3241_v27  ;;  %v2263_v0 = vld [vmem:[#allocation3 + $0xf0] sm:$0xff]  ;;  %v2264_v27 = vld [vmem:[#allocation3 + $0xf8] sm:$0xff] }
 0x3f8   : > { %6051 = vmatmul.msk.bf16.gmra.mxu2 %vm2833_vm4, %v4623_v28  ;;  %v2554_v36 = vmax.f32 %v2518_v18, 0.0  ;;  %2923 = vst.msk [vmem:[#allocation4 + $0x90] sm:$0xff] %vm2833_vm4, %v2887_v35 }
 0x3fa   : > { %v2806_v41 = vmul.f32 %v7527_v48, %v2554_v36 }
 0x3fb   : > { %v2400_v42 = vpop.f32.mrf.mxu0  ;;  %v4481_v45 = vld [vmem:[#allocation2 + $0x4e] sm:$0xff] }
 0x3fc   : > { %2850 = vst.msk [vmem:[#allocation2 + $0x5b] sm:$0xff] %vm2833_vm4, %v2806_v41  ;;  %v2479_v49 = vmul.f32 %v7479_v8, %v2400_v42  ;;  %4336 = vrot.lane.b32.xlu1 %v4261_v43, %s6180_s26  ;;  %v2888_v48 = vld [vmem:[#allocation2 + $0x50] sm:$0xff]  ;;  %v6111_v41 = vld [vmem:[%s9344_s6 + $0x38] sm:$0xff] }
 0x3fd   : > { %4118 = vrot.lane.b32.xlu2 %v7620_v44, %s6181_s19  ;;  %3900 = vrot.lane.b32.xlu0 %v7549_v40, %s6179_s18  ;;  %4517 = vst.msk [vmem:[#allocation4 + $0x58] sm:$0xff] %vm2833_vm4, %v4481_v45  ;;  %v4260_v40 = vld [vmem:[#allocation2 + $0x35] sm:$0xff]  ;;  %v3243_v19 = vpop.permute.xlu1 %3242  ;;  %v7676_v38 = vld [vmem:[#allocation2 + $0x4c] sm:$0xff] }
 0x3fe   : > { %v2519_v51 = vadd.f32 %v7484_v17, %v2479_v49  ;;  %6009 = vmatmul.msk.bf16.gmra.mxu0 %vm2307_vm2, %v2282_v50  ;;  %2924 = vst.msk [vmem:[#allocation4 + $0xa0] sm:$0xff] %vm2833_vm4, %v2888_v48  ;;  %v4557_v5 = vld [vmem:[#allocation4 + $0x48] sm:$0xff]  ;;  %v3609_v43 = vld [vmem:[#allocation2 + $0x3b] sm:$0xff]  ;;  %4782 = vmatpush.bf16.msra.mxu1 %v6111_v41 }
 0x3ff   : > { %3350 = vst.msk [vmem:[#allocation4 + $0x10] sm:$0xff] %vm3348_vm7, %v3243_v19  ;;  %v2265_v19 = vld [vmem:[#allocation3 + $0x100] sm:$0xff]  ;;  %v2268_v41 = vld [vmem:[#allocation3 + $0x118] sm:$0x3f] }
 0x400   : > { %v2555_v57 = vmax.f32 %v2519_v51, 0.0  ;;  %v2956_v51 = vld [vmem:[#allocation2 + $0x31] sm:$0xff] }
 0x402   : > { %v2807_v59 = vmul.f32 %v7529_v33, %v2555_v57 }
 0x403   : > { %v2402_v60 = vpop.f32.mrf.mxu0  ;;  %v4482_v1 = vld [vmem:[#allocation2 + $0x56] sm:$0xff] }
 0x404   : > { %2851 = vst.msk [vmem:[#allocation2 + $0x63] sm:$0xff] %vm2833_vm4, %v2807_v59  ;;  %v2480_v4 = vmul.f32 %v7479_v8, %v2402_v60  ;;  %3248 = vrot.lane.b32.xlu1 %v7562_v56, %s6174_s16  ;;  %v4559_v6 = vld [vmem:[#allocation4 + $0x58] sm:$0xff]  ;;  %v2889_v33 = vld [vmem:[#allocation2 + $0x58] sm:$0xff]  ;;  %v2262_v56 = vld [vmem:[#allocation3 + $0xe8] sm:$0xff] }
 0x405   : > { %3030 = vrot.lane.b32.xlu2 %v2954_v61, %s6170_s30  ;;  %4334 = vrot.lane.b32.xlu0 %v4260_v40, %s6180_s26  ;;  %v4625_v52 = vpack.c.bf16 %v4559_v6, %v4557_v5  ;;  %4518 = vst.msk [vmem:[#allocation4 + $0x68] sm:$0xff] %vm2833_vm4, %v4482_v1  ;;  %v2283_v32 = vpack.c.bf16 %v2262_v56, %v2261_v24  ;;  %v4262_v59 = vld [vmem:[#allocation2 + $0x45] sm:$0xff]  ;;  %v2266_v24 = vld [vmem:[#allocation3 + $0x108] sm:$0xff] }
 0x406   : > { %v2520_v11 = vadd.f32 %v7484_v17, %v2480_v4  ;;  %2925 = vst.msk [vmem:[#allocation4 + $0xb0] sm:$0xff] %vm2833_vm4, %v2889_v33  ;;  %v6109_v61 = vld [vmem:[%s9344_s6 + $0x28] sm:$0xff] }
 0x407   : > { %v7702_v4 = vld [vmem:[#allocation2 + $0x44] sm:$0xff] }
 0x408   : > { %6052 = vmatmul.msk.bf16.gmra.mxu2 %vm2833_vm4, %v4625_v52  ;;  %v2556_v15 = vmax.f32 %v2520_v11, 0.0  ;;  %v6108_v11 = vld [vmem:[%s9344_s6 + $0x20] sm:$0xff] }
 0x40a   : > { %v2808_v29 = vmul.f32 %v7531_v53, %v2556_v15 }
 0x40b   : > { %v2405_v14 = vpop.f32.mrf.mxu0  ;;  %v4483_v13 = vld [vmem:[#allocation2 + $0x5e] sm:$0xff] }
 0x40c   : > { %2852 = vst.msk [vmem:[#allocation2 + $0x6b] sm:$0xff] %vm2833_vm4, %v2808_v29  ;;  %v2481_v20 = vmul.f32 %v7479_v8, %v2405_v14  ;;  %3468 = vrot.lane.b32.xlu1 %v7647_v46, %s6178_s14  ;;  %v2890_v53 = vld [vmem:[#allocation2 + $0x60] sm:$0xff]  ;;  %v4561_v9 = vld [vmem:[#allocation4 + $0x68] sm:$0xff] }
 0x40d   : > { %3250 = vrot.lane.b32.xlu2 %v7582_v12, %s6174_s16  ;;  %3032 = vrot.lane.b32.xlu0 %v2955_v23, %s6170_s30  ;;  %4519 = vst.msk [vmem:[#allocation4 + $0x78] sm:$0xff] %vm2833_vm4, %v4483_v13  ;;  %v2957_v14 = vld [vmem:[#allocation2 + $0x39] sm:$0xff] }
 0x40e   : > { %v2521_v31 = vadd.f32 %v7484_v17, %v2481_v20  ;;  %6010 = vmatmul.msk.bf16.gmra.mxu0 %vm2307_vm2, %v2283_v32  ;;  %2926 = vst.msk [vmem:[#allocation4 + $0xc0] sm:$0xff] %vm2833_vm4, %v2890_v53  ;;  %v6107_v20 = vld [vmem:[%s9344_s6 + $0x18] sm:$0xff]  ;;  %v4263_v32 = vld [vmem:[#allocation2 + $0x4d] sm:$0xff]  ;;  %v2285_v53 = vpack.c.bf16 %v2266_v24, %v2265_v19 }
 0x410   : > { %v2557_v47 = vmax.f32 %v2521_v31, 0.0 }
 0x412   : > { %v2809_v10 = vmul.f32 %v7543_v26, %v2557_v47 }
 0x413   : > { %v2407_v54 = vpop.f32.mrf.mxu0  ;;  %v4484_v63 = vld [vmem:[#allocation2 + $0x66] sm:$0xff] }
 0x414   : > { %2853 = vst.msk [vmem:[#allocation2 + $0x73] sm:$0xff] %vm2833_vm4, %v2809_v10  ;;  %v2482_v12 = vmul.f32 %v7479_v8, %v2407_v54  ;;  %3902 = vrot.lane.b32.xlu1 %v7602_v55, %s6179_s18  ;;  %v4563_v28 = vld [vmem:[#allocation4 + $0x78] sm:$0xff]  ;;  %v2891_v16 = vld [vmem:[#allocation2 + $0x68] sm:$0xff] }
 0x415   : > { %3684 = vrot.lane.b32.xlu2 %v3608_v62, %s6177_s13  ;;  %3466 = vrot.lane.b32.xlu0 %v7663_v7, %s6178_s14  ;;  %v4627_v26 = vpack.c.bf16 %v4563_v28, %v4561_v9  ;;  %4520 = vst.msk [vmem:[#allocation4 + $0x88] sm:$0xff] %vm2833_vm4, %v4484_v63  ;;  %v7733_v63 = vld [vmem:[#allocation2 + $0x42] sm:$0xff] }
 0x416   : > { %v2522_v18 = vadd.f32 %v7484_v17, %v2482_v12  ;;  %2927 = vst.msk [vmem:[#allocation4 + $0xd0] sm:$0xff] %vm2833_vm4, %v2891_v16  ;;  %v3610_v9 = vld [vmem:[#allocation2 + $0x43] sm:$0xff] }
 0x417   : > { %v3459_v25 = vpop.permute.xlu2 %3458 }
 0x418   : > { %3567 = vst.msk [vmem:[#allocation4] sm:$0xff] %vm3566_vm8, %v3459_v25  ;;  %6053 = vmatmul.msk.bf16.gmra.mxu2 %vm2833_vm4, %v4627_v26  ;;  %v2558_v55 = vmax.f32 %v2522_v18, 0.0  ;;  %v6105_v26 = vld [vmem:[%s9344_s6 + $0x8] sm:$0xff] }
 0x41a   : > { %v2810_v36 = vmul.f32 %v7545_v34, %v2558_v55  ;;  %v2284_v34 = vpack.c.bf16 %v2264_v27, %v2263_v0 }
 0x41b   : > { %v2410_v35 = vpop.f32.mrf.mxu0  ;;  %v4485_v39 = vld [vmem:[#allocation2 + $0x6e] sm:$0xff] }
 0x41c   : > { %2854 = vst.msk [vmem:[#allocation2 + $0x7b] sm:$0xff] %vm2833_vm4, %v2810_v36  ;;  %v2483_v42 = vmul.f32 %v7479_v8, %v2410_v35  ;;  %4122 = vrot.lane.b32.xlu1 %v7676_v38, %s6181_s19  ;;  %v2892_v45 = vld [vmem:[#allocation2 + $0x70] sm:$0xff] }
 0x41d   : > { %3904 = vrot.lane.b32.xlu2 %v7620_v44, %s6179_s18  ;;  %3686 = vrot.lane.b32.xlu0 %v3609_v43, %s6177_s13  ;;  %4521 = vst.msk [vmem:[#allocation4 + $0x98] sm:$0xff] %vm2833_vm4, %v4485_v39  ;;  %v6110_v44 = vld [vmem:[%s9344_s6 + $0x30] sm:$0xff]  ;;  %v2267_v39 = vld [vmem:[#allocation3 + $0x110] sm:$0xff] }
 0x41e   : > { %v2523_v49 = vadd.f32 %v7484_v17, %v2483_v42  ;;  %6011 = vmatmul.msk.bf16.gmra.mxu0 %vm2307_vm2, %v2284_v34  ;;  %2928 = vst.msk [vmem:[#allocation4 + $0xe0] sm:$0xff] %vm2833_vm4, %v2892_v45  ;;  %4783 = vmatpush.bf16.msra.mxu1 %v6110_v44  ;;  %v4565_v40 = vld [vmem:[#allocation4 + $0x88] sm:$0xff] }
 0x41f   : > { %v3679_v52 = vpop.permute.xlu2 %3678  ;;  %v3611_v34 = vld [vmem:[#allocation2 + $0x4b] sm:$0xff] }
 0x420   : > { %v2559_v50 = vmax.f32 %v2523_v49, 0.0  ;;  %v7760_v44 = vld [vmem:[#allocation2 + $0x4a] sm:$0xff] }
 0x422   : > { %v2811_v48 = vmul.f32 %v7547_v37, %v2559_v50  ;;  %4784 = vmatpush.bf16.msra.mxu1 %v6109_v61  ;;  %v2286_v50 = vpack.c.bf16 %v2268_v41, %v2267_v39 }
 0x423   : > { %v2412_v57 = vpop.f32.mrf.mxu0  ;;  %v4486_v60 = vld [vmem:[#allocation2 + $0x76] sm:$0xff] }
 0x424   : > { %2855 = vst.msk [vmem:[#allocation2 + $0x83] sm:$0xff] %vm2833_vm4, %v2811_v48  ;;  %v2484_v1 = vmul.f32 %v7479_v8, %v2412_v57  ;;  %3034 = vrot.lane.b32.xlu1 %v2956_v51, %s6170_s30  ;;  %v4567_v37 = vld [vmem:[#allocation4 + $0x98] sm:$0xff]  ;;  %v2893_v6 = vld [vmem:[#allocation2 + $0x78] sm:$0xff] }
 0x425   : > { %4338 = vrot.lane.b32.xlu2 %v4262_v59, %s6180_s26  ;;  %4120 = vrot.lane.b32.xlu0 %v7702_v4, %s6181_s19  ;;  %v4629_v5 = vpack.c.bf16 %v4567_v37, %v4565_v40  ;;  %4522 = vst.msk [vmem:[#allocation4 + $0xa8] sm:$0xff] %vm2833_vm4, %v4486_v60  ;;  %v7776_v40 = vld [vmem:[#allocation2 + $0x54] sm:$0xff] }
 0x426   : > { %v2524_v33 = vadd.f32 %v7484_v17, %v2484_v1  ;;  %2929 = vst.msk [vmem:[#allocation4 + $0xf0] sm:$0xff] %vm2833_vm4, %v2893_v6  ;;  %4785 = vmatpush.bf16.msra.mxu1 %v6108_v11  ;;  %v4264_v1 = vld [vmem:[#allocation2 + $0x55] sm:$0xff] }
 0x428   : > { %6054 = vmatmul.msk.bf16.gmra.mxu2 %vm2833_vm4, %v4629_v5  ;;  %v2560_v15 = vmax.f32 %v2524_v33, 0.0 }
 0x42a   : > { %v2812_v56 = vmul.f32 %v7572_v2, %v2560_v15  ;;  %4786 = vmatpush.bf16.msra.mxu1 %v6107_v20 }
 0x42b   : > { %v2415_v29 = vpop.f32.mrf.mxu0  ;;  %v4487_v13 = vld [vmem:[#allocation2 + $0x7e] sm:$0xff] }
 0x42c   : > { %2856 = vst.msk [vmem:[#allocation2 + $0x8b] sm:$0xff] %vm2833_vm4, %v2812_v56  ;;  %v2485_v23 = vmul.f32 %v7479_v8, %v2415_v29  ;;  %3254 = vrot.lane.b32.xlu1 %v7647_v46, %s6174_s16  ;;  %v2894_v2 = vld [vmem:[#allocation2 + $0x80] sm:$0xff]  ;;  %v6106_v46 = vld [vmem:[%s9344_s6 + $0x10] sm:$0xff] }
 0x42d   : > { %3036 = vrot.lane.b32.xlu2 %v2957_v14, %s6170_s30  ;;  %4340 = vrot.lane.b32.xlu0 %v4263_v32, %s6180_s26  ;;  %4523 = vst.msk [vmem:[#allocation4 + $0xb8] sm:$0xff] %vm2833_vm4, %v4487_v13  ;;  %v4569_v18 = vld [vmem:[#allocation4 + $0xa8] sm:$0xff]  ;;  %v4265_v14 = vld [vmem:[#allocation2 + $0x5d] sm:$0xff] }
 0x42e   : > { %v2525_v31 = vadd.f32 %v7484_v17, %v2485_v23  ;;  %v3677_v47 = vpop.permute.xlu1 %3676  ;;  %6012 = vmatmul.msk.bf16.gmra.mxu0 %vm2307_vm2, %v2285_v53  ;;  %2930 = vst.msk [vmem:[#allocation4 + $0x100] sm:$0xff] %vm2833_vm4, %v2894_v2  ;;  %4787 = vmatpush.bf16.msra.mxu1 %v6106_v46  ;;  %v7797_v23 = vld [vmem:[#allocation2 + $0x5c] sm:$0xff] }
 0x42f   : > { %v4113_v10 = vpop.permute.xlu2 %4112  ;;  %3785 = vst.msk [vmem:[#allocation4] sm:$0xff] %vm3784_vm9, %v3677_v47 }
 0x430   : > { %v2561_v54 = vmax.f32 %v2525_v31, 0.0 }
 0x432   : > { %v2813_v62 = vmul.f32 %v7564_v58, %v2561_v54  ;;  %4788 = vmatpush.bf16.msra.mxu1 %v6105_v26 }
 0x433   : > { %v2417_v12 = vpop.f32.mrf.mxu0  ;;  %v4488_v28 = vld [vmem:[#allocation2 + $0x86] sm:$0xff] }
 0x434   : > { %2857 = vst.msk [vmem:[#allocation2 + $0x93] sm:$0xff] %vm2833_vm4, %v2813_v62  ;;  %v2486_v16 = vmul.f32 %v7479_v8, %v2417_v12  ;;  %3688 = vrot.lane.b32.xlu1 %v3610_v9, %s6177_s13  ;;  %v4571_v58 = vld [vmem:[#allocation4 + $0xb8] sm:$0xff]  ;;  %v2895_v55 = vld [vmem:[#allocation2 + $0x88] sm:$0xff] }
 0x435   : > { %3470 = vrot.lane.b32.xlu2 %v7733_v63, %s6178_s14  ;;  %3252 = vrot.lane.b32.xlu0 %v7663_v7, %s6174_s16  ;;  %v4631_v25 = vpack.c.bf16 %v4571_v58, %v4569_v18  ;;  %4524 = vst.msk [vmem:[#allocation4 + $0xc8] sm:$0xff] %vm2833_vm4, %v4488_v28  ;;  %v6104_v7 = vld [vmem:[%s9344_s6] sm:$0xff] }
 0x436   : > { %v2526_v0 = vadd.f32 %v7484_v17, %v2486_v16  ;;  %2931 = vst.msk [vmem:[#allocation4 + $0x110] sm:$0xff] %vm2833_vm4, %v2895_v55  ;;  %4789 = vmatpush.bf16.msra.mxu1 %v6104_v7  ;;  %v3613_v58 = vld [vmem:[#allocation2 + $0x5b] sm:$0xff] }
 0x437   : > { %v3461_v27 = vpop.permute.xlu0 %3460  ;;  %v7747_v36 = vpop.permute.xlu2 %4332 }
 0x438   : > { %3568 = vst.msk [vmem:[#allocation4 + $0x10] sm:$0xff] %vm3566_vm8, %v3461_v27  ;;  %6055 = vmatmul.msk.bf16.gmra.mxu2 %vm2833_vm4, %v4631_v25  ;;  %v2562_v35 = vmax.f32 %v2526_v0, 0.0  ;;  %v3395_v25 = vld [vmem:[#allocation2 + $0x5a] sm:$0xff] }
 0x439   : > { %3786 = vst.msk [vmem:[#allocation4 + $0x10] sm:$0xff] %vm3784_vm9, %v3679_v52 }
 0x43a   : > { %v2814_v42 = vmul.f32 %v7574_v3, %v2562_v35  ;;  %v4048_v35 = vld [vmem:[#allocation2 + $0x64] sm:$0xff] }
 0x43b   : > { %v2420_v43 = vpop.f32.mrf.mxu0  ;;  %v4489_v45 = vld [vmem:[#allocation2 + $0x8e] sm:$0xff] }
 0x43c   : > { %2858 = vst.msk [vmem:[#allocation2 + $0x9b] sm:$0xff] %vm2833_vm4, %v2814_v42  ;;  %v2487_v49 = vmul.f32 %v7479_v8, %v2420_v43  ;;  %3908 = vrot.lane.b32.xlu1 %v7676_v38, %s6179_s18  ;;  %v2896_v3 = vld [vmem:[#allocation2 + $0x90] sm:$0xff] }
 0x43d   : > { %3690 = vrot.lane.b32.xlu2 %v3611_v34, %s6177_s13  ;;  %3472 = vrot.lane.b32.xlu0 %v7760_v44, %s6178_s14  ;;  %4525 = vst.msk [vmem:[#allocation4 + $0xd8] sm:$0xff] %vm2833_vm4, %v4489_v45  ;;  %v4573_v6 = vld [vmem:[#allocation4 + $0xc8] sm:$0xff] }
 0x43e   : > { %v2527_v48 = vadd.f32 %v7484_v17, %v2487_v49  ;;  %v3897_v57 = vpop.permute.xlu1 %3896  ;;  %6013 = vmatmul.msk.bf16.gmra.mxu0 %vm2307_vm2, %v2286_v50  ;;  %2932 = vst.msk [vmem:[#allocation4 + $0x120] sm:$0xff] %vm2833_vm4, %v2896_v3  ;;  %v3612_v42 = vld [vmem:[#allocation2 + $0x53] sm:$0xff]  ;;  %vm3602_vm2 = vcmask 521600  }
 0x43f   : > { %v3895_v51 = vpop.permute.xlu0 %3894  ;;  %v7771_v38 = vpop.permute.xlu2 %3244  ;;  %4004 = vst.msk [vmem:[#allocation4 + $0x10] sm:$0xff] %vm4002_vm10, %v3897_v57  ;;  %v4049_v50 = vld [vmem:[#allocation2 + $0x6c] sm:$0xff] }
 0x440   : > { %4003 = vst.msk [vmem:[#allocation4] sm:$0xff] %vm4002_vm10, %v3895_v51  ;;  %v2563_v59 = vmax.f32 %v2527_v48, 0.0  ;;  %v2960_v57 = vld [vmem:[#allocation2 + $0x51] sm:$0xff] }
 0x441   : > { %4221 = vst.msk [vmem:[#allocation4] sm:$0xff] %vm4220_vm11, %v4113_v10  ;;  %v7809_v10 = vld [vmem:[#allocation2 + $0x52] sm:$0xff] }
 0x442   : > { %v2815_v60 = vmul.f32 %v7597_v22, %v2563_v59 }
 0x443   : > { %v2422_v61 = vpop.f32.mrf.mxu0  ;;  %v4490_v37 = vld [vmem:[#allocation2 + $0x96] sm:$0xff] }
 0x444   : > { %2859 = vst.msk [vmem:[#allocation2 + $0xa3] sm:$0xff] %vm2833_vm4, %v2815_v60  ;;  %v2488_v5 = vmul.f32 %v7479_v8, %v2422_v61  ;;  %4342 = vrot.lane.b32.xlu1 %v4264_v1, %s6180_s26  ;;  %v4575_v52 = vld [vmem:[#allocation4 + $0xd8] sm:$0xff]  ;;  %v2897_v33 = vld [vmem:[#allocation2 + $0x98] sm:$0xff]  ;;  %v3397_v1 = vld [vmem:[#allocation2 + $0x6a] sm:$0xff] }
 0x445   : > { %4124 = vrot.lane.b32.xlu2 %v7776_v40, %s6181_s19  ;;  %3906 = vrot.lane.b32.xlu0 %v7702_v4, %s6179_s18  ;;  %v4633_v22 = vpack.c.bf16 %v4575_v52, %v4573_v6  ;;  %4526 = vst.msk [vmem:[#allocation4 + $0xe8] sm:$0xff] %vm2833_vm4, %v4490_v37  ;;  %v2959_v4 = vld [vmem:[#allocation2 + $0x49] sm:$0xff] }
 0x446   : > { %v2528_v11 = vadd.f32 %v7484_v17, %v2488_v5  ;;  %v4331_v15 = vpop.permute.xlu1 %4330  ;;  %2933 = vst.msk [vmem:[#allocation4 + $0x130] sm:$0xff] %vm2833_vm4, %v2897_v33 }
 0x447   : > { %4439 = vst.msk [vmem:[#allocation4] sm:$0xff] %vm4438_vm12, %v4331_v15  ;;  %v7789_v19 = vpop.permute.xlu2 %3464  ;;  %v3396_v15 = vld [vmem:[#allocation2 + $0x62] sm:$0xff] }
 0x448   : > { %6056 = vmatmul.msk.bf16.gmra.mxu2 %vm2833_vm4, %v4633_v22  ;;  %v2564_v24 = vmax.f32 %v2528_v11, 0.0  ;;  %v3614_v11 = vld [vmem:[#allocation2 + $0x63] sm:$0xff] }
 0x44a   : > { %v2816_v56 = vmul.f32 %v7592_v21, %v2564_v24 }
 0x44b   : > { %v2425_v29 = vpop.f32.mrf.mxu0  ;;  %v4491_v13 = vld [vmem:[#allocation2 + $0x9e] sm:$0xff] }
 0x44c   : > { %2860 = vst.msk [vmem:[#allocation2 + $0xab] sm:$0xff] %vm2833_vm4, %v2816_v56  ;;  %v2489_v20 = vmul.f32 %v7479_v8, %v2425_v29  ;;  %3040 = vrot.lane.b32.xlu1 %v2959_v4, %s6170_s30  ;;  %v2898_v21 = vld [vmem:[#allocation2 + $0xa0] sm:$0xff]  ;;  %v4577_v54 = vld [vmem:[#allocation4 + $0xe8] sm:$0xff] }
 0x44d   : > { %4344 = vrot.lane.b32.xlu2 %v4265_v14, %s6180_s26  ;;  %4126 = vrot.lane.b32.xlu0 %v7797_v23, %s6181_s19  ;;  %4527 = vst.msk [vmem:[#allocation4 + $0xf8] sm:$0xff] %vm2833_vm4, %v4491_v13  ;;  %v7869_v29 = vld [vmem:[#allocation2 + $0x7c] sm:$0xff]  ;;  %v3615_v4 = vld [vmem:[#allocation2 + $0x6b] sm:$0xff] }
 0x44e   : > { %v2529_v32 = vadd.f32 %v7484_v17, %v2489_v20  ;;  %v3029_v53 = vpop.permute.xlu1 %3028  ;;  %2934 = vst.msk [vmem:[#allocation4 + $0x140] sm:$0xff] %vm2833_vm4, %v2898_v21  ;;  %v2958_v17 = vld [vmem:[#allocation2 + $0x41] sm:$0xff] }
 0x44f   : > { %3134 = vst.msk [vmem:[#allocation4 + $0x30] sm:$0xff] %vm3130_vm6, %v3029_v53  ;;  %v3899_v8 = vpop.permute.xlu2 %3898  ;;  %v4115_v2 = vpop.permute.xlu0 %4114  ;;  %v4548_v16 = vld [vmem:[#allocation4] sm:$0xff] }
 0x450   : > { %v2565_v31 = vmax.f32 %v2529_v32, 0.0  ;;  %4222 = vst.msk [vmem:[#allocation4 + $0x10] sm:$0xff] %vm4220_vm11, %v4115_v2  ;;  %v2962_v21 = vld [vmem:[#allocation2 + $0x61] sm:$0xff]  ;;  %v4050_v32 = vld [vmem:[#allocation2 + $0x74] sm:$0xff] }
 0x451   : > { %4440 = vst.msk [vmem:[#allocation4 + $0x10] sm:$0xff] %vm4438_vm12, %v7747_v36 }
 0x452   : > { %v2817_v47 = vmul.f32 %v7599_v30, %v2565_v31  ;;  %v2963_v31 = vld [vmem:[#allocation2 + $0x69] sm:$0xff] }
 0x453   : > { %v4492_v46 = vld [vmem:[#allocation2 + $0xa6] sm:$0xff] }
 0x454   : > { %2861 = vst.msk [vmem:[#allocation2 + $0xb3] sm:$0xff] %vm2833_vm4, %v2817_v47  ;;  %3474 = vrot.lane.b32.xlu1 %v7809_v10, %s6178_s14  ;;  %v4579_v62 = vld [vmem:[#allocation4 + $0xf8] sm:$0xff]  ;;  %v2899_v30 = vld [vmem:[#allocation2 + $0xa8] sm:$0xff] }
 0x455   : > { %3256 = vrot.lane.b32.xlu2 %v7733_v63, %s6174_s16  ;;  %3038 = vrot.lane.b32.xlu0 %v2958_v17, %s6170_s30  ;;  %v4635_v12 = vpack.c.bf16 %v4579_v62, %v4577_v54  ;;  %4528 = vst.msk [vmem:[#allocation4 + $0x108] sm:$0xff] %vm2833_vm4, %v4492_v46  ;;  %v4269_v47 = vld [vmem:[#allocation2 + $0x7d] sm:$0xff]  ;;  %v3398_v54 = vld [vmem:[#allocation2 + $0x72] sm:$0xff] }
 0x456   : > { %v3463_v9 = vpop.permute.xlu1 %3462  ;;  %2935 = vst.msk [vmem:[#allocation4 + $0x150] sm:$0xff] %vm2833_vm4, %v2899_v30  ;;  %v3616_v62 = vld [vmem:[#allocation2 + $0x73] sm:$0xff] }
 0x457   : > { %v3027_v28 = vpop.permute.xlu0 %3026  ;;  %v4119_v26 = vpop.permute.xlu2 %4118 }
 0x458   : > { %6057 = vmatmul.msk.bf16.gmra.mxu2 %vm2833_vm4, %v4635_v12  ;;  %3133 = vst.msk [vmem:[#allocation4 + $0x20] sm:$0xff] %vm3130_vm6, %v3027_v28  ;;  %v4550_v63 = vld [vmem:[#allocation4 + $0x10] sm:$0xff] }
 0x459   : > { %3351 = vst.msk [vmem:[#allocation4 + $0x20] sm:$0xff] %vm3348_vm7, %v7771_v38  ;;  %v4620_v18 = vpack.c.bf16 %v4550_v63, %v4548_v16  ;;  %v4266_v38 = vld [vmem:[#allocation2 + $0x65] sm:$0xff]  ;;  %v2603_v63 = vld [vmem:[%s9339_s1 + $0xb0] sm:$0xff] }
 0x45a   : > { %3569 = vst.msk [vmem:[#allocation4 + $0x20] sm:$0xff] %vm3566_vm8, %v3463_v9 }
 0x45b   : > { %4790 = vmatmul.bf16.vlgmr.msra.gmra.mxu1 %v4620_v18  ;;  %v4493_v55 = vld [vmem:[#allocation2 + $0xae] sm:$0xff]  ;;  %v3617_v18 = vld [vmem:[#allocation2 + $0x7b] sm:$0xff] }
 0x45c   : > { %3694 = vrot.lane.b32.xlu1 %v3613_v58, %s6177_s13  ;;  %4529 = vst.msk [vmem:[#allocation4 + $0x118] sm:$0xff] %vm2833_vm4, %v4493_v55  ;;  %v2900_v0 = vld [vmem:[#allocation2 + $0xb0] sm:$0xff]  ;;  %v3399_v58 = vld [vmem:[#allocation2 + $0x7a] sm:$0xff] }
 0x45d   : > { %3476 = vrot.lane.b32.xlu2 %v3395_v25, %s6178_s14  ;;  %3258 = vrot.lane.b32.xlu0 %v7760_v44, %s6174_s16  ;;  %2936 = vst.msk [vmem:[#allocation4 + $0x160] sm:$0xff] %vm2833_vm4, %v2900_v0  ;;  %v4581_v39 = vld [vmem:[#allocation4 + $0x108] sm:$0xff] }
 0x45e   : > { %v3683_v27 = vpop.permute.xlu1 %3682  ;;  %v4267_v44 = vld [vmem:[#allocation2 + $0x6d] sm:$0xff] }
 0x45f   : > { %v3247_v36 = vpop.permute.xlu0 %3246  ;;  %v3031_v7 = vpop.permute.xlu2 %3030 }
 0x460   : > { %3352 = vst.msk [vmem:[#allocation4 + $0x30] sm:$0xff] %vm3348_vm7, %v3247_v36  ;;  %v7906_v36 = vld [vmem:[#allocation2 + $0x84] sm:$0xff] }
 0x461   : > { %3570 = vst.msk [vmem:[#allocation4 + $0x30] sm:$0xff] %vm3566_vm8, %v7789_v19 }
 0x462   : > { %3788 = vst.msk [vmem:[#allocation4 + $0x30] sm:$0xff] %vm3784_vm9, %v3683_v27  ;;  %v2602_v27 = vld [vmem:[%s9339_s1 + $0xa8] sm:$0xff] }
 0x463   : > { %3135 = vst.msk [vmem:[#allocation4 + $0x40] sm:$0xff] %vm3130_vm6, %v3031_v7  ;;  %v4583_v41 = vld [vmem:[#allocation4 + $0x118] sm:$0xff] }
 0x464   : > { %4128 = vrot.lane.b32.xlu1 %v4048_v35, %s6181_s19  ;;  %v4637_v43 = vpack.c.bf16 %v4583_v41, %v4581_v39  ;;  %v4271_v41 = vld [vmem:[#allocation2 + $0x8d] sm:$0xff] }
 0x465   : > { %3910 = vrot.lane.b32.xlu2 %v7776_v40, %s6179_s18  ;;  %3692 = vrot.lane.b32.xlu0 %v3612_v42, %s6177_s13  ;;  %v2961_v40 = vld [vmem:[#allocation2 + $0x59] sm:$0xff]  ;;  %v4053_v42 = vld [vmem:[#allocation2 + $0x8c] sm:$0xff] }
 0x466   : > { %v4117_v34 = vpop.permute.xlu1 %4116 }
 0x467   : > { %v3681_v45 = vpop.permute.xlu0 %3680  ;;  %v3251_v49 = vpop.permute.xlu2 %3250 }
 0x468   : > { %6058 = vmatmul.msk.bf16.gmra.mxu2 %vm2833_vm4, %v4637_v43  ;;  %3787 = vst.msk [vmem:[#allocation4 + $0x20] sm:$0xff] %vm3784_vm9, %v3681_v45 }
 0x469   : > { %4005 = vst.msk [vmem:[#allocation4 + $0x20] sm:$0xff] %vm4002_vm10, %v3899_v8 }
 0x46a   : > { %4223 = vst.msk [vmem:[#allocation4 + $0x20] sm:$0xff] %vm4220_vm11, %v4117_v34 }
 0x46c   : > { %4348 = vrot.lane.b32.xlu1 %v4267_v44, %s6180_s26  ;;  %v4270_v44 = vld [vmem:[#allocation2 + $0x85] sm:$0xff] }
 0x46d   : > { %4130 = vrot.lane.b32.xlu2 %v4049_v50, %s6181_s19  ;;  %3912 = vrot.lane.b32.xlu0 %v7797_v23, %s6179_s18  ;;  %v4268_v23 = vld [vmem:[#allocation2 + $0x75] sm:$0xff] }
 0x46e   : > { %v4337_v3 = vpop.permute.xlu1 %4336 }
 0x46f   : > { %v3901_v48 = vpop.permute.xlu0 %3900  ;;  %v3685_v51 = vpop.permute.xlu2 %3684 }
 0x470   : > { %4006 = vst.msk [vmem:[#allocation4 + $0x30] sm:$0xff] %vm4002_vm10, %v3901_v48 }
 0x471   : > { %4224 = vst.msk [vmem:[#allocation4 + $0x30] sm:$0xff] %vm4220_vm11, %v4119_v26 }
 0x472   : > { %4442 = vst.msk [vmem:[#allocation4 + $0x30] sm:$0xff] %vm4438_vm12, %v4337_v3 }
 0x474   : > { %3260 = vrot.lane.b32.xlu1 %v7809_v10, %s6174_s16 }
 0x475   : > { %3042 = vrot.lane.b32.xlu2 %v2960_v57, %s6170_s30  ;;  %4346 = vrot.lane.b32.xlu0 %v4266_v38, %s6180_s26  ;;  %v6113_v38 = vld [vmem:[%s9347_s9] sm:$0xff] }
 0x476   : > { %v3249_v59 = vpop.permute.xlu1 %3248  ;;  %5183 = vmatpush.bf16.msra.mxu3 %v6113_v38 }
 0x477   : > { %v4335_v60 = vpop.permute.xlu0 %4334  ;;  %3353 = vst.msk [vmem:[#allocation4 + $0x40] sm:$0xff] %vm3348_vm7, %v3249_v59  ;;  %v3905_v61 = vpop.permute.xlu2 %3904 }
 0x478   : > { %4441 = vst.msk [vmem:[#allocation4 + $0x20] sm:$0xff] %vm4438_vm12, %v4335_v60  ;;  %v7930_v60 = vld [vmem:[#allocation2 + $0x8a] sm:$0xff] }
 0x479   : > { %v4554_v22 = vld [vmem:[#allocation4 + $0x30] sm:$0xff] }
 0x47c   : > { %3480 = vrot.lane.b32.xlu1 %v3397_v1, %s6178_s14 }
 0x47d   : > { %3262 = vrot.lane.b32.xlu2 %v3395_v25, %s6174_s16  ;;  %3044 = vrot.lane.b32.xlu0 %v2961_v40, %s6170_s30 }
 0x47e   : > { %v3469_v37 = vpop.permute.xlu1 %3468 }
 0x47f   : > { %v3033_v5 = vpop.permute.xlu0 %3032  ;;  %v4339_v6 = vpop.permute.xlu2 %4338  ;;  %v4552_v52 = vld [vmem:[#allocation4 + $0x20] sm:$0xff] }
 0x480   : > { %3136 = vst.msk [vmem:[#allocation4 + $0x50] sm:$0xff] %vm3130_vm6, %v3033_v5  ;;  %v4622_v33 = vpack.c.bf16 %v4554_v22, %v4552_v52  ;;  %v2604_v5 = vld [vmem:[%s9339_s1 + $0xb8] sm:$0xff]  ;;  %v7943_v52 = vld [vmem:[#allocation2 + $0x82] sm:$0xff]  ;;  %v4890_v22 = vpop.f32.mrf.mxu2 }
 0x481   : > { %3354 = vst.msk [vmem:[#allocation4 + $0x50] sm:$0xff] %vm3348_vm7, %v3251_v49  ;;  %v2964_v49 = vld [vmem:[#allocation2 + $0x71] sm:$0xff] }
 0x482   : > { %3572 = vst.msk [vmem:[#allocation4 + $0x50] sm:$0xff] %vm3566_vm8, %v3469_v37  ;;  %4795 = vmatmul.bf16.gmra.mxu1 %v4622_v33 }
 0x484   : > { %3914 = vrot.lane.b32.xlu1 %v4048_v35, %s6179_s18 }
 0x485   : > { %3696 = vrot.lane.b32.xlu2 %v3614_v11, %s6177_s13  ;;  %3478 = vrot.lane.b32.xlu0 %v3396_v15, %s6178_s14 }
 0x486   : > { %v3903_v19 = vpop.permute.xlu1 %3902 }
 0x487   : > { %v3467_v24 = vpop.permute.xlu0 %3466  ;;  %v3037_v56 = vpop.permute.xlu2 %3036 }
 0x488   : > { %3571 = vst.msk [vmem:[#allocation4 + $0x40] sm:$0xff] %vm3566_vm8, %v3467_v24  ;;  %v2605_v24 = vld [vmem:[%s9339_s1 + $0xc0] sm:$0xff] }
 0x489   : > { %3789 = vst.msk [vmem:[#allocation4 + $0x40] sm:$0xff] %vm3784_vm9, %v3685_v51 }
 0x48a   : > { %4007 = vst.msk [vmem:[#allocation4 + $0x40] sm:$0xff] %vm4002_vm10, %v3903_v19 }
 0x48b   : > { %3138 = vst.msk [vmem:[#allocation4 + $0x70] sm:$0xff] %vm3130_vm6, %v3037_v56 }
 0x48c   : > { %4134 = vrot.lane.b32.xlu1 %v7869_v29, %s6181_s19 }
 0x48d   : > { %3916 = vrot.lane.b32.xlu2 %v4049_v50, %s6179_s18  ;;  %3698 = vrot.lane.b32.xlu0 %v3615_v4, %s6177_s13  ;;  %v3619_v4 = vld [vmem:[#allocation2 + $0x8b] sm:$0xff] }
 0x48e   : > { %v4123_v14 = vpop.permute.xlu1 %4122 }
 0x48f   : > { %v3687_v13 = vpop.permute.xlu0 %3686  ;;  %v3471_v20 = vpop.permute.xlu2 %3470 }
 0x490   : > { %3790 = vst.msk [vmem:[#allocation4 + $0x50] sm:$0xff] %vm3784_vm9, %v3687_v13 }
 0x491   : > { %4008 = vst.msk [vmem:[#allocation4 + $0x50] sm:$0xff] %vm4002_vm10, %v3905_v61  ;;  %v2965_v61 = vld [vmem:[#allocation2 + $0x79] sm:$0xff] }
 0x492   : > { %4226 = vst.msk [vmem:[#allocation4 + $0x50] sm:$0xff] %vm4220_vm11, %v4123_v14 }
 0x494   : > { %3046 = vrot.lane.b32.xlu1 %v2962_v21, %s6170_s30 }
 0x495   : > { %4350 = vrot.lane.b32.xlu2 %v4268_v23, %s6180_s26  ;;  %4132 = vrot.lane.b32.xlu0 %v4050_v32, %s6181_s19 }
 0x496   : > { %v3035_v53 = vpop.permute.xlu1 %3034 }
 0x497   : > { %v4121_v8 = vpop.permute.xlu0 %4120  ;;  %v3691_v2 = vpop.permute.xlu2 %3690  ;;  %3137 = vst.msk [vmem:[#allocation4 + $0x60] sm:$0xff] %vm3130_vm6, %v3035_v53 }
 0x498   : > { %4225 = vst.msk [vmem:[#allocation4 + $0x40] sm:$0xff] %vm4220_vm11, %v4121_v8 }
 0x499   : > { %4443 = vst.msk [vmem:[#allocation4 + $0x40] sm:$0xff] %vm4438_vm12, %v4339_v6  ;;  %v3618_v6 = vld [vmem:[#allocation2 + $0x83] sm:$0xff] }
 0x49c   : > { %3266 = vrot.lane.b32.xlu1 %v3397_v1, %s6174_s16 }
 0x49d   : > { %3048 = vrot.lane.b32.xlu2 %v2963_v31, %s6170_s30  ;;  %4352 = vrot.lane.b32.xlu0 %v4269_v47, %s6180_s26  ;;  %v4272_v47 = vld [vmem:[#allocation2 + $0x95] sm:$0xff] }
 0x49e   : > { %v3255_v10 = vpop.permute.xlu1 %3254 }
 0x49f   : > { %v4341_v46 = vpop.permute.xlu0 %4340  ;;  %3356 = vst.msk [vmem:[#allocation4 + $0x70] sm:$0xff] %vm3348_vm7, %v3255_v10  ;;  %v4125_v17 = vpop.permute.xlu2 %4124  ;;  %v4054_v10 = vld [vmem:[#allocation2 + $0x94] sm:$0xff] }
 0x4a0   : > { %4444 = vst.msk [vmem:[#allocation4 + $0x50] sm:$0xff] %vm4438_vm12, %v4341_v46  ;;  %v4556_v28 = vld [vmem:[#allocation4 + $0x40] sm:$0xff] }
 0x4a4   : > { %3700 = vrot.lane.b32.xlu1 %v3616_v62, %s6177_s13 }
 0x4a5   : > { %3482 = vrot.lane.b32.xlu2 %v3398_v54, %s6178_s14  ;;  %3264 = vrot.lane.b32.xlu0 %v3396_v15, %s6174_s16 }
 0x4a6   : > { %v3689_v12 = vpop.permute.xlu1 %3688 }
 0x4a7   : > { %v3253_v30 = vpop.permute.xlu0 %3252  ;;  %v4345_v9 = vpop.permute.xlu2 %4344  ;;  %v4558_v26 = vld [vmem:[#allocation4 + $0x50] sm:$0xff] }
 0x4a8   : > { %3355 = vst.msk [vmem:[#allocation4 + $0x60] sm:$0xff] %vm3348_vm7, %v3253_v30  ;;  %v4624_v16 = vpack.c.bf16 %v4558_v26, %v4556_v28  ;;  %v2967_v28 = vld [vmem:[#allocation2 + $0x89] sm:$0xff]  ;;  %v4273_v26 = vld [vmem:[#allocation2 + $0x9d] sm:$0xff] }
 0x4a9   : > { %3573 = vst.msk [vmem:[#allocation4 + $0x60] sm:$0xff] %vm3566_vm8, %v3471_v20  ;;  %v7965_v20 = vld [vmem:[%s9346_s8] ss:$0 sm:$0xff] }
 0x4aa   : > { %3791 = vst.msk [vmem:[#allocation4 + $0x60] sm:$0xff] %vm3784_vm9, %v3689_v12  ;;  %4800 = vmatmul.bf16.gmra.mxu1 %v4624_v16  ;;  %v4055_v16 = vld [vmem:[#allocation2 + $0x9c] sm:$0xff] }
 0x4ac   : > { %2729 = vperm.xlu1 %6141, %v2603_v63  }
 0x4ad   : > { %3702 = vrot.lane.b32.xlu2 %v3617_v18, %s6177_s13  ;;  %3484 = vrot.lane.b32.xlu0 %v3399_v58, %s6178_s14 }
 0x4ae   : > { %v3909_v25 = vpop.permute.xlu1 %3908 }
 0x4af   : > { %v3473_v55 = vpop.permute.xlu0 %3472  ;;  %v3257_v0 = vpop.permute.xlu2 %3256 }
 0x4b0   : > { %3574 = vst.msk [vmem:[#allocation4 + $0x70] sm:$0xff] %vm3566_vm8, %v3473_v55 }
 0x4b1   : > { %3792 = vst.msk [vmem:[#allocation4 + $0x70] sm:$0xff] %vm3784_vm9, %v3691_v2 }
 0x4b2   : > { %4010 = vst.msk [vmem:[#allocation4 + $0x70] sm:$0xff] %vm4002_vm10, %v3909_v25 }
 0x4b4   : > { %4136 = vrot.lane.b32.xlu1 %v7906_v36, %s6181_s19 }
 0x4b5   : > { %3918 = vrot.lane.b32.xlu2 %v4050_v32, %s6179_s18  ;;  %2724 = vperm.xlu0 %6140, %v2602_v27   ;;  %v4892_v32 = vpop.f32.mrf.mxu2  ;;  %v7986_v27 = vld [vmem:[#allocation2 + $0x92] sm:$0xff] }
 0x4b6   : > { %v4343_v7 = vpop.permute.xlu1 %4342 }
 0x4b7   : > { %v3907_v35 = vpop.permute.xlu0 %3906  ;;  %v3477_v39 = vpop.permute.xlu2 %3476 }
 0x4b8   : > { %4009 = vst.msk [vmem:[#allocation4 + $0x60] sm:$0xff] %vm4002_vm10, %v3907_v35 }
 0x4b9   : > { %4227 = vst.msk [vmem:[#allocation4 + $0x60] sm:$0xff] %vm4220_vm11, %v4125_v17 }
 0x4ba   : > { %4445 = vst.msk [vmem:[#allocation4 + $0x60] sm:$0xff] %vm4438_vm12, %v4343_v7 }
 0x4bc   : > { %4356 = vrot.lane.b32.xlu1 %v4271_v41, %s6180_s26  ;;  %v3621_v41 = vld [vmem:[#allocation2 + $0x9b] sm:$0xff] }
 0x4bd   : > { %4138 = vrot.lane.b32.xlu2 %v4053_v42, %s6181_s19  ;;  %3920 = vrot.lane.b32.xlu0 %v7869_v29, %s6179_s18  ;;  %v7957_v29 = vld [vmem:[%s9345_s7] ss:$0 sm:$0xff] }
 0x4be   : > { %v3041_v43 = vpop.permute.xlu1 %3040 }
 0x4bf   : > { %3140 = vst.msk [vmem:[#allocation4 + $0x90] sm:$0xff] %vm3130_vm6, %v3041_v43  ;;  %v3911_v34 = vpop.permute.xlu2 %3910  ;;  %v4127_v45 = vpop.permute.xlu0 %4126 }
 0x4c0   : > { %4228 = vst.msk [vmem:[#allocation4 + $0x70] sm:$0xff] %vm4220_vm11, %v4127_v45  ;;  %v4895_v43 = vpop.f32.mrf.mxu2 }
 0x4c1   : > { %4446 = vst.msk [vmem:[#allocation4 + $0x70] sm:$0xff] %vm4438_vm12, %v4345_v9  ;;  %v4560_v51 = vld [vmem:[#allocation4 + $0x60] sm:$0xff] }
 0x4c4   : > { %3268 = vrot.lane.b32.xlu1 %v3398_v54, %s6174_s16 }
 0x4c5   : > { %3050 = vrot.lane.b32.xlu2 %v2964_v49, %s6170_s30  ;;  %4354 = vrot.lane.b32.xlu0 %v4270_v44, %s6180_s26 }
 0x4c6   : > { %v3475_v50 = vpop.permute.xlu1 %3474 }
 0x4c7   : > { %v3039_v3 = vpop.permute.xlu0 %3038  ;;  %v4131_v48 = vpop.permute.xlu2 %4130 }
 0x4c8   : > { %3139 = vst.msk [vmem:[#allocation4 + $0x80] sm:$0xff] %vm3130_vm6, %v3039_v3  ;;  %v4562_v57 = vld [vmem:[#allocation4 + $0x70] sm:$0xff] }
 0x4c9   : > { %3357 = vst.msk [vmem:[#allocation4 + $0x80] sm:$0xff] %vm3348_vm7, %v3257_v0  ;;  %v4626_v59 = vpack.c.bf16 %v4562_v57, %v4560_v51  ;;  %v4897_v51 = vpop.f32.mrf.mxu2 }
 0x4ca   : > { %3575 = vst.msk [vmem:[#allocation4 + $0x80] sm:$0xff] %vm3566_vm8, %v3475_v50  ;;  %v2606_v50 = vld [vmem:[%s9339_s1 + $0xc8] sm:$0xff] }
 0x4cb   : > { %4805 = vmatmul.bf16.gmra.mxu1 %v4626_v59 }
 0x4cc   : > { %3488 = vrot.lane.b32.xlu1 %v7930_v60, %s6178_s14 }
 0x4cd   : > { %3270 = vrot.lane.b32.xlu2 %v3399_v58, %s6174_s16  ;;  %3052 = vrot.lane.b32.xlu0 %v2965_v61, %s6170_s30  ;;  %v2427_v61 = vpop.f32.mrf.mxu0 }
 0x4ce   : > { %v3695_v1 = vpop.permute.xlu1 %3694 }
 0x4cf   : > { %v3259_v40 = vpop.permute.xlu0 %3258  ;;  %v3043_v37 = vpop.permute.xlu2 %3042 }
 0x4d0   : > { %3358 = vst.msk [vmem:[#allocation4 + $0x90] sm:$0xff] %vm3348_vm7, %v3259_v40 }
 0x4d1   : > { %3576 = vst.msk [vmem:[#allocation4 + $0x90] sm:$0xff] %vm3566_vm8, %v3477_v39 }
 0x4d2   : > { %3794 = vst.msk [vmem:[#allocation4 + $0x90] sm:$0xff] %vm3784_vm9, %v3695_v1 }
 0x4d3   : > { %3141 = vst.msk [vmem:[#allocation4 + $0xa0] sm:$0xff] %vm3130_vm6, %v3043_v37 }
 0x4d4   : > { %2734 = vperm.xlu1 %6141, %v2604_v5  }
 0x4d5   : > { %3704 = vrot.lane.b32.xlu2 %v3618_v6, %s6177_s13  ;;  %3486 = vrot.lane.b32.xlu0 %v7943_v52, %s6178_s14  ;;  %v2607_v6 = vld [vmem:[%s9339_s1 + $0xd0] sm:$0xff] }
 0x4d6   : > { %v4129_v33 = vpop.permute.xlu1 %4128 }
 0x4d7   : > { %v3693_v11 = vpop.permute.xlu0 %3692  ;;  %v3263_v15 = vpop.permute.xlu2 %3262 }
 0x4d8   : > { %3793 = vst.msk [vmem:[#allocation4 + $0x80] sm:$0xff] %vm3784_vm9, %v3693_v11  ;;  %v4791_v19 = vpop.f32.mrf.mxu1 }
 0x4d9   : > { %4011 = vst.msk [vmem:[#allocation4 + $0x80] sm:$0xff] %vm4002_vm10, %v3911_v34  ;;  %v4891_v56 = vadd.f32 %v4890_v22, %v4791_v19 }
 0x4da   : > { %4229 = vst.msk [vmem:[#allocation4 + $0x80] sm:$0xff] %vm4220_vm11, %v4129_v33 }
 0x4db   : > { %v4984_v13 = vmul.f32 %v7957_v29, %v4891_v56 }
 0x4dc   : > { %3924 = vrot.lane.b32.xlu1 %v4053_v42, %s6179_s18  ;;  %v7997_v42 = vld [vmem:[#allocation2 + $0x9a] sm:$0xff] }
 0x4dd   : > { %2739 = vperm.xlu2 %6142, %v2605_v24   ;;  %3706 = vrot.lane.b32.xlu0 %v3619_v4, %s6177_s13  ;;  %v5024_v2 = vadd.f32 %v7965_v20, %v4984_v13  ;;  %v2430_v4 = vpop.f32.mrf.mxu0  ;;  %v2968_v13 = vld [vmem:[#allocation2 + $0x91] sm:$0xff] }
 0x4de   : > { %v4349_v14 = vpop.permute.xlu1 %4348 }
 0x4df   : > { %v3913_v23 = vpop.permute.xlu0 %3912  ;;  %v3697_v21 = vpop.permute.xlu2 %3696  ;;  %v5060_v54 = vmax.f32 %v5024_v2, 0.0 }
 0x4e0   : > { %4012 = vst.msk [vmem:[#allocation4 + $0x90] sm:$0xff] %vm4002_vm10, %v3913_v23  ;;  %v4793_v53 = vpop.f32.mrf.mxu1  ;;  %v8031_v23 = vld [vmem:[#allocation2 + $0xa4] sm:$0xff] }
 0x4e1   : > { %4230 = vst.msk [vmem:[#allocation4 + $0x90] sm:$0xff] %vm4220_vm11, %v4131_v48  ;;  %v4893_v8 = vadd.f32 %v4892_v32, %v4793_v53  ;;  %v3620_v48 = vld [vmem:[#allocation2 + $0x93] sm:$0xff] }
 0x4e2   : > { %4448 = vst.msk [vmem:[#allocation4 + $0x90] sm:$0xff] %vm4438_vm12, %v4349_v14  ;;  %v4274_v14 = vld [vmem:[#allocation2 + $0xa5] sm:$0xff] }
 0x4e3   : > { %v4985_v31 = vmul.f32 %v7957_v29, %v4893_v8 }
 0x4e4   : > { %4358 = vrot.lane.b32.xlu1 %v4272_v47, %s6180_s26 }
 0x4e5   : > { %4140 = vrot.lane.b32.xlu2 %v4054_v10, %s6181_s19  ;;  %v5025_v46 = vadd.f32 %v7965_v20, %v4985_v31  ;;  %3922 = vrot.lane.b32.xlu0 %v7906_v36, %s6179_s18  ;;  %v2966_v36 = vld [vmem:[#allocation2 + $0x81] sm:$0xff] }
 0x4e6   : > { %v3261_v17 = vpop.permute.xlu1 %3260 }
 0x4e7   : > { %v4347_v62 = vpop.permute.xlu0 %4346  ;;  %3359 = vst.msk [vmem:[#allocation4 + $0xa0] sm:$0xff] %vm3348_vm7, %v3261_v17  ;;  %v3917_v12 = vpop.permute.xlu2 %3916  ;;  %v5061_v30 = vmax.f32 %v5025_v46, 0.0  ;;  %v8046_v46 = vld [vmem:[%s9343_s5] ss:$0 sm:$0xff] }
 0x4e8   : > { %4447 = vst.msk [vmem:[#allocation4 + $0x80] sm:$0xff] %vm4438_vm12, %v4347_v62  ;;  %v4275_v62 = vld [vmem:[#allocation2 + $0xad] sm:$0xff] }
 0x4e9   : > { %v5096_v9 = vpack.c.bf16 %v5061_v30, %v5060_v54  ;;  %v4566_v55 = vld [vmem:[#allocation4 + $0x90] sm:$0xff] }
 0x4ea   : > { %v2969_v54 = vld [vmem:[#allocation2 + $0x99] sm:$0xff] }
 0x4eb   : > { %6072 = vmatmul.msk.bf16.vlgmr.msra.gmra.mxu3 %vm2833_vm4, %v5096_v9 }
 0x4ec   : > { %3056 = vrot.lane.b32.xlu1 %v2967_v28, %s6170_s30 }
 0x4ed   : > { %4360 = vrot.lane.b32.xlu2 %v4273_v26, %s6180_s26  ;;  %4142 = vrot.lane.b32.xlu0 %v4055_v16, %s6181_s19 }
 0x4ee   : > { %v3481_v63 = vpop.permute.xlu1 %3480 }
 0x4ef   : > { %v3045_v18 = vpop.permute.xlu0 %3044  ;;  %v4351_v58 = vpop.permute.xlu2 %4350  ;;  %v4564_v25 = vld [vmem:[#allocation4 + $0x80] sm:$0xff] }
 0x4f0   : > { %3142 = vst.msk [vmem:[#allocation4 + $0xb0] sm:$0xff] %vm3130_vm6, %v3045_v18  ;;  %v4628_v0 = vpack.c.bf16 %v4566_v55, %v4564_v25  ;;  %v8060_v18 = vpop.f32.mrf.mxu0  ;;  %v3622_v25 = vld [vmem:[#allocation2 + $0xa3] sm:$0xff]  ;;  %v4900_v55 = vpop.f32.mrf.mxu2 }
 0x4f1   : > { %3360 = vst.msk [vmem:[#allocation4 + $0xb0] sm:$0xff] %vm3348_vm7, %v3263_v15 }
 0x4f2   : > { %3578 = vst.msk [vmem:[#allocation4 + $0xb0] sm:$0xff] %vm3566_vm8, %v3481_v63  ;;  %4810 = vmatmul.bf16.gmra.mxu1 %v4628_v0 }
 0x4f4   : > { %3490 = vrot.lane.b32.xlu1 %v7986_v27, %s6178_s14 }
 0x4f5   : > { %3272 = vrot.lane.b32.xlu2 %v7943_v52, %s6174_s16  ;;  %3054 = vrot.lane.b32.xlu0 %v2966_v36, %s6170_s30  ;;  %v8021_v52 = vld [vmem:[#allocation2 + $0xac] sm:$0xff] }
 0x4f6   : > { %v3915_v7 = vpop.permute.xlu1 %3914 }
 0x4f7   : > { %v3479_v35 = vpop.permute.xlu0 %3478  ;;  %v3049_v39 = vpop.permute.xlu2 %3048 }
 0x4f8   : > { %3577 = vst.msk [vmem:[#allocation4 + $0xa0] sm:$0xff] %vm3566_vm8, %v3479_v35 }
 0x4f9   : > { %3795 = vst.msk [vmem:[#allocation4 + $0xa0] sm:$0xff] %vm3784_vm9, %v3697_v21  ;;  %v8037_v21 = vld [vmem:[%s9342_s4] ss:$0 sm:$0xff] }
 0x4fa   : > { %4013 = vst.msk [vmem:[#allocation4 + $0xa0] sm:$0xff] %vm4002_vm10, %v3915_v7  ;;  %v2491_v32 = vmul.f32 %v8037_v21, %v2430_v4  ;;  %v2490_v30 = vmul.f32 %v8037_v21, %v2427_v61 }
 0x4fb   : > { %3144 = vst.msk [vmem:[#allocation4 + $0xd0] sm:$0xff] %vm3130_vm6, %v3049_v39 }
 0x4fc   : > { %3710 = vrot.lane.b32.xlu1 %v3621_v41, %s6177_s13  ;;  %v2531_v17 = vadd.f32 %v8046_v46, %v2491_v32  ;;  %v2530_v63 = vadd.f32 %v8046_v46, %v2490_v30 }
 0x4fd   : > { %3492 = vrot.lane.b32.xlu2 %v7997_v42, %s6178_s14  ;;  %3274 = vrot.lane.b32.xlu0 %v7930_v60, %s6174_s16 }
 0x4fe   : > { %v4135_v34 = vpop.permute.xlu1 %4134  ;;  %v2566_v0 = vmax.f32 %v2530_v63, 0.0 }
 0x4ff   : > { %v4796_v45 = vpop.f32.mrf.mxu1  ;;  %v3699_v49 = vpop.permute.xlu0 %3698 }
 0x500   : > { %3796 = vst.msk [vmem:[#allocation4 + $0xb0] sm:$0xff] %vm3784_vm9, %v3699_v49  ;;  %v3483_v44 = vpop.permute.xlu2 %3482  ;;  %v4896_v3 = vadd.f32 %v4895_v43, %v4796_v45  ;;  %v2435_v45 = vpop.f32.mrf.mxu0 }
 0x501   : > { %4014 = vst.msk [vmem:[#allocation4 + $0xb0] sm:$0xff] %vm4002_vm10, %v3917_v12  ;;  %v2567_v12 = vmax.f32 %v2531_v17, 0.0  ;;  %v4902_v49 = vpop.f32.mrf.mxu2 }
 0x502   : > { %4232 = vst.msk [vmem:[#allocation4 + $0xb0] sm:$0xff] %vm4220_vm11, %v4135_v34  ;;  %v4986_v57 = vmul.f32 %v7957_v29, %v4896_v3  ;;  %v3623_v34 = vld [vmem:[#allocation2 + $0xab] sm:$0xff]  ;;  %v2493_v3 = vmul.f32 %v8037_v21, %v2435_v45 }
 0x504   : > { %3926 = vrot.lane.b32.xlu1 %v4054_v10, %s6179_s18  ;;  %v5026_v37 = vadd.f32 %v7965_v20, %v4986_v57 }
 0x505   : > { %2744 = vperm.xlu2 %6142, %v2606_v50   ;;  %3708 = vrot.lane.b32.xlu0 %v3620_v48, %s6177_s13 }
 0x506   : > { %v3047_v38 = vpop.permute.xlu1 %3046  ;;  %v5062_v33 = vmax.f32 %v5026_v37, 0.0  ;;  %v2533_v37 = vadd.f32 %v8046_v46, %v2493_v3  ;;  %v3624_v3 = vld [vmem:[#allocation2 + $0xb3] sm:$0xff] }
 0x507   : > { %v4798_v59 = vpop.f32.mrf.mxu1  ;;  %v4133_v60 = vpop.permute.xlu0 %4132  ;;  %3143 = vst.msk [vmem:[#allocation4 + $0xc0] sm:$0xff] %vm3130_vm6, %v3047_v38 }
 0x508   : > { %v4898_v1 = vadd.f32 %v4897_v51, %v4798_v59  ;;  %4231 = vst.msk [vmem:[#allocation4 + $0xa0] sm:$0xff] %vm4220_vm11, %v4133_v60  ;;  %v3703_v40 = vpop.permute.xlu2 %3702 }
 0x509   : > { %4449 = vst.msk [vmem:[#allocation4 + $0xa0] sm:$0xff] %vm4438_vm12, %v4351_v58  ;;  %v8064_v58 = vld [vmem:[#allocation2 + $0xa2] sm:$0xff] }
 0x50a   : > { %v4987_v5 = vmul.f32 %v7957_v29, %v4898_v1 }
 0x50c   : > { %v5027_v22 = vadd.f32 %v7965_v20, %v4987_v5  ;;  %4146 = vrot.lane.b32.xlu1 %v8021_v52, %s6181_s19 }
 0x50d   : > { %3928 = vrot.lane.b32.xlu2 %v4055_v16, %s6179_s18  ;;  %2749 = vperm.xlu0 %6140, %v2607_v6  }
 0x50e   : > { %v3267_v11 = vpop.permute.xlu1 %3266  ;;  %v5063_v15 = vmax.f32 %v5027_v22, 0.0 }
 0x50f   : > { %v4353_v19 = vpop.permute.xlu0 %4352  ;;  %3362 = vst.msk [vmem:[#allocation4 + $0xd0] sm:$0xff] %vm3348_vm7, %v3267_v11 }
 0x510   : > { %v3919_v24 = vpop.permute.xlu2 %3918  ;;  %4450 = vst.msk [vmem:[#allocation4 + $0xb0] sm:$0xff] %vm4438_vm12, %v4353_v19  ;;  %v5097_v56 = vpack.c.bf16 %v5063_v15, %v5062_v33  ;;  %v4568_v2 = vld [vmem:[#allocation4 + $0xa0] sm:$0xff] }
 0x512   : > { %6073 = vmatmul.msk.bf16.gmra.mxu3 %vm2833_vm4, %v5097_v56 }
 0x514   : > { %3058 = vrot.lane.b32.xlu1 %v2968_v13, %s6170_s30 }
 0x515   : > { %4362 = vrot.lane.b32.xlu2 %v4274_v14, %s6180_s26  ;;  %4144 = vrot.lane.b32.xlu0 %v8031_v23, %s6181_s19 }
 0x516   : > { %v3701_v53 = vpop.permute.xlu1 %3700 }
 0x517   : > { %v3265_v8 = vpop.permute.xlu0 %3264  ;;  %v4570_v31 = vld [vmem:[#allocation4 + $0xb0] sm:$0xff] }
 0x518   : > { %3361 = vst.msk [vmem:[#allocation4 + $0xc0] sm:$0xff] %vm3348_vm7, %v3265_v8  ;;  %v4139_v47 = vpop.permute.xlu2 %4138  ;;  %v4630_v10 = vpack.c.bf16 %v4570_v31, %v4568_v2  ;;  %v2492_v31 = vmul.f32 %v8037_v21, %v8060_v18 }
 0x519   : > { %3579 = vst.msk [vmem:[#allocation4 + $0xc0] sm:$0xff] %vm3566_vm8, %v3483_v44 }
 0x51a   : > { %3797 = vst.msk [vmem:[#allocation4 + $0xc0] sm:$0xff] %vm3784_vm9, %v3701_v53  ;;  %4815 = vmatmul.bf16.gmra.mxu1 %v4630_v10  ;;  %v2532_v30 = vadd.f32 %v8046_v46, %v2492_v31 }
 0x51b   : > { %4015 = vst.msk [vmem:[#allocation4 + $0xc0] sm:$0xff] %vm4002_vm10, %v3919_v24  ;;  %v2569_v24 = vmax.f32 %v2533_v37, 0.0 }
 0x51c   : > { %3278 = vrot.lane.b32.xlu1 %v7997_v42, %s6174_s16  ;;  %v2609_v42 = vld [vmem:[%s9339_s1 + $0xe0] sm:$0xff] }
 0x51d   : > { %3060 = vrot.lane.b32.xlu2 %v2969_v54, %s6170_s30  ;;  %4364 = vrot.lane.b32.xlu0 %v4275_v62, %s6180_s26 }
 0x51e   : > { %v2730_v9 = vpop.permute.xlu1 %2729 }
 0x51f   : > { %v3485_v28 = vpop.permute.xlu0 %3484  ;;  %v2819_v26 = vmul.f32 %v2730_v9, %v2567_v12  ;;  %v2970_v9 = vld [vmem:[#allocation2 + $0xa1] sm:$0xff] }
 0x520   : > { %3580 = vst.msk [vmem:[#allocation4 + $0xd0] sm:$0xff] %vm3566_vm8, %v3485_v28  ;;  %v3051_v16 = vpop.permute.xlu2 %3050 }
 0x521   : > { %3798 = vst.msk [vmem:[#allocation4 + $0xd0] sm:$0xff] %vm3784_vm9, %v3703_v40  ;;  %v2608_v40 = vld [vmem:[%s9339_s1 + $0xd8] sm:$0xff] }
 0x522   : > { %2863 = vst.msk [vmem:[#allocation2 + $0xc3] sm:$0xff] %vm2833_vm4, %v2819_v26  ;;  %v4905_v26 = vpop.f32.mrf.mxu2 }
 0x523   : > { %3145 = vst.msk [vmem:[#allocation4 + $0xe0] sm:$0xff] %vm3130_vm6, %v3051_v16 }
 0x524   : > { %3712 = vrot.lane.b32.xlu1 %v3622_v25, %s6177_s13 }
 0x525   : > { %3494 = vrot.lane.b32.xlu2 %v8064_v58, %s6178_s14  ;;  %3276 = vrot.lane.b32.xlu0 %v7986_v27, %s6174_s16  ;;  %v8079_v27 = vld [vmem:[#allocation2 + $0xaa] sm:$0xff] }
 0x526   : > { %v4137_v36 = vpop.permute.xlu1 %4136 }
 0x527   : > { %v4801_v7 = vpop.f32.mrf.mxu1  ;;  %v2725_v35 = vpop.permute.xlu0 %2724  ;;  %4233 = vst.msk [vmem:[#allocation4 + $0xc0] sm:$0xff] %vm4220_vm11, %v4137_v36  ;;  %v2971_v36 = vld [vmem:[#allocation2 + $0xa9] sm:$0xff] }
 0x528   : > { %v2818_v39 = vmul.f32 %v2725_v35, %v2566_v0  ;;  %v8072_v41 = vpop.permute.xlu2 %3270  ;;  %v4901_v43 = vadd.f32 %v4900_v55, %v4801_v7 }
 0x52a   : > { %2862 = vst.msk [vmem:[#allocation2 + $0xbb] sm:$0xff] %vm2833_vm4, %v2818_v39  ;;  %v4988_v44 = vmul.f32 %v7957_v29, %v4901_v43  ;;  %v4907_v35 = vpop.f32.mrf.mxu2 }
 0x52c   : > { %2759 = vperm.xlu1 %6141, %v2609_v42   ;;  %v5028_v61 = vadd.f32 %v7965_v20, %v4988_v44 }
 0x52d   : > { %3714 = vrot.lane.b32.xlu2 %v3623_v34, %s6177_s13  ;;  %3496 = vrot.lane.b32.xlu0 %v8079_v27, %s6178_s14 }
 0x52e   : > { %v4357_v50 = vpop.permute.xlu1 %4356  ;;  %v5064_v11 = vmax.f32 %v5028_v61, 0.0 }
 0x52f   : > { %v4803_v48 = vpop.f32.mrf.mxu1  ;;  %v3921_v51 = vpop.permute.xlu0 %3920 }
 0x530   : > { %v4903_v57 = vadd.f32 %v4902_v49, %v4803_v48  ;;  %4016 = vst.msk [vmem:[#allocation4 + $0xd0] sm:$0xff] %vm4002_vm10, %v3921_v51  ;;  %v8086_v38 = vpop.permute.xlu2 %3704  ;;  %v2437_v48 = vpop.f32.mrf.mxu0  ;;  %v8155_v51 = vld [vmem:[#allocation2 + $0xb2] sm:$0xff] }
 0x531   : > { %v4494_v59 = vld [vmem:[#allocation2 + $0xb6] sm:$0xff]  ;;  %v4495_v60 = vld [vmem:[#allocation2 + $0xbe] sm:$0xff]  ;;  %4234 = vst.msk [vmem:[#allocation4 + $0xd0] sm:$0xff] %vm4220_vm11, %v4139_v47  ;;  %v2494_v61 = vmul.f32 %v8037_v21, %v2437_v48 }
 0x532   : > { %4530 = vst.msk [vmem:[#allocation4 + $0x128] sm:$0xff] %vm2833_vm4, %v4494_v59  ;;  %v4989_v1 = vmul.f32 %v7957_v29, %v4903_v57  ;;  %v8097_v5 = vld [vmem:[#allocation2 + $0xb4] sm:$0xff]  ;;  %v2902_v33 = vld [vmem:[#allocation2 + $0xc0] sm:$0xff] }
 0x533   : > { %4531 = vst.msk [vmem:[#allocation4 + $0x138] sm:$0xff] %vm2833_vm4, %v4495_v60  ;;  %v2901_v22 = vld [vmem:[#allocation2 + $0xb8] sm:$0xff] }
 0x534   : > { %v5029_v6 = vadd.f32 %v7965_v20, %v4989_v1  ;;  %4452 = vst.msk [vmem:[#allocation4 + $0xd0] sm:$0xff] %vm4438_vm12, %v4357_v50  ;;  %4148 = vrot.lane.b32.xlu1 %v8097_v5, %s6181_s19  ;;  %v4277_v8 = vld [vmem:[#allocation2 + $0xbd] sm:$0xff]  ;;  %v4276_v28 = vld [vmem:[#allocation2 + $0xb5] sm:$0xff] }
 0x535   : > { %3930 = vrot.lane.b32.xlu2 %v8031_v23, %s6179_s18  ;;  %2754 = vperm.xlu0 %6140, %v2608_v40   ;;  %2937 = vst.msk [vmem:[#allocation4 + $0x170] sm:$0xff] %vm2833_vm4, %v2901_v22  ;;  %v8111_v2 = vld [vmem:[#allocation2 + $0xbc] sm:$0xff] }
 0x536   : > { %v3269_v15 = vpop.permute.xlu1 %3268  ;;  %v5065_v19 = vmax.f32 %v5029_v6, 0.0  ;;  %2938 = vst.msk [vmem:[#allocation4 + $0x180] sm:$0xff] %vm2833_vm4, %v2902_v33  ;;  %v8136_v0 = vld [vmem:[#allocation2 + $0xba] sm:$0xff] }
 0x537   : > { %v4355_v56 = vpop.permute.xlu0 %4354  ;;  %3363 = vst.msk [vmem:[#allocation4 + $0xe0] sm:$0xff] %vm3348_vm7, %v3269_v15 }
 0x538   : > { %4451 = vst.msk [vmem:[#allocation4 + $0xc0] sm:$0xff] %vm4438_vm12, %v4355_v56  ;;  %v2740_v4 = vpop.permute.xlu2 %2739  ;;  %v5098_v14 = vpack.c.bf16 %v5065_v19, %v5064_v11  ;;  %v2611_v11 = vld [vmem:[%s9339_s1 + $0xf0] sm:$0xff]  ;;  %v2534_v19 = vadd.f32 %v8046_v46, %v2494_v61  ;;  %v3625_v56 = vld [vmem:[#allocation2 + $0xbb] sm:$0xff] }
 0x539   : > { %v2821_v13 = vmul.f32 %v2740_v4, %v2569_v24  ;;  %v4585_v23 = vld [vmem:[#allocation4 + $0x128] sm:$0xff] }
 0x53a   : > { %6074 = vmatmul.msk.bf16.gmra.mxu3 %vm2833_vm4, %v5098_v14  ;;  %v4587_v32 = vld [vmem:[#allocation4 + $0x138] sm:$0xff]  ;;  %v2570_v14 = vmax.f32 %v2534_v19, 0.0 }
 0x53b   : > { %2865 = vst.msk [vmem:[#allocation2 + $0xd3] sm:$0xff] %vm2833_vm4, %v2821_v13  ;;  %v4639_v53 = vpack.c.bf16 %v4587_v32, %v4585_v23  ;;  %v4574_v54 = vld [vmem:[#allocation4 + $0xd0] sm:$0xff] }
 0x53c   : > { %4368 = vrot.lane.b32.xlu1 %v4277_v8, %s6180_s26 }
 0x53d   : > { %4150 = vrot.lane.b32.xlu2 %v8111_v2, %s6181_s19  ;;  %6059 = vmatmul.msk.bf16.gmra.mxu2 %vm2833_vm4, %v4639_v53 }
 0x53e   : > { %3932 = vrot.lane.b32.xlu0 %v8021_v52, %s6179_s18  ;;  %v3489_v47 = vpop.permute.xlu1 %3488  ;;  %v2568_v52 = vmax.f32 %v2532_v30, 0.0 }
 0x53f   : > { %v3053_v10 = vpop.permute.xlu0 %3052  ;;  %v4572_v17 = vld [vmem:[#allocation4 + $0xc0] sm:$0xff] }
 0x540   : > { %3146 = vst.msk [vmem:[#allocation4 + $0xf0] sm:$0xff] %vm3130_vm6, %v3053_v10  ;;  %v4141_v62 = vpop.permute.xlu2 %4140  ;;  %v4632_v12 = vpack.c.bf16 %v4574_v54, %v4572_v17 }
 0x541   : > { %3364 = vst.msk [vmem:[#allocation4 + $0xf0] sm:$0xff] %vm3348_vm7, %v8072_v41 }
 0x542   : > { %3582 = vst.msk [vmem:[#allocation4 + $0xf0] sm:$0xff] %vm3566_vm8, %v3489_v47  ;;  %4820 = vmatmul.bf16.gmra.mxu1 %v4632_v12  ;;  %v2973_v12 = vld [vmem:[#allocation2 + $0xb9] sm:$0xff] }
 0x544   : > { %3280 = vrot.lane.b32.xlu1 %v8064_v58, %s6174_s16 }
 0x545   : > { %3062 = vrot.lane.b32.xlu2 %v2970_v9, %s6170_s30 }
 0x546   : > { %4366 = vrot.lane.b32.xlu0 %v4276_v28, %s6180_s26  ;;  %v2735_v16 = vpop.permute.xlu1 %2734 }
 0x547   : > { %v3487_v63 = vpop.permute.xlu0 %3486  ;;  %v2820_v18 = vmul.f32 %v2735_v16, %v2568_v52 }
 0x548   : > { %3581 = vst.msk [vmem:[#allocation4 + $0xe0] sm:$0xff] %vm3566_vm8, %v3487_v63  ;;  %v8131_v25 = vpop.permute.xlu2 %4360  ;;  %v4806_v55 = vpop.f32.mrf.mxu1 }
 0x549   : > { %3799 = vst.msk [vmem:[#allocation4 + $0xe0] sm:$0xff] %vm3784_vm9, %v8086_v38  ;;  %v4906_v58 = vadd.f32 %v4905_v26, %v4806_v55  ;;  %v8204_v55 = vld [vmem:[#allocation2 + $0xc2] sm:$0xff] }
 0x54a   : > { %2864 = vst.msk [vmem:[#allocation2 + $0xcb] sm:$0xff] %vm2833_vm4, %v2820_v18 }
 0x54b   : > { %v4990_v39 = vmul.f32 %v7957_v29, %v4906_v58  ;;  %v2972_v58 = vld [vmem:[#allocation2 + $0xb1] sm:$0xff] }
 0x54c   : > { %3500 = vrot.lane.b32.xlu1 %v8136_v0, %s6178_s14 }
 0x54d   : > { %3282 = vrot.lane.b32.xlu2 %v8079_v27, %s6174_s16  ;;  %v2610_v27 = vld [vmem:[%s9339_s1 + $0xe8] sm:$0xff]  ;;  %v5030_v44 = vadd.f32 %v7965_v20, %v4990_v39 }
 0x54e   : > { %3064 = vrot.lane.b32.xlu0 %v2971_v36, %s6170_s30  ;;  %v3925_v7 = vpop.permute.xlu1 %3924 }
 0x54f   : > { %v3707_v41 = vpop.permute.xlu0 %3706  ;;  %v5066_v1 = vmax.f32 %v5030_v44, 0.0 }
 0x550   : > { %3800 = vst.msk [vmem:[#allocation4 + $0xf0] sm:$0xff] %vm3784_vm9, %v3707_v41  ;;  %v8145_v42 = vpop.permute.xlu2 %3272  ;;  %v4808_v43 = vpop.f32.mrf.mxu1 }
 0x551   : > { %v4496_v34 = vld [vmem:[#allocation2 + $0xc6] sm:$0xff]  ;;  %v4497_v45 = vld [vmem:[#allocation2 + $0xce] sm:$0xff]  ;;  %4018 = vst.msk [vmem:[#allocation4 + $0xf0] sm:$0xff] %vm4002_vm10, %v3925_v7  ;;  %v4908_v49 = vadd.f32 %v4907_v35, %v4808_v43 }
 0x552   : > { %4532 = vst.msk [vmem:[#allocation4 + $0x148] sm:$0xff] %vm2833_vm4, %v4496_v34  ;;  %v2903_v57 = vld [vmem:[#allocation2 + $0xc8] sm:$0xff]  ;;  %v2904_v59 = vld [vmem:[#allocation2 + $0xd0] sm:$0xff] }
 0x553   : > { %4533 = vst.msk [vmem:[#allocation4 + $0x158] sm:$0xff] %vm2833_vm4, %v4497_v45  ;;  %v4991_v50 = vmul.f32 %v7957_v29, %v4908_v49  ;;  %v4278_v53 = vld [vmem:[#allocation2 + $0xc5] sm:$0xff]  ;;  %v4279_v30 = vld [vmem:[#allocation2 + $0xcd] sm:$0xff] }
 0x554   : > { %2764 = vperm.xlu1 %6141, %v2610_v27   ;;  %2939 = vst.msk [vmem:[#allocation4 + $0x190] sm:$0xff] %vm2833_vm4, %v2903_v57  ;;  %v8181_v8 = vld [vmem:[#allocation2 + $0xc4] sm:$0xff]  ;;  %v8195_v9 = vld [vmem:[#allocation2 + $0xcc] sm:$0xff] }
 0x555   : > { %3716 = vrot.lane.b32.xlu2 %v3624_v3, %s6177_s13  ;;  %v5031_v38 = vadd.f32 %v7965_v20, %v4991_v50  ;;  %2940 = vst.msk [vmem:[#allocation4 + $0x1a0] sm:$0xff] %vm2833_vm4, %v2904_v59  ;;  %v3627_v44 = vld [vmem:[#allocation2 + $0xcb] sm:$0xff] }
 0x556   : > { %3498 = vrot.lane.b32.xlu0 %v8155_v51, %s6178_s14  ;;  %v4359_v60 = vpop.permute.xlu1 %4358  ;;  %v8219_v50 = vld [vmem:[#allocation2 + $0xca] sm:$0xff] }
 0x557   : > { %v3923_v40 = vpop.permute.xlu0 %3922  ;;  %v5067_v37 = vmax.f32 %v5031_v38, 0.0 }
 0x558   : > { %4017 = vst.msk [vmem:[#allocation4 + $0xe0] sm:$0xff] %vm4002_vm10, %v3923_v40  ;;  %v3493_v6 = vpop.permute.xlu2 %3492  ;;  %v2612_v40 = vld [vmem:[%s9339_s1 + $0xf8] sm:$0xff] }
 0x559   : > { %4235 = vst.msk [vmem:[#allocation4 + $0xe0] sm:$0xff] %vm4220_vm11, %v4141_v62  ;;  %v5099_v22 = vpack.c.bf16 %v5067_v37, %v5066_v1  ;;  %v4589_v33 = vld [vmem:[#allocation4 + $0x148] sm:$0xff] }
 0x55a   : > { %4453 = vst.msk [vmem:[#allocation4 + $0xe0] sm:$0xff] %vm4438_vm12, %v4359_v60  ;;  %v4591_v15 = vld [vmem:[#allocation4 + $0x158] sm:$0xff] }
 0x55b   : > { %6075 = vmatmul.msk.bf16.gmra.mxu3 %vm2833_vm4, %v5099_v22  ;;  %v4641_v24 = vpack.c.bf16 %v4591_v15, %v4589_v33  ;;  %v2613_v15 = vld [vmem:[%s9339_s1 + $0x100] sm:$0xff] }
 0x55c   : > { %3936 = vrot.lane.b32.xlu1 %v8111_v2, %s6179_s18 }
 0x55d   : > { %2769 = vperm.xlu2 %6142, %v2611_v11   ;;  %6060 = vmatmul.msk.bf16.gmra.mxu2 %vm2833_vm4, %v4641_v24 }
 0x55e   : > { %3718 = vrot.lane.b32.xlu0 %v3625_v56, %s6177_s13  ;;  %v3057_v4 = vpop.permute.xlu1 %3056 }
 0x55f   : > { %3148 = vst.msk [vmem:[#allocation4 + $0x110] sm:$0xff] %vm3130_vm6, %v3057_v4  ;;  %v4143_v13 = vpop.permute.xlu0 %4142 }
 0x560   : > { %v2745_v23 = vpop.permute.xlu2 %2744  ;;  %4236 = vst.msk [vmem:[#allocation4 + $0xf0] sm:$0xff] %vm4220_vm11, %v4143_v13 }
 0x561   : > { %v2822_v32 = vmul.f32 %v2745_v23, %v2570_v14  ;;  %4454 = vst.msk [vmem:[#allocation4 + $0xf0] sm:$0xff] %vm4438_vm12, %v8131_v25  ;;  %v4576_v10 = vld [vmem:[#allocation4 + $0xe0] sm:$0xff]  ;;  %v2440_v25 = vpop.f32.mrf.mxu0 }
 0x562   : > { %v2495_v36 = vmul.f32 %v8037_v21, %v2440_v25 }
 0x563   : > { %2866 = vst.msk [vmem:[#allocation2 + $0xdb] sm:$0xff] %vm2833_vm4, %v2822_v32 }
 0x564   : > { %4370 = vrot.lane.b32.xlu1 %v4278_v53, %s6180_s26  ;;  %v2535_v45 = vadd.f32 %v8046_v46, %v2495_v36 }
 0x565   : > { %4152 = vrot.lane.b32.xlu2 %v8181_v8, %s6181_s19 }
 0x566   : > { %3934 = vrot.lane.b32.xlu0 %v8097_v5, %s6179_s18  ;;  %v3491_v2 = vpop.permute.xlu1 %3490  ;;  %v4910_v5 = vpop.f32.mrf.mxu2 }
 0x567   : > { %v3055_v31 = vpop.permute.xlu0 %3054 }
 0x568   : > { %3147 = vst.msk [vmem:[#allocation4 + $0x100] sm:$0xff] %vm3130_vm6, %v3055_v31  ;;  %v3929_v47 = vpop.permute.xlu2 %3928  ;;  %v4578_v17 = vld [vmem:[#allocation4 + $0xf0] sm:$0xff] }
 0x569   : > { %3365 = vst.msk [vmem:[#allocation4 + $0x100] sm:$0xff] %vm3348_vm7, %v8145_v42  ;;  %v4634_v54 = vpack.c.bf16 %v4578_v17, %v4576_v10  ;;  %v2442_v22 = vpop.f32.mrf.mxu0  ;;  %v2974_v10 = vld [vmem:[#allocation2 + $0xc1] sm:$0xff] }
 0x56a   : > { %v4498_v62 = vld [vmem:[#allocation2 + $0xd6] sm:$0xff]  ;;  %3583 = vst.msk [vmem:[#allocation4 + $0x100] sm:$0xff] %vm3566_vm8, %v3491_v2 }
 0x56b   : > { %4534 = vst.msk [vmem:[#allocation4 + $0x168] sm:$0xff] %vm2833_vm4, %v4498_v62  ;;  %4825 = vmatmul.bf16.gmra.mxu1 %v4634_v54  ;;  %v2905_v28 = vld [vmem:[#allocation2 + $0xd8] sm:$0xff] }
 0x56c   : > { %3068 = vrot.lane.b32.xlu1 %v2973_v12, %s6170_s30  ;;  %2941 = vst.msk [vmem:[#allocation4 + $0x1b0] sm:$0xff] %vm2833_vm4, %v2905_v28  ;;  %v4280_v2 = vld [vmem:[#allocation2 + $0xd5] sm:$0xff] }
 0x56d   : > { %4372 = vrot.lane.b32.xlu2 %v4279_v30, %s6180_s26 }
 0x56e   : > { %4154 = vrot.lane.b32.xlu0 %v8195_v9, %s6181_s19  ;;  %v3711_v52 = vpop.permute.xlu1 %3710  ;;  %v4912_v7 = vpop.f32.mrf.mxu2 }
 0x56f   : > { %v4811_v26 = vpop.f32.mrf.mxu1  ;;  %v3275_v16 = vpop.permute.xlu0 %3274 }
 0x570   : > { %3366 = vst.msk [vmem:[#allocation4 + $0x110] sm:$0xff] %vm3348_vm7, %v3275_v16  ;;  %v4363_v63 = vpop.permute.xlu2 %4362  ;;  %v4911_v18 = vadd.f32 %v4910_v5, %v4811_v26  ;;  %v2975_v16 = vld [vmem:[#allocation2 + $0xc9] sm:$0xff] }
 0x571   : > { %3584 = vst.msk [vmem:[#allocation4 + $0x110] sm:$0xff] %vm3566_vm8, %v3493_v6  ;;  %v2445_v32 = vpop.f32.mrf.mxu0 }
 0x572   : > { %3802 = vst.msk [vmem:[#allocation4 + $0x110] sm:$0xff] %vm3784_vm9, %v3711_v52  ;;  %v4992_v35 = vmul.f32 %v7957_v29, %v4911_v18  ;;  %v4593_v13 = vld [vmem:[#allocation4 + $0x168] sm:$0xff]  ;;  %v2497_v17 = vmul.f32 %v8037_v21, %v2445_v32  ;;  %v8328_v32 = vld [vmem:[%s9349_s11] ss:$0 sm:$0xff] }
 0x573   : > { %4020 = vst.msk [vmem:[#allocation4 + $0x110] sm:$0xff] %vm4002_vm10, %v3929_v47  ;;  %v8256_v47 = vld [vmem:[#allocation2 + $0xd4] sm:$0xff] }
 0x574   : > { %3502 = vrot.lane.b32.xlu1 %v8204_v55, %s6178_s14  ;;  %v5032_v49 = vadd.f32 %v7965_v20, %v4992_v35  ;;  %v2537_v52 = vadd.f32 %v8046_v46, %v2497_v17 }
 0x575   : > { %3284 = vrot.lane.b32.xlu2 %v8155_v51, %s6174_s16  ;;  %v2571_v51 = vmax.f32 %v2535_v45, 0.0 }
 0x576   : > { %3066 = vrot.lane.b32.xlu0 %v2972_v58, %s6170_s30  ;;  %v3927_v39 = vpop.permute.xlu1 %3926  ;;  %v5068_v48 = vmax.f32 %v5032_v49, 0.0  ;;  %v4915_v31 = vpop.f32.mrf.mxu2  ;;  %v2573_v25 = vmax.f32 %v2537_v52, 0.0  ;;  %v2496_v58 = vmul.f32 %v8037_v21, %v2442_v22 }
 0x577   : > { %v4813_v41 = vpop.f32.mrf.mxu1  ;;  %v3709_v42 = vpop.permute.xlu0 %3708 }
 0x578   : > { %v4913_v43 = vadd.f32 %v4912_v7, %v4813_v41  ;;  %3801 = vst.msk [vmem:[#allocation4 + $0x100] sm:$0xff] %vm3784_vm9, %v3709_v42  ;;  %v3061_v34 = vpop.permute.xlu2 %3060  ;;  %v2536_v45 = vadd.f32 %v8046_v46, %v2496_v58 }
 0x579   : > { %4019 = vst.msk [vmem:[#allocation4 + $0x100] sm:$0xff] %vm4002_vm10, %v3927_v39  ;;  %v8280_v49 = vpop.f32.mrf.mxu0 }
 0x57a   : > { %v4993_v27 = vmul.f32 %v7957_v29, %v4913_v43  ;;  %3150 = vst.msk [vmem:[#allocation4 + $0x130] sm:$0xff] %vm3130_vm6, %v3061_v34 }
 0x57c   : > { %v5033_v3 = vadd.f32 %v7965_v20, %v4993_v27  ;;  %3722 = vrot.lane.b32.xlu1 %v3627_v44, %s6177_s13 }
 0x57d   : > { %3504 = vrot.lane.b32.xlu2 %v8219_v50, %s6178_s14 }
 0x57e   : > { %3286 = vrot.lane.b32.xlu0 %v8136_v0, %s6174_s16  ;;  %v4147_v57 = vpop.permute.xlu1 %4146  ;;  %v5069_v38 = vmax.f32 %v5033_v3, 0.0  ;;  %v3626_v0 = vld [vmem:[#allocation2 + $0xc3] sm:$0xff]  ;;  %v4917_v36 = vpop.f32.mrf.mxu2 }
 0x57f   : > { %v2750_v59 = vpop.permute.xlu0 %2749  ;;  %4238 = vst.msk [vmem:[#allocation4 + $0x110] sm:$0xff] %vm4220_vm11, %v4147_v57 }
 0x580   : > { %v2823_v60 = vmul.f32 %v2750_v59, %v2571_v51  ;;  %v3495_v61 = vpop.permute.xlu2 %3494  ;;  %v5100_v1 = vpack.c.bf16 %v5069_v38, %v5068_v48  ;;  %v3628_v48 = vld [vmem:[#allocation2 + $0xd3] sm:$0xff] }
 0x582   : > { %2867 = vst.msk [vmem:[#allocation2 + $0xe3] sm:$0xff] %vm2833_vm4, %v2823_v60  ;;  %6076 = vmatmul.msk.bf16.gmra.mxu3 %vm2833_vm4, %v5100_v1 }
 0x584   : > { %3938 = vrot.lane.b32.xlu1 %v8181_v8, %s6179_s18  ;;  %v8252_v8 = vpop.f32.mrf.mxu3 }
 0x585   : > { %2774 = vperm.xlu2 %6142, %v2612_v40   ;;  %v3629_v40 = vld [vmem:[#allocation2 + $0xdb] sm:$0xff] }
 0x586   : > { %3720 = vrot.lane.b32.xlu0 %v3626_v0, %s6177_s13  ;;  %v3059_v37 = vpop.permute.xlu1 %3058  ;;  %v2450_v0 = vpop.f32.mrf.mxu0 }
 0x587   : > { %v4145_v6 = vpop.permute.xlu0 %4144  ;;  %3149 = vst.msk [vmem:[#allocation4 + $0x120] sm:$0xff] %vm3130_vm6, %v3059_v37  ;;  %v8303_v37 = vld [vmem:[#allocation2 + $0xda] sm:$0xff]  ;;  %v2499_v22 = vmul.f32 %v8037_v21, %v2450_v0  ;;  %v4920_v58 = vpop.f32.mrf.mxu2 }
 0x588   : > { %4237 = vst.msk [vmem:[#allocation4 + $0x100] sm:$0xff] %vm4220_vm11, %v4145_v6  ;;  %v3715_v33 = vpop.permute.xlu2 %3714 }
 0x589   : > { %v4499_v11 = vld [vmem:[#allocation2 + $0xde] sm:$0xff]  ;;  %4455 = vst.msk [vmem:[#allocation4 + $0x100] sm:$0xff] %vm4438_vm12, %v4363_v63 }
 0x58a   : > { %4535 = vst.msk [vmem:[#allocation4 + $0x178] sm:$0xff] %vm2833_vm4, %v4499_v11  ;;  %v8243_v19 = vld [vmem:[#allocation2 + $0xdc] sm:$0xff] }
 0x58b   : > { %v2906_v24 = vld [vmem:[#allocation2 + $0xe0] sm:$0xff] }
 0x58c   : > { %4158 = vrot.lane.b32.xlu1 %v8243_v19, %s6181_s19  ;;  %2942 = vst.msk [vmem:[#allocation4 + $0x1c0] sm:$0xff] %vm2833_vm4, %v2906_v24  ;;  %v4281_v63 = vld [vmem:[#allocation2 + $0xdd] sm:$0xff]  ;;  %v8270_v18 = vpop.f32.mrf.mxu3 }
 0x58d   : > { %3940 = vrot.lane.b32.xlu2 %v8195_v9, %s6179_s18 }
 0x58e   : > { %2779 = vperm.xlu0 %6140, %v2613_v15   ;;  %v3279_v56 = vpop.permute.xlu1 %3278  ;;  %v8311_v15 = vld [vmem:[%s9348_s10] ss:$0 sm:$0xff] }
 0x58f   : > { %v4365_v4 = vpop.permute.xlu0 %4364  ;;  %3368 = vst.msk [vmem:[#allocation4 + $0x130] sm:$0xff] %vm3348_vm7, %v3279_v56 }
 0x590   : > { %v3931_v14 = vpop.permute.xlu2 %3930  ;;  %4456 = vst.msk [vmem:[#allocation4 + $0x110] sm:$0xff] %vm4438_vm12, %v4365_v4  ;;  %v4580_v30 = vld [vmem:[#allocation4 + $0x100] sm:$0xff] }
 0x591   : > { %v4595_v23 = vld [vmem:[#allocation4 + $0x178] sm:$0xff] }
 0x592   : > { %v4643_v53 = vpack.c.bf16 %v4595_v23, %v4593_v13  ;;  %v2614_v13 = vld [vmem:[%s9339_s1 + $0x108] sm:$0xff]  ;;  %v2539_v23 = vadd.f32 %v8046_v46, %v2499_v22  ;;  %v8395_v22 = vld [vmem:[%s9345_s7] ss:$0 sm:$0xff] }
 0x594   : > { %6061 = vmatmul.msk.bf16.gmra.mxu2 %vm2833_vm4, %v4643_v53  ;;  %3070 = vrot.lane.b32.xlu1 %v2974_v10, %s6170_s30 }
 0x595   : > { %4374 = vrot.lane.b32.xlu2 %v4280_v2, %s6180_s26  ;;  %v5190_v51 = vpop.f32.mrf.mxu3 }
 0x596   : > { %4156 = vrot.lane.b32.xlu0 %v8256_v47, %s6181_s19  ;;  %v3713_v54 = vpop.permute.xlu1 %3712  ;;  %v5281_v53 = vmul.f32 %v8311_v15, %v5190_v51 }
 0x597   : > { %v4816_v62 = vpop.f32.mrf.mxu1  ;;  %v3277_v12 = vpop.permute.xlu0 %3276  ;;  %v4582_v5 = vld [vmem:[#allocation4 + $0x110] sm:$0xff] }
 0x598   : > { %3367 = vst.msk [vmem:[#allocation4 + $0x120] sm:$0xff] %vm3348_vm7, %v3277_v12  ;;  %v8263_v9 = vpop.permute.xlu2 %4150  ;;  %v4636_v28 = vpack.c.bf16 %v4582_v5, %v4580_v30  ;;  %v4916_v26 = vadd.f32 %v4915_v31, %v4816_v62  ;;  %v5280_v62 = vmul.f32 %v8311_v15, %v8270_v18  ;;  %v2575_v12 = vmax.f32 %v2539_v23, 0.0 }
 0x599   : > { %3585 = vst.msk [vmem:[#allocation4 + $0x120] sm:$0xff] %vm3566_vm8, %v3495_v61  ;;  %v5321_v30 = vadd.f32 %v8328_v32, %v5281_v53 }
 0x59a   : > { %3803 = vst.msk [vmem:[#allocation4 + $0x120] sm:$0xff] %vm3784_vm9, %v3713_v54  ;;  %4830 = vmatmul.bf16.gmra.mxu1 %v4636_v28  ;;  %v4994_v7 = vmul.f32 %v7957_v29, %v4916_v26 }
 0x59b   : > { %4021 = vst.msk [vmem:[#allocation4 + $0x120] sm:$0xff] %vm4002_vm10, %v3931_v14 }
 0x59c   : > { %3290 = vrot.lane.b32.xlu1 %v8219_v50, %s6174_s16  ;;  %v5034_v27 = vadd.f32 %v7965_v20, %v4994_v7  ;;  %v8286_v50 = vld [vmem:[#allocation2 + $0xd2] sm:$0xff] }
 0x59d   : > { %3072 = vrot.lane.b32.xlu2 %v2975_v16, %s6170_s30 }
 0x59e   : > { %4376 = vrot.lane.b32.xlu0 %v4281_v63, %s6180_s26  ;;  %v2760_v35 = vpop.permute.xlu1 %2759  ;;  %v5070_v57 = vmax.f32 %v5034_v27, 0.0  ;;  %v8352_v63 = vadd.f32 %v8328_v32, %v5280_v62 }
 0x59f   : > { %v4818_v39 = vpop.f32.mrf.mxu1  ;;  %v3497_v41 = vpop.permute.xlu0 %3496  ;;  %v2825_v42 = vmul.f32 %v2760_v35, %v2573_v25 }
 0x5a0   : > { %v4918_v43 = vadd.f32 %v4917_v36, %v4818_v39  ;;  %3586 = vst.msk [vmem:[#allocation4 + $0x130] sm:$0xff] %vm3566_vm8, %v3497_v41  ;;  %v3063_v34 = vpop.permute.xlu2 %3062  ;;  %v5357_v36 = vmax.f32 %v5321_v30, 0.0 }
 0x5a1   : > { %3804 = vst.msk [vmem:[#allocation4 + $0x130] sm:$0xff] %vm3784_vm9, %v3715_v33  ;;  %v5192_v33 = vpop.f32.mrf.mxu3 }
 0x5a2   : > { %v4995_v44 = vmul.f32 %v7957_v29, %v4918_v43  ;;  %2869 = vst.msk [vmem:[#allocation2 + $0xf3] sm:$0xff] %vm2833_vm4, %v2825_v42  ;;  %v2572_v29 = vmax.f32 %v2536_v45, 0.0  ;;  %v5282_v14 = vmul.f32 %v8311_v15, %v5192_v33 }
 0x5a3   : > { %3151 = vst.msk [vmem:[#allocation4 + $0x140] sm:$0xff] %vm3130_vm6, %v3063_v34  ;;  %v5356_v34 = vmax.f32 %v8352_v63, 0.0 }
 0x5a4   : > { %v5035_v3 = vadd.f32 %v7965_v20, %v4995_v44  ;;  %3724 = vrot.lane.b32.xlu1 %v3628_v48, %s6177_s13  ;;  %v8340_v17 = vadd.f32 %v8328_v32, %v5282_v14  ;;  %v8370_v44 = vrot.slane %v5357_v36, 1 }
 0x5a5   : > { %3506 = vrot.lane.b32.xlu2 %v8286_v50, %s6178_s14 }
 0x5a6   : > { %3288 = vrot.lane.b32.xlu0 %v8204_v55, %s6174_s16  ;;  %v4149_v38 = vpop.permute.xlu1 %4148  ;;  %v5071_v59 = vmax.f32 %v5035_v3, 0.0  ;;  %v2615_v55 = vld [vmem:[%s9339_s1 + $0x110] sm:$0xff]  ;;  %v5358_v26 = vmax.f32 %v8340_v17, 0.0 }
 0x5a7   : > { %v2755_v60 = vpop.permute.xlu0 %2754  ;;  %4239 = vst.msk [vmem:[#allocation4 + $0x120] sm:$0xff] %vm4220_vm11, %v4149_v38 }
 0x5a8   : > { %v2824_v61 = vmul.f32 %v2755_v60, %v2572_v29  ;;  %v8295_v1 = vpop.permute.xlu2 %3282  ;;  %v5101_v20 = vpack.c.bf16 %v5071_v59, %v5070_v57  ;;  %v5433_v41 = vrot.slane %v5358_v26, 1  ;;  %v5429_v60 = vrot.slane %v5356_v34, 1 }
 0x5aa   : > { %2868 = vst.msk [vmem:[#allocation2 + $0xeb] sm:$0xff] %vm2833_vm4, %v2824_v61  ;;  %6077 = vmatmul.msk.bf16.gmra.mxu3 %vm2833_vm4, %v5101_v20  ;;  %v5434_v59 = vsel %vm5427_vm13, %v8370_v44, %v5433_v41  ;;  %v2976_v61 = vld [vmem:[#allocation2 + $0xd1] sm:$0xff] }
 0x5ab   : > { %v8390_v0 = vmax.f32 %v5357_v36, %v5434_v59 }
 0x5ac   : > { %2789 = vperm.xlu1 %6141, %v2615_v55  }
 0x5ad   : > { %3726 = vrot.lane.b32.xlu2 %v3629_v40, %s6177_s13  ;;  %v5606_v62 = vrot.slane %v8390_v0, 2 }
 0x5ae   : > { %3508 = vrot.lane.b32.xlu0 %v8303_v37, %s6178_s14  ;;  %v4369_v6 = vpop.permute.xlu1 %4368 }
 0x5b0   : > { %v3933_v11 = vpop.permute.xlu0 %3932  ;;  %v8314_v24 = vpop.permute.xlu2 %3716 }
 0x5b1   : > { %4022 = vst.msk [vmem:[#allocation4 + $0x130] sm:$0xff] %vm4002_vm10, %v3933_v11  ;;  %v4500_v56 = vld [vmem:[#allocation2 + $0xe6] sm:$0xff]  ;;  %v4501_v4 = vld [vmem:[#allocation2 + $0xee] sm:$0xff] }
 0x5b2   : > { %4240 = vst.msk [vmem:[#allocation4 + $0x130] sm:$0xff] %vm4220_vm11, %v8263_v9  ;;  %v8334_v2 = vld [vmem:[#allocation2 + $0xe4] sm:$0xff]  ;;  %v2908_v10 = vld [vmem:[#allocation2 + $0xf0] sm:$0xff]  ;;  %v5279_v9 = vmul.f32 %v8311_v15, %v8252_v8  ;;  %v2498_v8 = vmul.f32 %v8037_v21, %v8280_v49 }
 0x5b3   : > { %4536 = vst.msk [vmem:[#allocation4 + $0x188] sm:$0xff] %vm2833_vm4, %v4500_v56  ;;  %v2907_v31 = vld [vmem:[#allocation2 + $0xe8] sm:$0xff] }
 0x5b4   : > { %4537 = vst.msk [vmem:[#allocation4 + $0x198] sm:$0xff] %vm2833_vm4, %v4501_v4  ;;  %4160 = vrot.lane.b32.xlu1 %v8334_v2, %s6181_s19  ;;  %v8355_v25 = vld [vmem:[#allocation2 + $0xec] sm:$0xff]  ;;  %v8362_v7 = vadd.f32 %v8328_v32, %v5279_v9  ;;  %v2538_v51 = vadd.f32 %v8046_v46, %v2498_v8 }
 0x5b5   : > { %4458 = vst.msk [vmem:[#allocation4 + $0x130] sm:$0xff] %vm4438_vm12, %v4369_v6  ;;  %3942 = vrot.lane.b32.xlu2 %v8256_v47, %s6179_s18  ;;  %v4283_v39 = vld [vmem:[#allocation2 + $0xed] sm:$0xff]  ;;  %v4282_v20 = vld [vmem:[#allocation2 + $0xe5] sm:$0xff]  ;;  %v4922_v6 = vpop.f32.mrf.mxu2 }
 0x5b6   : > { %2784 = vperm.xlu0 %6140, %v2614_v13   ;;  %2943 = vst.msk [vmem:[#allocation4 + $0x1d0] sm:$0xff] %vm2833_vm4, %v2907_v31  ;;  %v3281_v54 = vpop.permute.xlu1 %3280  ;;  %v5355_v57 = vmax.f32 %v8362_v7, 0.0  ;;  %v2574_v40 = vmax.f32 %v2538_v51, 0.0  ;;  %v8469_v51 = vld [vmem:[#allocation2 + $0xe2] sm:$0xff] }
 0x5b7   : > { %2944 = vst.msk [vmem:[#allocation4 + $0x1e0] sm:$0xff] %vm2833_vm4, %v2908_v10 }
 0x5b8   : > { %v4367_v47 = vpop.permute.xlu0 %4366  ;;  %3369 = vst.msk [vmem:[#allocation4 + $0x140] sm:$0xff] %vm3348_vm7, %v3281_v54  ;;  %v2770_v5 = vpop.permute.xlu2 %2769  ;;  %v5428_v55 = vrot.slane %v5355_v57, 1 }
 0x5b9   : > { %4457 = vst.msk [vmem:[#allocation4 + $0x120] sm:$0xff] %vm4438_vm12, %v4367_v47  ;;  %v2827_v28 = vmul.f32 %v2770_v5, %v2575_v12  ;;  %v8418_v47 = vld [vmem:[%s9346_s8] ss:$0 sm:$0xff] }
 0x5ba   : > { %v4597_v52 = vld [vmem:[#allocation4 + $0x188] sm:$0xff]  ;;  %v5430_v31 = vsel %vm5427_vm13, %v5428_v55, %v5429_v60  ;;  %v8493_v55 = vld [vmem:[%s9343_s5] ss:$0 sm:$0xff] }
 0x5bb   : > { %v4599_v16 = vld [vmem:[#allocation4 + $0x198] sm:$0xff]  ;;  %2871 = vst.msk [vmem:[#allocation2 + $0x103] sm:$0xff] %vm2833_vm4, %v2827_v28  ;;  %v8424_v9 = vmax.f32 %v5355_v57, %v5430_v31 }
 0x5bc   : > { %v4645_v18 = vpack.c.bf16 %v4599_v16, %v4597_v52  ;;  %4380 = vrot.lane.b32.xlu1 %v4283_v39, %s6180_s26  ;;  %v4586_v27 = vld [vmem:[#allocation4 + $0x130] sm:$0xff] }
 0x5bd   : > { %4162 = vrot.lane.b32.xlu2 %v8355_v25, %s6181_s19  ;;  %v5195_v35 = vpop.f32.mrf.mxu3 }
 0x5be   : > { %6062 = vmatmul.msk.bf16.gmra.mxu2 %vm2833_vm4, %v4645_v18  ;;  %3944 = vrot.lane.b32.xlu0 %v8243_v19, %s6179_s18  ;;  %v5283_v42 = vmul.f32 %v8311_v15, %v5195_v35  ;;  %v3501_v43 = vpop.permute.xlu1 %3500  ;;  %v8439_v18 = vld [vmem:[#allocation2 + $0xea] sm:$0xff] }
 0x5bf   : > { %v4821_v45 = vpop.f32.mrf.mxu1 }
 0x5c0   : > { %v3065_v21 = vpop.permute.xlu0 %3064  ;;  %v4584_v49 = vld [vmem:[#allocation4 + $0x120] sm:$0xff]  ;;  %v8373_v3 = vadd.f32 %v8328_v32, %v5283_v42  ;;  %v8376_v19 = vpop.permute.xlu2 %4152  ;;  %v4921_v38 = vadd.f32 %v4920_v58, %v4821_v45 }
 0x5c1   : > { %3152 = vst.msk [vmem:[#allocation4 + $0x150] sm:$0xff] %vm3130_vm6, %v3065_v21  ;;  %v4638_v48 = vpack.c.bf16 %v4586_v27, %v4584_v49  ;;  %v2616_v27 = vld [vmem:[%s9339_s1 + $0x118] sm:$0x3f] }
 0x5c2   : > { %3370 = vst.msk [vmem:[#allocation4 + $0x150] sm:$0xff] %vm3348_vm7, %v8295_v1  ;;  %v5359_v29 = vmax.f32 %v8373_v3, 0.0  ;;  %v4996_v33 = vmul.f32 %v8395_v22, %v4921_v38  ;;  %v8481_v38 = vld [vmem:[%s9342_s4] ss:$0 sm:$0xff] }
 0x5c3   : > { %3588 = vst.msk [vmem:[#allocation4 + $0x150] sm:$0xff] %vm3566_vm8, %v3501_v43  ;;  %4835 = vmatmul.bf16.gmra.mxu1 %v4638_v48  ;;  %v2452_v48 = vpop.f32.mrf.mxu0 }
 0x5c4   : > { %v5435_v46 = vrot.slane %v5359_v29, 1  ;;  %3292 = vrot.lane.b32.xlu1 %v8286_v50, %s6174_s16  ;;  %v5036_v12 = vadd.f32 %v8418_v47, %v4996_v33  ;;  %v2500_v59 = vmul.f32 %v8481_v38, %v2452_v48 }
 0x5c5   : > { %3074 = vrot.lane.b32.xlu2 %v2976_v61, %s6170_s30  ;;  %v5197_v1 = vpop.f32.mrf.mxu3 }
 0x5c6   : > { %4378 = vrot.lane.b32.xlu0 %v4282_v20, %s6180_s26  ;;  %v5284_v11 = vmul.f32 %v8311_v15, %v5197_v1  ;;  %v2765_v56 = vpop.permute.xlu1 %2764  ;;  %v5436_v4 = vsel %vm5427_vm13, %v5433_v41, %v5435_v46  ;;  %v5072_v8 = vmax.f32 %v5036_v12, 0.0  ;;  %v2540_v1 = vadd.f32 %v8493_v55, %v2500_v59 }
 0x5c7   : > { %v4823_v14 = vpop.f32.mrf.mxu1  ;;  %v2826_v23 = vmul.f32 %v2765_v56, %v2574_v40  ;;  %v8402_v53 = vmax.f32 %v5358_v26, %v5436_v4  ;;  %v2977_v26 = vld [vmem:[#allocation2 + $0xd9] sm:$0xff] }
 0x5c8   : > { %v3499_v13 = vpop.permute.xlu0 %3498  ;;  %v8406_v10 = vadd.f32 %v8328_v32, %v5284_v11  ;;  %v4923_v17 = vadd.f32 %v4922_v6, %v4823_v14  ;;  %v8409_v54 = vpop.permute.xlu2 %4372  ;;  %v3631_v6 = vld [vmem:[#allocation2 + $0xeb] sm:$0xff]  ;;  %v2576_v4 = vmax.f32 %v2540_v1, 0.0 }
 0x5c9   : > { %3587 = vst.msk [vmem:[#allocation4 + $0x140] sm:$0xff] %vm3566_vm8, %v3499_v13  ;;  %v5607_v50 = vrot.slane %v8402_v53, 2 }
 0x5ca   : > { %3805 = vst.msk [vmem:[#allocation4 + $0x140] sm:$0xff] %vm3784_vm9, %v8314_v24  ;;  %v5360_v30 = vmax.f32 %v8406_v10, 0.0  ;;  %v4997_v5 = vmul.f32 %v8395_v22, %v4923_v17  ;;  %v2978_v10 = vld [vmem:[#allocation2 + $0xe1] sm:$0xff] }
 0x5cb   : > { %2870 = vst.msk [vmem:[#allocation2 + $0xfb] sm:$0xff] %vm2833_vm4, %v2826_v23  ;;  %v8427_v24 = vsel %vm5605_vm14, %v5606_v62, %v5607_v50 }
 0x5cc   : > { %v8431_v28 = vrot.slane %v5360_v30, 1  ;;  %v5037_v52 = vadd.f32 %v8418_v47, %v4997_v5  ;;  %3512 = vrot.lane.b32.xlu1 %v8439_v18, %s6178_s14 }
 0x5cd   : > { %3294 = vrot.lane.b32.xlu2 %v8303_v37, %s6174_s16  ;;  %v5432_v37 = vsel %vm5427_vm13, %v5429_v60, %v8370_v44  ;;  %v3630_v44 = vld [vmem:[#allocation2 + $0xe3] sm:$0xff] }
 0x5ce   : > { %3076 = vrot.lane.b32.xlu0 %v2977_v26, %s6170_s30  ;;  %v5073_v58 = vmax.f32 %v5037_v52, 0.0  ;;  %v3937_v36 = vpop.permute.xlu1 %3936  ;;  %v5438_v7 = vsel %vm5427_vm13, %v5435_v46, %v8431_v28  ;;  %v8458_v49 = vmax.f32 %v5356_v34, %v5432_v37  ;;  %v4925_v52 = vpop.f32.mrf.mxu2 }
 0x5cf   : > { %v8445_v39 = vmax.f32 %v5359_v29, %v5438_v7 }
 0x5d0   : > { %v3719_v35 = vpop.permute.xlu0 %3718  ;;  %v8450_v41 = vpop.permute.xlu2 %3284  ;;  %v5102_v42 = vpack.c.bf16 %v5073_v58, %v5072_v8 }
 0x5d1   : > { %3806 = vst.msk [vmem:[#allocation4 + $0x150] sm:$0xff] %vm3784_vm9, %v3719_v35  ;;  %v5609_v21 = vrot.slane %v8445_v39, 2 }
 0x5d2   : > { %v4502_v43 = vld [vmem:[#allocation2 + $0xf6] sm:$0xff]  ;;  %v4503_v45 = vld [vmem:[#allocation2 + $0xfe] sm:$0xff]  ;;  %4024 = vst.msk [vmem:[#allocation4 + $0x150] sm:$0xff] %vm4002_vm10, %v3937_v36  ;;  %6078 = vmatmul.msk.bf16.gmra.mxu3 %vm2833_vm4, %v5102_v42 }
 0x5d3   : > { %4538 = vst.msk [vmem:[#allocation4 + $0x1a8] sm:$0xff] %vm2833_vm4, %v4502_v43  ;;  %v8467_v3 = vsel %vm5605_vm14, %v5607_v50, %v5609_v21  ;;  %v2909_v63 = vld [vmem:[#allocation2 + $0xf8] sm:$0xff]  ;;  %v2910_v57 = vld [vmem:[#allocation2 + $0x100] sm:$0xff] }
 0x5d4   : > { %4539 = vst.msk [vmem:[#allocation4 + $0x1b8] sm:$0xff] %vm2833_vm4, %v4503_v45  ;;  %v5708_v34 = vmax.f32 %v8458_v49, %v8467_v3  ;;  %2794 = vperm.xlu1 %6141, %v2616_v27   ;;  %v8511_v17 = vld [vmem:[#allocation2 + $0xfc] sm:$0xff] }
 0x5d5   : > { %3728 = vrot.lane.b32.xlu2 %v3630_v44, %s6177_s13  ;;  %2945 = vst.msk [vmem:[#allocation4 + $0x1f0] sm:$0xff] %vm2833_vm4, %v2909_v63  ;;  %v4285_v62 = vld [vmem:[#allocation2 + $0xfd] sm:$0xff]  ;;  %v4284_v27 = vld [vmem:[#allocation2 + $0xf5] sm:$0xff] }
 0x5d6   : > { %3510 = vrot.lane.b32.xlu0 %v8469_v51, %s6178_s14  ;;  %v4371_v29 = vpop.permute.xlu1 %4370  ;;  %2946 = vst.msk [vmem:[#allocation4 + $0x200] sm:$0xff] %vm2833_vm4, %v2910_v57 }
 0x5d8   : > { %v3935_v60 = vpop.permute.xlu0 %3934  ;;  %v8485_v61 = vpop.permute.xlu2 %3504 }
 0x5d9   : > { %4023 = vst.msk [vmem:[#allocation4 + $0x140] sm:$0xff] %vm4002_vm10, %v3935_v60 }
 0x5da   : > { %4241 = vst.msk [vmem:[#allocation4 + $0x140] sm:$0xff] %vm4220_vm11, %v8376_v19  ;;  %v4601_v46 = vld [vmem:[#allocation4 + $0x1a8] sm:$0xff] }
 0x5db   : > { %4459 = vst.msk [vmem:[#allocation4 + $0x140] sm:$0xff] %vm4438_vm12, %v4371_v29  ;;  %v4603_v20 = vld [vmem:[#allocation4 + $0x1b8] sm:$0xff]  ;;  %v8500_v19 = vld [vmem:[#allocation2 + $0xf4] sm:$0xff] }
 0x5dc   : > { %v4647_v40 = vpack.c.bf16 %v4603_v20, %v4601_v46  ;;  %4164 = vrot.lane.b32.xlu1 %v8500_v19, %s6181_s19  ;;  %v4927_v20 = vpop.f32.mrf.mxu2 }
 0x5dd   : > { %3946 = vrot.lane.b32.xlu2 %v8334_v2, %s6179_s18 }
 0x5de   : > { %6063 = vmatmul.msk.bf16.gmra.mxu2 %vm2833_vm4, %v4647_v40  ;;  %3730 = vrot.lane.b32.xlu0 %v3631_v6, %s6177_s13  ;;  %v5200_v33 = vpop.f32.mrf.mxu3  ;;  %v3069_v11 = vpop.permute.xlu1 %3068 }
 0x5df   : > { %v5285_v56 = vmul.f32 %v8311_v15, %v5200_v33  ;;  %3154 = vst.msk [vmem:[#allocation4 + $0x170] sm:$0xff] %vm3130_vm6, %v3069_v11  ;;  %v2455_v6 = vpop.f32.mrf.mxu0 }
 0x5e0   : > { %v4155_v14 = vpop.permute.xlu0 %4154  ;;  %v2775_v13 = vpop.permute.xlu2 %2774 }
 0x5e1   : > { %4242 = vst.msk [vmem:[#allocation4 + $0x150] sm:$0xff] %vm4220_vm11, %v4155_v14  ;;  %v5325_v2 = vadd.f32 %v8328_v32, %v5285_v56  ;;  %v2828_v23 = vmul.f32 %v2775_v13, %v2576_v4  ;;  %v2979_v56 = vld [vmem:[#allocation2 + $0xe9] sm:$0xff]  ;;  %v8572_v4 = vld [vmem:[#allocation2 + $0xfa] sm:$0xff]  ;;  %v2501_v13 = vmul.f32 %v8481_v38, %v2455_v6 }
 0x5e2   : > { %4460 = vst.msk [vmem:[#allocation4 + $0x150] sm:$0xff] %vm4438_vm12, %v8409_v54  ;;  %v4588_v8 = vld [vmem:[#allocation4 + $0x140] sm:$0xff] }
 0x5e3   : > { %v5361_v31 = vmax.f32 %v5325_v2, 0.0  ;;  %2872 = vst.msk [vmem:[#allocation2 + $0x10b] sm:$0xff] %vm2833_vm4, %v2828_v23 }
 0x5e4   : > { %4384 = vrot.lane.b32.xlu1 %v4285_v62, %s6180_s26 }
 0x5e5   : > { %4166 = vrot.lane.b32.xlu2 %v8511_v17, %s6181_s19  ;;  %v5439_v50 = vrot.slane %v5361_v31, 1 }
 0x5e6   : > { %3948 = vrot.lane.b32.xlu0 %v8355_v25, %s6179_s18  ;;  %v5202_v12 = vpop.f32.mrf.mxu3  ;;  %v3503_v5 = vpop.permute.xlu1 %3502 }
 0x5e7   : > { %v5286_v54 = vmul.f32 %v8311_v15, %v5202_v12  ;;  %v5440_v58 = vsel %vm5427_vm13, %v8431_v28, %v5439_v50  ;;  %v2541_v12 = vadd.f32 %v8493_v55, %v2501_v13 }
 0x5e8   : > { %v3067_v26 = vpop.permute.xlu0 %3066  ;;  %v3941_v36 = vpop.permute.xlu2 %3940  ;;  %v8524_v25 = vmax.f32 %v5360_v30, %v5440_v58 }
 0x5e9   : > { %3153 = vst.msk [vmem:[#allocation4 + $0x160] sm:$0xff] %vm3130_vm6, %v3067_v26  ;;  %v4590_v7 = vld [vmem:[#allocation4 + $0x150] sm:$0xff]  ;;  %v8527_v35 = vadd.f32 %v8328_v32, %v5286_v54  ;;  %v4826_v37 = vpop.f32.mrf.mxu1  ;;  %v2577_v26 = vmax.f32 %v2541_v12, 0.0 }
 0x5ea   : > { %3371 = vst.msk [vmem:[#allocation4 + $0x160] sm:$0xff] %vm3348_vm7, %v8450_v41  ;;  %v4640_v42 = vpack.c.bf16 %v4590_v7, %v4588_v8  ;;  %v4504_v43 = vld [vmem:[#allocation2 + $0x106] sm:$0xff]  ;;  %v5611_v28 = vrot.slane %v8524_v25, 2  ;;  %v4926_v30 = vadd.f32 %v4925_v52, %v4826_v37  ;;  %v3632_v52 = vld [vmem:[#allocation2 + $0xf3] sm:$0xff]  ;;  %v3633_v37 = vld [vmem:[#allocation2 + $0xfb] sm:$0xff] }
 0x5eb   : > { %3589 = vst.msk [vmem:[#allocation4 + $0x160] sm:$0xff] %vm3566_vm8, %v3503_v5  ;;  %v5362_v45 = vmax.f32 %v8527_v35, 0.0  ;;  %v2911_v44 = vld [vmem:[#allocation2 + $0x108] sm:$0xff]  ;;  %v8585_v54 = vld [vmem:[#allocation2 + $0xf2] sm:$0xff] }
 0x5ec   : > { %4540 = vst.msk [vmem:[#allocation4 + $0x1c8] sm:$0xff] %vm2833_vm4, %v4504_v43  ;;  %4840 = vmatmul.bf16.gmra.mxu1 %v4640_v42  ;;  %v8539_v41 = vsel %vm5605_vm14, %v5609_v21, %v5611_v28  ;;  %3296 = vrot.lane.b32.xlu1 %v8469_v51, %s6174_s16  ;;  %v4998_v59 = vmul.f32 %v8395_v22, %v4926_v30 }
 0x5ed   : > { %3078 = vrot.lane.b32.xlu2 %v2978_v10, %s6170_s30  ;;  %v8543_v48 = vrot.slane %v5362_v45, 1  ;;  %2947 = vst.msk [vmem:[#allocation4 + $0x210] sm:$0xff] %vm2833_vm4, %v2911_v44  ;;  %v5709_v63 = vmax.f32 %v8390_v0, %v8539_v41 }
 0x5ee   : > { %4382 = vrot.lane.b32.xlu0 %v4284_v27, %s6180_s26  ;;  %v3723_v57 = vpop.permute.xlu1 %3722  ;;  %v5038_v33 = vadd.f32 %v8418_v47, %v4998_v59 }
 0x5ef   : > { %v5442_v21 = vsel %vm5427_vm13, %v5439_v50, %v8543_v48 }
 0x5f0   : > { %v3287_v29 = vpop.permute.xlu0 %3286  ;;  %v4375_v60 = vpop.permute.xlu2 %4374  ;;  %v8555_v46 = vmax.f32 %v5361_v31, %v5442_v21  ;;  %v5074_v31 = vmax.f32 %v5038_v33, 0.0 }
 0x5f1   : > { %3372 = vst.msk [vmem:[#allocation4 + $0x170] sm:$0xff] %vm3348_vm7, %v3287_v29  ;;  %v4828_v1 = vpop.f32.mrf.mxu1  ;;  %v4286_v29 = vld [vmem:[#allocation2 + $0x105] sm:$0xff] }
 0x5f2   : > { %3590 = vst.msk [vmem:[#allocation4 + $0x170] sm:$0xff] %vm3566_vm8, %v8485_v61  ;;  %v4928_v51 = vadd.f32 %v4927_v20, %v4828_v1  ;;  %v5613_v40 = vrot.slane %v8555_v46, 2  ;;  %v8614_v20 = vld [vmem:[#allocation2 + $0x104] sm:$0xff] }
 0x5f3   : > { %3808 = vst.msk [vmem:[#allocation4 + $0x170] sm:$0xff] %vm3784_vm9, %v3723_v57  ;;  %v8607_v57 = vpop.f32.mrf.mxu0 }
 0x5f4   : > { %4026 = vst.msk [vmem:[#allocation4 + $0x170] sm:$0xff] %vm4002_vm10, %v3941_v36  ;;  %v4999_v11 = vmul.f32 %v8395_v22, %v4928_v51  ;;  %v8569_v61 = vsel %vm5605_vm14, %v5611_v28, %v5613_v40  ;;  %3516 = vrot.lane.b32.xlu1 %v8572_v4, %s6178_s14 }
 0x5f5   : > { %3298 = vrot.lane.b32.xlu2 %v8439_v18, %s6174_s16  ;;  %v5710_v14 = vmax.f32 %v8402_v53, %v8569_v61  ;;  %v9352_v61 = vmax.f32 %v8424_v9, %v8427_v24 }
 0x5f6   : > { %3080 = vrot.lane.b32.xlu0 %v2979_v56, %s6170_s30  ;;  %v5039_v2 = vadd.f32 %v8418_v47, %v4999_v11  ;;  %v3939_v18 = vpop.permute.xlu1 %3938 }
 0x5f8   : > { %v3721_v23 = vpop.permute.xlu0 %3720  ;;  %v5075_v50 = vmax.f32 %v5039_v2, 0.0  ;;  %v3073_v62 = vpop.permute.xlu2 %3072  ;;  %v2980_v2 = vld [vmem:[#allocation2 + $0xf1] sm:$0xff] }
 0x5f9   : > { %3807 = vst.msk [vmem:[#allocation4 + $0x160] sm:$0xff] %vm3784_vm9, %v3721_v23 }
 0x5fa   : > { %4025 = vst.msk [vmem:[#allocation4 + $0x160] sm:$0xff] %vm4002_vm10, %v3939_v18  ;;  %v5103_v5 = vpack.c.bf16 %v5075_v50, %v5074_v31  ;;  %v4605_v18 = vld [vmem:[#allocation4 + $0x1c8] sm:$0xff] }
 0x5fb   : > { %3156 = vst.msk [vmem:[#allocation4 + $0x190] sm:$0xff] %vm3130_vm6, %v3073_v62  ;;  %v2460_v62 = vpop.f32.mrf.mxu0 }
 0x5fc   : > { %6079 = vmatmul.msk.bf16.gmra.mxu3 %vm2833_vm4, %v5103_v5  ;;  %3950 = vrot.lane.b32.xlu1 %v8500_v19, %s6179_s18 }
 0x5fd   : > { %3732 = vrot.lane.b32.xlu2 %v3632_v52, %s6177_s13 }
 0x5fe   : > { %3514 = vrot.lane.b32.xlu0 %v8585_v54, %s6178_s14  ;;  %v4159_v58 = vpop.permute.xlu1 %4158 }
 0x5ff   : > { %4244 = vst.msk [vmem:[#allocation4 + $0x170] sm:$0xff] %vm4220_vm11, %v4159_v58  ;;  %v2503_v58 = vmul.f32 %v8481_v38, %v2460_v62 }
 0x600   : > { %v2780_v36 = vpop.permute.xlu0 %2779  ;;  %v8593_v7 = vpop.permute.xlu2 %3506 }
 0x601   : > { %v2829_v8 = vmul.f32 %v2780_v36, %v2577_v26  ;;  %v4930_v26 = vpop.f32.mrf.mxu2 }
 0x603   : > { %2873 = vst.msk [vmem:[#allocation2 + $0x113] sm:$0xff] %vm2833_vm4, %v2829_v8 }
 0x605   : > { %3952 = vrot.lane.b32.xlu2 %v8511_v17, %s6179_s18  ;;  %v5205_v42 = vpop.f32.mrf.mxu3 }
 0x606   : > { %3734 = vrot.lane.b32.xlu0 %v3633_v37, %s6177_s13  ;;  %v5287_v43 = vmul.f32 %v8311_v15, %v5205_v42  ;;  %v3071_v28 = vpop.permute.xlu1 %3070 }
 0x607   : > { %3155 = vst.msk [vmem:[#allocation4 + $0x180] sm:$0xff] %vm3130_vm6, %v3071_v28 }
 0x608   : > { %v4157_v19 = vpop.permute.xlu0 %4156  ;;  %v5327_v10 = vadd.f32 %v8328_v32, %v5287_v43  ;;  %v8602_v30 = vpop.permute.xlu2 %3726 }
 0x609   : > { %4243 = vst.msk [vmem:[#allocation4 + $0x160] sm:$0xff] %vm4220_vm11, %v4157_v19 }
 0x60a   : > { %v4505_v27 = vld [vmem:[#allocation2 + $0x10e] sm:$0xff]  ;;  %4461 = vst.msk [vmem:[#allocation4 + $0x160] sm:$0xff] %vm4438_vm12, %v4375_v60  ;;  %v5363_v17 = vmax.f32 %v5327_v10, 0.0 }
 0x60b   : > { %v8605_v44 = vld [vmem:[#allocation2 + $0x10c] sm:$0xff]  ;;  %4541 = vst.msk [vmem:[#allocation4 + $0x1d8] sm:$0xff] %vm2833_vm4, %v4505_v27 }
 0x60c   : > { %4170 = vrot.lane.b32.xlu1 %v8605_v44, %s6181_s19  ;;  %v2912_v21 = vld [vmem:[#allocation2 + $0x110] sm:$0xff]  ;;  %v5443_v59 = vrot.slane %v5363_v17, 1 }
 0x60d   : > { %4386 = vrot.lane.b32.xlu2 %v4286_v29, %s6180_s26  ;;  %2948 = vst.msk [vmem:[#allocation4 + $0x220] sm:$0xff] %vm2833_vm4, %v2912_v21  ;;  %v5207_v60 = vpop.f32.mrf.mxu3  ;;  %v4287_v5 = vld [vmem:[#allocation2 + $0x10d] sm:$0xff]  ;;  %v8663_v21 = vld [vmem:[#allocation2 + $0x102] sm:$0xff] }
 0x60e   : > { %4168 = vrot.lane.b32.xlu0 %v8614_v20, %s6181_s19  ;;  %v5288_v1 = vmul.f32 %v8311_v15, %v5207_v60  ;;  %v5444_v51 = vsel %vm5427_vm13, %v8543_v48, %v5443_v59  ;;  %v3291_v33 = vpop.permute.xlu1 %3290  ;;  %v2502_v60 = vmul.f32 %v8481_v38, %v8607_v57 }
 0x60f   : > { %v8624_v11 = vmax.f32 %v5362_v45, %v5444_v51  ;;  %3374 = vst.msk [vmem:[#allocation4 + $0x190] sm:$0xff] %vm3348_vm7, %v3291_v33  ;;  %v2981_v45 = vld [vmem:[#allocation2 + $0xf9] sm:$0xff] }
 0x610   : > { %v4377_v6 = vpop.permute.xlu0 %4376  ;;  %v8627_v56 = vadd.f32 %v8328_v32, %v5288_v1  ;;  %v3943_v13 = vpop.permute.xlu2 %3942  ;;  %v2542_v57 = vadd.f32 %v8493_v55, %v2502_v60 }
 0x611   : > { %4462 = vst.msk [vmem:[#allocation4 + $0x170] sm:$0xff] %vm4438_vm12, %v4377_v6  ;;  %v5615_v31 = vrot.slane %v8624_v11, 2  ;;  %v4592_v8 = vld [vmem:[#allocation4 + $0x160] sm:$0xff]  ;;  %v4932_v1 = vpop.f32.mrf.mxu2 }
 0x612   : > { %v4607_v23 = vld [vmem:[#allocation4 + $0x1d8] sm:$0xff]  ;;  %v5364_v48 = vmax.f32 %v8627_v56, 0.0 }
 0x613   : > { %v4649_v35 = vpack.c.bf16 %v4607_v23, %v4605_v18  ;;  %v8637_v50 = vsel %vm5605_vm14, %v5613_v40, %v5615_v31 }
 0x614   : > { %3082 = vrot.lane.b32.xlu1 %v2980_v2, %s6170_s30  ;;  %v8641_v12 = vrot.slane %v5364_v48, 1  ;;  %v5711_v52 = vmax.f32 %v8445_v39, %v8637_v50 }
 0x615   : > { %6064 = vmatmul.msk.bf16.gmra.mxu2 %vm2833_vm4, %v4649_v35  ;;  %3084 = vrot.lane.b32.xlu2 %v2981_v45, %s6170_s30  ;;  %v3635_v45 = vld [vmem:[#allocation2 + $0x10b] sm:$0xff] }
 0x616   : > { %4388 = vrot.lane.b32.xlu0 %v4287_v5, %s6180_s26  ;;  %v5446_v40 = vsel %vm5427_vm13, %v5443_v59, %v8641_v12  ;;  %v3725_v19 = vpop.permute.xlu1 %3724  ;;  %v8691_v5 = vld [vmem:[#allocation2 + $0x10a] sm:$0xff] }
 0x617   : > { %v4831_v36 = vpop.f32.mrf.mxu1  ;;  %v8651_v42 = vmax.f32 %v5363_v17, %v5446_v40  ;;  %v2543_v17 = vadd.f32 %v8493_v55, %v2503_v58  ;;  %v2578_v40 = vmax.f32 %v2542_v57, 0.0 }
 0x618   : > { %v4594_v37 = vld [vmem:[#allocation4 + $0x170] sm:$0xff]  ;;  %v3289_v43 = vpop.permute.xlu0 %3288  ;;  %v8654_v10 = vpop.permute.xlu2 %4162  ;;  %v4931_v29 = vadd.f32 %v4930_v26, %v4831_v36 }
 0x619   : > { %v4642_v28 = vpack.c.bf16 %v4594_v37, %v4592_v8  ;;  %3373 = vst.msk [vmem:[#allocation4 + $0x180] sm:$0xff] %vm3348_vm7, %v3289_v43  ;;  %v5617_v27 = vrot.slane %v8651_v42, 2  ;;  %v2579_v6 = vmax.f32 %v2543_v17, 0.0 }
 0x61a   : > { %3591 = vst.msk [vmem:[#allocation4 + $0x180] sm:$0xff] %vm3566_vm8, %v8593_v7 }
 0x61b   : > { %4845 = vmatmul.bf16.gmra.mxu1 %v4642_v28  ;;  %3809 = vst.msk [vmem:[#allocation4 + $0x180] sm:$0xff] %vm3784_vm9, %v3725_v19  ;;  %v8668_v59 = vsel %vm5605_vm14, %v5615_v31, %v5617_v27  ;;  %v3634_v31 = vld [vmem:[#allocation2 + $0x103] sm:$0xff] }
 0x61c   : > { %3302 = vrot.lane.b32.xlu1 %v8572_v4, %s6174_s16  ;;  %4027 = vst.msk [vmem:[#allocation4 + $0x180] sm:$0xff] %vm4002_vm10, %v3943_v13  ;;  %v5712_v7 = vmax.f32 %v8524_v25, %v8668_v59  ;;  %v5000_v4 = vmul.f32 %v8395_v22, %v4931_v29  ;;  %v4511_v29 = vld [vmem:[#allocation2 + $0x13e] sm:$0x3f] }
 0x61d   : > { %3518 = vrot.lane.b32.xlu2 %v8663_v21, %s6178_s14  ;;  %4547 = vst.msk [vmem:[#allocation4 + $0x238] sm:$0x3f] %vm2876_vm15, %v4511_v29  ;;  %v4935_v29 = vpop.f32.mrf.mxu2 }
 0x61e   : > { %3300 = vrot.lane.b32.xlu0 %v8585_v54, %s6174_s16  ;;  %v2790_v13 = vpop.permute.xlu1 %2789  ;;  %v5040_v35 = vadd.f32 %v8418_v47, %v5000_v4 }
 0x61f   : > { %v4833_v51 = vpop.f32.mrf.mxu1  ;;  %v2831_v18 = vmul.f32 %v2790_v13, %v2579_v6 }
 0x620   : > { %v4933_v33 = vadd.f32 %v4932_v1, %v4833_v51  ;;  %v3509_v2 = vpop.permute.xlu0 %3508  ;;  %v3075_v23 = vpop.permute.xlu2 %3074  ;;  %v5076_v26 = vmax.f32 %v5040_v35, 0.0 }
 0x621   : > { %3592 = vst.msk [vmem:[#allocation4 + $0x190] sm:$0xff] %vm3566_vm8, %v3509_v2 }
 0x622   : > { %v5001_v54 = vmul.f32 %v8395_v22, %v4933_v33  ;;  %3810 = vst.msk [vmem:[#allocation4 + $0x190] sm:$0xff] %vm3784_vm9, %v8602_v30 }
 0x623   : > { %2875 = vst.msk [vmem:[#allocation2 + $0x123] sm:$0xff] %vm2833_vm4, %v2831_v18 }
 0x624   : > { %3736 = vrot.lane.b32.xlu1 %v3634_v31, %s6177_s13  ;;  %v5041_v62 = vadd.f32 %v8418_v47, %v5001_v54  ;;  %3157 = vst.msk [vmem:[#allocation4 + $0x1a0] sm:$0xff] %vm3130_vm6, %v3075_v23 }
 0x625   : > { %3738 = vrot.lane.b32.xlu2 %v3635_v45, %s6177_s13 }
 0x626   : > { %3520 = vrot.lane.b32.xlu0 %v8691_v5, %s6178_s14  ;;  %v5077_v30 = vmax.f32 %v5041_v62, 0.0  ;;  %v4161_v36 = vpop.permute.xlu1 %4160 }
 0x627   : > { %4245 = vst.msk [vmem:[#allocation4 + $0x180] sm:$0xff] %vm4220_vm11, %v4161_v36 }
 0x628   : > { %v2785_v58 = vpop.permute.xlu0 %2784  ;;  %v5104_v8 = vpack.c.bf16 %v5077_v30, %v5076_v26  ;;  %v8696_v43 = vpop.permute.xlu2 %3294 }
 0x629   : > { %v2830_v37 = vmul.f32 %v2785_v58, %v2578_v40  ;;  %v2983_v40 = vld [vmem:[#allocation2 + $0x109] sm:$0xff] }
 0x62a   : > { %6080 = vmatmul.msk.bf16.gmra.mxu3 %vm2833_vm4, %v5104_v8 }
 0x62b   : > { %2874 = vst.msk [vmem:[#allocation2 + $0x11b] sm:$0xff] %vm2833_vm4, %v2830_v37  ;;  %v2982_v37 = vld [vmem:[#allocation2 + $0x101] sm:$0xff] }
 0x62c   : > { %3956 = vrot.lane.b32.xlu1 %v8605_v44, %s6179_s18 }
 0x62d   : > { %v5210_v19 = vpop.f32.mrf.mxu3 }
 0x62e   : > { %3954 = vrot.lane.b32.xlu0 %v8614_v20, %s6179_s18  ;;  %v5289_v28 = vmul.f32 %v8311_v15, %v5210_v19  ;;  %v4381_v60 = vpop.permute.xlu1 %4380 }
 0x630   : > { %v5329_v17 = vadd.f32 %v8328_v32, %v5289_v28  ;;  %v3945_v4 = vpop.permute.xlu0 %3944  ;;  %v8708_v1 = vpop.permute.xlu2 %3728 }
 0x631   : > { %4028 = vst.msk [vmem:[#allocation4 + $0x190] sm:$0xff] %vm4002_vm10, %v3945_v4  ;;  %v2462_v28 = vpop.f32.mrf.mxu0 }
 0x632   : > { %v4506_v44 = vld [vmem:[#allocation2 + $0x116] sm:$0xff]  ;;  %v4507_v51 = vld [vmem:[#allocation2 + $0x11e] sm:$0xff]  ;;  %v5365_v6 = vmax.f32 %v5329_v17, 0.0  ;;  %4246 = vst.msk [vmem:[#allocation4 + $0x190] sm:$0xff] %vm4220_vm11, %v8654_v10 }
 0x633   : > { %v4288_v20 = vld [vmem:[#allocation2 + $0x115] sm:$0xff]  ;;  %4542 = vst.msk [vmem:[#allocation4 + $0x1e8] sm:$0xff] %vm2833_vm4, %v4506_v44  ;;  %v4289_v56 = vld [vmem:[#allocation2 + $0x11d] sm:$0xff] }
 0x634   : > { %4390 = vrot.lane.b32.xlu1 %v4288_v20, %s6180_s26  ;;  %v8714_v33 = vld [vmem:[#allocation2 + $0x114] sm:$0xff]  ;;  %4543 = vst.msk [vmem:[#allocation4 + $0x1f8] sm:$0xff] %vm2833_vm4, %v4507_v51  ;;  %v5447_v2 = vrot.slane %v5365_v6, 1  ;;  %v8719_v13 = vld [vmem:[#allocation2 + $0x11c] sm:$0xff] }
 0x635   : > { %4172 = vrot.lane.b32.xlu2 %v8714_v33, %s6181_s19  ;;  %4464 = vst.msk [vmem:[#allocation4 + $0x190] sm:$0xff] %vm4438_vm12, %v4381_v60  ;;  %v5212_v18 = vpop.f32.mrf.mxu3  ;;  %v2913_v10 = vld [vmem:[#allocation2 + $0x118] sm:$0x3f]  ;;  %v2504_v60 = vmul.f32 %v8481_v38, %v2462_v28 }
 0x636   : > { %4174 = vrot.lane.b32.xlu0 %v8719_v13, %s6181_s19  ;;  %v5290_v23 = vmul.f32 %v8311_v15, %v5212_v18  ;;  %2949 = vst.msk [vmem:[#allocation4 + $0x230] sm:$0x3f] %vm2876_vm15, %v2913_v10  ;;  %v5448_v31 = vsel %vm5427_vm13, %v8641_v12, %v5447_v2  ;;  %v3293_v45 = vpop.permute.xlu1 %3292 }
 0x637   : > { %v8730_v35 = vmax.f32 %v5364_v48, %v5448_v31  ;;  %3375 = vst.msk [vmem:[#allocation4 + $0x1a0] sm:$0xff] %vm3348_vm7, %v3293_v45 }
 0x638   : > { %v8733_v54 = vadd.f32 %v8328_v32, %v5290_v23  ;;  %v4379_v57 = vpop.permute.xlu0 %4378  ;;  %v3947_v62 = vpop.permute.xlu2 %3946 }
 0x639   : > { %4463 = vst.msk [vmem:[#allocation4 + $0x180] sm:$0xff] %vm4438_vm12, %v4379_v57  ;;  %v5619_v26 = vrot.slane %v8730_v35, 2 }
 0x63a   : > { %v5366_v30 = vmax.f32 %v8733_v54, 0.0  ;;  %v4609_v12 = vld [vmem:[#allocation4 + $0x1e8] sm:$0xff]  ;;  %v2985_v54 = vld [vmem:[#allocation2 + $0x119] sm:$0x3f] }
 0x63b   : > { %v4611_v48 = vld [vmem:[#allocation4 + $0x1f8] sm:$0xff]  ;;  %v8743_v58 = vsel %vm5605_vm14, %v5617_v27, %v5619_v26 }
 0x63c   : > { %3088 = vrot.lane.b32.xlu1 %v2983_v40, %s6170_s30  ;;  %v8747_v36 = vrot.slane %v5366_v30, 1  ;;  %v4651_v8 = vpack.c.bf16 %v4611_v48, %v4609_v12  ;;  %v5713_v19 = vmax.f32 %v8555_v46, %v8743_v58  ;;  %v4598_v20 = vld [vmem:[#allocation4 + $0x190] sm:$0xff]  ;;  %v4937_v40 = vpop.f32.mrf.mxu2 }
 0x63d   : > { %4392 = vrot.lane.b32.xlu2 %v4289_v56, %s6180_s26 }
 0x63e   : > { %3086 = vrot.lane.b32.xlu0 %v2982_v37, %s6170_s30  ;;  %6065 = vmatmul.msk.bf16.gmra.mxu2 %vm2833_vm4, %v4651_v8  ;;  %v5450_v27 = vsel %vm5427_vm13, %v5447_v2, %v8747_v36  ;;  %v3513_v18 = vpop.permute.xlu1 %3512  ;;  %v8763_v2 = vld [vmem:[#allocation2 + $0x112] sm:$0xff] }
 0x63f   : > { %v8756_v4 = vmax.f32 %v5365_v6, %v5450_v27  ;;  %v2544_v6 = vadd.f32 %v8493_v55, %v2504_v60 }
 0x640   : > { %v4836_v17 = vpop.f32.mrf.mxu1  ;;  %v3077_v44 = vpop.permute.xlu0 %3076  ;;  %v4596_v51 = vld [vmem:[#allocation4 + $0x180] sm:$0xff] }
 0x641   : > { %3158 = vst.msk [vmem:[#allocation4 + $0x1b0] sm:$0xff] %vm3130_vm6, %v3077_v44  ;;  %v4167_v10 = vpop.permute.xlu2 %4166  ;;  %v4644_v23 = vpack.c.bf16 %v4598_v20, %v4596_v51  ;;  %v5621_v31 = vrot.slane %v8756_v4, 2  ;;  %v4936_v57 = vadd.f32 %v4935_v29, %v4836_v17  ;;  %v2580_v8 = vmax.f32 %v2544_v6, 0.0  ;;  %v3419_v29 = vld [vmem:[#allocation2 + $0x11a] sm:$0xff] }
 0x642   : > { %3376 = vst.msk [vmem:[#allocation4 + $0x1b0] sm:$0xff] %vm3348_vm7, %v8696_v43  ;;  %v3636_v17 = vld [vmem:[#allocation2 + $0x113] sm:$0xff] }
 0x643   : > { %3594 = vst.msk [vmem:[#allocation4 + $0x1b0] sm:$0xff] %vm3566_vm8, %v3513_v18  ;;  %4850 = vmatmul.bf16.gmra.mxu1 %v4644_v23  ;;  %v8771_v38 = vsel %vm5605_vm14, %v5619_v26, %v5621_v31  ;;  %v5002_v45 = vmul.f32 %v8395_v22, %v4936_v57 }
 0x644   : > { %3522 = vrot.lane.b32.xlu1 %v8763_v2, %s6178_s14  ;;  %v5714_v43 = vmax.f32 %v8624_v11, %v8771_v38 }
 0x645   : > { %3304 = vrot.lane.b32.xlu2 %v8663_v21, %s6174_s16  ;;  %v5042_v37 = vadd.f32 %v8418_v47, %v5002_v45 }
 0x646   : > { %3306 = vrot.lane.b32.xlu0 %v8691_v5, %s6174_s16  ;;  %v2795_v26 = vpop.permute.xlu1 %2794  ;;  %v3637_v5 = vld [vmem:[#allocation2 + $0x11b] sm:$0xff] }
 0x647   : > { %v2832_v28 = vmul.f32 %v2795_v26, %v2580_v8  ;;  %v5078_v60 = vmax.f32 %v5042_v37, 0.0 }
 0x648   : > { %v4838_v12 = vpop.f32.mrf.mxu1  ;;  %v3511_v48 = vpop.permute.xlu0 %3510 }
 0x649   : > { %v4938_v56 = vadd.f32 %v4937_v40, %v4838_v12  ;;  %3593 = vst.msk [vmem:[#allocation4 + $0x1a0] sm:$0xff] %vm3566_vm8, %v3511_v48  ;;  %v3079_v55 = vpop.permute.xlu2 %3078 }
 0x64a   : > { %3811 = vst.msk [vmem:[#allocation4 + $0x1a0] sm:$0xff] %vm3784_vm9, %v8708_v1 }
 0x64b   : > { %v5003_v21 = vmul.f32 %v8395_v22, %v4938_v56  ;;  %4029 = vst.msk [vmem:[#allocation4 + $0x1a0] sm:$0xff] %vm4002_vm10, %v3947_v62 }
 0x64c   : > { %3742 = vrot.lane.b32.xlu1 %v3637_v5, %s6177_s13  ;;  %2877 = vst.msk [vmem:[#allocation2 + $0x12b] sm:$0x3f] %vm2876_vm15, %v2832_v28 }
 0x64d   : > { %v5043_v27 = vadd.f32 %v8418_v47, %v5003_v21  ;;  %3524 = vrot.lane.b32.xlu2 %v3419_v29, %s6178_s14  ;;  %3159 = vst.msk [vmem:[#allocation4 + $0x1c0] sm:$0xff] %vm3130_vm6, %v3079_v55 }
 0x64e   : > { %3740 = vrot.lane.b32.xlu0 %v3636_v17, %s6177_s13  ;;  %v4165_v62 = vpop.permute.xlu1 %4164  ;;  %v2984_v17 = vld [vmem:[#allocation2 + $0x111] sm:$0xff] }
 0x64f   : > { %v5079_v1 = vmax.f32 %v5043_v27, 0.0  ;;  %4247 = vst.msk [vmem:[#allocation4 + $0x1a0] sm:$0xff] %vm4220_vm11, %v4165_v62 }
 0x650   : > { %v3731_v44 = vpop.permute.xlu0 %3730 }
 0x651   : > { %v5105_v51 = vpack.c.bf16 %v5079_v1, %v5078_v60  ;;  %3812 = vst.msk [vmem:[#allocation4 + $0x1b0] sm:$0xff] %vm3784_vm9, %v3731_v44  ;;  %v3299_v20 = vpop.permute.xlu2 %3298  ;;  %v4940_v60 = vpop.f32.mrf.mxu2 }
 0x653   : > { %6081 = vmatmul.msk.bf16.gmra.mxu3 %vm2833_vm4, %v5105_v51  ;;  %v4508_v18 = vld [vmem:[#allocation2 + $0x126] sm:$0xff]  ;;  %v4509_v23 = vld [vmem:[#allocation2 + $0x12e] sm:$0xff] }
 0x654   : > { %v8796_v57 = vld [vmem:[#allocation2 + $0x124] sm:$0xff]  ;;  %4544 = vst.msk [vmem:[#allocation4 + $0x208] sm:$0xff] %vm2833_vm4, %v4508_v18  ;;  %v4073_v8 = vld [vmem:[#allocation2 + $0x12c] sm:$0xff] }
 0x655   : > { %3958 = vrot.lane.b32.xlu2 %v8714_v33, %s6179_s18  ;;  %4176 = vrot.lane.b32.xlu1 %v8796_v57, %s6181_s19  ;;  %4545 = vst.msk [vmem:[#allocation4 + $0x218] sm:$0xff] %vm2833_vm4, %v4509_v23  ;;  %v5215_v6 = vpop.f32.mrf.mxu3  ;;  %v4291_v26 = vld [vmem:[#allocation2 + $0x12d] sm:$0xff] }
 0x656   : > { %3960 = vrot.lane.b32.xlu0 %v8719_v13, %s6179_s18  ;;  %v5291_v45 = vmul.f32 %v8311_v15, %v5215_v6  ;;  %v4385_v56 = vpop.permute.xlu1 %4384  ;;  %v4290_v13 = vld [vmem:[#allocation2 + $0x125] sm:$0xff] }
 0x657   : > { %v3421_v6 = vld [vmem:[#allocation2 + $0x12a] sm:$0x3f] }
 0x658   : > { %v8808_v40 = vadd.f32 %v8328_v32, %v5291_v45  ;;  %v3949_v12 = vpop.permute.xlu0 %3948  ;;  %v3420_v45 = vld [vmem:[#allocation2 + $0x122] sm:$0xff] }
 0x659   : > { %4030 = vst.msk [vmem:[#allocation4 + $0x1b0] sm:$0xff] %vm4002_vm10, %v3949_v12  ;;  %v3733_v48 = vpop.permute.xlu2 %3732 }
 0x65a   : > { %v5367_v33 = vmax.f32 %v8808_v40, 0.0  ;;  %4248 = vst.msk [vmem:[#allocation4 + $0x1b0] sm:$0xff] %vm4220_vm11, %v4167_v10 }
 0x65b   : > { %4466 = vst.msk [vmem:[#allocation4 + $0x1b0] sm:$0xff] %vm4438_vm12, %v4385_v56  ;;  %v4613_v55 = vld [vmem:[#allocation4 + $0x208] sm:$0xff] }
 0x65c   : > { %v8816_v15 = vrot.slane %v5367_v33, 1  ;;  %v4615_v32 = vld [vmem:[#allocation4 + $0x218] sm:$0xff] }
 0x65d   : > { %4178 = vrot.lane.b32.xlu2 %v4073_v8, %s6181_s19  ;;  %4396 = vrot.lane.b32.xlu1 %v4291_v26, %s6180_s26  ;;  %v4653_v37 = vpack.c.bf16 %v4615_v32, %v4613_v55  ;;  %v4942_v8 = vpop.f32.mrf.mxu2 }
 0x65e   : > { %4394 = vrot.lane.b32.xlu0 %v4290_v13, %s6180_s26  ;;  %v5452_v10 = vsel %vm5427_vm13, %v8747_v36, %v8816_v15  ;;  %v3297_v5 = vpop.permute.xlu1 %3296 }
 0x65f   : > { %6066 = vmatmul.msk.bf16.gmra.mxu2 %vm2833_vm4, %v4653_v37  ;;  %v8827_v21 = vmax.f32 %v5366_v30, %v5452_v10  ;;  %3377 = vst.msk [vmem:[#allocation4 + $0x1c0] sm:$0xff] %vm3348_vm7, %v3297_v5  ;;  %v3638_v37 = vld [vmem:[#allocation2 + $0x123] sm:$0xff]  ;;  %v3639_v10 = vld [vmem:[#allocation2 + $0x12b] sm:$0x3f] }
 0x660   : > { %v4383_v28 = vpop.permute.xlu0 %4382 }
 0x661   : > { %4465 = vst.msk [vmem:[#allocation4 + $0x1a0] sm:$0xff] %vm4438_vm12, %v4383_v28  ;;  %v3953_v29 = vpop.permute.xlu2 %3952  ;;  %v5623_v27 = vrot.slane %v8827_v21, 2 }
 0x662   : > { %v4602_v51 = vld [vmem:[#allocation4 + $0x1b0] sm:$0xff] }
 0x663   : > { %v8837_v36 = vsel %vm5605_vm14, %v5621_v31, %v5623_v27 }
 0x664   : > { %v5715_v30 = vmax.f32 %v8651_v42, %v8837_v36 }
 0x665   : > { %3090 = vrot.lane.b32.xlu2 %v2984_v17, %s6170_s30  ;;  %3308 = vrot.lane.b32.xlu1 %v8763_v2, %s6174_s16  ;;  %v3203_v2 = vld [vmem:[#allocation2 + $0x11a] sm:$0x3f] }
 0x666   : > { %3092 = vrot.lane.b32.xlu0 %v2985_v54, %s6170_s30  ;;  %v3517_v62 = vpop.permute.xlu1 %3516 }
 0x668   : > { %v3081_v1 = vpop.permute.xlu0 %3080  ;;  %v4600_v44 = vld [vmem:[#allocation4 + $0x1a0] sm:$0xff] }
 0x669   : > { %3160 = vst.msk [vmem:[#allocation4 + $0x1d0] sm:$0xff] %vm3130_vm6, %v3081_v1  ;;  %v4387_v31 = vpop.permute.xlu2 %4386  ;;  %v4646_v18 = vpack.c.bf16 %v4602_v51, %v4600_v44  ;;  %v4841_v23 = vpop.f32.mrf.mxu1  ;;  %v4075_v1 = vld [vmem:[#allocation2 + $0x13c] sm:$0x3f]  ;;  %v4074_v44 = vld [vmem:[#allocation2 + $0x134] sm:$0xff]  ;;  %v3857_v51 = vld [vmem:[#allocation2 + $0x12c] sm:$0x3f] }
 0x66a   : > { %3378 = vst.msk [vmem:[#allocation4 + $0x1d0] sm:$0xff] %vm3348_vm7, %v3299_v20  ;;  %v4941_v12 = vadd.f32 %v4940_v60, %v4841_v23 }
 0x66b   : > { %3596 = vst.msk [vmem:[#allocation4 + $0x1d0] sm:$0xff] %vm3566_vm8, %v3517_v62  ;;  %4855 = vmatmul.bf16.gmra.mxu1 %v4646_v18 }
 0x66c   : > { %v5004_v26 = vmul.f32 %v8395_v22, %v4941_v12 }
 0x66d   : > { %3310 = vrot.lane.b32.xlu2 %v3203_v2, %s6174_s16  ;;  %3528 = vrot.lane.b32.xlu1 %v3421_v6, %s6178_s14 }
 0x66e   : > { %3526 = vrot.lane.b32.xlu0 %v3420_v45, %s6178_s14  ;;  %v3951_v55 = vpop.permute.xlu1 %3950  ;;  %v5044_v28 = vadd.f32 %v8418_v47, %v5004_v26 }
 0x670   : > { %v3515_v56 = vpop.permute.xlu0 %3514  ;;  %v5080_v54 = vmax.f32 %v5044_v28, 0.0 }
 0x671   : > { %3595 = vst.msk [vmem:[#allocation4 + $0x1c0] sm:$0xff] %vm3566_vm8, %v3515_v56  ;;  %v3085_v20 = vpop.permute.xlu2 %3084  ;;  %v4843_v32 = vpop.f32.mrf.mxu1 }
 0x672   : > { %3813 = vst.msk [vmem:[#allocation4 + $0x1c0] sm:$0xff] %vm3784_vm9, %v3733_v48  ;;  %v4943_v13 = vadd.f32 %v4942_v8, %v4843_v32 }
 0x673   : > { %4031 = vst.msk [vmem:[#allocation4 + $0x1c0] sm:$0xff] %vm4002_vm10, %v3951_v55  ;;  %v4945_v55 = vpop.f32.mrf.mxu2 }
 0x674   : > { %3162 = vst.msk [vmem:[#allocation4 + $0x1f0] sm:$0xff] %vm3130_vm6, %v3085_v20  ;;  %v5005_v5 = vmul.f32 %v8395_v22, %v4943_v13 }
 0x675   : > { %3744 = vrot.lane.b32.xlu2 %v3638_v37, %s6177_s13  ;;  %3962 = vrot.lane.b32.xlu1 %v8796_v57, %s6179_s18 }
 0x676   : > { %3746 = vrot.lane.b32.xlu0 %v3639_v10, %s6177_s13  ;;  %v5045_v48 = vadd.f32 %v8418_v47, %v5005_v5  ;;  %v4292_v47 = vld [vmem:[#allocation2 + $0x135] sm:$0xff]  ;;  %v8886_v5 = vld [vmem:[%s9345_s7] ss:$0 sm:$0xff] }
 0x678   : > { %v3735_v17 = vpop.permute.xlu0 %3734  ;;  %v5081_v60 = vmax.f32 %v5045_v48, 0.0 }
 0x679   : > { %3814 = vst.msk [vmem:[#allocation4 + $0x1d0] sm:$0xff] %vm3784_vm9, %v3735_v17  ;;  %v3519_v62 = vpop.permute.xlu2 %3518 }
 0x67a   : > { %4032 = vst.msk [vmem:[#allocation4 + $0x1d0] sm:$0xff] %vm4002_vm10, %v3953_v29  ;;  %v5106_v57 = vpack.c.bf16 %v5081_v60, %v5080_v54  ;;  %v4293_v29 = vld [vmem:[#allocation2 + $0x13d] sm:$0x3f] }
 0x67b   : > { %v4947_v54 = vpop.f32.mrf.mxu2 }
 0x67c   : > { %6082 = vmatmul.msk.bf16.gmra.mxu3 %vm2833_vm4, %v5106_v57 }
 0x67d   : > { %3964 = vrot.lane.b32.xlu2 %v3857_v51, %s6179_s18  ;;  %4182 = vrot.lane.b32.xlu1 %v4075_v1, %s6181_s19  ;;  %v8893_v51 = vld [vmem:[%s9346_s8] ss:$0 sm:$0xff] }
 0x67e   : > { %v4171_v18 = vpop.permute.xlu1 %4170  ;;  %4180 = vrot.lane.b32.xlu0 %v4074_v44, %s6181_s19 }
 0x67f   : > { %4250 = vst.msk [vmem:[#allocation4 + $0x1d0] sm:$0xff] %vm4220_vm11, %v4171_v18 }
 0x680   : > { %v4169_v22 = vpop.permute.xlu0 %4168 }
 0x681   : > { %4249 = vst.msk [vmem:[#allocation4 + $0x1c0] sm:$0xff] %vm4220_vm11, %v4169_v22  ;;  %v3739_v2 = vpop.permute.xlu2 %3738 }
 0x682   : > { %4467 = vst.msk [vmem:[#allocation4 + $0x1c0] sm:$0xff] %vm4438_vm12, %v4387_v31 }
 0x685   : > { %4398 = vrot.lane.b32.xlu2 %v4292_v47, %s6180_s26 }
 0x686   : > { %v3083_v23 = vpop.permute.xlu1 %3082  ;;  %4400 = vrot.lane.b32.xlu0 %v4293_v29, %s6180_s26 }
 0x687   : > { %3161 = vst.msk [vmem:[#allocation4 + $0x1e0] sm:$0xff] %vm3130_vm6, %v3083_v23 }
 0x688   : > { %v4389_v6 = vpop.permute.xlu0 %4388 }
 0x689   : > { %4468 = vst.msk [vmem:[#allocation4 + $0x1d0] sm:$0xff] %vm4438_vm12, %v4389_v6  ;;  %v4604_v8 = vld [vmem:[#allocation4 + $0x1c0] sm:$0xff] }
 0x68e   : > { %v3303_v45 = vpop.permute.xlu1 %3302 }
 0x68f   : > { %3380 = vst.msk [vmem:[#allocation4 + $0x1f0] sm:$0xff] %vm3348_vm7, %v3303_v45  ;;  %v4173_v12 = vpop.permute.xlu2 %4172  ;;  %v8900_v45 = vpop.f32.mrf.mxu3 }
 0x690   : > { %v3301_v56 = vpop.permute.xlu0 %3300  ;;  %v4606_v26 = vld [vmem:[#allocation4 + $0x1d0] sm:$0xff] }
 0x691   : > { %3379 = vst.msk [vmem:[#allocation4 + $0x1e0] sm:$0xff] %vm3348_vm7, %v3301_v56  ;;  %v4648_v31 = vpack.c.bf16 %v4606_v26, %v4604_v8 }
 0x692   : > { %3597 = vst.msk [vmem:[#allocation4 + $0x1e0] sm:$0xff] %vm3566_vm8, %v3519_v62 }
 0x693   : > { %4860 = vmatmul.bf16.gmra.mxu1 %v4648_v31 }
 0x696   : > { %v3737_v20 = vpop.permute.xlu1 %3736 }
 0x697   : > { %3815 = vst.msk [vmem:[#allocation4 + $0x1e0] sm:$0xff] %vm3784_vm9, %v3737_v20  ;;  %v4393_v32 = vpop.permute.xlu2 %4392  ;;  %v5220_v26 = vpop.f32.mrf.mxu3 }
 0x698   : > { %v4846_v13 = vpop.f32.mrf.mxu1  ;;  %v3521_v37 = vpop.permute.xlu0 %3520 }
 0x699   : > { %3598 = vst.msk [vmem:[#allocation4 + $0x1f0] sm:$0xff] %vm3566_vm8, %v3521_v37  ;;  %v4946_v10 = vadd.f32 %v4945_v55, %v4846_v13 }
 0x69a   : > { %3816 = vst.msk [vmem:[#allocation4 + $0x1f0] sm:$0xff] %vm3784_vm9, %v3739_v2 }
 0x69b   : > { %v5006_v48 = vmul.f32 %v8886_v5, %v4946_v10 }
 0x69d   : > { %v5046_v57 = vadd.f32 %v8893_v51, %v5006_v48 }
 0x69e   : > { %v3957_v28 = vpop.permute.xlu1 %3956 }
 0x69f   : > { %4034 = vst.msk [vmem:[#allocation4 + $0x1f0] sm:$0xff] %vm4002_vm10, %v3957_v28  ;;  %v3305_v17 = vpop.permute.xlu2 %3304  ;;  %v5082_v47 = vmax.f32 %v5046_v57, 0.0  ;;  %v5222_v10 = vpop.f32.mrf.mxu3 }
 0x6a0   : > { %v4848_v60 = vpop.f32.mrf.mxu1  ;;  %v3955_v44 = vpop.permute.xlu0 %3954 }
 0x6a1   : > { %v4948_v1 = vadd.f32 %v4947_v54, %v4848_v60  ;;  %4033 = vst.msk [vmem:[#allocation4 + $0x1e0] sm:$0xff] %vm4002_vm10, %v3955_v44  ;;  %v4950_v28 = vpop.f32.mrf.mxu2 }
 0x6a2   : > { %4251 = vst.msk [vmem:[#allocation4 + $0x1e0] sm:$0xff] %vm4220_vm11, %v4173_v12 }
 0x6a3   : > { %v5007_v62 = vmul.f32 %v8886_v5, %v4948_v1 }
 0x6a5   : > { %v5047_v18 = vadd.f32 %v8893_v51, %v5007_v62 }
 0x6a6   : > { %v4391_v22 = vpop.permute.xlu1 %4390 }
 0x6a7   : > { %v5083_v29 = vmax.f32 %v5047_v18, 0.0  ;;  %4469 = vst.msk [vmem:[#allocation4 + $0x1e0] sm:$0xff] %vm4438_vm12, %v4391_v22  ;;  %v3525_v23 = vpop.permute.xlu2 %3524 }
 0x6a8   : > { %v4175_v2 = vpop.permute.xlu0 %4174 }
 0x6a9   : > { %v5107_v6 = vpack.c.bf16 %v5083_v29, %v5082_v47  ;;  %4252 = vst.msk [vmem:[#allocation4 + $0x1f0] sm:$0xff] %vm4220_vm11, %v4175_v2  ;;  %v4952_v62 = vpop.f32.mrf.mxu2 }
 0x6aa   : > { %4470 = vst.msk [vmem:[#allocation4 + $0x1f0] sm:$0xff] %vm4438_vm12, %v4393_v32 }
 0x6ab   : > { %6083 = vmatmul.msk.bf16.gmra.mxu3 %vm2833_vm4, %v5107_v6 }
 0x6ad   : > { %v5225_v1 = vpop.f32.mrf.mxu3 }
 0x6ae   : > { %v3089_v56 = vpop.permute.xlu1 %3088  ;;  %v4608_v31 = vld [vmem:[#allocation4 + $0x1e0] sm:$0xff] }
 0x6af   : > { %3164 = vst.msk [vmem:[#allocation4 + $0x210] sm:$0xff] %vm3130_vm6, %v3089_v56  ;;  %v3959_v12 = vpop.permute.xlu2 %3958 }
 0x6b0   : > { %v3087_v8 = vpop.permute.xlu0 %3086 }
 0x6b1   : > { %3163 = vst.msk [vmem:[#allocation4 + $0x200] sm:$0xff] %vm3130_vm6, %v3087_v8  ;;  %v4610_v20 = vld [vmem:[#allocation4 + $0x1f0] sm:$0xff] }
 0x6b2   : > { %3381 = vst.msk [vmem:[#allocation4 + $0x200] sm:$0xff] %vm3348_vm7, %v3305_v17  ;;  %v4650_v55 = vpack.c.bf16 %v4610_v20, %v4608_v31  ;;  %v4510_v20 = vld [vmem:[#allocation2 + $0x136] sm:$0xff] }
 0x6b3   : > { %4546 = vst.msk [vmem:[#allocation4 + $0x228] sm:$0xff] %vm2833_vm4, %v4510_v20 }
 0x6b4   : > { %4865 = vmatmul.bf16.gmra.mxu1 %v4650_v55 }
 0x6b5   : > { %v5227_v6 = vpop.f32.mrf.mxu3 }
 0x6b6   : > { %v3523_v13 = vpop.permute.xlu1 %3522 }
 0x6b7   : > { %3599 = vst.msk [vmem:[#allocation4 + $0x200] sm:$0xff] %vm3566_vm8, %v3523_v13  ;;  %v4179_v32 = vpop.permute.xlu2 %4178 }
 0x6b8   : > { %v3307_v37 = vpop.permute.xlu0 %3306 }
 0x6b9   : > { %3382 = vst.msk [vmem:[#allocation4 + $0x210] sm:$0xff] %vm3348_vm7, %v3307_v37 }
 0x6ba   : > { %3600 = vst.msk [vmem:[#allocation4 + $0x210] sm:$0xff] %vm3566_vm8, %v3525_v23 }
 0x6be   : > { %v3743_v48 = vpop.permute.xlu1 %3742 }
 0x6bf   : > { %3818 = vst.msk [vmem:[#allocation4 + $0x210] sm:$0xff] %vm3784_vm9, %v3743_v48  ;;  %v3091_v54 = vpop.permute.xlu2 %3090 }
 0x6c0   : > { %3165 = vst.msk [vmem:[#allocation4 + $0x220] sm:$0xff] %vm3130_vm6, %v3091_v54  ;;  %v4851_v17 = vpop.f32.mrf.mxu1  ;;  %v3741_v60 = vpop.permute.xlu0 %3740  ;;  %vm4256_vm6 = vcmask 915200  }
 0x6c1   : > { %3817 = vst.msk [vmem:[#allocation4 + $0x200] sm:$0xff] %vm3784_vm9, %v3741_v60  ;;  %v4951_v44 = vadd.f32 %v4950_v28, %v4851_v17 }
 0x6c2   : > { %4035 = vst.msk [vmem:[#allocation4 + $0x200] sm:$0xff] %vm4002_vm10, %v3959_v12 }
 0x6c3   : > { %v5008_v18 = vmul.f32 %v8886_v5, %v4951_v44  ;;  %v8938_v44 = vld [vmem:[%s9349_s11] ss:$0 sm:$0xff] }
 0x6c5   : > { %v5048_v23 = vadd.f32 %v8893_v51, %v5008_v18 }
 0x6c7   : > { %v4177_v57 = vpop.permute.xlu1 %4176  ;;  %v5084_v8 = vmax.f32 %v5048_v23, 0.0  ;;  %v3311_v28 = vpop.permute.xlu2 %3310 }
 0x6c8   : > { %4253 = vst.msk [vmem:[#allocation4 + $0x200] sm:$0xff] %vm4220_vm11, %v4177_v57  ;;  %v4853_v22 = vpop.f32.mrf.mxu1  ;;  %v3961_v47 = vpop.permute.xlu0 %3960 }
 0x6c9   : > { %v4953_v29 = vadd.f32 %v4952_v62, %v4853_v22  ;;  %4036 = vst.msk [vmem:[#allocation4 + $0x210] sm:$0xff] %vm4002_vm10, %v3961_v47  ;;  %v4619_v22 = vld [vmem:[#allocation4 + $0x238] sm:$0x3f] }
 0x6ca   : > { %4254 = vst.msk [vmem:[#allocation4 + $0x210] sm:$0xff] %vm4220_vm11, %v4179_v32  ;;  %v8928_v32 = vld [vmem:[%s9348_s10] ss:$0 sm:$0xff] }
 0x6cb   : > { %v5009_v2 = vmul.f32 %v8886_v5, %v4953_v29  ;;  %v5296_v37 = vmul.f32 %v8928_v32, %v5227_v6  ;;  %v5295_v48 = vmul.f32 %v8928_v32, %v5225_v1  ;;  %v5293_v54 = vmul.f32 %v8928_v32, %v5220_v26  ;;  %v4617_v1 = vld [vmem:[#allocation4 + $0x228] sm:$0xff] }
 0x6cc   : > { %v5294_v60 = vmul.f32 %v8928_v32, %v5222_v10  ;;  %v5292_v26 = vmul.f32 %v8928_v32, %v8900_v45  ;;  %v4655_v6 = vpack.c.bf16 %v4619_v22, %v4617_v1 }
 0x6cd   : > { %v5049_v56 = vadd.f32 %v8893_v51, %v5009_v2  ;;  %v5336_v57 = vadd.f32 %v8938_v44, %v5296_v37  ;;  %v5335_v10 = vadd.f32 %v8938_v44, %v5295_v48 }
 0x6ce   : > { %6067 = vmatmul.msk.bf16.gmra.mxu2 %vm2833_vm4, %v4655_v6  ;;  %v5332_v45 = vadd.f32 %v8938_v44, %v5292_v26 }
 0x6cf   : > { %v4397_v12 = vpop.permute.xlu1 %4396  ;;  %v5085_v31 = vmax.f32 %v5049_v56, 0.0  ;;  %v3745_v37 = vpop.permute.xlu2 %3744 }
 0x6d0   : > { %4472 = vst.msk [vmem:[#allocation4 + $0x210] sm:$0xff] %vm4438_vm12, %v4397_v12  ;;  %v4395_v55 = vpop.permute.xlu0 %4394  ;;  %v5333_v12 = vadd.f32 %v8938_v44, %v5293_v54 }
 0x6d1   : > { %v5108_v13 = vpack.c.bf16 %v5085_v31, %v5084_v8  ;;  %4471 = vst.msk [vmem:[#allocation4 + $0x200] sm:$0xff] %vm4438_vm12, %v4395_v55  ;;  %v5334_v8 = vadd.f32 %v8938_v44, %v5294_v60  ;;  %v5372_v31 = vmax.f32 %v5336_v57, 0.0  ;;  %v5371_v55 = vmax.f32 %v5335_v10, 0.0 }
 0x6d2   : > { %v5368_v57 = vmax.f32 %v5332_v45, 0.0 }
 0x6d3   : > { %6084 = vmatmul.msk.bf16.gmra.mxu3 %vm2833_vm4, %v5108_v13  ;;  %v5459_v1 = vrot.slane %v5371_v55, 1 }
 0x6d4   : > { %v5453_v6 = vrot.slane %v5368_v57, 1 }
 0x6d6   : > { %v5230_v17 = vpop.f32.mrf.mxu3 }
 0x6d7   : > { %v3309_v62 = vpop.permute.xlu1 %3308  ;;  %v5297_v18 = vmul.f32 %v8928_v32, %v5230_v17  ;;  %v4614_v2 = vld [vmem:[#allocation4 + $0x210] sm:$0xff]  ;;  %v5369_v17 = vmax.f32 %v5333_v12, 0.0 }
 0x6d8   : > { %3383 = vst.msk [vmem:[#allocation4 + $0x220] sm:$0xff] %vm3348_vm7, %v3309_v62  ;;  %v3093_v29 = vpop.permute.xlu0 %3092  ;;  %v4612_v23 = vld [vmem:[#allocation4 + $0x200] sm:$0xff]  ;;  %v5370_v62 = vmax.f32 %v5334_v8, 0.0  ;;  %v4955_v8 = vpop.f32.mrf.mxu2  ;;  %vm4474_vm7 = vcmask 1046400  }
 0x6d9   : > { %v5337_v47 = vadd.f32 %v8938_v44, %v5297_v18  ;;  %3167 = vst.msk [vmem:[#allocation4 + $0x230] sm:$0x3f] %vm3166_vm0, %v3093_v29  ;;  %v4652_v56 = vpack.c.bf16 %v4614_v2, %v4612_v23  ;;  %v5461_v18 = vrot.slane %v5372_v31, 1  ;;  %v5455_v10 = vrot.slane %v5369_v17, 1 }
 0x6da   : > { %3385 = vst.msk [vmem:[#allocation4 + $0x230] sm:$0x3f] %vm3384_vm1, %v3311_v28 }
 0x6db   : > { %v5373_v20 = vmax.f32 %v5337_v47, 0.0  ;;  %4870 = vmatmul.bf16.gmra.mxu1 %v4652_v56  ;;  %v5457_v47 = vrot.slane %v5370_v62, 1  ;;  %v5462_v23 = vsel %vm5427_vm13, %v5459_v1, %v5461_v18 }
 0x6dc   : > { %v8968_v45 = vmax.f32 %v5371_v55, %v5462_v23 }
 0x6dd   : > { %v5463_v13 = vrot.slane %v5373_v20, 1  ;;  %v5460_v12 = vsel %vm5427_vm13, %v5457_v47, %v5459_v1 }
 0x6de   : > { %v5232_v48 = vpop.f32.mrf.mxu3 }
 0x6df   : > { %v3529_v54 = vpop.permute.xlu1 %3528  ;;  %v5298_v60 = vmul.f32 %v8928_v32, %v5232_v48  ;;  %v5464_v26 = vsel %vm5427_vm13, %v5461_v18, %v5463_v13  ;;  %v3965_v18 = vpop.permute.xlu2 %3964 }
 0x6e0   : > { %3603 = vst.msk [vmem:[#allocation4 + $0x230] sm:$0x3f] %vm3602_vm2, %v3529_v54  ;;  %v3527_v22 = vpop.permute.xlu0 %3526  ;;  %v8961_v2 = vmax.f32 %v5372_v31, %v5464_v26  ;;  %v5456_v31 = vsel %vm5427_vm13, %v5453_v6, %v5455_v10 }
 0x6e1   : > { %v8954_v28 = vadd.f32 %v8938_v44, %v5298_v60  ;;  %3601 = vst.msk [vmem:[#allocation4 + $0x220] sm:$0xff] %vm3566_vm8, %v3527_v22  ;;  %v5550_v60 = vmax.f32 %v5370_v62, %v5460_v12  ;;  %vm5790_vm8 = vcmask 1042432  }
 0x6e2   : > { %3819 = vst.msk [vmem:[#allocation4 + $0x220] sm:$0xff] %vm3784_vm9, %v3745_v37  ;;  %v5458_v37 = vsel %vm5427_vm13, %v5455_v10, %v5457_v47  ;;  %v5635_v1 = vrot.slane %v8961_v2, 2  ;;  %v5548_v47 = vmax.f32 %v5368_v57, %v5456_v31  ;;  %v5454_v10 = vsel %vm5427_vm13, %v8816_v15, %v5453_v6  ;;  %v4957_v6 = vpop.f32.mrf.mxu2 }
 0x6e3   : > { %v5374_v29 = vmax.f32 %v8954_v28, 0.0  ;;  %v5549_v16 = vmax.f32 %v5369_v17, %v5458_v37  ;;  %v5631_v62 = vrot.slane %v5550_v60, 2  ;;  %v5547_v57 = vmax.f32 %v5367_v33, %v5454_v10 }
 0x6e4   : > { %v5627_v31 = vrot.slane %v5548_v47, 2  ;;  %vm5765_vm9 = vcmask 89088  }
 0x6e5   : > { %v8965_v56 = vrot.slane %v5374_v29, 1  ;;  %v5625_v40 = vrot.slane %v5547_v57, 2 }
 0x6e7   : > { %v3963_v48 = vpop.permute.xlu1 %3962  ;;  %v5466_v54 = vsel %vm5427_vm13, %v5463_v13, %v8965_v56  ;;  %v5633_v13 = vrot.slane %v8968_v45, 2 }
 0x6e8   : > { %4037 = vst.msk [vmem:[#allocation4 + $0x220] sm:$0xff] %vm4002_vm10, %v3963_v48  ;;  %v8975_v22 = vmax.f32 %v5373_v20, %v5466_v54  ;;  %v4856_v55 = vpop.f32.mrf.mxu1  ;;  %v3747_v26 = vpop.permute.xlu0 %3746 }
 0x6e9   : > { %3821 = vst.msk [vmem:[#allocation4 + $0x230] sm:$0x3f] %vm3820_vm3, %v3747_v26  ;;  %v4956_v48 = vadd.f32 %v4955_v8, %v4856_v55  ;;  %v5636_v12 = vsel %vm5605_vm14, %v5633_v13, %v5635_v1  ;;  %v5629_v26 = vrot.slane %v5549_v16, 2  ;;  %v5634_v17 = vsel %vm5605_vm14, %v5631_v62, %v5633_v13  ;;  %v4399_v55 = vpop.permute.xlu2 %4398 }
 0x6ea   : > { %v9351_v23 = vrot.slane %v8975_v22, 2  ;;  %4039 = vst.msk [vmem:[#allocation4 + $0x230] sm:$0x3f] %vm4038_vm5, %v3965_v18  ;;  %v5721_v37 = vmax.f32 %v5549_v16, %v5636_v12  ;;  %v5626_v12 = vsel %vm5605_vm14, %v5623_v27, %v5625_v40 }
 0x6eb   : > { %v5010_v8 = vmul.f32 %v8886_v5, %v4956_v48  ;;  %v5632_v18 = vsel %vm5605_vm14, %v5629_v26, %v5631_v62  ;;  %v5630_v33 = vsel %vm5605_vm14, %v5627_v31, %v5629_v26  ;;  %v5628_v48 = vsel %vm5605_vm14, %v5625_v40, %v5627_v31 }
 0x6ec   : > { %v5638_v20 = vsel %vm5605_vm14, %v5635_v1, %v9351_v23  ;;  %v5719_v16 = vmax.f32 %v5547_v57, %v5632_v18  ;;  %v5718_v62 = vmax.f32 %v8827_v21, %v5630_v33 }
 0x6ed   : > { %v5722_v54 = vmax.f32 %v5550_v60, %v5638_v20  ;;  %v5720_v20 = vmax.f32 %v5548_v47, %v5634_v17  ;;  %v5050_v13 = vadd.f32 %v8893_v51, %v5010_v8 }
 0x6ef   : > { %5794 = vmatpush.msrb.mxu2 %v5722_v54  ;;  %v4183_v15 = vpop.permute.xlu1 %4182  ;;  %v5717_v54 = vmax.f32 %v8756_v4, %v5628_v48  ;;  %v5086_v26 = vmax.f32 %v5050_v13, 0.0 }
 0x6f0   : > { %4257 = vst.msk [vmem:[#allocation4 + $0x230] sm:$0x3f] %vm4256_vm6, %v4183_v15  ;;  %v4858_v1 = vpop.f32.mrf.mxu1  ;;  %v4181_v60 = vpop.permute.xlu0 %4180 }
 0x6f1   : > { %5795 = vmatpush.msrb.mxu2 %v5721_v37  ;;  %v4958_v23 = vadd.f32 %v4957_v6, %v4858_v1  ;;  %4255 = vst.msk [vmem:[#allocation4 + $0x220] sm:$0xff] %vm4220_vm11, %v4181_v60 }
 0x6f2   : > { %4473 = vst.msk [vmem:[#allocation4 + $0x220] sm:$0xff] %vm4438_vm12, %v4399_v55 }
 0x6f3   : > { %5796 = vmatpush.msrb.mxu2 %v5720_v20  ;;  %v5011_v10 = vmul.f32 %v8886_v5, %v4958_v23  ;;  %v5716_v23 = vmax.f32 %v8730_v35, %v5626_v12 }
 0x6f5   : > { %5797 = vmatpush.msrb.mxu2 %v5719_v16  ;;  %v5051_v47 = vadd.f32 %v8893_v51, %v5011_v10 }
 0x6f7   : > { %5798 = vmatpush.msrb.mxu2 %v5718_v62  ;;  %v5087_v17 = vmax.f32 %v5051_v47, 0.0 }
 0x6f8   : > { %v4401_v57 = vpop.permute.xlu0 %4400 }
 0x6f9   : > { %5799 = vmatpush.msrb.mxu2 %v5717_v54  ;;  %v5109_v37 = vpack.c.bf16 %v5087_v17, %v5086_v26  ;;  %4475 = vst.msk [vmem:[#allocation4 + $0x230] sm:$0x3f] %vm4474_vm7, %v4401_v57  ;;  %v4616_v4 = vld [vmem:[#allocation4 + $0x220] sm:$0xff] }
 0x6fb   : > { %5800 = vmatpush.msrb.mxu2 %v5716_v23  ;;  %6085 = vmatmul.msk.bf16.gmra.mxu3 %vm2833_vm4, %v5109_v37 }
 0x6fd   : > { %5801 = vmatpush.msrb.mxu2 %v5715_v30 }
 0x6ff   : > { %5802 = vmatpush.msrb.mxu2 %v5714_v43  ;;  %v5235_v21 = vpop.f32.mrf.mxu3 }
 0x700   : > { %v4618_v35 = vld [vmem:[#allocation4 + $0x230] sm:$0x3f]  ;;  %v5299_v27 = vmul.f32 %v8928_v32, %v5235_v21 }
 0x701   : > { %5803 = vmatpush.msrb.mxu2 %v5713_v19  ;;  %v4654_v15 = vpack.c.bf16 %v4618_v35, %v4616_v4 }
 0x702   : > { %v5339_v42 = vadd.f32 %v8938_v44, %v5299_v27 }
 0x703   : > { %5804 = vmatpush.msrb.mxu2 %v5712_v7  ;;  %4875 = vmatmul.bf16.gmra.mxu1 %v4654_v15 }
 0x704   : > { %v5375_v11 = vmax.f32 %v5339_v42, 0.0 }
 0x705   : > { %5805 = vmatpush.msrb.mxu2 %v5711_v52 }
 0x706   : > { %v5467_v46 = vrot.slane %v5375_v11, 1 }
 0x707   : > { %5806 = vmatpush.msrb.mxu2 %v5710_v14  ;;  %v5237_v58 = vpop.f32.mrf.mxu3  ;;  %v9353_v14 = vrot.slane %v8975_v22, 2 }
 0x708   : > { %v5300_v25 = vmul.f32 %v8928_v32, %v5237_v58  ;;  %v5468_v59 = vsel %vm5427_vm13, %v8965_v56, %v5467_v46 }
 0x709   : > { %5807 = vmatpush.msrb.mxu2 %v5709_v63  ;;  %v9036_v39 = vmax.f32 %v5374_v29, %v5468_v59  ;;  %v4960_v63 = vpop.f32.mrf.mxu2 }
 0x70a   : > { %v5340_v53 = vadd.f32 %v8938_v44, %v5300_v25 }
 0x70b   : > { %5808 = vmatpush.msrb.mxu2 %v5708_v34  ;;  %v5639_v0 = vrot.slane %v9036_v39, 2 }
 0x70c   : > { %v5376_v41 = vmax.f32 %v5340_v53, 0.0 }
 0x70d   : > { %5809 = vmatpush.msrb.mxu2 %v9352_v61  ;;  %v9046_v50 = vsel %vm5605_vm14, %v9353_v14, %v5639_v0 }
 0x70e   : > { %v5469_v49 = vrot.slane %v5376_v41, 1 }
 0x710   : > { %v4861_v3 = vpop.f32.mrf.mxu1  ;;  %v5470_v34 = vsel %vm5427_vm13, %v5467_v46, %v5469_v49 }
 0x711   : > { %v9049_v52 = vmax.f32 %v5375_v11, %v5470_v34  ;;  %v4961_v7 = vadd.f32 %v4960_v63, %v4861_v3  ;;  %v4962_v43 = vpop.f32.mrf.mxu2 }
 0x713   : > { %v5641_v19 = vrot.slane %v9049_v52, 2  ;;  %v5012_v24 = vmul.f32 %v8886_v5, %v4961_v7 }
 0x715   : > { %v9053_v9 = vsel %vm5605_vm14, %v5639_v0, %v5641_v19  ;;  %v5052_v28 = vadd.f32 %v8893_v51, %v5012_v24 }
 0x716   : > { %v5724_v38 = vmax.f32 %v8961_v2, %v9053_v9  ;;  %v5745_v2 = vld [vmem:[%s9340_s2 + $0x20] sm:$0xff]  ;;  %v5748_v9 = vld [vmem:[%s9340_s2 + $0x38] sm:$0xff] }
 0x717   : > { %v5088_v6 = vmax.f32 %v5052_v28, 0.0 }
 0x718   : > { %v4863_v36 = vpop.f32.mrf.mxu1 }
 0x719   : > { %v4963_v30 = vadd.f32 %v4962_v43, %v4863_v36  ;;  %v4965_v1 = vpop.f32.mrf.mxu2 }
 0x71b   : > { %v5013_v29 = vmul.f32 %v8886_v5, %v4963_v30 }
 0x71d   : > { %v5053_v56 = vadd.f32 %v8893_v51, %v5013_v29 }
 0x71f   : > { %v5089_v8 = vmax.f32 %v5053_v56, 0.0 }
 0x721   : > { %v5110_v31 = vpack.c.bf16 %v5089_v8, %v5088_v6  ;;  %v4967_v54 = vpop.f32.mrf.mxu2 }
 0x723   : > { %6086 = vmatmul.msk.bf16.gmra.mxu3 %vm2833_vm4, %v5110_v31 }
 0x729   : > { %v4970_v61 = vpop.f32.mrf.mxu2 }
 0x72e   : > { %v5240_v18 = vpop.f32.mrf.mxu3 }
 0x72f   : > { %v5301_v55 = vmul.f32 %v8928_v32, %v5240_v18 }
 0x731   : > { %v5341_v60 = vadd.f32 %v8938_v44, %v5301_v55  ;;  %v4866_v20 = vpop.f32.mrf.mxu1  ;;  %v4972_v36 = vpop.f32.mrf.mxu2 }
 0x732   : > { %v4966_v16 = vadd.f32 %v4965_v1, %v4866_v20 }
 0x733   : > { %v5377_v40 = vmax.f32 %v5341_v60, 0.0 }
 0x734   : > { %v5014_v47 = vmul.f32 %v8886_v5, %v4966_v16 }
 0x735   : > { %v5471_v33 = vrot.slane %v5377_v40, 1 }
 0x736   : > { %v5242_v13 = vpop.f32.mrf.mxu3  ;;  %v5054_v4 = vadd.f32 %v8893_v51, %v5014_v47 }
 0x737   : > { %v5302_v10 = vmul.f32 %v8928_v32, %v5242_v13  ;;  %v5472_v48 = vsel %vm5427_vm13, %v5469_v49, %v5471_v33 }
 0x738   : > { %v9066_v62 = vmax.f32 %v5376_v41, %v5472_v48  ;;  %v5090_v11 = vmax.f32 %v5054_v4, 0.0 }
 0x739   : > { %v5342_v12 = vadd.f32 %v8938_v44, %v5302_v10  ;;  %v4868_v26 = vpop.f32.mrf.mxu1 }
 0x73a   : > { %v5643_v17 = vrot.slane %v9066_v62, 2  ;;  %v4968_v23 = vadd.f32 %v4967_v54, %v4868_v26 }
 0x73b   : > { %v5378_v57 = vmax.f32 %v5342_v12, 0.0 }
 0x73c   : > { %v9072_v37 = vsel %vm5605_vm14, %v5641_v19, %v5643_v17  ;;  %v5015_v35 = vmul.f32 %v8886_v5, %v4968_v23 }
 0x73d   : > { %v5473_v21 = vrot.slane %v5378_v57, 1 }
 0x73e   : > { %v5055_v27 = vadd.f32 %v8893_v51, %v5015_v35 }
 0x73f   : > { %v5474_v15 = vsel %vm5427_vm13, %v5471_v33, %v5473_v21 }
 0x740   : > { %v9078_v42 = vmax.f32 %v5377_v40, %v5474_v15  ;;  %v5091_v46 = vmax.f32 %v5055_v27, 0.0 }
 0x742   : > { %v5645_v58 = vrot.slane %v9078_v42, 2  ;;  %v5111_v25 = vpack.c.bf16 %v5091_v46, %v5090_v11 }
 0x744   : > { %v9082_v59 = vsel %vm5605_vm14, %v5643_v17, %v5645_v58  ;;  %6087 = vmatmul.msk.bf16.gmra.mxu3 %vm2833_vm4, %v5111_v25 }
 0x745   : > { %v5726_v53 = vmax.f32 %v9036_v39, %v9082_v59  ;;  %v5753_v39 = vld [vmem:[%s9340_s2 + $0x60] sm:$0xff]  ;;  %v5751_v59 = vld [vmem:[%s9340_s2 + $0x50] sm:$0xff] }
 0x751   : > { %v4975_v54 = vpop.f32.mrf.mxu2 }
 0x756   : > { %v5245_v0 = vpop.f32.mrf.mxu3 }
 0x757   : > { %v5303_v41 = vmul.f32 %v8928_v32, %v5245_v0 }
 0x758   : > { %v4871_v63 = vpop.f32.mrf.mxu1 }
 0x759   : > { %v5343_v14 = vadd.f32 %v8938_v44, %v5303_v41  ;;  %v4971_v3 = vadd.f32 %v4970_v61, %v4871_v63 }
 0x75b   : > { %v5379_v49 = vmax.f32 %v5343_v14, 0.0  ;;  %v5016_v19 = vmul.f32 %v8886_v5, %v4971_v3 }
 0x75d   : > { %v5475_v34 = vrot.slane %v5379_v49, 1  ;;  %v5056_v8 = vadd.f32 %v8893_v51, %v5016_v19 }
 0x75e   : > { %v5247_v7 = vpop.f32.mrf.mxu3 }
 0x75f   : > { %v5304_v24 = vmul.f32 %v8928_v32, %v5247_v7  ;;  %v5476_v43 = vsel %vm5427_vm13, %v5473_v21, %v5475_v34  ;;  %v5092_v40 = vmax.f32 %v5056_v8, 0.0 }
 0x760   : > { %v4873_v30 = vpop.f32.mrf.mxu1  ;;  %v9092_v28 = vmax.f32 %v5378_v57, %v5476_v43 }
 0x761   : > { %v5344_v29 = vadd.f32 %v8938_v44, %v5304_v24  ;;  %v4973_v56 = vadd.f32 %v4972_v36, %v4873_v30 }
 0x762   : > { %v5647_v6 = vrot.slane %v9092_v28, 2 }
 0x763   : > { %v5380_v31 = vmax.f32 %v5344_v29, 0.0  ;;  %v5017_v18 = vmul.f32 %v8886_v5, %v4973_v56 }
 0x764   : > { %v9099_v55 = vsel %vm5605_vm14, %v5645_v58, %v5647_v6  ;;  %v4977_v58 = vpop.f32.mrf.mxu2 }
 0x765   : > { %v5477_v1 = vrot.slane %v5380_v31, 1  ;;  %v5057_v60 = vadd.f32 %v8893_v51, %v5017_v18  ;;  %v5727_v20 = vmax.f32 %v9049_v52, %v9099_v55  ;;  %v5723_v52 = vmax.f32 %v8968_v45, %v9046_v50  ;;  %v5756_v45 = vld [vmem:[%s9340_s2 + $0x78] sm:$0xff]  ;;  %v5755_v50 = vld [vmem:[%s9340_s2 + $0x70] sm:$0xff]  ;;  %v5761_v55 = vld [vmem:[%s9340_s2 + $0xa0] sm:$0xff] }
 0x767   : > { %v5093_v33 = vmax.f32 %v5057_v60, 0.0  ;;  %v5478_v16 = vsel %vm5427_vm13, %v5475_v34, %v5477_v1 }
 0x768   : > { %v9105_v13 = vmax.f32 %v5379_v49, %v5478_v16 }
 0x769   : > { %v5112_v10 = vpack.c.bf16 %v5093_v33, %v5092_v40 }
 0x76a   : > { %v5649_v48 = vrot.slane %v9105_v13, 2 }
 0x76b   : > { %6088 = vmatmul.msk.bf16.gmra.mxu3 %vm2833_vm4, %v5112_v10 }
 0x76c   : > { %v9110_v47 = vsel %vm5605_vm14, %v5647_v6, %v5649_v48 }
 0x76d   : > { %v5728_v12 = vmax.f32 %v9066_v62, %v9110_v47  ;;  %v5725_v62 = vmax.f32 %v8975_v22, %v9072_v37  ;;  %v5752_v22 = vld [vmem:[%s9340_s2 + $0x58] sm:$0xff]  ;;  %v5758_v37 = vld [vmem:[%s9340_s2 + $0x88] sm:$0xff] }
 0x76e   : > { %v5754_v47 = vld [vmem:[%s9340_s2 + $0x68] sm:$0xff] }
 0x77e   : > { %v5250_v26 = vpop.f32.mrf.mxu3 }
 0x77f   : > { %v5305_v17 = vmul.f32 %v8928_v32, %v5250_v26 }
 0x780   : > { %v4876_v57 = vpop.f32.mrf.mxu1 }
 0x781   : > { %v5345_v23 = vadd.f32 %v8938_v44, %v5305_v17  ;;  %v4976_v21 = vadd.f32 %v4975_v54, %v4876_v57 }
 0x783   : > { %v5381_v4 = vmax.f32 %v5345_v23, 0.0  ;;  %v5018_v15 = vmul.f32 %v8886_v5, %v4976_v21 }
 0x785   : > { %v5479_v35 = vrot.slane %v5381_v4, 1  ;;  %v5058_v14 = vadd.f32 %v8893_v51, %v5018_v15 }
 0x786   : > { %v5252_v27 = vpop.f32.mrf.mxu3 }
 0x787   : > { %v5306_v11 = vmul.f32 %v8928_v32, %v5252_v27  ;;  %v5480_v46 = vsel %vm5427_vm13, %v5477_v1, %v5479_v35  ;;  %v5094_v43 = vmax.f32 %v5058_v14, 0.0 }
 0x788   : > { %v4878_v25 = vpop.f32.mrf.mxu1  ;;  %v9119_v61 = vmax.f32 %v5380_v31, %v5480_v46 }
 0x789   : > { %v5346_v0 = vadd.f32 %v8938_v44, %v5306_v11  ;;  %v4978_v41 = vadd.f32 %v4977_v58, %v4878_v25 }
 0x78a   : > { %v5651_v63 = vrot.slane %v9119_v61, 2 }
 0x78b   : > { %v5382_v49 = vmax.f32 %v5346_v0, 0.0  ;;  %v5019_v3 = vmul.f32 %v8886_v5, %v4978_v41 }
 0x78c   : > { %v9126_v34 = vsel %vm5605_vm14, %v5649_v48, %v5651_v63 }
 0x78d   : > { %v5481_v7 = vrot.slane %v5382_v49, 1  ;;  %v5059_v19 = vadd.f32 %v8893_v51, %v5019_v3  ;;  %v5729_v24 = vmax.f32 %v9078_v42, %v9126_v34  ;;  %v5742_v42 = vld [vmem:[%s9340_s2 + $0x8] sm:$0xff]  ;;  %v5763_v34 = vld [vmem:[%s9340_s2 + $0xb0] sm:$0xff] }
 0x78f   : > { %v5095_v36 = vmax.f32 %v5059_v19, 0.0  ;;  %v5482_v30 = vsel %vm5427_vm13, %v5479_v35, %v5481_v7 }
 0x790   : > { %v9132_v29 = vmax.f32 %v5381_v4, %v5482_v30 }
 0x791   : > { %v5113_v56 = vpack.c.bf16 %v5095_v36, %v5094_v43 }
 0x792   : > { %v5653_v6 = vrot.slane %v9132_v29, 2 }
 0x793   : > { %6089 = vmatmul.msk.bf16.gmra.mxu3 %vm2833_vm4, %v5113_v56 }
 0x794   : > { %v9137_v5 = vsel %vm5605_vm14, %v5651_v63, %v5653_v6 }
 0x795   : > { %v5730_v51 = vmax.f32 %v9092_v28, %v9137_v5  ;;  %v5749_v28 = vld [vmem:[%s9340_s2 + $0x40] sm:$0xff] }
 0x7a6   : > { %v5255_v8 = vpop.f32.mrf.mxu3 }
 0x7a7   : > { %v5307_v31 = vmul.f32 %v8928_v32, %v5255_v8 }
 0x7a9   : > { %v5347_v18 = vadd.f32 %v8938_v44, %v5307_v31 }
 0x7ab   : > { %v5383_v1 = vmax.f32 %v5347_v18, 0.0 }
 0x7ad   : > { %v5483_v60 = vrot.slane %v5383_v1, 1 }
 0x7ae   : > { %v5257_v40 = vpop.f32.mrf.mxu3 }
 0x7af   : > { %v5308_v33 = vmul.f32 %v8928_v32, %v5257_v40  ;;  %v5484_v16 = vsel %vm5427_vm13, %v5481_v7, %v5483_v60 }
 0x7b0   : > { %v9145_v10 = vmax.f32 %v5382_v49, %v5484_v16 }
 0x7b1   : > { %v5348_v48 = vadd.f32 %v8938_v44, %v5308_v33 }
 0x7b2   : > { %v5655_v54 = vrot.slane %v9145_v10, 2 }
 0x7b3   : > { %v5384_v26 = vmax.f32 %v5348_v48, 0.0 }
 0x7b4   : > { %v9150_v17 = vsel %vm5605_vm14, %v5653_v6, %v5655_v54 }
 0x7b5   : > { %v5485_v57 = vrot.slane %v5384_v26, 1  ;;  %v5731_v23 = vmax.f32 %v9105_v13, %v9150_v17  ;;  %v5750_v13 = vld [vmem:[%s9340_s2 + $0x48] sm:$0xff] }
 0x7b7   : > { %v5486_v4 = vsel %vm5427_vm13, %v5483_v60, %v5485_v57 }
 0x7b8   : > { %v9155_v21 = vmax.f32 %v5383_v1, %v5486_v4 }
 0x7ba   : > { %v5657_v35 = vrot.slane %v9155_v21, 2 }
 0x7bc   : > { %v9159_v27 = vsel %vm5605_vm14, %v5655_v54, %v5657_v35 }
 0x7bd   : > { %v5732_v15 = vmax.f32 %v9119_v61, %v9159_v27  ;;  %v5760_v61 = vld [vmem:[%s9340_s2 + $0x98] sm:$0xff] }
 0x7c7   : > { %v5260_v11 = vpop.f32.mrf.mxu3 }
 0x7c8   : > { %v5309_v46 = vmul.f32 %v8928_v32, %v5260_v11 }
 0x7ca   : > { %v5349_v58 = vadd.f32 %v8938_v44, %v5309_v46 }
 0x7cc   : > { %v5385_v25 = vmax.f32 %v5349_v58, 0.0 }
 0x7ce   : > { %v5487_v0 = vrot.slane %v5385_v25, 1 }
 0x7cf   : > { %v5262_v7 = vpop.f32.mrf.mxu3 }
 0x7d0   : > { %v5488_v41 = vsel %vm5427_vm13, %v5485_v57, %v5487_v0  ;;  %v5310_v6 = vmul.f32 %v8928_v32, %v5262_v7 }
 0x7d1   : > { %v9166_v63 = vmax.f32 %v5384_v26, %v5488_v41 }
 0x7d2   : > { %v5350_v60 = vadd.f32 %v8938_v44, %v5310_v6 }
 0x7d3   : > { %v5659_v14 = vrot.slane %v9166_v63, 2 }
 0x7d4   : > { %v5386_v26 = vmax.f32 %v5350_v60, 0.0 }
 0x7d5   : > { %v9172_v49 = vsel %vm5605_vm14, %v5657_v35, %v5659_v14 }
 0x7d6   : > { %v5733_v3 = vmax.f32 %v9132_v29, %v9172_v49  ;;  %v5489_v58 = vrot.slane %v5386_v26, 1 }
 0x7ee   : > { %v5265_v19 = vpop.f32.mrf.mxu3 }
 0x7ef   : > { %v5311_v30 = vmul.f32 %v8928_v32, %v5265_v19 }
 0x7f1   : > { %v5351_v18 = vadd.f32 %v8938_v44, %v5311_v30 }
 0x7f3   : > { %v5387_v16 = vmax.f32 %v5351_v18, 0.0 }
 0x7f5   : > { %v5491_v35 = vrot.slane %v5387_v16, 1 }
 0x7f6   : > { %v5267_v43 = vpop.f32.mrf.mxu3 }
 0x7f7   : > { %v5312_v36 = vmul.f32 %v8928_v32, %v5267_v43 }
 0x7f9   : > { %v5352_v8 = vadd.f32 %v8938_v44, %v5312_v36  ;;  %v5492_v36 = vsel %vm5427_vm13, %v5489_v58, %v5491_v35 }
 0x7fb   : > { %v5388_v40 = vmax.f32 %v5352_v8, 0.0  ;;  %v5490_v8 = vsel %vm5427_vm13, %v5487_v0, %v5489_v58 }
 0x7fd   : > { %v5493_v57 = vrot.slane %v5388_v40, 1 }
 0x7ff   : > { %v5494_v7 = vsel %vm5427_vm13, %v5491_v35, %v5493_v57 }
 0x800   : > { %v5567_v30 = vmax.f32 %v5387_v16, %v5494_v7 }
 0x802   : > { %v5665_v60 = vrot.slane %v5567_v30, 2 }
 0x816   : > { %v5270_v56 = vpop.f32.mrf.mxu3 }
 0x817   : > { %v5313_v31 = vmul.f32 %v8928_v32, %v5270_v56 }
 0x819   : > { %v5353_v1 = vadd.f32 %v8938_v44, %v5313_v31 }
 0x81b   : > { %v5389_v33 = vmax.f32 %v5353_v1, 0.0 }
 0x81d   : > { %v5495_v48 = vrot.slane %v5389_v33, 1 }
 0x81e   : > { %v5272_v54 = vpop.f32.mrf.mxu3 }
 0x81f   : > { %v5314_v4 = vmul.f32 %v8928_v32, %v5272_v54  ;;  %v5496_v46 = vsel %vm5427_vm13, %v5493_v57, %v5495_v48  ;;  %v5566_v32 = vmax.f32 %v5386_v26, %v5492_v36  ;;  %v5565_v54 = vmax.f32 %v5385_v25, %v5490_v8  ;;  %v5743_v36 = vld [vmem:[%s9340_s2 + $0x10] sm:$0xff] }
 0x820   : > { %v5568_v19 = vmax.f32 %v5388_v40, %v5496_v46 }
 0x821   : > { %v5354_v11 = vadd.f32 %v8938_v44, %v5314_v4  ;;  %v5663_v57 = vrot.slane %v5566_v32, 2  ;;  %v5661_v26 = vrot.slane %v5565_v54, 2 }
 0x822   : > { %v5667_v18 = vrot.slane %v5568_v19, 2 }
 0x823   : > { %v5390_v41 = vmax.f32 %v5354_v11, 0.0  ;;  %v5666_v11 = vsel %vm5605_vm14, %v5663_v57, %v5665_v60  ;;  %v5664_v46 = vsel %vm5605_vm14, %v5661_v26, %v5663_v57 }
 0x824   : > { %v5668_v16 = vsel %vm5605_vm14, %v5665_v60, %v5667_v18  ;;  %v5736_v58 = vmax.f32 %v9166_v63, %v5666_v11  ;;  %v5735_v7 = vmax.f32 %v9155_v21, %v5664_v46  ;;  %v5746_v21 = vld [vmem:[%s9340_s2 + $0x28] sm:$0xff] }
 0x825   : > { %v5497_v43 = vrot.slane %v5390_v41, 1  ;;  %v5737_v25 = vmax.f32 %v5565_v54, %v5668_v16 }
 0x827   : > { %v5570_v56 = vmax.f32 %v5390_v41, %v5497_v43  ;;  %v5498_v6 = vsel %vm5427_vm13, %v5495_v48, %v5497_v43  ;;  %v5662_v41 = vsel %vm5605_vm14, %v5659_v14, %v5661_v26 }
 0x828   : > { %v5569_v31 = vmax.f32 %v5389_v33, %v5498_v6  ;;  %v5741_v33 = vld [vmem:[%s9340_s2] sm:$0xff]  ;;  %v5734_v43 = vmax.f32 %v9145_v10, %v5662_v41  ;;  %v5747_v10 = vld [vmem:[%s9340_s2 + $0x30] sm:$0xff] }
 0x829   : > { %v5671_v44 = vrot.slane %v5570_v56, 2  ;;  %5810 = vmatmul.f32.vlgmr.msrb.gmra.mxu2 %v5741_v33 }
 0x82a   : > { %v5669_v1 = vrot.slane %v5569_v31, 2 }
 0x82b   : > { %v5740_v4 = vmax.f32 %v5568_v19, %v5671_v44  ;;  %v5744_v19 = vld [vmem:[%s9340_s2 + $0x18] sm:$0xff] }
 0x82c   : > { %v5670_v40 = vsel %vm5605_vm14, %v5667_v18, %v5669_v1  ;;  %v5672_v35 = vsel %vm5605_vm14, %v5669_v1, %v5671_v44 }
 0x82d   : > { %6090 = vmatpush.msk.msrb.mxu0 %vm5790_vm8, %v5740_v4  ;;  %6114 = vmatpush.msk.msrb.mxu1 %vm5790_vm8, %v5740_v4  ;;  %v5738_v48 = vmax.f32 %v5566_v32, %v5670_v40  ;;  %v5739_v0 = vmax.f32 %v5567_v30, %v5672_v35 }
 0x82f   : > { %5835 = vmatpush.msrb.mxu3 %v5738_v48  ;;  %5891 = vmatpush.msrb.mxu0 %v5739_v0 }
 0x830   : > { %6115 = vmatpush.msrb.mxu1 %v5739_v0  ;;  %6091 = vmatmul.msk.f32.vlgmr.msrb.gmra.mxu0 %vm5765_vm9, %v5743_v36 }
 0x831   : > { %5836 = vmatpush.msrb.mxu3 %v5737_v25  ;;  %5813 = vmatmul.f32.gmra.mxu2 %v5744_v19 }
 0x833   : > { %5837 = vmatpush.msrb.mxu3 %v5736_v58 }
 0x835   : > { %5838 = vmatpush.msrb.mxu3 %v5735_v7 }
 0x837   : > { %5839 = vmatpush.msrb.mxu3 %v5734_v43 }
 0x838   : > { %6092 = vmatmul.msk.f32.gmra.mxu0 %vm5765_vm9, %v5746_v21 }
 0x839   : > { %5840 = vmatpush.msrb.mxu3 %v5733_v3  ;;  %5816 = vmatmul.f32.gmra.mxu2 %v5747_v10 }
 0x83b   : > { %5841 = vmatpush.msrb.mxu3 %v5732_v15 }
 0x83d   : > { %5842 = vmatpush.msrb.mxu3 %v5731_v23 }
 0x83f   : > { %5843 = vmatpush.msrb.mxu3 %v5730_v51 }
 0x840   : > { %6093 = vmatmul.msk.f32.gmra.mxu0 %vm5765_vm9, %v5749_v28 }
 0x841   : > { %5844 = vmatpush.msrb.mxu3 %v5729_v24  ;;  %5819 = vmatmul.f32.gmra.mxu2 %v5750_v13 }
 0x843   : > { %5845 = vmatpush.msrb.mxu3 %v5728_v12  ;;  %v5757_v12 = vld [vmem:[%s9340_s2 + $0x80] sm:$0xff] }
 0x845   : > { %5846 = vmatpush.msrb.mxu3 %v5727_v20  ;;  %v5764_v20 = vld [vmem:[%s9340_s2 + $0xb8] sm:$0xff] }
 0x846   : > { %6098 = vmatmul.msk.f32.vlgmr.msrb.gmra.mxu1 %vm5765_vm9, %v5764_v20 }
 0x847   : > { %5847 = vmatpush.msrb.mxu3 %v5726_v53  ;;  %v5762_v53 = vld [vmem:[%s9340_s2 + $0xa8] sm:$0xff] }
 0x848   : > { %6094 = vmatmul.msk.f32.gmra.mxu0 %vm5765_vm9, %v5752_v22 }
 0x849   : > { %5848 = vmatpush.msrb.mxu3 %v5725_v62  ;;  %5822 = vmatmul.f32.gmra.mxu2 %v5753_v39 }
 0x84b   : > { %5849 = vmatpush.msrb.mxu3 %v5724_v38  ;;  %v5759_v38 = vld [vmem:[%s9340_s2 + $0x90] sm:$0xff] }
 0x84d   : > { %5850 = vmatpush.msrb.mxu3 %v5723_v52 }
 0x84e   : > { %5851 = vmatmul.f32.vlgmr.msrb.gmra.mxu3 %v5742_v42 }
 0x850   : > { %6095 = vmatmul.msk.f32.gmra.mxu0 %vm5765_vm9, %v5755_v50 }
 0x851   : > { %5825 = vmatmul.f32.gmra.mxu2 %v5756_v45 }
 0x856   : > { %5854 = vmatmul.f32.gmra.mxu3 %v5745_v2 }
 0x858   : > { %6096 = vmatmul.msk.f32.gmra.mxu0 %vm5765_vm9, %v5758_v37 }
 0x859   : > { %5828 = vmatmul.f32.gmra.mxu2 %v5759_v38 }
 0x85e   : > { %5857 = vmatmul.f32.gmra.mxu3 %v5748_v9 }
 0x860   : > { %6097 = vmatmul.msk.f32.gmra.mxu0 %vm5765_vm9, %v5761_v55 }
 0x861   : > { %5831 = vmatmul.f32.gmra.mxu2 %v5762_v53 }
 0x866   : > { %5860 = vmatmul.f32.gmra.mxu3 %v5751_v59 }
 0x86e   : > { %5863 = vmatmul.f32.gmra.mxu3 %v5754_v47 }
 0x876   : > { %5866 = vmatmul.f32.gmra.mxu3 %v5757_v12 }
 0x87e   : > { %5869 = vmatmul.f32.gmra.mxu3 %v5760_v61 }
 0x886   : > { %5872 = vmatmul.f32.gmra.mxu3 %v5763_v34 }
 0x8ac   : > { %v5811_v24 = vpop.f32.mrf.mxu2 }
 0x8ad   : > { %v5893_v29 = vpop.f32.mrf.mxu0 }
 0x8b4   : > { %v5814_v5 = vpop.f32.mrf.mxu2 }
 0x8b5   : > { %v5896_v51 = vpop.f32.mrf.mxu0 }
 0x8bc   : > { %v5817_v15 = vpop.f32.mrf.mxu2 }
 0x8bd   : > { %v5899_v14 = vpop.f32.mrf.mxu0 }
 0x8c3   : > { %v5914_v7 = vpop.f32.mrf.mxu1 }
 0x8c4   : > { %v5820_v30 = vpop.f32.mrf.mxu2 }
 0x8c5   : > { %v5902_v8 = vpop.f32.mrf.mxu0 }
 0x8cc   : > { %v5823_v18 = vpop.f32.mrf.mxu2 }
 0x8cd   : > { %v5905_v60 = vpop.f32.mrf.mxu0 }
 0x8d1   : > { %v5852_v17 = vpop.f32.mrf.mxu3 }
 0x8d2   : > { %v5853_v23 = vadd.f32 %v5852_v17, %v5811_v24 }
 0x8d4   : > { %v5894_v27 = vadd.f32 %v5893_v29, %v5853_v23  ;;  %v5826_v57 = vpop.f32.mrf.mxu2 }
 0x8d5   : > { %v5908_v35 = vpop.f32.mrf.mxu0 }
 0x8d6   : > { %5917 = vst.msk [vmem:[%s9317_s20] sm:$0xff] %vm2833_vm4, %v5894_v27 }
 0x8d9   : > { %v5855_v63 = vpop.f32.mrf.mxu3 }
 0x8da   : > { %v5856_v49 = vadd.f32 %v5855_v63, %v5814_v5 }
 0x8dc   : > { %v5897_v3 = vadd.f32 %v5896_v51, %v5856_v49  ;;  %v5829_v33 = vpop.f32.mrf.mxu2 }
 0x8dd   : > { %v5911_v11 = vpop.f32.mrf.mxu0 }
 0x8de   : > { %5918 = vst.msk [vmem:[%s9317_s20 + $0x8] sm:$0xff] %vm2833_vm4, %v5897_v3 }
 0x8e1   : > { %v5858_v56 = vpop.f32.mrf.mxu3 }
 0x8e2   : > { %v5859_v6 = vadd.f32 %v5858_v56, %v5817_v15 }
 0x8e4   : > { %v5900_v32 = vadd.f32 %v5899_v14, %v5859_v6  ;;  %v5832_v58 = vpop.f32.mrf.mxu2 }
 0x8e6   : > { %5919 = vst.msk [vmem:[%s9317_s20 + $0x10] sm:$0xff] %vm2833_vm4, %v5900_v32 }
 0x8e9   : > { %v5861_v31 = vpop.f32.mrf.mxu3 }
 0x8ea   : > { %v5862_v44 = vadd.f32 %v5861_v31, %v5820_v30 }
 0x8ec   : > { %v5903_v1 = vadd.f32 %v5902_v8, %v5862_v44 }
 0x8ee   : > { %5920 = vst.msk [vmem:[%s9317_s20 + $0x18] sm:$0xff] %vm2833_vm4, %v5903_v1 }
 0x8f1   : > { %v5864_v54 = vpop.f32.mrf.mxu3 }
 0x8f2   : > { %v5865_v4 = vadd.f32 %v5864_v54, %v5823_v18 }
 0x8f4   : > { %v5906_v40 = vadd.f32 %v5905_v60, %v5865_v4 }
 0x8f6   : > { %5921 = vst.msk [vmem:[%s9317_s20 + $0x20] sm:$0xff] %vm2833_vm4, %v5906_v40 }
 0x8f9   : > { %v5867_v16 = vpop.f32.mrf.mxu3 }
 0x8fa   : > { %v5868_v48 = vadd.f32 %v5867_v16, %v5826_v57 }
 0x8fc   : > { %v5909_v0 = vadd.f32 %v5908_v35, %v5868_v48 }
 0x8fe   : > { %5922 = vst.msk [vmem:[%s9317_s20 + $0x28] sm:$0xff] %vm2833_vm4, %v5909_v0 }
 0x901   : > { %v5870_v26 = vpop.f32.mrf.mxu3 }
 0x902   : > { %v5871_v25 = vadd.f32 %v5870_v26, %v5829_v33 }
 0x904   : > { %v5912_v46 = vadd.f32 %v5911_v11, %v5871_v25 }
 0x906   : > { %5923 = vst.msk [vmem:[%s9317_s20 + $0x30] sm:$0xff] %vm2833_vm4, %v5912_v46 }
 0x909   : > { %v5873_v41 = vpop.f32.mrf.mxu3 }
 0x90a   : > { %v5874_v19 = vadd.f32 %v5873_v41, %v5832_v58 }
 0x90c   : > { %v5915_v43 = vadd.f32 %v5914_v7, %v5874_v19 }
 0x90e   : > { %5924 = vst.msk [vmem:[%s9317_s20 + $0x38] sm:$0xff] %vm2833_vm4, %v5915_v43 }
 0x90f PF: > { %s22_s21 = sadd.s32 1, %s6165_s21  }
 0x910   : > { %p19_p4 = scmp.ge.s32.totalorder %s22_s21, 4  }
 0x912   :  { %21 = sbr.rel (!%p19_p4) target bundleno = 1 (0x1), region = 98 }

</bundles_post_ra>
